<compile_context>
chip_gen: v7x
topology: tpu7x:2x2x1
jax: 0.10.0
libtpu: 0.0.40
codegen_flags: <defaults>
</compile_context>

<pallas_src>
import functools

import jax
import jax.numpy as jnp
from jax.experimental import pallas as pl
from jax.experimental.pallas import tpu as pltpu


# ---------------------------------------------------------------------------
# Pallas kernels
# ---------------------------------------------------------------------------
def _conv_kernel(a_ref, b_ref, bias_ref, o_ref, *, row_offsets, m):
    """kh-tap accumulated matmul + folded-BN bias + ReLU.

    a_ref:    (L, K)        bf16  folded/flattened input rows for one image
    b_ref:    (kh, K, Cout) bf16  weights with BN scale folded in
    bias_ref: (1, Cout)     f32   folded BN bias
    o_ref:    (m, Cout)     f32   output rows (m = Ho*Wo)
    """
    acc = jnp.zeros(o_ref.shape, jnp.float32)
    for t, r0 in enumerate(row_offsets):        # static loop over kh taps
        acc = acc + jnp.dot(a_ref[r0:r0 + m, :], b_ref[t],
                            preferred_element_type=jnp.float32)
    o_ref[...] = jnp.maximum(acc + bias_ref[...], 0.0).astype(o_ref.dtype)


def _maxpool_kernel(a_ref, o_ref, *, row_offsets, m, c, kw):
    """3x3/s2 max-pool: 9-tap max over contiguous row windows x channel groups.

    a_ref: (L, kw*C) f32  folded/flattened input rows for one image
    o_ref: (m, C)    f32
    """
    acc = None
    for r0 in row_offsets:                      # kh taps (row windows)
        for dj in range(kw):                    # kw taps (lane-aligned groups)
            v = a_ref[r0:r0 + m, dj * c:(dj + 1) * c]
            acc = v if acc is None else jnp.maximum(acc, v)
    o_ref[...] = acc


# ---------------------------------------------------------------------------
# XLA-side layout prep (cheap: <= ~1.5-3x of the input, vs 9x im2col before)
# ---------------------------------------------------------------------------
def _prep_folded_input(x_nhwc, kh, kw, stride, padding):
    """Fold kw taps (+W-stride) into channels, reorder H rows by stride phase,
    and flatten (H, Wo) so each kh tap is a *contiguous* row window of length
    Ho*Wo.  Returns (A, row_offsets, (Ho, Wo)) with A of shape (N, L, kw*C).
    """
    N, H, W, C = x_nhwc.shape
    if padding:
        x_nhwc = jnp.pad(
            x_nhwc, ((0, 0), (padding, padding), (padding, padding), (0, 0)))
    Hp, Wp = H + 2 * padding, W + 2 * padding
    Ho = (Hp - kh) // stride + 1
    Wo = (Wp - kw) // stride + 1

    # kw taps -> channel groups (W-stride applied here, in XLA).
    cols = [x_nhwc[:, :, dj:dj + stride * (Wo - 1) + 1:stride, :]
            for dj in range(kw)]
    xw = cols[0] if kw == 1 else jnp.concatenate(cols, axis=-1)   # (N,Hp,Wo,kw*C)

    # Reorder H rows so rows needed by each kh tap are contiguous after flatten.
    if stride == 1:
        xh = xw
        row_offsets = tuple(di * Wo for di in range(kh))
    else:
        phases = [xw[:, p::stride] for p in range(stride)]
        counts = [p.shape[1] for p in phases]
        base = [0]
        for cnt in counts[:-1]:
            base.append(base[-1] + cnt)
        for di in range(kh):
            assert di // stride + Ho <= counts[di % stride], "phase window OOB"
        xh = jnp.concatenate(phases, axis=1)
        row_offsets = tuple((base[di % stride] + di // stride) * Wo
                            for di in range(kh))

    L = xh.shape[1] * Wo
    A = xh.reshape(N, L, kw * C)
    return A, row_offsets, (Ho, Wo)


# ---------------------------------------------------------------------------
# Wrappers
# ---------------------------------------------------------------------------
def bn_fold(gamma, beta, mean, var, eps=1e-3):
    scale = gamma / jnp.sqrt(var + eps)
    bias = beta - mean * scale
    return scale, bias


def conv_bn_relu(x_nhwc, w_oihw, scale, bias, *, stride, padding):
    """Conv2d(bias=False) + folded BN + ReLU.  NHWC in / NHWC out."""
    N = x_nhwc.shape[0]
    Cout, Cin, kh, kw = w_oihw.shape
    assert Cin == x_nhwc.shape[-1]

    A, row_offsets, (Ho, Wo) = _prep_folded_input(x_nhwc, kh, kw, stride, padding)
    A = A.astype(jnp.bfloat16)
    L, K = A.shape[1], A.shape[2]

    # (Cout,Cin,kh,kw) -> (kh, kw*Cin, Cout), matching the dj-major/c-minor
    # channel fold; BN scale folded into the weight columns.
    B = jnp.transpose(w_oihw, (2, 3, 1, 0)).reshape(kh, kw * Cin, Cout)
    B = (B * scale.reshape(1, 1, Cout)).astype(jnp.bfloat16)
    bias2d = bias.reshape(1, Cout).astype(jnp.float32)

    M = Ho * Wo
    kernel = functools.partial(_conv_kernel, row_offsets=row_offsets, m=M)
    out = pl.pallas_call(
        kernel,
        out_shape=jax.ShapeDtypeStruct((N, M, Cout), jnp.float32),
        grid=(N,),
        in_specs=[
            pl.BlockSpec((None, L, K), lambda n: (n, 0, 0)),       # per-image A
            pl.BlockSpec((kh, K, Cout), lambda n: (0, 0, 0)),      # resident W
            pl.BlockSpec((1, Cout), lambda n: (0, 0)),             # resident bias
        ],
        out_specs=pl.BlockSpec((None, M, Cout), lambda n: (n, 0, 0)),
        compiler_params=pltpu.CompilerParams(dimension_semantics=("parallel",)),
    )(A, B, bias2d)
    return out.reshape(N, Ho, Wo, Cout)


def maxpool3x3s2(x_nhwc):
    """MaxPool2d(kernel_size=3, stride=2), no padding.  NHWC in / NHWC out."""
    N, H, W, C = x_nhwc.shape
    A, row_offsets, (Ho, Wo) = _prep_folded_input(x_nhwc, 3, 3, 2, 0)
    A = A.astype(jnp.float32)            # keep pooling exact in f32
    L, K = A.shape[1], A.shape[2]
    M = Ho * Wo
    kernel = functools.partial(_maxpool_kernel, row_offsets=row_offsets,
                               m=M, c=C, kw=3)
    out = pl.pallas_call(
        kernel,
        out_shape=jax.ShapeDtypeStruct((N, M, C), jnp.float32),
        grid=(N,),
        in_specs=[pl.BlockSpec((None, L, K), lambda n: (n, 0, 0))],
        out_specs=pl.BlockSpec((None, M, C), lambda n: (n, 0, 0)),
        compiler_params=pltpu.CompilerParams(dimension_semantics=("parallel",)),
    )(A)
    return out.reshape(N, Ho, Wo, C)


def mixed_6a(x_nchw, params):
    """Forward pass of Mixed_6a.  Input/output are NCHW (PyTorch convention)."""
    x = jnp.transpose(x_nchw, (0, 2, 3, 1))  # -> NHWC

    # branch0: 3x3/s2 conv 256->384
    s, b = bn_fold(*params["b0_bn"])
    x0 = conv_bn_relu(x, params["b0_w"], s, b, stride=2, padding=0)

    # branch1: 1x1 conv 256->192, 3x3/s1/p1 conv 192->192, 3x3/s2 conv 192->256
    s, b = bn_fold(*params["b1_0_bn"])
    t = conv_bn_relu(x, params["b1_0_w"], s, b, stride=1, padding=0)
    s, b = bn_fold(*params["b1_1_bn"])
    t = conv_bn_relu(t, params["b1_1_w"], s, b, stride=1, padding=1)
    s, b = bn_fold(*params["b1_2_bn"])
    x1 = conv_bn_relu(t, params["b1_2_w"], s, b, stride=2, padding=0)

    # branch2: MaxPool2d(3, stride=2)
    x2 = maxpool3x3s2(x)

    # TODO(synk): optionally fuse branch1 into one pallas_call and write column
    # slices of a single (M, 896) output to drop the XLA concat copy.
    out = jnp.concatenate([x0, x1, x2], axis=-1)        # channels-last concat
    return jnp.transpose(out, (0, 3, 1, 2))             # -> NCHW


# ---------------------------------------------------------------------------
# Deterministic synthetic parameters + smoke test
# ---------------------------------------------------------------------------
if __name__ == "__main__":
    key = jax.random.PRNGKey(0)
    ks = jax.random.split(key, 10)

    N, C, H, W = 2, 256, 11, 11          # in_planes is fixed to 256 by the module
    x = jax.random.normal(ks[0], (N, C, H, W), jnp.float32)

    def conv_w(k, cout, cin, kh, kw):
        return jax.random.normal(k, (cout, cin, kh, kw), jnp.float32) * 0.05

    def bn_p(k, c):
        k1, k2, k3, k4 = jax.random.split(k, 4)
        gamma = jax.random.uniform(k1, (c,), jnp.float32, 0.5, 1.5)
        beta = jax.random.normal(k2, (c,), jnp.float32) * 0.1
        mean = jax.random.normal(k3, (c,), jnp.float32) * 0.1
        var = jax.random.uniform(k4, (c,), jnp.float32, 0.5, 1.5)
        return (gamma, beta, mean, var)

    params = {
        "b0_w": conv_w(ks[1], 384, 256, 3, 3), "b0_bn": bn_p(ks[2], 384),
        "b1_0_w": conv_w(ks[3], 192, 256, 1, 1), "b1_0_bn": bn_p(ks[4], 192),
        "b1_1_w": conv_w(ks[5], 192, 192, 3, 3), "b1_1_bn": bn_p(ks[6], 192),
        "b1_2_w": conv_w(ks[7], 256, 192, 3, 3), "b1_2_bn": bn_p(ks[8], 256),
    }

    out = jax.jit(mixed_6a)(x, params)
    jax.block_until_ready(out)

    Ho = (H - 3) // 2 + 1
    Wo = (W - 3) // 2 + 1
    assert out.shape == (N, 384 + 256 + 256, Ho, Wo), out.shape
    assert out.dtype == jnp.float32
    print("KERNEL_OK")
</pallas_src>

<mosaic_0001>
module attributes {stable_mosaic.version = 11 : i64} {
  func.func @_conv_kernel(%arg0: i32, %arg1: memref<1x121x256xbf16, #tpu.memory_space<vmem>>, %arg2: memref<1x256x192xbf16, #tpu.memory_space<vmem>>, %arg3: memref<1x192xf32, #tpu.memory_space<vmem>>, %arg4: memref<1x121x192xf32, #tpu.memory_space<vmem>>) attributes {dimension_semantics = [#tpu.dimension_semantics<parallel>], iteration_bounds = array<i64: 2>, scalar_prefetch = 0 : i64, scratch_operands = 0 : i64, tpu.core_type = #tpu.core_type<tc>, window_params = [{transform_indices = @transform_0, window_bounds = array<i64: 1, 121, 256>}, {pipeline_mode = #tpu.pipeline_mode<synchronous>, transform_indices = @transform_1, window_bounds = array<i64: 1, 256, 192>}, {pipeline_mode = #tpu.pipeline_mode<synchronous>, transform_indices = @transform_2, window_bounds = array<i64: 1, 192>}, {transform_indices = @transform_3, window_bounds = array<i64: 1, 121, 192>}]} {
    %cst = arith.constant 0.000000e+00 : f32
    %0 = vector.broadcast %cst : f32 to vector<121x192xf32>
    %c0 = arith.constant 0 : index
    %c0_0 = arith.constant 0 : index
    %c0_1 = arith.constant 0 : index
    %1 = vector.load %arg1[%c0, %c0_0, %c0_1] : memref<1x121x256xbf16, #tpu.memory_space<vmem>>, vector<1x121x256xbf16>
    %2 = vector.shape_cast %1 : vector<1x121x256xbf16> to vector<121x256xbf16>
    %c0_2 = arith.constant 0 : index
    %c0_3 = arith.constant 0 : index
    %c0_4 = arith.constant 0 : index
    %3 = vector.load %arg2[%c0_2, %c0_3, %c0_4] : memref<1x256x192xbf16, #tpu.memory_space<vmem>>, vector<1x256x192xbf16>
    %4 = vector.shape_cast %3 : vector<1x256x192xbf16> to vector<256x192xbf16>
    %cst_5 = arith.constant dense<0.000000e+00> : vector<121x192xf32>
    %5 = tpu.matmul %2, %4, %cst_5 {dimension_numbers = #tpu.dot_dimension_numbers<[1], [0], [0], [1], [0, 0, 1, 1], [], []>} : vector<121x256xbf16>, vector<256x192xbf16>, vector<121x192xf32> -> vector<121x192xf32>
    %6 = arith.addf %0, %5 : vector<121x192xf32>
    %c0_6 = arith.constant 0 : index
    %c0_7 = arith.constant 0 : index
    %7 = vector.load %arg3[%c0_6, %c0_7] : memref<1x192xf32, #tpu.memory_space<vmem>>, vector<1x192xf32>
    %8 = vector.broadcast %7 : vector<1x192xf32> to vector<121x192xf32>
    %9 = arith.addf %6, %8 : vector<121x192xf32>
    %cst_8 = arith.constant 0.000000e+00 : f32
    %10 = vector.broadcast %cst_8 : f32 to vector<121x192xf32>
    %11 = arith.maximumf %9, %10 : vector<121x192xf32>
    %c0_9 = arith.constant 0 : index
    %c0_10 = arith.constant 0 : index
    %c0_11 = arith.constant 0 : index
    %12 = vector.load %arg4[%c0_9, %c0_10, %c0_11] : memref<1x121x192xf32, #tpu.memory_space<vmem>>, vector<1x121x192xf32>
    %13 = vector.shape_cast %12 : vector<1x121x192xf32> to vector<121x192xf32>
    %14 = vector.shape_cast %11 : vector<121x192xf32> to vector<1x121x192xf32>
    tpu.vector_store %arg4[%c0_9, %c0_10, %c0_11], %14 {strides = array<i32>} : memref<1x121x192xf32, #tpu.memory_space<vmem>>, vector<1x121x192xf32>,
    return
  }
  func.func @transform_0(%arg0: i32) -> (i32, i32, i32) {
    %c0_i32 = arith.constant 0 : i32
    %c0_i32_0 = arith.constant 0 : i32
    %c0_i32_1 = arith.constant 0 : i32
    return %arg0, %c0_i32, %c0_i32_0 : i32, i32, i32
  }
  func.func @transform_1(%arg0: i32) -> (i32, i32, i32) {
    %c0_i32 = arith.constant 0 : i32
    %c0_i32_0 = arith.constant 0 : i32
    %c0_i32_1 = arith.constant 0 : i32
    %c0_i32_2 = arith.constant 0 : i32
    return %c0_i32, %c0_i32_0, %c0_i32_1 : i32, i32, i32
  }
  func.func @transform_2(%arg0: i32) -> (i32, i32) {
    %c0_i32 = arith.constant 0 : i32
    %c0_i32_0 = arith.constant 0 : i32
    %c0_i32_1 = arith.constant 0 : i32
    return %c0_i32, %c0_i32_0 : i32, i32
  }
  func.func @transform_3(%arg0: i32) -> (i32, i32, i32) {
    %c0_i32 = arith.constant 0 : i32
    %c0_i32_0 = arith.constant 0 : i32
    %c0_i32_1 = arith.constant 0 : i32
    return %arg0, %c0_i32, %c0_i32_0 : i32, i32, i32
  }
}

module attributes {stable_mosaic.version = 11 : i64} {
  func.func @_maxpool_kernel(%arg0: i32, %arg1: memref<1x55x768xf32, #tpu.memory_space<vmem>>, %arg2: memref<1x25x256xf32, #tpu.memory_space<vmem>>) attributes {dimension_semantics = [#tpu.dimension_semantics<parallel>], iteration_bounds = array<i64: 2>, scalar_prefetch = 0 : i64, scratch_operands = 0 : i64, tpu.core_type = #tpu.core_type<tc>, window_params = [{transform_indices = @transform_0, window_bounds = array<i64: 1, 55, 768>}, {transform_indices = @transform_1, window_bounds = array<i64: 1, 25, 256>}]} {
    %c0 = arith.constant 0 : index
    %c0_0 = arith.constant 0 : index
    %c0_1 = arith.constant 0 : index
    %0 = vector.load %arg1[%c0, %c0_0, %c0_1] : memref<1x55x768xf32, #tpu.memory_space<vmem>>, vector<1x25x256xf32>
    %1 = vector.shape_cast %0 : vector<1x25x256xf32> to vector<25x256xf32>
    %c0_2 = arith.constant 0 : index
    %c0_3 = arith.constant 0 : index
    %c256 = arith.constant 256 : index
    %2 = vector.load %arg1[%c0_2, %c0_3, %c256] : memref<1x55x768xf32, #tpu.memory_space<vmem>>, vector<1x25x256xf32>
    %3 = vector.shape_cast %2 : vector<1x25x256xf32> to vector<25x256xf32>
    %4 = arith.maximumf %1, %3 : vector<25x256xf32>
    %c0_4 = arith.constant 0 : index
    %c0_5 = arith.constant 0 : index
    %c512 = arith.constant 512 : index
    %5 = vector.load %arg1[%c0_4, %c0_5, %c512] : memref<1x55x768xf32, #tpu.memory_space<vmem>>, vector<1x25x256xf32>
    %6 = vector.shape_cast %5 : vector<1x25x256xf32> to vector<25x256xf32>
    %7 = arith.maximumf %4, %6 : vector<25x256xf32>
    %c0_6 = arith.constant 0 : index
    %c30 = arith.constant 30 : index
    %c0_7 = arith.constant 0 : index
    %8 = vector.load %arg1[%c0_6, %c30, %c0_7] : memref<1x55x768xf32, #tpu.memory_space<vmem>>, vector<1x25x256xf32>
    %9 = vector.shape_cast %8 : vector<1x25x256xf32> to vector<25x256xf32>
    %10 = arith.maximumf %7, %9 : vector<25x256xf32>
    %c0_8 = arith.constant 0 : index
    %c30_9 = arith.constant 30 : index
    %c256_10 = arith.constant 256 : index
    %11 = vector.load %arg1[%c0_8, %c30_9, %c256_10] : memref<1x55x768xf32, #tpu.memory_space<vmem>>, vector<1x25x256xf32>
    %12 = vector.shape_cast %11 : vector<1x25x256xf32> to vector<25x256xf32>
    %13 = arith.maximumf %10, %12 : vector<25x256xf32>
    %c0_11 = arith.constant 0 : index
    %c30_12 = arith.constant 30 : index
    %c512_13 = arith.constant 512 : index
    %14 = vector.load %arg1[%c0_11, %c30_12, %c512_13] : memref<1x55x768xf32, #tpu.memory_space<vmem>>, vector<1x25x256xf32>
    %15 = vector.shape_cast %14 : vector<1x25x256xf32> to vector<25x256xf32>
    %16 = arith.maximumf %13, %15 : vector<25x256xf32>
    %c0_14 = arith.constant 0 : index
    %c5 = arith.constant 5 : index
    %c0_15 = arith.constant 0 : index
    %17 = vector.load %arg1[%c0_14, %c5, %c0_15] : memref<1x55x768xf32, #tpu.memory_space<vmem>>, vector<1x25x256xf32>
    %18 = vector.shape_cast %17 : vector<1x25x256xf32> to vector<25x256xf32>
    %19 = arith.maximumf %16, %18 : vector<25x256xf32>
    %c0_16 = arith.constant 0 : index
    %c5_17 = arith.constant 5 : index
    %c256_18 = arith.constant 256 : index
    %20 = vector.load %arg1[%c0_16, %c5_17, %c256_18] : memref<1x55x768xf32, #tpu.memory_space<vmem>>, vector<1x25x256xf32>
    %21 = vector.shape_cast %20 : vector<1x25x256xf32> to vector<25x256xf32>
    %22 = arith.maximumf %19, %21 : vector<25x256xf32>
    %c0_19 = arith.constant 0 : index
    %c5_20 = arith.constant 5 : index
    %c512_21 = arith.constant 512 : index
    %23 = vector.load %arg1[%c0_19, %c5_20, %c512_21] : memref<1x55x768xf32, #tpu.memory_space<vmem>>, vector<1x25x256xf32>
    %24 = vector.shape_cast %23 : vector<1x25x256xf32> to vector<25x256xf32>
    %25 = arith.maximumf %22, %24 : vector<25x256xf32>
    %c0_22 = arith.constant 0 : index
    %c0_23 = arith.constant 0 : index
    %c0_24 = arith.constant 0 : index
    %26 = vector.load %arg2[%c0_22, %c0_23, %c0_24] : memref<1x25x256xf32, #tpu.memory_space<vmem>>, vector<1x25x256xf32>
    %27 = vector.shape_cast %26 : vector<1x25x256xf32> to vector<25x256xf32>
    %28 = vector.shape_cast %25 : vector<25x256xf32> to vector<1x25x256xf32>
    tpu.vector_store %arg2[%c0_22, %c0_23, %c0_24], %28 {strides = array<i32>} : memref<1x25x256xf32, #tpu.memory_space<vmem>>, vector<1x25x256xf32>,
    return
  }
  func.func @transform_0(%arg0: i32) -> (i32, i32, i32) {
    %c0_i32 = arith.constant 0 : i32
    %c0_i32_0 = arith.constant 0 : i32
    %c0_i32_1 = arith.constant 0 : i32
    return %arg0, %c0_i32, %c0_i32_0 : i32, i32, i32
  }
  func.func @transform_1(%arg0: i32) -> (i32, i32, i32) {
    %c0_i32 = arith.constant 0 : i32
    %c0_i32_0 = arith.constant 0 : i32
    %c0_i32_1 = arith.constant 0 : i32
    return %arg0, %c0_i32, %c0_i32_0 : i32, i32, i32
  }
}

module attributes {stable_mosaic.version = 11 : i64} {
  func.func @_conv_kernel(%arg0: i32, %arg1: memref<1x143x576xbf16, #tpu.memory_space<vmem>>, %arg2: memref<3x576x192xbf16, #tpu.memory_space<vmem>>, %arg3: memref<1x192xf32, #tpu.memory_space<vmem>>, %arg4: memref<1x121x192xf32, #tpu.memory_space<vmem>>) attributes {dimension_semantics = [#tpu.dimension_semantics<parallel>], iteration_bounds = array<i64: 2>, scalar_prefetch = 0 : i64, scratch_operands = 0 : i64, tpu.core_type = #tpu.core_type<tc>, window_params = [{transform_indices = @transform_0, window_bounds = array<i64: 1, 143, 576>}, {pipeline_mode = #tpu.pipeline_mode<synchronous>, transform_indices = @transform_1, window_bounds = array<i64: 3, 576, 192>}, {pipeline_mode = #tpu.pipeline_mode<synchronous>, transform_indices = @transform_2, window_bounds = array<i64: 1, 192>}, {transform_indices = @transform_3, window_bounds = array<i64: 1, 121, 192>}]} {
    %cst = arith.constant 0.000000e+00 : f32
    %0 = vector.broadcast %cst : f32 to vector<121x192xf32>
    %c0 = arith.constant 0 : index
    %c0_0 = arith.constant 0 : index
    %c0_1 = arith.constant 0 : index
    %1 = vector.load %arg1[%c0, %c0_0, %c0_1] : memref<1x143x576xbf16, #tpu.memory_space<vmem>>, vector<1x121x576xbf16>
    %2 = vector.shape_cast %1 : vector<1x121x576xbf16> to vector<121x576xbf16>
    %c0_2 = arith.constant 0 : index
    %c0_3 = arith.constant 0 : index
    %c0_4 = arith.constant 0 : index
    %3 = vector.load %arg2[%c0_2, %c0_3, %c0_4] : memref<3x576x192xbf16, #tpu.memory_space<vmem>>, vector<1x576x192xbf16>
    %4 = vector.shape_cast %3 : vector<1x576x192xbf16> to vector<576x192xbf16>
    %cst_5 = arith.constant dense<0.000000e+00> : vector<121x192xf32>
    %5 = tpu.matmul %2, %4, %cst_5 {dimension_numbers = #tpu.dot_dimension_numbers<[1], [0], [0], [1], [0, 0, 1, 1], [], []>} : vector<121x576xbf16>, vector<576x192xbf16>, vector<121x192xf32> -> vector<121x192xf32>
    %6 = arith.addf %0, %5 : vector<121x192xf32>
    %c0_6 = arith.constant 0 : index
    %c11 = arith.constant 11 : index
    %c0_7 = arith.constant 0 : index
    %7 = vector.load %arg1[%c0_6, %c11, %c0_7] : memref<1x143x576xbf16, #tpu.memory_space<vmem>>, vector<1x121x576xbf16>
    %8 = vector.shape_cast %7 : vector<1x121x576xbf16> to vector<121x576xbf16>
    %c1 = arith.constant 1 : index
    %c0_8 = arith.constant 0 : index
    %c0_9 = arith.constant 0 : index
    %9 = vector.load %arg2[%c1, %c0_8, %c0_9] : memref<3x576x192xbf16, #tpu.memory_space<vmem>>, vector<1x576x192xbf16>
    %10 = vector.shape_cast %9 : vector<1x576x192xbf16> to vector<576x192xbf16>
    %cst_10 = arith.constant dense<0.000000e+00> : vector<121x192xf32>
    %11 = tpu.matmul %8, %10, %cst_10 {dimension_numbers = #tpu.dot_dimension_numbers<[1], [0], [0], [1], [0, 0, 1, 1], [], []>} : vector<121x576xbf16>, vector<576x192xbf16>, vector<121x192xf32> -> vector<121x192xf32>
    %12 = arith.addf %6, %11 : vector<121x192xf32>
    %c0_11 = arith.constant 0 : index
    %c22 = arith.constant 22 : index
    %c0_12 = arith.constant 0 : index
    %13 = vector.load %arg1[%c0_11, %c22, %c0_12] : memref<1x143x576xbf16, #tpu.memory_space<vmem>>, vector<1x121x576xbf16>
    %14 = vector.shape_cast %13 : vector<1x121x576xbf16> to vector<121x576xbf16>
    %c2 = arith.constant 2 : index
    %c0_13 = arith.constant 0 : index
    %c0_14 = arith.constant 0 : index
    %15 = vector.load %arg2[%c2, %c0_13, %c0_14] : memref<3x576x192xbf16, #tpu.memory_space<vmem>>, vector<1x576x192xbf16>
    %16 = vector.shape_cast %15 : vector<1x576x192xbf16> to vector<576x192xbf16>
    %cst_15 = arith.constant dense<0.000000e+00> : vector<121x192xf32>
    %17 = tpu.matmul %14, %16, %cst_15 {dimension_numbers = #tpu.dot_dimension_numbers<[1], [0], [0], [1], [0, 0, 1, 1], [], []>} : vector<121x576xbf16>, vector<576x192xbf16>, vector<121x192xf32> -> vector<121x192xf32>
    %18 = arith.addf %12, %17 : vector<121x192xf32>
    %c0_16 = arith.constant 0 : index
    %c0_17 = arith.constant 0 : index
    %19 = vector.load %arg3[%c0_16, %c0_17] : memref<1x192xf32, #tpu.memory_space<vmem>>, vector<1x192xf32>
    %20 = vector.broadcast %19 : vector<1x192xf32> to vector<121x192xf32>
    %21 = arith.addf %18, %20 : vector<121x192xf32>
    %cst_18 = arith.constant 0.000000e+00 : f32
    %22 = vector.broadcast %cst_18 : f32 to vector<121x192xf32>
    %23 = arith.maximumf %21, %22 : vector<121x192xf32>
    %c0_19 = arith.constant 0 : index
    %c0_20 = arith.constant 0 : index
    %c0_21 = arith.constant 0 : index
    %24 = vector.load %arg4[%c0_19, %c0_20, %c0_21] : memref<1x121x192xf32, #tpu.memory_space<vmem>>, vector<1x121x192xf32>
    %25 = vector.shape_cast %24 : vector<1x121x192xf32> to vector<121x192xf32>
    %26 = vector.shape_cast %23 : vector<121x192xf32> to vector<1x121x192xf32>
    tpu.vector_store %arg4[%c0_19, %c0_20, %c0_21], %26 {strides = array<i32>} : memref<1x121x192xf32, #tpu.memory_space<vmem>>, vector<1x121x192xf32>,
    return
  }
  func.func @transform_0(%arg0: i32) -> (i32, i32, i32) {
    %c0_i32 = arith.constant 0 : i32
    %c0_i32_0 = arith.constant 0 : i32
    %c0_i32_1 = arith.constant 0 : i32
    return %arg0, %c0_i32, %c0_i32_0 : i32, i32, i32
  }
  func.func @transform_1(%arg0: i32) -> (i32, i32, i32) {
    %c0_i32 = arith.constant 0 : i32
    %c0_i32_0 = arith.constant 0 : i32
    %c0_i32_1 = arith.constant 0 : i32
    %c0_i32_2 = arith.constant 0 : i32
    return %c0_i32, %c0_i32_0, %c0_i32_1 : i32, i32, i32
  }
  func.func @transform_2(%arg0: i32) -> (i32, i32) {
    %c0_i32 = arith.constant 0 : i32
    %c0_i32_0 = arith.constant 0 : i32
    %c0_i32_1 = arith.constant 0 : i32
    return %c0_i32, %c0_i32_0 : i32, i32
  }
  func.func @transform_3(%arg0: i32) -> (i32, i32, i32) {
    %c0_i32 = arith.constant 0 : i32
    %c0_i32_0 = arith.constant 0 : i32
    %c0_i32_1 = arith.constant 0 : i32
    return %arg0, %c0_i32, %c0_i32_0 : i32, i32, i32
  }
}

module attributes {stable_mosaic.version = 11 : i64} {
  func.func @_conv_kernel(%arg0: i32, %arg1: memref<1x55x576xbf16, #tpu.memory_space<vmem>>, %arg2: memref<3x576x256xbf16, #tpu.memory_space<vmem>>, %arg3: memref<1x256xf32, #tpu.memory_space<vmem>>, %arg4: memref<1x25x256xf32, #tpu.memory_space<vmem>>) attributes {dimension_semantics = [#tpu.dimension_semantics<parallel>], iteration_bounds = array<i64: 2>, scalar_prefetch = 0 : i64, scratch_operands = 0 : i64, tpu.core_type = #tpu.core_type<tc>, window_params = [{transform_indices = @transform_0, window_bounds = array<i64: 1, 55, 576>}, {pipeline_mode = #tpu.pipeline_mode<synchronous>, transform_indices = @transform_1, window_bounds = array<i64: 3, 576, 256>}, {pipeline_mode = #tpu.pipeline_mode<synchronous>, transform_indices = @transform_2, window_bounds = array<i64: 1, 256>}, {transform_indices = @transform_3, window_bounds = array<i64: 1, 25, 256>}]} {
    %cst = arith.constant 0.000000e+00 : f32
    %0 = vector.broadcast %cst : f32 to vector<25x256xf32>
    %c0 = arith.constant 0 : index
    %c0_0 = arith.constant 0 : index
    %c0_1 = arith.constant 0 : index
    %1 = vector.load %arg1[%c0, %c0_0, %c0_1] : memref<1x55x576xbf16, #tpu.memory_space<vmem>>, vector<1x25x576xbf16>
    %2 = vector.shape_cast %1 : vector<1x25x576xbf16> to vector<25x576xbf16>
    %c0_2 = arith.constant 0 : index
    %c0_3 = arith.constant 0 : index
    %c0_4 = arith.constant 0 : index
    %3 = vector.load %arg2[%c0_2, %c0_3, %c0_4] : memref<3x576x256xbf16, #tpu.memory_space<vmem>>, vector<1x576x256xbf16>
    %4 = vector.shape_cast %3 : vector<1x576x256xbf16> to vector<576x256xbf16>
    %cst_5 = arith.constant dense<0.000000e+00> : vector<25x256xf32>
    %5 = tpu.matmul %2, %4, %cst_5 {dimension_numbers = #tpu.dot_dimension_numbers<[1], [0], [0], [1], [0, 0, 1, 1], [], []>} : vector<25x576xbf16>, vector<576x256xbf16>, vector<25x256xf32> -> vector<25x256xf32>
    %6 = arith.addf %0, %5 : vector<25x256xf32>
    %c0_6 = arith.constant 0 : index
    %c30 = arith.constant 30 : index
    %c0_7 = arith.constant 0 : index
    %7 = vector.load %arg1[%c0_6, %c30, %c0_7] : memref<1x55x576xbf16, #tpu.memory_space<vmem>>, vector<1x25x576xbf16>
    %8 = vector.shape_cast %7 : vector<1x25x576xbf16> to vector<25x576xbf16>
    %c1 = arith.constant 1 : index
    %c0_8 = arith.constant 0 : index
    %c0_9 = arith.constant 0 : index
    %9 = vector.load %arg2[%c1, %c0_8, %c0_9] : memref<3x576x256xbf16, #tpu.memory_space<vmem>>, vector<1x576x256xbf16>
    %10 = vector.shape_cast %9 : vector<1x576x256xbf16> to vector<576x256xbf16>
    %cst_10 = arith.constant dense<0.000000e+00> : vector<25x256xf32>
    %11 = tpu.matmul %8, %10, %cst_10 {dimension_numbers = #tpu.dot_dimension_numbers<[1], [0], [0], [1], [0, 0, 1, 1], [], []>} : vector<25x576xbf16>, vector<576x256xbf16>, vector<25x256xf32> -> vector<25x256xf32>
    %12 = arith.addf %6, %11 : vector<25x256xf32>
    %c0_11 = arith.constant 0 : index
    %c5 = arith.constant 5 : index
    %c0_12 = arith.constant 0 : index
    %13 = vector.load %arg1[%c0_11, %c5, %c0_12] : memref<1x55x576xbf16, #tpu.memory_space<vmem>>, vector<1x25x576xbf16>
    %14 = vector.shape_cast %13 : vector<1x25x576xbf16> to vector<25x576xbf16>
    %c2 = arith.constant 2 : index
    %c0_13 = arith.constant 0 : index
    %c0_14 = arith.constant 0 : index
    %15 = vector.load %arg2[%c2, %c0_13, %c0_14] : memref<3x576x256xbf16, #tpu.memory_space<vmem>>, vector<1x576x256xbf16>
    %16 = vector.shape_cast %15 : vector<1x576x256xbf16> to vector<576x256xbf16>
    %cst_15 = arith.constant dense<0.000000e+00> : vector<25x256xf32>
    %17 = tpu.matmul %14, %16, %cst_15 {dimension_numbers = #tpu.dot_dimension_numbers<[1], [0], [0], [1], [0, 0, 1, 1], [], []>} : vector<25x576xbf16>, vector<576x256xbf16>, vector<25x256xf32> -> vector<25x256xf32>
    %18 = arith.addf %12, %17 : vector<25x256xf32>
    %c0_16 = arith.constant 0 : index
    %c0_17 = arith.constant 0 : index
    %19 = vector.load %arg3[%c0_16, %c0_17] : memref<1x256xf32, #tpu.memory_space<vmem>>, vector<1x256xf32>
    %20 = vector.broadcast %19 : vector<1x256xf32> to vector<25x256xf32>
    %21 = arith.addf %18, %20 : vector<25x256xf32>
    %cst_18 = arith.constant 0.000000e+00 : f32
    %22 = vector.broadcast %cst_18 : f32 to vector<25x256xf32>
    %23 = arith.maximumf %21, %22 : vector<25x256xf32>
    %c0_19 = arith.constant 0 : index
    %c0_20 = arith.constant 0 : index
    %c0_21 = arith.constant 0 : index
    %24 = vector.load %arg4[%c0_19, %c0_20, %c0_21] : memref<1x25x256xf32, #tpu.memory_space<vmem>>, vector<1x25x256xf32>
    %25 = vector.shape_cast %24 : vector<1x25x256xf32> to vector<25x256xf32>
    %26 = vector.shape_cast %23 : vector<25x256xf32> to vector<1x25x256xf32>
    tpu.vector_store %arg4[%c0_19, %c0_20, %c0_21], %26 {strides = array<i32>} : memref<1x25x256xf32, #tpu.memory_space<vmem>>, vector<1x25x256xf32>,
    return
  }
  func.func @transform_0(%arg0: i32) -> (i32, i32, i32) {
    %c0_i32 = arith.constant 0 : i32
    %c0_i32_0 = arith.constant 0 : i32
    %c0_i32_1 = arith.constant 0 : i32
    return %arg0, %c0_i32, %c0_i32_0 : i32, i32, i32
  }
  func.func @transform_1(%arg0: i32) -> (i32, i32, i32) {
    %c0_i32 = arith.constant 0 : i32
    %c0_i32_0 = arith.constant 0 : i32
    %c0_i32_1 = arith.constant 0 : i32
    %c0_i32_2 = arith.constant 0 : i32
    return %c0_i32, %c0_i32_0, %c0_i32_1 : i32, i32, i32
  }
  func.func @transform_2(%arg0: i32) -> (i32, i32) {
    %c0_i32 = arith.constant 0 : i32
    %c0_i32_0 = arith.constant 0 : i32
    %c0_i32_1 = arith.constant 0 : i32
    return %c0_i32, %c0_i32_0 : i32, i32
  }
  func.func @transform_3(%arg0: i32) -> (i32, i32, i32) {
    %c0_i32 = arith.constant 0 : i32
    %c0_i32_0 = arith.constant 0 : i32
    %c0_i32_1 = arith.constant 0 : i32
    return %arg0, %c0_i32, %c0_i32_0 : i32, i32, i32
  }
}

module attributes {stable_mosaic.version = 11 : i64} {
  func.func @_conv_kernel(%arg0: i32, %arg1: memref<1x55x768xbf16, #tpu.memory_space<vmem>>, %arg2: memref<3x768x384xbf16, #tpu.memory_space<vmem>>, %arg3: memref<1x384xf32, #tpu.memory_space<vmem>>, %arg4: memref<1x25x384xf32, #tpu.memory_space<vmem>>) attributes {dimension_semantics = [#tpu.dimension_semantics<parallel>], iteration_bounds = array<i64: 2>, scalar_prefetch = 0 : i64, scratch_operands = 0 : i64, tpu.core_type = #tpu.core_type<tc>, window_params = [{transform_indices = @transform_0, window_bounds = array<i64: 1, 55, 768>}, {pipeline_mode = #tpu.pipeline_mode<synchronous>, transform_indices = @transform_1, window_bounds = array<i64: 3, 768, 384>}, {pipeline_mode = #tpu.pipeline_mode<synchronous>, transform_indices = @transform_2, window_bounds = array<i64: 1, 384>}, {transform_indices = @transform_3, window_bounds = array<i64: 1, 25, 384>}]} {
    %cst = arith.constant 0.000000e+00 : f32
    %0 = vector.broadcast %cst : f32 to vector<25x384xf32>
    %c0 = arith.constant 0 : index
    %c0_0 = arith.constant 0 : index
    %c0_1 = arith.constant 0 : index
    %1 = vector.load %arg1[%c0, %c0_0, %c0_1] : memref<1x55x768xbf16, #tpu.memory_space<vmem>>, vector<1x25x768xbf16>
    %2 = vector.shape_cast %1 : vector<1x25x768xbf16> to vector<25x768xbf16>
    %c0_2 = arith.constant 0 : index
    %c0_3 = arith.constant 0 : index
    %c0_4 = arith.constant 0 : index
    %3 = vector.load %arg2[%c0_2, %c0_3, %c0_4] : memref<3x768x384xbf16, #tpu.memory_space<vmem>>, vector<1x768x384xbf16>
    %4 = vector.shape_cast %3 : vector<1x768x384xbf16> to vector<768x384xbf16>
    %cst_5 = arith.constant dense<0.000000e+00> : vector<25x384xf32>
    %5 = tpu.matmul %2, %4, %cst_5 {dimension_numbers = #tpu.dot_dimension_numbers<[1], [0], [0], [1], [0, 0, 1, 1], [], []>} : vector<25x768xbf16>, vector<768x384xbf16>, vector<25x384xf32> -> vector<25x384xf32>
    %6 = arith.addf %0, %5 : vector<25x384xf32>
    %c0_6 = arith.constant 0 : index
    %c30 = arith.constant 30 : index
    %c0_7 = arith.constant 0 : index
    %7 = vector.load %arg1[%c0_6, %c30, %c0_7] : memref<1x55x768xbf16, #tpu.memory_space<vmem>>, vector<1x25x768xbf16>
    %8 = vector.shape_cast %7 : vector<1x25x768xbf16> to vector<25x768xbf16>
    %c1 = arith.constant 1 : index
    %c0_8 = arith.constant 0 : index
    %c0_9 = arith.constant 0 : index
    %9 = vector.load %arg2[%c1, %c0_8, %c0_9] : memref<3x768x384xbf16, #tpu.memory_space<vmem>>, vector<1x768x384xbf16>
    %10 = vector.shape_cast %9 : vector<1x768x384xbf16> to vector<768x384xbf16>
    %cst_10 = arith.constant dense<0.000000e+00> : vector<25x384xf32>
    %11 = tpu.matmul %8, %10, %cst_10 {dimension_numbers = #tpu.dot_dimension_numbers<[1], [0], [0], [1], [0, 0, 1, 1], [], []>} : vector<25x768xbf16>, vector<768x384xbf16>, vector<25x384xf32> -> vector<25x384xf32>
    %12 = arith.addf %6, %11 : vector<25x384xf32>
    %c0_11 = arith.constant 0 : index
    %c5 = arith.constant 5 : index
    %c0_12 = arith.constant 0 : index
    %13 = vector.load %arg1[%c0_11, %c5, %c0_12] : memref<1x55x768xbf16, #tpu.memory_space<vmem>>, vector<1x25x768xbf16>
    %14 = vector.shape_cast %13 : vector<1x25x768xbf16> to vector<25x768xbf16>
    %c2 = arith.constant 2 : index
    %c0_13 = arith.constant 0 : index
    %c0_14 = arith.constant 0 : index
    %15 = vector.load %arg2[%c2, %c0_13, %c0_14] : memref<3x768x384xbf16, #tpu.memory_space<vmem>>, vector<1x768x384xbf16>
    %16 = vector.shape_cast %15 : vector<1x768x384xbf16> to vector<768x384xbf16>
    %cst_15 = arith.constant dense<0.000000e+00> : vector<25x384xf32>
    %17 = tpu.matmul %14, %16, %cst_15 {dimension_numbers = #tpu.dot_dimension_numbers<[1], [0], [0], [1], [0, 0, 1, 1], [], []>} : vector<25x768xbf16>, vector<768x384xbf16>, vector<25x384xf32> -> vector<25x384xf32>
    %18 = arith.addf %12, %17 : vector<25x384xf32>
    %c0_16 = arith.constant 0 : index
    %c0_17 = arith.constant 0 : index
    %19 = vector.load %arg3[%c0_16, %c0_17] : memref<1x384xf32, #tpu.memory_space<vmem>>, vector<1x384xf32>
    %20 = vector.broadcast %19 : vector<1x384xf32> to vector<25x384xf32>
    %21 = arith.addf %18, %20 : vector<25x384xf32>
    %cst_18 = arith.constant 0.000000e+00 : f32
    %22 = vector.broadcast %cst_18 : f32 to vector<25x384xf32>
    %23 = arith.maximumf %21, %22 : vector<25x384xf32>
    %c0_19 = arith.constant 0 : index
    %c0_20 = arith.constant 0 : index
    %c0_21 = arith.constant 0 : index
    %24 = vector.load %arg4[%c0_19, %c0_20, %c0_21] : memref<1x25x384xf32, #tpu.memory_space<vmem>>, vector<1x25x384xf32>
    %25 = vector.shape_cast %24 : vector<1x25x384xf32> to vector<25x384xf32>
    %26 = vector.shape_cast %23 : vector<25x384xf32> to vector<1x25x384xf32>
    tpu.vector_store %arg4[%c0_19, %c0_20, %c0_21], %26 {strides = array<i32>} : memref<1x25x384xf32, #tpu.memory_space<vmem>>, vector<1x25x384xf32>,
    return
  }
  func.func @transform_0(%arg0: i32) -> (i32, i32, i32) {
    %c0_i32 = arith.constant 0 : i32
    %c0_i32_0 = arith.constant 0 : i32
    %c0_i32_1 = arith.constant 0 : i32
    return %arg0, %c0_i32, %c0_i32_0 : i32, i32, i32
  }
  func.func @transform_1(%arg0: i32) -> (i32, i32, i32) {
    %c0_i32 = arith.constant 0 : i32
    %c0_i32_0 = arith.constant 0 : i32
    %c0_i32_1 = arith.constant 0 : i32
    %c0_i32_2 = arith.constant 0 : i32
    return %c0_i32, %c0_i32_0, %c0_i32_1 : i32, i32, i32
  }
  func.func @transform_2(%arg0: i32) -> (i32, i32) {
    %c0_i32 = arith.constant 0 : i32
    %c0_i32_0 = arith.constant 0 : i32
    %c0_i32_1 = arith.constant 0 : i32
    return %c0_i32, %c0_i32_0 : i32, i32
  }
  func.func @transform_3(%arg0: i32) -> (i32, i32, i32) {
    %c0_i32 = arith.constant 0 : i32
    %c0_i32_0 = arith.constant 0 : i32
    %c0_i32_1 = arith.constant 0 : i32
    return %arg0, %c0_i32, %c0_i32_0 : i32, i32, i32
  }
}

</mosaic_0001>

<bundles_post_ra>
// kernel: mixed_6a.6
= control target key start
LH: loop header
LB: loop body
LE: loop exit
PB: predicated region body
PF: predicated region fallthrough
CT: control target
= control target key end

     0   :  { %s906_s12 = smov 0   ;;  %s1129_s0 = inlined_call_operand.vmem [shape: bf16[2,121,256], index: 0, kind: input, shape index: {}]   ;;  %s1130_s1 = inlined_call_operand.vmem [shape: bf16[1,256,192], index: 1, kind: input, shape index: {}]   ;;  %s1131_s2 = inlined_call_operand.vmem [shape: f32[1,192], index: 2, kind: input, shape index: {}]   ;;  %s1132_s3 = inlined_call_operand.vmem [shape: f32[2,121,192], index: 3, kind: output, shape index: {}]  }
   0x1 LB: > { %s705_s13 = sadd.s32 4294967295, %s884_s12   ;;  %p709_p0 = scmp.ge.s32.totalorder %s884_s12, 1  ;;  %s884_s12 = sphi %s906_s12, %s13_s12  }
   0x2   : > { %p137_p1 = scmp.lt.s32.totalorder %s884_s12, 3 }
   0x4   : > { %p138_p2 = pnand %p709_p0, %p137_p1 }
   0x5   : > { %v806_v0 = vld [vmem:[%s1130_s1 + $0x4] ss:$8 sps:$4 sm:$0xff] (!%p138_p2)   ;;  %v808_v1 = vld [vmem:[%s1130_s1] ss:$8 sps:$4 sm:$0xff] (!%p138_p2)   ;;  %v809_v2 = vld [vmem:[%s1130_s1 + $0x14] ss:$8 sps:$4 sm:$0xff] (!%p138_p2)   ;;  %v221_v48 = vlaneseq (!%p138_p2) }
   0x6   : > { %141 = sbr.rel (%p138_p2) target bundleno = 315 (0x13b), region = 32  ;;  %471 = vmatprep.subr.bf16.mxu0 (!%p138_p2), %v806_v0  ;;  %766 = vmatprep.subr.bf16.mxu1 (!%p138_p2), %v806_v0  ;;  %v811_v3 = vld [vmem:[%s1130_s1 + $0x10] ss:$8 sps:$4 sm:$0xff] (!%p138_p2)   ;;  %v812_v4 = vld [vmem:[%s1130_s1 + $0x24] ss:$8 sps:$4 sm:$0xff] (!%p138_p2)   ;;  %p161_p3 = scmp.lt.s32.totalorder (!%p138_p2), %s705_s13, 1 }
   0x7   : > { %472 = vmatpush1.bf16.msra.mxu0 (!%p138_p2), %v808_v1  ;;  %782 = vmatpush1.bf16.msra.mxu1 (!%p138_p2), %v808_v1  ;;  %v814_v5 = vld [vmem:[%s1130_s1 + $0x20] ss:$8 sps:$4 sm:$0xff] (!%p138_p2)   ;;  %v815_v6 = vld [vmem:[%s1130_s1 + $0x34] ss:$8 sps:$4 sm:$0xff] (!%p138_p2)   ;;  %v817_v7 = vld [vmem:[%s1130_s1 + $0x30] ss:$8 sps:$4 sm:$0xff] (!%p138_p2)  }
   0x8   : > { %473 = vmatprep.subr.bf16.mxu0 (!%p138_p2), %v809_v2  ;;  %767 = vmatprep.subr.bf16.mxu1 (!%p138_p2), %v809_v2  ;;  %v818_v8 = vld [vmem:[%s1130_s1 + $0x44] ss:$8 sps:$4 sm:$0xff] (!%p138_p2)   ;;  %v820_v9 = vld [vmem:[%s1130_s1 + $0x40] ss:$8 sps:$4 sm:$0xff] (!%p138_p2)   ;;  %v821_v10 = vld [vmem:[%s1130_s1 + $0x54] ss:$8 sps:$4 sm:$0xff] (!%p138_p2)  }
   0x9   : > { %v823_v11 = vld [vmem:[%s1130_s1 + $0x50] ss:$8 sps:$4 sm:$0xff] (!%p138_p2)   ;;  %v824_v12 = vld [vmem:[%s1130_s1 + $0x64] ss:$8 sps:$4 sm:$0xff] (!%p138_p2)   ;;  %v826_v14 = vld [vmem:[%s1130_s1 + $0x60] ss:$8 sps:$4 sm:$0xff] (!%p138_p2)  }
   0xa   : > { %v827_v16 = vld [vmem:[%s1130_s1 + $0x74] ss:$8 sps:$4 sm:$0xff] (!%p138_p2)   ;;  %v829_v17 = vld [vmem:[%s1130_s1 + $0x70] ss:$8 sps:$4 sm:$0xff] (!%p138_p2)   ;;  %v830_v18 = vld [vmem:[%s1130_s1 + $0x84] ss:$8 sps:$4 sm:$0xff] (!%p138_p2)  }
   0xb   : > { %474 = vmatpush1.bf16.msra.mxu0 (!%p138_p2), %v811_v3  ;;  %783 = vmatpush1.bf16.msra.mxu1 (!%p138_p2), %v811_v3  ;;  %v832_v19 = vld [vmem:[%s1130_s1 + $0x80] ss:$8 sps:$4 sm:$0xff] (!%p138_p2)   ;;  %v833_v20 = vld [vmem:[%s1130_s1 + $0x94] ss:$8 sps:$4 sm:$0xff] (!%p138_p2)   ;;  %v835_v21 = vld [vmem:[%s1130_s1 + $0x90] ss:$8 sps:$4 sm:$0xff] (!%p138_p2)  }
   0xc   : > { %475 = vmatprep.subr.bf16.mxu0 (!%p138_p2), %v812_v4  ;;  %768 = vmatprep.subr.bf16.mxu1 (!%p138_p2), %v812_v4  ;;  %v836_v22 = vld [vmem:[%s1130_s1 + $0xa4] ss:$8 sps:$4 sm:$0xff] (!%p138_p2)   ;;  %v838_v23 = vld [vmem:[%s1130_s1 + $0xa0] ss:$8 sps:$4 sm:$0xff] (!%p138_p2)   ;;  %v839_v24 = vld [vmem:[%s1130_s1 + $0xb4] ss:$8 sps:$4 sm:$0xff] (!%p138_p2)  }
   0xd   : > { %s1134_s13 = smov (!%p161_p3, %s705_s13), 1  ;;  %v841_v25 = vld [vmem:[%s1130_s1 + $0xb0] ss:$8 sps:$4 sm:$0xff]   ;;  %v842_v26 = vld [vmem:[%s1130_s1 + $0xc4] ss:$8 sps:$4 sm:$0xff]   ;;  %v222_v49 = vshrl.u32 %v221_v48, 7 }
   0xe   : > { %s764_s9 = sshll.u32 %s1134_s13, 7  ;;  %v844_v27 = vld [vmem:[%s1130_s1 + $0xc0] ss:$8 sps:$4 sm:$0xff]   ;;  %v845_v28 = vld [vmem:[%s1130_s1 + $0xd4] ss:$8 sps:$4 sm:$0xff]   ;;  %s765_s8 = sshll.u32 %s1134_s13, 8 }
   0xf   : > { %476 = vmatpush1.bf16.msra.mxu0 %v814_v5  ;;  %784 = vmatpush1.bf16.msra.mxu1 %v814_v5  ;;  %s956_s16 = scalar_lea.vmem %s1129_s0, %s764_s9  ;;  %v847_v29 = vld [vmem:[%s1130_s1 + $0xd0] ss:$8 sps:$4 sm:$0xff]   ;;  %v848_v30 = vld [vmem:[%s1130_s1 + $0xe4] ss:$8 sps:$4 sm:$0xff]   ;;  %v850_v31 = vld [vmem:[%s1130_s1 + $0xe0] ss:$8 sps:$4 sm:$0xff]   ;;  %s1047_s10 = scalar_lea.vmem %s1132_s3, %s765_s8 }
  0x10   : > { %477 = vmatprep.subr.bf16.mxu0 %v815_v6  ;;  %769 = vmatprep.subr.bf16.mxu1 %v815_v6  ;;  %v856_v13 = vld [vmem:[%s956_s16 + $0x4] ss:$8 sps:$4 sm:$0xff]   ;;  %v851_v32 = vld [vmem:[%s1130_s1 + $0xf4] ss:$8 sps:$4 sm:$0xff]   ;;  %v853_v33 = vld [vmem:[%s1130_s1 + $0xf0] ss:$8 sps:$4 sm:$0xff]  }
  0x11   : > { %v859_v15 = vld [vmem:[%s956_s16 + $0x44] ss:$8 sps:$4 sm:$0xff]   ;;  %503 = vmatprep.mubr.bf16.mxu0 %v856_v13  ;;  %v854_v34 = vld [vmem:[%s956_s16] ss:$8 sps:$4 sm:$0xff]   ;;  %v860_v36 = vld [vmem:[%s956_s16 + $0x14] ss:$8 sps:$4 sm:$0xff]  }
  0x12   : > { %543 = vmatprep.mubr.bf16.mxu1 %v859_v15  ;;  %v857_v35 = vld [vmem:[%s956_s16 + $0x40] ss:$8 sps:$4 sm:$0xff]   ;;  %v862_v37 = vld [vmem:[%s956_s16 + $0x54] ss:$8 sps:$4 sm:$0xff]   ;;  %v864_v38 = vld [vmem:[%s956_s16 + $0x10] ss:$8 sps:$4 sm:$0xff]  }
  0x13   : > { %478 = vmatpush1.bf16.msra.mxu0 %v817_v7  ;;  %785 = vmatpush1.bf16.msra.mxu1 %v817_v7  ;;  %v865_v39 = vld [vmem:[%s956_s16 + $0x50] ss:$8 sps:$4 sm:$0xff]   ;;  %v866_v40 = vld [vmem:[%s956_s16 + $0x24] ss:$8 sps:$4 sm:$0xff]   ;;  %v870_v42 = vld [vmem:[%s956_s16 + $0x20] ss:$8 sps:$4 sm:$0xff]  }
  0x14   : > { %479 = vmatprep.subr.bf16.mxu0 %v818_v8  ;;  %770 = vmatprep.subr.bf16.mxu1 %v818_v8  ;;  %v868_v41 = vld [vmem:[%s956_s16 + $0x64] ss:$8 sps:$4 sm:$0xff]   ;;  %v871_v43 = vld [vmem:[%s956_s16 + $0x60] ss:$8 sps:$4 sm:$0xff]   ;;  %v872_v44 = vld [vmem:[%s956_s16 + $0x34] ss:$8 sps:$4 sm:$0xff]  }
  0x15   : > { %v874_v45 = vld [vmem:[%s956_s16 + $0x74] ss:$8 sps:$4 sm:$0x1f]   ;;  %v876_v46 = vld [vmem:[%s956_s16 + $0x30] ss:$8 sps:$4 sm:$0xff]   ;;  %v223_v50 = vsub.s32 0, %v222_v49 }
  0x16   : > { %v877_v47 = vld [vmem:[%s956_s16 + $0x70] ss:$8 sps:$4 sm:$0x1f]   ;;  %v219_v51 = vld [vmem:[%s1131_s2] sm:$0x3]  ;;  %v227_v52 = vsub.s32 1, %v222_v49 }
  0x17   : > { %480 = vmatpush1.bf16.msra.mxu0 %v820_v9  ;;  %786 = vmatpush1.bf16.msra.mxu1 %v820_v9  ;;  %v1037_v53 = vrot.slane %v219_v51, %v223_v50  ;;  %vm617_vm0 = vcmask 523264   ;;  %vm648_vm1 = vcmask 516096  }
  0x18   : > { %481 = vmatprep.subr.bf16.mxu0 %v821_v10  ;;  %771 = vmatprep.subr.bf16.mxu1 %v821_v10  ;;  %v1039_v54 = vrot.slane %v219_v51, %v227_v52 }
  0x1b   : > { %482 = vmatpush1.bf16.msra.mxu0 %v823_v11  ;;  %787 = vmatpush1.bf16.msra.mxu1 %v823_v11 }
  0x1c   : > { %483 = vmatprep.subr.bf16.mxu0 %v824_v12  ;;  %772 = vmatprep.subr.bf16.mxu1 %v824_v12 }
  0x1f   : > { %484 = vmatpush1.bf16.msra.mxu0 %v826_v14  ;;  %788 = vmatpush1.bf16.msra.mxu1 %v826_v14 }
  0x20   : > { %485 = vmatprep.subr.bf16.mxu0 %v827_v16  ;;  %773 = vmatprep.subr.bf16.mxu1 %v827_v16 }
  0x23   : > { %486 = vmatpush1.bf16.msra.mxu0 %v829_v17  ;;  %789 = vmatpush1.bf16.msra.mxu1 %v829_v17 }
  0x24   : > { %487 = vmatprep.subr.bf16.mxu0 %v830_v18  ;;  %774 = vmatprep.subr.bf16.mxu1 %v830_v18 }
  0x27   : > { %488 = vmatpush1.bf16.msra.mxu0 %v832_v19  ;;  %790 = vmatpush1.bf16.msra.mxu1 %v832_v19 }
  0x28   : > { %489 = vmatprep.subr.bf16.mxu0 %v833_v20  ;;  %775 = vmatprep.subr.bf16.mxu1 %v833_v20 }
  0x2b   : > { %490 = vmatpush1.bf16.msra.mxu0 %v835_v21  ;;  %791 = vmatpush1.bf16.msra.mxu1 %v835_v21 }
  0x2c   : > { %491 = vmatprep.subr.bf16.mxu0 %v836_v22  ;;  %776 = vmatprep.subr.bf16.mxu1 %v836_v22 }
  0x2f   : > { %492 = vmatpush1.bf16.msra.mxu0 %v838_v23  ;;  %792 = vmatpush1.bf16.msra.mxu1 %v838_v23 }
  0x30   : > { %493 = vmatprep.subr.bf16.mxu0 %v839_v24  ;;  %777 = vmatprep.subr.bf16.mxu1 %v839_v24 }
  0x33   : > { %494 = vmatpush1.bf16.msra.mxu0 %v841_v25  ;;  %793 = vmatpush1.bf16.msra.mxu1 %v841_v25 }
  0x34   : > { %495 = vmatprep.subr.bf16.mxu0 %v842_v26  ;;  %778 = vmatprep.subr.bf16.mxu1 %v842_v26 }
  0x37   : > { %496 = vmatpush1.bf16.msra.mxu0 %v844_v27  ;;  %794 = vmatpush1.bf16.msra.mxu1 %v844_v27 }
  0x38   : > { %497 = vmatprep.subr.bf16.mxu0 %v845_v28  ;;  %779 = vmatprep.subr.bf16.mxu1 %v845_v28 }
  0x3b   : > { %498 = vmatpush1.bf16.msra.mxu0 %v847_v29  ;;  %795 = vmatpush1.bf16.msra.mxu1 %v847_v29 }
  0x3c   : > { %499 = vmatprep.subr.bf16.mxu0 %v848_v30  ;;  %780 = vmatprep.subr.bf16.mxu1 %v848_v30 }
  0x3f   : > { %500 = vmatpush1.bf16.msra.mxu0 %v850_v31  ;;  %796 = vmatpush1.bf16.msra.mxu1 %v850_v31 }
  0x40   : > { %501 = vmatprep.subr.bf16.mxu0 %v851_v32  ;;  %781 = vmatprep.subr.bf16.mxu1 %v851_v32 }
  0x43   : > { %502 = vmatpush1.bf16.msra.mxu0 %v853_v33  ;;  %797 = vmatpush1.bf16.msra.mxu1 %v853_v33 }
  0x46   : > { %504 = vmatmul.mubr.bf16.vlgmr.msra.gmra.mrb[0].mxu0 %v854_v34  ;;  %544 = vmatmul.mubr.bf16.vlgmr.msra.gmra.mrb[0].mxu1 %v857_v35 }
  0x47   : > { %513 = vmatprep.mubr.bf16.mxu0 %v860_v36  ;;  %553 = vmatprep.mubr.bf16.mxu1 %v862_v37 }
  0x4e   : > { %514 = vmatmul.mubr.bf16.gmra.mrb[4].mxu0 %v864_v38  ;;  %554 = vmatmul.mubr.bf16.gmra.mrb[4].mxu1 %v865_v39 }
  0x4f   : > { %523 = vmatprep.mubr.bf16.mxu0 %v866_v40  ;;  %563 = vmatprep.mubr.bf16.mxu1 %v868_v41 }
  0x56   : > { %524 = vmatmul.mubr.bf16.gmra.mrb[8].mxu0 %v870_v42  ;;  %564 = vmatmul.mubr.bf16.gmra.mrb[8].mxu1 %v871_v43 }
  0x57   : > { %533 = vmatprep.mubr.bf16.mxu0 %v872_v44  ;;  %573 = vmatprep.mubr.bf16.mxu1 %v874_v45 }
  0x5e   : > { %534 = vmatmul.mubr.bf16.gmra.mrb[12].mxu0 %v876_v46  ;;  %574 = vmatmul.mubr.bf16.gmra.mrb[12].mxu1 %v877_v47 }
 0x119   : > { %v505_v55 = vpop.f32.mrb[0].mxu0  ;;  %v545_v56 = vpop.f32.mrb[0].mxu1 }
 0x11a   : > { %v506_v57 = vadd.f32 %v505_v55, %v1037_v53  ;;  %v546_v58 = vadd.f32 %v545_v56, %v1037_v53  ;;  %v507_v59 = vpop.f32.mrb[1].mxu0  ;;  %v547_v60 = vpop.f32.mrb[1].mxu1 }
 0x11b   : > { %v508_v61 = vadd.f32 %v507_v59, %v1039_v54  ;;  %v548_v62 = vadd.f32 %v547_v60, %v1039_v54  ;;  %v509_v63 = vpop.f32.mrb[2].mxu0  ;;  %v549_v0 = vpop.f32.mrb[2].mxu1 }
 0x11c   : > { %v584_v1 = vmax.f32 %v506_v57, 0.0  ;;  %v600_v2 = vmax.f32 %v546_v58, 0.0  ;;  %v510_v3 = vadd.f32 %v509_v63, %v1037_v53  ;;  %v550_v4 = vadd.f32 %v549_v0, %v1037_v53  ;;  %v511_v5 = vpop.f32.mrb[3].mxu0  ;;  %v551_v6 = vpop.f32.mrb[3].mxu1 }
 0x11d   : > { %v585_v7 = vmax.f32 %v508_v61, 0.0  ;;  %v601_v8 = vmax.f32 %v548_v62, 0.0  ;;  %v512_v9 = vadd.f32 %v511_v5, %v1039_v54  ;;  %v552_v10 = vadd.f32 %v551_v6, %v1039_v54 }
 0x11e   : > { %616 = vst [vmem:[%s1047_s10] sm:$0xff] %v584_v1  ;;  %633 = vst [vmem:[%s1047_s10 + $0x80] sm:$0xff] %v600_v2  ;;  %v586_v11 = vmax.f32 %v510_v3, 0.0  ;;  %v602_v12 = vmax.f32 %v550_v4, 0.0 }
 0x11f   : > { %618 = vst.msk [vmem:[%s1047_s10 + $0x8] sm:$0xff] %vm617_vm0, %v585_v7  ;;  %634 = vst.msk [vmem:[%s1047_s10 + $0x88] sm:$0xff] %vm617_vm0, %v601_v8  ;;  %v587_v13 = vmax.f32 %v512_v9, 0.0  ;;  %v603_v14 = vmax.f32 %v552_v10, 0.0 }
 0x120   : > { %619 = vst [vmem:[%s1047_s10 + $0x10] sm:$0xff] %v586_v11  ;;  %635 = vst [vmem:[%s1047_s10 + $0x90] sm:$0xff] %v602_v12 }
 0x121   : > { %620 = vst.msk [vmem:[%s1047_s10 + $0x18] sm:$0xff] %vm617_vm0, %v587_v13  ;;  %636 = vst.msk [vmem:[%s1047_s10 + $0x98] sm:$0xff] %vm617_vm0, %v603_v14  ;;  %v515_v15 = vpop.f32.mrb[4].mxu0  ;;  %v555_v16 = vpop.f32.mrb[4].mxu1 }
 0x122   : > { %v516_v17 = vadd.f32 %v515_v15, %v1037_v53  ;;  %v556_v18 = vadd.f32 %v555_v16, %v1037_v53  ;;  %v517_v19 = vpop.f32.mrb[5].mxu0  ;;  %v557_v20 = vpop.f32.mrb[5].mxu1 }
 0x123   : > { %v518_v21 = vadd.f32 %v517_v19, %v1039_v54  ;;  %v558_v22 = vadd.f32 %v557_v20, %v1039_v54  ;;  %v519_v23 = vpop.f32.mrb[6].mxu0  ;;  %v559_v24 = vpop.f32.mrb[6].mxu1 }
 0x124   : > { %v588_v25 = vmax.f32 %v516_v17, 0.0  ;;  %v604_v26 = vmax.f32 %v556_v18, 0.0  ;;  %v520_v27 = vadd.f32 %v519_v23, %v1037_v53  ;;  %v560_v28 = vadd.f32 %v559_v24, %v1037_v53  ;;  %v521_v29 = vpop.f32.mrb[7].mxu0  ;;  %v561_v30 = vpop.f32.mrb[7].mxu1 }
 0x125   : > { %v589_v31 = vmax.f32 %v518_v21, 0.0  ;;  %v605_v32 = vmax.f32 %v558_v22, 0.0  ;;  %v522_v33 = vadd.f32 %v521_v29, %v1039_v54  ;;  %v562_v34 = vadd.f32 %v561_v30, %v1039_v54 }
 0x126   : > { %621 = vst [vmem:[%s1047_s10 + $0x20] sm:$0xff] %v588_v25  ;;  %637 = vst [vmem:[%s1047_s10 + $0xa0] sm:$0xff] %v604_v26  ;;  %v590_v35 = vmax.f32 %v520_v27, 0.0  ;;  %v606_v36 = vmax.f32 %v560_v28, 0.0 }
 0x127   : > { %622 = vst.msk [vmem:[%s1047_s10 + $0x28] sm:$0xff] %vm617_vm0, %v589_v31  ;;  %638 = vst.msk [vmem:[%s1047_s10 + $0xa8] sm:$0xff] %vm617_vm0, %v605_v32  ;;  %v591_v37 = vmax.f32 %v522_v33, 0.0  ;;  %v607_v38 = vmax.f32 %v562_v34, 0.0 }
 0x128   : > { %623 = vst [vmem:[%s1047_s10 + $0x30] sm:$0xff] %v590_v35  ;;  %639 = vst [vmem:[%s1047_s10 + $0xb0] sm:$0xff] %v606_v36 }
 0x129   : > { %624 = vst.msk [vmem:[%s1047_s10 + $0x38] sm:$0xff] %vm617_vm0, %v591_v37  ;;  %640 = vst.msk [vmem:[%s1047_s10 + $0xb8] sm:$0xff] %vm617_vm0, %v607_v38  ;;  %v525_v39 = vpop.f32.mrb[8].mxu0  ;;  %v565_v40 = vpop.f32.mrb[8].mxu1 }
 0x12a   : > { %v526_v41 = vadd.f32 %v525_v39, %v1037_v53  ;;  %v566_v42 = vadd.f32 %v565_v40, %v1037_v53  ;;  %v527_v43 = vpop.f32.mrb[9].mxu0  ;;  %v567_v44 = vpop.f32.mrb[9].mxu1 }
 0x12b   : > { %v528_v45 = vadd.f32 %v527_v43, %v1039_v54  ;;  %v568_v46 = vadd.f32 %v567_v44, %v1039_v54  ;;  %v529_v47 = vpop.f32.mrb[10].mxu0  ;;  %v569_v48 = vpop.f32.mrb[10].mxu1 }
 0x12c   : > { %v592_v49 = vmax.f32 %v526_v41, 0.0  ;;  %v608_v50 = vmax.f32 %v566_v42, 0.0  ;;  %v530_v51 = vadd.f32 %v529_v47, %v1037_v53  ;;  %v570_v52 = vadd.f32 %v569_v48, %v1037_v53  ;;  %v531_v55 = vpop.f32.mrb[11].mxu0  ;;  %v571_v56 = vpop.f32.mrb[11].mxu1 }
 0x12d   : > { %v593_v57 = vmax.f32 %v528_v45, 0.0  ;;  %v609_v58 = vmax.f32 %v568_v46, 0.0  ;;  %v532_v59 = vadd.f32 %v531_v55, %v1039_v54  ;;  %v572_v60 = vadd.f32 %v571_v56, %v1039_v54 }
 0x12e   : > { %625 = vst [vmem:[%s1047_s10 + $0x40] sm:$0xff] %v592_v49  ;;  %641 = vst [vmem:[%s1047_s10 + $0xc0] sm:$0xff] %v608_v50  ;;  %v594_v61 = vmax.f32 %v530_v51, 0.0  ;;  %v610_v62 = vmax.f32 %v570_v52, 0.0 }
 0x12f   : > { %626 = vst.msk [vmem:[%s1047_s10 + $0x48] sm:$0xff] %vm617_vm0, %v593_v57  ;;  %642 = vst.msk [vmem:[%s1047_s10 + $0xc8] sm:$0xff] %vm617_vm0, %v609_v58  ;;  %v595_v63 = vmax.f32 %v532_v59, 0.0  ;;  %v611_v0 = vmax.f32 %v572_v60, 0.0 }
 0x130   : > { %627 = vst [vmem:[%s1047_s10 + $0x50] sm:$0xff] %v594_v61  ;;  %643 = vst [vmem:[%s1047_s10 + $0xd0] sm:$0xff] %v610_v62 }
 0x131   : > { %628 = vst.msk [vmem:[%s1047_s10 + $0x58] sm:$0xff] %vm617_vm0, %v595_v63  ;;  %644 = vst.msk [vmem:[%s1047_s10 + $0xd8] sm:$0xff] %vm617_vm0, %v611_v0  ;;  %v535_v1 = vpop.f32.mrb[12].mxu0  ;;  %v575_v2 = vpop.f32.mrb[12].mxu1 }
 0x132   : > { %v536_v3 = vadd.f32 %v535_v1, %v1037_v53  ;;  %v576_v4 = vadd.f32 %v575_v2, %v1037_v53  ;;  %v537_v5 = vpop.f32.mrb[13].mxu0  ;;  %v577_v6 = vpop.f32.mrb[13].mxu1 }
 0x133   : > { %v538_v7 = vadd.f32 %v537_v5, %v1039_v54  ;;  %v578_v8 = vadd.f32 %v577_v6, %v1039_v54  ;;  %v539_v9 = vpop.f32.mrb[14].mxu0  ;;  %v579_v10 = vpop.f32.mrb[14].mxu1 }
 0x134   : > { %v596_v11 = vmax.f32 %v536_v3, 0.0  ;;  %v612_v12 = vmax.f32 %v576_v4, 0.0  ;;  %v540_v13 = vadd.f32 %v539_v9, %v1037_v53  ;;  %v580_v14 = vadd.f32 %v579_v10, %v1037_v53  ;;  %v541_v15 = vpop.f32.mrb[15].mxu0  ;;  %v581_v16 = vpop.f32.mrb[15].mxu1 }
 0x135   : > { %v597_v17 = vmax.f32 %v538_v7, 0.0  ;;  %v613_v18 = vmax.f32 %v578_v8, 0.0  ;;  %v542_v19 = vadd.f32 %v541_v15, %v1039_v54  ;;  %v582_v20 = vadd.f32 %v581_v16, %v1039_v54 }
 0x136   : > { %629 = vst [vmem:[%s1047_s10 + $0x60] sm:$0xff] %v596_v11  ;;  %645 = vst [vmem:[%s1047_s10 + $0xe0] sm:$0xff] %v612_v12  ;;  %v598_v21 = vmax.f32 %v540_v13, 0.0  ;;  %v614_v22 = vmax.f32 %v580_v14, 0.0 }
 0x137   : > { %630 = vst.msk [vmem:[%s1047_s10 + $0x68] sm:$0xff] %vm617_vm0, %v597_v17  ;;  %646 = vst.msk [vmem:[%s1047_s10 + $0xe8] sm:$0xff] %vm617_vm0, %v613_v18  ;;  %v599_v53 = vmax.f32 %v542_v19, 0.0  ;;  %v615_v23 = vmax.f32 %v582_v20, 0.0 }
 0x138   : > { %631 = vst [vmem:[%s1047_s10 + $0x70] sm:$0xff] %v598_v21  ;;  %647 = vst [vmem:[%s1047_s10 + $0xf0] sm:$0x1] %v614_v22 }
 0x139   : > { %632 = vst.msk [vmem:[%s1047_s10 + $0x78] sm:$0xff] %vm617_vm0, %v599_v53 }
 0x13a   : > { %649 = vst.msk [vmem:[%s1047_s10 + $0xf8] sm:$0x1] %vm648_vm1, %v615_v23 }
 0x13b PF: > { %s13_s12 = sadd.s32 1, %s884_s12  }
 0x13c   : > { %p10_p4 = scmp.ge.s32.totalorder %s13_s12, 4  }
 0x13e   :  { %12 = sbr.rel (!%p10_p4) target bundleno = 1 (0x1), region = 62 }

// kernel: mixed_6a.9
= control target key start
LH: loop header
LB: loop body
LE: loop exit
PB: predicated region body
PF: predicated region fallthrough
CT: control target
= control target key end

     0   :  { %s524_s6 = smov 0   ;;  %s831_s0 = inlined_call_operand.vmem [shape: f32[2,55,768], index: 0, kind: input, shape index: {}]   ;;  %s832_s1 = inlined_call_operand.vmem [shape: f32[2,25,256], index: 1, kind: output, shape index: {}]  }
   0x1 LB: > { %s486_s7 = sadd.s32 4294967295, %s512_s6   ;;  %p490_p0 = scmp.ge.s32.totalorder %s512_s6, 1  ;;  %s512_s6 = sphi %s524_s6, %s11_s6  }
   0x2   : > { %p87_p1 = scmp.lt.s32.totalorder %s512_s6, 3 }
   0x4   : > { %p88_p2 = pnand %p490_p0, %p87_p1 }
   0x5   : > { %p107_p3 = scmp.lt.s32.totalorder (!%p88_p2), %s486_s7, 1  ;;  %vm173_vm0 = vcmask (!%p88_p2), 1041408   ;;  %vm308_vm1 = vcmask (!%p88_p2), 1042432  }
   0x6   : > { %91 = sbr.rel (%p88_p2) target bundleno = 67 (0x43), region = 24 }
   0xd   : > { %s834_s7 = smov (!%p107_p3, %s486_s7), 1 }
   0xe   : > { %s497_s8 = smul.u32 336, %s834_s7  ;;  %s496_s12 = sshll.u32 %s834_s7, 6 }
   0xf   : > { %s676_s15 = scalar_lea.vmem %s832_s1, %s496_s12 }
  0x10   : > { %s538_s11 = scalar_lea.vmem %s831_s0, %s497_s8 }
  0x11   : > { %v117_v0 = vld [vmem:[%s538_s11] sm:$0xff]  ;;  %v542_v1 = vld [vmem:[%s538_s11 + $0x30] sm:$0xff]  ;;  %v118_v24 = vld [vmem:[%s538_s11 + $0x8] sm:$0xff] }
  0x12   : > { %v125_v2 = vld [vmem:[%s538_s11 + $0x10] sm:$0xff]  ;;  %v546_v3 = vld [vmem:[%s538_s11 + $0x40] sm:$0xff]  ;;  %v310_v11 = vrot.slane %v542_v1, 5  ;;  %v590_v36 = vld [vmem:[%s538_s11 + $0x38] sm:$0xff] }
  0x13   : > { %v133_v4 = vmax.f32 %v117_v0, %v125_v2  ;;  %v141_v5 = vld [vmem:[%s538_s11 + $0x20] sm:$0xff]  ;;  %v550_v6 = vld [vmem:[%s538_s11 + $0x50] sm:$0xff]  ;;  %v135_v7 = vmax.f32 %v542_v1, %v546_v3  ;;  %v352_v12 = vrot.slane %v546_v3, 5  ;;  %v126_v37 = vld [vmem:[%s538_s11 + $0x18] sm:$0xff]  ;;  %v313_v51 = vrot.slane %v590_v36, 5 }
  0x14   : > { %v157_v8 = vld [vmem:[%s538_s11 + $0x90] sm:$0xc0]  ;;  %v159_v9 = vld [vmem:[%s538_s11 + $0xc0] sm:$0xff]  ;;  %v394_v35 = vrot.slane %v550_v6, 5  ;;  %v599_v41 = vld [vmem:[%s538_s11 + $0x48] sm:$0xff]  ;;  %v134_v42 = vmax.f32 %v118_v24, %v126_v37 }
  0x15   : > { %v557_v10 = vld [vmem:[%s538_s11 + $0xf0] sm:$0xff]  ;;  %v149_v13 = vmax.f32 %v133_v4, %v141_v5  ;;  %v174_v14 = vrot.slane %v157_v8, 6  ;;  %v175_v15 = vrot.slane %v159_v9, 6  ;;  %v204_v17 = vld [vmem:[%s538_s11 + $0xa0] sm:$0xc0]  ;;  %v567_v19 = vmax.f32 %v135_v7, %v550_v6  ;;  %v142_v43 = vld [vmem:[%s538_s11 + $0x28] sm:$0xff] }
  0x16   : > { %v180_v16 = vrot.slane %v557_v10, 6  ;;  %v564_v18 = vld [vmem:[%s538_s11 + $0xd0] sm:$0xff]  ;;  %v220_v20 = vrot.slane %v204_v17, 6  ;;  %v572_v23 = vld [vmem:[%s538_s11 + $0xe0] sm:$0xff]  ;;  %v603_v44 = vld [vmem:[%s538_s11 + $0x58] sm:$0xff]  ;;  %v136_v47 = vmax.f32 %v590_v36, %v599_v41  ;;  %v150_v54 = vmax.f32 %v134_v42, %v142_v43 }
  0x17   : > { %v221_v21 = vrot.slane %v564_v18, 6  ;;  %v250_v22 = vld [vmem:[%s538_s11 + $0xb0] sm:$0xc0]  ;;  %v176_v25 = vsel %vm173_vm0, %v174_v14, %v175_v15  ;;  %v267_v28 = vrot.slane %v572_v23, 6  ;;  %v296_v29 = vld [vmem:[%s538_s11] sm:$0xe0] }
  0x18   : > { %v579_v26 = vsel %vm173_vm0, %v175_v15, %v180_v16  ;;  %v266_v27 = vrot.slane %v250_v22, 6  ;;  %v339_v30 = vld [vmem:[%s538_s11 + $0x10] sm:$0xe0]  ;;  %v196_v31 = vmax.f32 %v149_v13, %v176_v25  ;;  %v309_v33 = vrot.slane %v296_v29, 5  ;;  %v381_v34 = vld [vmem:[%s538_s11 + $0x20] sm:$0xe0] }
  0x19   : > { %v222_v32 = vsel %vm173_vm0, %v220_v20, %v221_v21  ;;  %v198_v38 = vmax.f32 %v567_v19, %v579_v26  ;;  %v351_v40 = vrot.slane %v339_v30, 5  ;;  %v393_v46 = vrot.slane %v381_v34, 5  ;;  %v158_v48 = vld [vmem:[%s538_s11 + $0x98] sm:$0xc0]  ;;  %v160_v49 = vld [vmem:[%s538_s11 + $0xc8] sm:$0xff]  ;;  %v644_v20 = vld [vmem:[%s538_s11 + $0x60] sm:$0xff] }
  0x1a   : > { %v268_v39 = vsel %vm173_vm0, %v266_v27, %v267_v28  ;;  %v242_v45 = vmax.f32 %v196_v31, %v222_v32  ;;  %v610_v50 = vld [vmem:[%s538_s11 + $0xf8] sm:$0xff]  ;;  %v311_v52 = vsel %vm308_vm1, %v309_v33, %v310_v11  ;;  %v177_v55 = vrot.slane %v158_v48, 6  ;;  %v205_v56 = vld [vmem:[%s538_s11 + $0xa8] sm:$0xc0]  ;;  %v647_v22 = vld [vmem:[%s538_s11 + $0x70] sm:$0xff] }
  0x1b   : > { %v353_v53 = vsel %vm308_vm1, %v351_v40, %v352_v12  ;;  %v621_v57 = vld [vmem:[%s538_s11 + $0xd8] sm:$0xff]  ;;  %v625_v60 = vmax.f32 %v136_v47, %v603_v44  ;;  %v178_v61 = vrot.slane %v160_v49, 6  ;;  %v182_v62 = vrot.slane %v610_v50, 6  ;;  %v629_v63 = vld [vmem:[%s538_s11 + $0xe8] sm:$0xff]  ;;  %v658_v30 = vld [vmem:[%s538_s11 + $0x120] sm:$0x7f] }
  0x1c   : > { %v251_v58 = vld [vmem:[%s538_s11 + $0xb8] sm:$0xc0]  ;;  %v288_v59 = vmax.f32 %v242_v45, %v268_v39  ;;  %v297_v0 = vld [vmem:[%s538_s11 + $0x8] sm:$0xe0]  ;;  %v223_v2 = vrot.slane %v205_v56, 6  ;;  %v224_v4 = vrot.slane %v621_v57, 6  ;;  %v395_v24 = vsel %vm308_vm1, %v393_v46, %v394_v35 }
  0x1d   : > { %v269_v5 = vrot.slane %v251_v58, 6  ;;  %v270_v7 = vrot.slane %v629_v63, 6  ;;  %v340_v8 = vld [vmem:[%s538_s11 + $0x18] sm:$0xe0]  ;;  %v179_v13 = vsel %vm173_vm0, %v177_v55, %v178_v61  ;;  %v640_v14 = vsel %vm173_vm0, %v178_v61, %v182_v62  ;;  %v382_v17 = vld [vmem:[%s538_s11 + $0x28] sm:$0xe0] }
  0x1e   : > { %v331_v9 = vmax.f32 %v288_v59, %v311_v52  ;;  %v312_v15 = vrot.slane %v297_v0, 5  ;;  %v197_v25 = vmax.f32 %v150_v54, %v179_v13  ;;  %v199_v27 = vmax.f32 %v625_v60, %v640_v14  ;;  %v661_v31 = vld [vmem:[%s538_s11 + $0x100] sm:$0xff]  ;;  %v671_v40 = vld [vmem:[%s538_s11 + $0x110] sm:$0xff]  ;;  %v692_v58 = vld [vmem:[%s538_s11 + $0x68] sm:$0xff] }
  0x1f   : > { %v225_v29 = vsel %vm173_vm0, %v223_v2, %v224_v4  ;;  %v271_v33 = vsel %vm173_vm0, %v269_v5, %v270_v7  ;;  %v354_v34 = vrot.slane %v340_v8, 5  ;;  %v355_v37 = vrot.slane %v599_v41, 5  ;;  %v668_v39 = vld [vmem:[%s538_s11 + $0x80] sm:$0xff]  ;;  %v695_v59 = vld [vmem:[%s538_s11 + $0x78] sm:$0xff]  ;;  %v709_v5 = vld [vmem:[%s538_s11 + $0x128] sm:$0x7f] }
  0x20   : > { %v373_v32 = vmax.f32 %v331_v9, %v353_v53  ;;  %v243_v42 = vmax.f32 %v197_v25, %v225_v29  ;;  %v396_v43 = vrot.slane %v382_v17, 5  ;;  %v397_v45 = vrot.slane %v603_v44, 5  ;;  %v712_v8 = vld [vmem:[%s538_s11 + $0x108] sm:$0xff]  ;;  %v746_v25 = vld [vmem:[%s538_s11 + $0x130] sm:$0x7f] }
  0x21   : > { %v137_v46 = vmax.f32 %v644_v20, %v647_v22  ;;  %v314_v48 = vsel %vm308_vm1, %v312_v15, %v313_v51  ;;  %v184_v49 = vrot.slane %v658_v30, 6  ;;  %v226_v52 = vrot.slane %v661_v31, 6  ;;  %v724_v18 = vld [vmem:[%s538_s11 + $0x88] sm:$0xff]  ;;  %v384_v41 = vld [vmem:[%s538_s11 + $0xb8] sm:$0x3f] }
  0x22   : > { %v415_v47 = vmax.f32 %v373_v32, %v395_v24  ;;  %v289_v53 = vmax.f32 %v243_v42, %v271_v33  ;;  %v356_v54 = vsel %vm308_vm1, %v354_v34, %v355_v37  ;;  %v272_v56 = vrot.slane %v671_v40, 6  ;;  %v757_v32 = vld [vmem:[%s538_s11 + $0x140] sm:$0x7f]  ;;  %v760_v33 = vld [vmem:[%s538_s11 + $0x90] sm:$0x3f] }
  0x23   : > { %v153_v55 = vmax.f32 %v137_v46, %v668_v39  ;;  %v185_v60 = vsel %vm173_vm0, %v180_v16, %v184_v49  ;;  %v227_v61 = vsel %vm173_vm0, %v221_v21, %v226_v52  ;;  %v315_v0 = vrot.slane %v644_v20, 5  ;;  %v727_v21 = vld [vmem:[%s538_s11 + $0x118] sm:$0xff]  ;;  %v257_v46 = vld [vmem:[%s538_s11 + $0x148] sm:$0x7f]  ;;  %v131_v44 = vld [vmem:[%s538_s11 + $0xa0] sm:$0x1] }
  0x24   : > { %423 = vst [vmem:[%s676_s15] sm:$0xff] %v415_v47  ;;  %v357_v2 = vrot.slane %v647_v22, 5  ;;  %v332_v9 = vmax.f32 %v289_v53, %v314_v48  ;;  %v398_v13 = vsel %vm308_vm1, %v396_v43, %v397_v45  ;;  %v244_v10 = vmax.f32 %v198_v38, %v227_v61  ;;  %v211_v43 = vld [vmem:[%s538_s11 + $0x138] sm:$0x7f] }
  0x25   : > { %v273_v16 = vsel %vm173_vm0, %v267_v28, %v272_v56  ;;  %v200_v14 = vmax.f32 %v153_v55, %v185_v60  ;;  %v316_v15 = vsel %vm308_vm1, %v310_v11, %v315_v0  ;;  %v399_v17 = vrot.slane %v668_v39, 5  ;;  %v299_v55 = vld [vmem:[%s538_s11 + $0x98] sm:$0x3f] }
  0x26   : > { %v138_v19 = vmax.f32 %v692_v58, %v695_v59  ;;  %v374_v23 = vmax.f32 %v332_v9, %v356_v54  ;;  %v290_v26 = vmax.f32 %v244_v10, %v273_v16  ;;  %v186_v28 = vrot.slane %v709_v5, 6  ;;  %v123_v9 = vld [vmem:[%s538_s11 + $0x90] sm:$0x1] }
  0x27   : > { %v228_v38 = vrot.slane %v712_v8, 6  ;;  %v358_v1 = vsel %vm308_vm1, %v352_v12, %v357_v2  ;;  %v274_v20 = vrot.slane %v727_v21, 6  ;;  %v317_v24 = vrot.slane %v692_v58, 5  ;;  %v342_v8 = vld [vmem:[%s538_s11 + $0xa8] sm:$0x3f] }
  0x28   : > { %v154_v11 = vmax.f32 %v138_v19, %v724_v18  ;;  %v416_v29 = vmax.f32 %v374_v23, %v398_v13  ;;  %v333_v31 = vmax.f32 %v290_v26, %v316_v15  ;;  %v187_v3 = vsel %vm173_vm0, %v182_v62, %v186_v28  ;;  %v774_v62 = vld [vmem:[%s538_s11 + $0xa0] sm:$0x3f]  ;;  %v124_v21 = vld [vmem:[%s538_s11 + $0x98] sm:$0x1] }
  0x29   : > { %v229_v12 = vsel %vm173_vm0, %v224_v4, %v228_v38  ;;  %v400_v34 = vsel %vm308_vm1, %v394_v35, %v399_v17  ;;  %v275_v50 = vsel %vm173_vm0, %v270_v7, %v274_v20  ;;  %v318_v57 = vsel %vm308_vm1, %v313_v51, %v317_v24 }
  0x2a   : > { %v245_v40 = vmax.f32 %v199_v27, %v229_v12  ;;  %424 = vst [vmem:[%s676_s15 + $0x8] sm:$0xff] %v416_v29  ;;  %v375_v4 = vmax.f32 %v333_v31, %v358_v1  ;;  %v359_v6 = vrot.slane %v695_v59, 5  ;;  %v401_v42 = vrot.slane %v724_v18, 5  ;;  %v781_v27 = vld [vmem:[%s538_s11 + $0xb0] sm:$0x3f] }
  0x2b   : > { %v230_v35 = vrot.slane %v746_v25, 6  ;;  %v201_v63 = vmax.f32 %v154_v11, %v187_v3  ;;  %v276_v36 = vrot.slane %v757_v32, 6  ;;  %v319_v51 = vrot.slane %v760_v33, 5  ;;  %v147_v25 = vld [vmem:[%s538_s11 + $0xb0] sm:$0x1] }
  0x2c   : > { %v291_v7 = vmax.f32 %v245_v40, %v275_v50  ;;  %v417_v47 = vmax.f32 %v375_v4, %v400_v34  ;;  %v360_v48 = vsel %vm308_vm1, %v355_v37, %v359_v6  ;;  %v361_v54 = vrot.slane %v774_v62, 5  ;;  %v148_v29 = vld [vmem:[%s538_s11 + $0xb8] sm:$0x1] }
  0x2d   : > { %v231_v53 = vsel %vm173_vm0, %v226_v52, %v230_v35  ;;  %v402_v59 = vsel %vm308_vm1, %v397_v45, %v401_v42  ;;  %v277_v61 = vsel %vm173_vm0, %v272_v56, %v276_v36  ;;  %v320_v37 = vsel %vm308_vm1, %v315_v0, %v319_v51 }
  0x2e   : > { %v334_v58 = vmax.f32 %v291_v7, %v318_v57  ;;  %v246_v60 = vmax.f32 %v200_v14, %v231_v53  ;;  %425 = vst [vmem:[%s676_s15 + $0x10] sm:$0xff] %v417_v47  ;;  %v403_v52 = vrot.slane %v781_v27, 5  ;;  %v232_v13 = vrot.slane %v211_v43, 6  ;;  %v132_v14 = vld [vmem:[%s538_s11 + $0xa8] sm:$0x1] }
  0x2f   : > { %v278_v10 = vrot.slane %v257_v46, 6  ;;  %v321_v45 = vrot.slane %v299_v55, 5  ;;  %v362_v56 = vsel %vm308_vm1, %v357_v2, %v361_v54  ;;  %v363_v19 = vrot.slane %v342_v8, 5 }
  0x30   : > { %v376_v16 = vmax.f32 %v334_v58, %v360_v48  ;;  %v292_v18 = vmax.f32 %v246_v60, %v277_v61  ;;  %v233_v15 = vsel %vm173_vm0, %v228_v38, %v232_v13  ;;  %v404_v1 = vsel %vm308_vm1, %v399_v17, %v403_v52 }
  0x31   : > { %v279_v0 = vsel %vm173_vm0, %v274_v20, %v278_v10  ;;  %v247_v11 = vmax.f32 %v201_v63, %v233_v15  ;;  %v322_v31 = vsel %vm308_vm1, %v317_v24, %v321_v45  ;;  %v405_v22 = vrot.slane %v384_v41, 5 }
  0x32   : > { %v418_v23 = vmax.f32 %v376_v16, %v402_v59  ;;  %v335_v26 = vmax.f32 %v292_v18, %v320_v37  ;;  %v139_v3 = vmax.f32 %v123_v9, %v131_v44  ;;  %v140_v2 = vmax.f32 %v124_v21, %v132_v14 }
  0x33   : > { %v293_v12 = vmax.f32 %v247_v11, %v279_v0  ;;  %v364_v20 = vsel %vm308_vm1, %v359_v6, %v363_v19  ;;  %v406_v17 = vsel %vm308_vm1, %v401_v42, %v405_v22 }
  0x34   : > { %426 = vst [vmem:[%s676_s15 + $0x18] sm:$0xff] %v418_v23  ;;  %v377_v38 = vmax.f32 %v335_v26, %v362_v56  ;;  %v155_v32 = vmax.f32 %v139_v3, %v147_v25  ;;  %v156_v33 = vmax.f32 %v140_v2, %v148_v29 }
  0x35   : > { %v336_v34 = vmax.f32 %v293_v12, %v322_v31 }
  0x36   : > { %v419_v39 = vmax.f32 %v377_v38, %v404_v1  ;;  %v202_v40 = vmax.f32 %v155_v32, %v184_v49  ;;  %v203_v24 = vmax.f32 %v156_v33, %v186_v28 }
  0x37   : > { %v378_v50 = vmax.f32 %v336_v34, %v364_v20 }
  0x38   : > { %427 = vst [vmem:[%s676_s15 + $0x20] sm:$0xff] %v419_v39  ;;  %v248_v57 = vmax.f32 %v202_v40, %v230_v35  ;;  %v249_v62 = vmax.f32 %v203_v24, %v232_v13 }
  0x39   : > { %v420_v4 = vmax.f32 %v378_v50, %v406_v17 }
  0x3a   : > { %v294_v6 = vmax.f32 %v248_v57, %v276_v36  ;;  %v295_v27 = vmax.f32 %v249_v62, %v278_v10 }
  0x3b   : > { %428 = vst [vmem:[%s676_s15 + $0x28] sm:$0xff] %v420_v4 }
  0x3c   : > { %v337_v63 = vmax.f32 %v294_v6, %v319_v51  ;;  %v338_v7 = vmax.f32 %v295_v27, %v321_v45 }
  0x3e   : > { %v379_v43 = vmax.f32 %v337_v63, %v361_v54  ;;  %v380_v42 = vmax.f32 %v338_v7, %v363_v19 }
  0x40   : > { %v421_v46 = vmax.f32 %v379_v43, %v403_v52  ;;  %v422_v30 = vmax.f32 %v380_v42, %v405_v22 }
  0x42   : > { %429 = vst [vmem:[%s676_s15 + $0x30] sm:$0x1] %v421_v46  ;;  %430 = vst [vmem:[%s676_s15 + $0x38] sm:$0x1] %v422_v30 }
  0x43 PF: > { %s11_s6 = sadd.s32 1, %s512_s6  }
  0x44   : > { %p8_p4 = scmp.ge.s32.totalorder %s11_s6, 4  }
  0x46   :  { %10 = sbr.rel (!%p8_p4) target bundleno = 1 (0x1), region = 54 }

// kernel: mixed_6a.7
= control target key start
LH: loop header
LB: loop body
LE: loop exit
PB: predicated region body
PF: predicated region fallthrough
CT: control target
= control target key end

     0   :  { %s5066_s12 = smov 0   ;;  %s6756_s0 = inlined_call_operand.vmem [shape: bf16[2,143,576], index: 0, kind: input, shape index: {}]   ;;  %s6757_s1 = inlined_call_operand.vmem [shape: bf16[3,576,192], index: 1, kind: input, shape index: {}]   ;;  %s6758_s2 = inlined_call_operand.vmem [shape: f32[1,192], index: 2, kind: input, shape index: {}]   ;;  %s6759_s3 = inlined_call_operand.vmem [shape: f32[2,121,192], index: 3, kind: output, shape index: {}]  }
   0x1 LB: > { %s3789_s13 = sadd.s32 4294967295, %s5043_s12   ;;  %p3793_p0 = scmp.ge.s32.totalorder %s5043_s12, 1  ;;  %s5043_s12 = sphi %s5066_s12, %s13_s12  }
   0x2   : > { %p137_p1 = scmp.lt.s32.totalorder %s5043_s12, 3 }
   0x4   : > { %p138_p2 = pnand %p3793_p0, %p137_p1 }
   0x6   : > { %141 = sbr.rel (%p138_p2) target bundleno = 559 (0x22f), region = 32 }
   0xd   : > { %v4602_v0 = vld [vmem:[%s6757_s1 + $0x244] ss:$8 sps:$4 sm:$0xff]   ;;  %p161_p3 = scmp.lt.s32.totalorder %s3789_s13, 1  ;;  %v6764_v2 = vmov 0   ;;  %v4606_v3 = vld [vmem:[%s6757_s1 + $0x240] ss:$8 sps:$4 sm:$0xff]  }
   0xe   : > { %v4604_v1 = vld [vmem:[%s6757_s1 + $0x444] ss:$8 sps:$4 sm:$0xff]   ;;  %1573 = vmatprep.mubr.bf16.mxu0 %v6764_v2  ;;  %1315 = vmatprep.subr.bf16.mxu1 %v4602_v0  ;;  %v4607_v4 = vld [vmem:[%s6757_s1 + $0x440] ss:$8 sps:$4 sm:$0xff]   ;;  %v4608_v5 = vld [vmem:[%s6757_s1 + $0x254] ss:$8 sps:$4 sm:$0xff]  }
   0xf   : > { %s6819_s13 = smov (!%p161_p3, %s3789_s13), 1  ;;  %1541 = vmatprep.subr.bf16.mxu0 %v4604_v1  ;;  %1316 = vmatpush1.bf16.msra.mxu1 %v4606_v3  ;;  %v4610_v6 = vld [vmem:[%s6757_s1 + $0x454] ss:$8 sps:$4 sm:$0xff]   ;;  %v4612_v7 = vld [vmem:[%s6757_s1 + $0x250] ss:$8 sps:$4 sm:$0xff]   ;;  %vm1290_vm1 = vcmask 523264  }
  0x10   : > { %1542 = vmatpush1.bf16.msra.mxu0 %v4607_v4  ;;  %s4592_s28 = smul.u32 360, %s6819_s13  ;;  %1317 = vmatprep.subr.bf16.mxu1 %v4608_v5  ;;  %v4613_v8 = vld [vmem:[%s6757_s1 + $0x450] ss:$8 sps:$4 sm:$0xff]   ;;  %v4614_v9 = vld [vmem:[%s6757_s1 + $0x264] ss:$8 sps:$4 sm:$0xff]   ;;  %vm2762_vm2 = vcmask 1044480  }
  0x11   : > { %1543 = vmatprep.subr.bf16.mxu0 %v4610_v6  ;;  %v4616_v10 = vld [vmem:[%s6757_s1 + $0x464] ss:$8 sps:$4 sm:$0xff]   ;;  %v4618_v11 = vld [vmem:[%s6757_s1 + $0x260] ss:$8 sps:$4 sm:$0xff]   ;;  %v4620_v13 = vld [vmem:[%s6757_s1 + $0x274] ss:$8 sps:$4 sm:$0xff]  }
  0x12   : > { %v4619_v12 = vld [vmem:[%s6757_s1 + $0x460] ss:$8 sps:$4 sm:$0xff]   ;;  %s5120_s18 = scalar_lea.vmem %s6756_s0, %s4592_s28  ;;  %v4622_v14 = vld [vmem:[%s6757_s1 + $0x474] ss:$8 sps:$4 sm:$0xff]   ;;  %v4624_v15 = vld [vmem:[%s6757_s1 + $0x270] ss:$8 sps:$4 sm:$0xff]  }
  0x13   : > { %1318 = vmatpush1.bf16.msra.mxu1 %v4612_v7  ;;  %v4625_v16 = vld [vmem:[%s6757_s1 + $0x470] ss:$8 sps:$4 sm:$0xff]   ;;  %v5135_v18 = vld [vmem:[%s5120_s18 + $0x4c] sm:$0xf]  ;;  %v5138_v19 = vld [vmem:[%s5120_s18 + $0x60] sm:$0xf] }
  0x14   : > { %1544 = vmatpush1.bf16.msra.mxu0 %v4613_v8  ;;  %1319 = vmatprep.subr.bf16.mxu1 %v4614_v9  ;;  %v5132_v17 = vld [vmem:[%s5120_s18 + $0x38] sm:$0xf]  ;;  %v294_v20 = vld [vmem:[%s5120_s18 + $0x24] sm:$0xe]  ;;  %v3878_v23 = vcombine.low %v5135_v18, %v5138_v19  ;;  %vm542_vm0 = vsmask.f32 6400 }
  0x15   : > { %1545 = vmatprep.subr.bf16.mxu0 %v4616_v10  ;;  %v4626_v21 = vld [vmem:[%s6757_s1 + $0x284] ss:$8 sps:$4 sm:$0xff]   ;;  %v3873_v22 = vcombine.low %v294_v20, %v5132_v17  ;;  %v3998_v24 = vcombine.low %v5132_v17, %v5135_v18  ;;  %v4630_v30 = vld [vmem:[%s6757_s1 + $0x280] ss:$8 sps:$4 sm:$0xff]   ;;  %v4634_v35 = vld [vmem:[%s6757_s1 + $0x294] ss:$8 sps:$4 sm:$0xff]  }
  0x16   : > { %v4633_v25 = vld [vmem:[%s6757_s1 + $0x204] ss:$8 sps:$4 sm:$0xff]   ;;  %v620_v28 = vshrl.u32 %v3878_v23, 16  ;;  %v623_v29 = vshll.u32 %v3878_v23, 16  ;;  %v5159_v36 = vld [vmem:[%s5120_s18 + $0x74] sm:$0xf] }
  0x17   : > { %1320 = vmatpush1.bf16.msra.mxu1 %v4618_v11  ;;  %v612_v26 = vshrl.u32 %v3873_v22, 16  ;;  %v615_v27 = vshll.u32 %v3873_v22, 16  ;;  %v5162_v37 = vld [vmem:[%s5120_s18 + $0x88] sm:$0xf]  ;;  %v4003_v42 = vcombine.low %v5138_v19, %v5159_v36  ;;  %v4636_v43 = vld [vmem:[%s6757_s1 + $0x290] ss:$8 sps:$4 sm:$0xff]  }
  0x18   : > { %1546 = vmatpush1.bf16.msra.mxu0 %v4619_v12  ;;  %1321 = vmatprep.subr.bf16.mxu1 %v4620_v13  ;;  %v622_v33 = vrot.slane %v620_v28, 1  ;;  %v625_v34 = vrot.slane %v623_v29, 2  ;;  %v4631_v40 = vld [vmem:[%s6757_s1 + $0x200] ss:$8 sps:$4 sm:$0xff]   ;;  %v3883_v41 = vcombine.low %v5159_v36, %v5162_v37  ;;  %v4637_v45 = vld [vmem:[%s6757_s1 + $0x2a4] ss:$8 sps:$4 sm:$0xff]  }
  0x19   : > { %1547 = vmatprep.subr.bf16.mxu0 %v4622_v14  ;;  %v614_v31 = vrot.slane %v612_v26, 1  ;;  %v617_v32 = vrot.slane %v615_v27, 2  ;;  %v5179_v48 = vld [vmem:[%s5120_s18 + $0x9c] sm:$0xf]  ;;  %v5183_v49 = vld [vmem:[%s5120_s18 + $0xb0] sm:$0xf] }
  0x1a   : > { %v626_v39 = vor.u32 %v625_v34, %v622_v33  ;;  %v665_v46 = vshrl.u32 %v3883_v41, 16  ;;  %v668_v47 = vshll.u32 %v3883_v41, 16  ;;  %v4008_v50 = vcombine.low %v5162_v37, %v5179_v48  ;;  %v4648_v54 = vld [vmem:[%s6757_s1 + $0x210] ss:$8 sps:$4 sm:$0xff]   ;;  %v4640_v55 = vld [vmem:[%s6757_s1 + $0x2a0] ss:$8 sps:$4 sm:$0xff]  }
  0x1b   : > { %1322 = vmatpush1.bf16.msra.mxu1 %v4624_v15  ;;  %v618_v38 = vor.u32 %v617_v32, %v614_v31  ;;  %v3888_v53 = vcombine.low %v5179_v48, %v5183_v49  ;;  %v4650_v56 = vld [vmem:[%s6757_s1 + $0x214] ss:$8 sps:$4 sm:$0xff]   ;;  %v5203_v61 = vld [vmem:[%s5120_s18 + $0xc4] sm:$0xf]  ;;  %v5206_v62 = vld [vmem:[%s5120_s18 + $0xd8] sm:$0xf] }
  0x1c   : > { %1548 = vmatpush1.bf16.msra.mxu0 %v4625_v16  ;;  %1323 = vmatprep.subr.bf16.mxu1 %v4626_v21  ;;  %v667_v51 = vrot.slane %v665_v46, 1  ;;  %v670_v52 = vrot.slane %v668_v47, 2  ;;  %v4641_v58 = vld [vmem:[%s6757_s1 + $0x2b4] ss:$8 sps:$4 sm:$0xff]   ;;  %v3893_v3 = vcombine.low %v5203_v61, %v5206_v62  ;;  %v4643_v4 = vld [vmem:[%s6757_s1 + $0x2b0] ss:$8 sps:$4 sm:$0xff]   ;;  %v4013_v5 = vcombine.low %v5183_v49, %v5203_v61 }
  0x1d   : > { %2360 = vmatprep.subr.bf16.mxu0 %v4633_v25  ;;  %v627_v44 = vsel %vm542_vm0, %v618_v38, %v626_v39  ;;  %v710_v59 = vshrl.u32 %v3888_v53, 16  ;;  %v713_v60 = vshll.u32 %v3888_v53, 16  ;;  %v4644_v6 = vld [vmem:[%s6757_s1 + $0x2c4] ss:$8 sps:$4 sm:$0xff]   ;;  %v4647_v7 = vld [vmem:[%s6757_s1 + $0x2c0] ss:$8 sps:$4 sm:$0xff]  }
  0x1e   : > { %v671_v57 = vor.u32 %v670_v52, %v667_v51  ;;  %v5224_v8 = vld [vmem:[%s5120_s18 + $0xec] sm:$0xf]  ;;  %v755_v10 = vshrl.u32 %v3893_v3, 16  ;;  %v758_v11 = vshll.u32 %v3893_v3, 16  ;;  %v4665_v12 = vld [vmem:[%s6757_s1 + $0x220] ss:$8 sps:$4 sm:$0xff]  }
  0x1f   : > { %1324 = vmatpush1.bf16.msra.mxu1 %v4630_v30  ;;  %3981 = vmatmul.mubr.msk.bf16.vlgmr.msra.gmra.mrb[0].mxu0 %vm1290_vm1, %v627_v44  ;;  %v712_v0 = vrot.slane %v710_v59, 1  ;;  %v715_v1 = vrot.slane %v713_v60, 2  ;;  %v5231_v13 = vld [vmem:[%s5120_s18 + $0x100] sm:$0xf]  ;;  %v4667_v14 = vld [vmem:[%s6757_s1 + $0x224] ss:$8 sps:$4 sm:$0xff]  }
  0x20   : > { %1325 = vmatprep.subr.bf16.mxu1 %v4634_v35  ;;  %2361 = vmatpush1.bf16.msra.mxu0 %v4631_v40  ;;  %v672_v63 = vsel %vm542_vm0, %v626_v39, %v671_v57  ;;  %v4651_v16 = vld [vmem:[%s6757_s1 + $0x2d4] ss:$8 sps:$4 sm:$0xff]   ;;  %v757_v21 = vrot.slane %v755_v10, 1  ;;  %v760_v22 = vrot.slane %v758_v11, 2  ;;  %v3898_v23 = vcombine.low %v5224_v8, %v5231_v13  ;;  %v4653_v26 = vld [vmem:[%s6757_s1 + $0x2d0] ss:$8 sps:$4 sm:$0xff]  }
  0x21   : > { %1583 = vmatprep.mubr.bf16.mxu0 %v6764_v2  ;;  %2362 = vmatprep.subr.bf16.mxu0 %v4650_v56  ;;  %v716_v9 = vor.u32 %v715_v1, %v712_v0  ;;  %v5245_v25 = vld [vmem:[%s5120_s18 + $0x114] sm:$0xf]  ;;  %v4654_v27 = vld [vmem:[%s6757_s1 + $0x2e4] ss:$8 sps:$4 sm:$0xff]   ;;  %v181_v30 = vld [vmem:[%s5120_s18 + $0x3c] sm:$0xff]  ;;  %s4303_s17 = sshll.u32 %s6819_s13, 8 }
  0x22   : > { %v178_v28 = vld [vmem:[%s5120_s18 + $0x28] sm:$0xff]  ;;  %v184_v31 = vld [vmem:[%s5120_s18 + $0x50] sm:$0xff]  ;;  %v761_v38 = vor.u32 %v760_v22, %v757_v21  ;;  %v800_v40 = vshrl.u32 %v3898_v23, 16  ;;  %v803_v41 = vshll.u32 %v3898_v23, 16  ;;  %s6645_s21 = scalar_lea.vmem %s6759_s3, %s4303_s17  ;;  %vm3732_vm3 = vcmask 516096  }
  0x23   : > { %1326 = vmatpush1.bf16.msra.mxu1 %v4636_v43  ;;  %v717_v20 = vsel %vm542_vm0, %v671_v57, %v716_v9  ;;  %v292_v32 = vld [vmem:[%s5120_s18 + $0x14] sm:$0xee]  ;;  %v216_v33 = vld [vmem:[%s5120_s18 + $0x128] sm:$0xf]  ;;  %v3875_v35 = vcombine.high %v181_v30, %v184_v31  ;;  %v4738_v18 = vld [vmem:[%s6757_s1 + $0x4c4] ss:$8 sps:$4 sm:$0xff]  }
  0x24   : > { %1327 = vmatprep.subr.bf16.mxu1 %v4637_v45  ;;  %2363 = vmatpush1.bf16.msra.mxu0 %v4648_v54  ;;  %v3870_v34 = vcombine.high %v292_v32, %v178_v28  ;;  %v4657_v39 = vld [vmem:[%s6757_s1 + $0x2e0] ss:$8 sps:$4 sm:$0xff]   ;;  %v4658_v47 = vld [vmem:[%s6757_s1 + $0x2f4] ss:$8 sps:$4 sm:$0xff]   ;;  %v3903_v51 = vcombine.low %v5245_v25, %v216_v33  ;;  %v4660_v52 = vld [vmem:[%s6757_s1 + $0x2f0] ss:$8 sps:$4 sm:$0xff]   ;;  %v762_v57 = vsel %vm542_vm0, %v716_v9, %v761_v38 }
  0x25   : > { %2364 = vmatprep.subr.bf16.mxu0 %v4667_v14  ;;  %v569_v45 = vshrl.u32 %v3875_v35, 16  ;;  %v572_v46 = vshll.u32 %v3875_v35, 16  ;;  %v805_v59 = vrot.slane %v803_v41, 2  ;;  %v4686_v60 = vld [vmem:[%s6757_s1 + $0x230] ss:$8 sps:$4 sm:$0xff]   ;;  %v187_v3 = vld [vmem:[%s5120_s18 + $0x64] sm:$0xff] }
  0x26   : > { %v561_v43 = vshrl.u32 %v3870_v34, 16  ;;  %v564_v44 = vshll.u32 %v3870_v34, 16  ;;  %v4688_v1 = vld [vmem:[%s6757_s1 + $0x234] ss:$8 sps:$4 sm:$0xff]   ;;  %v5286_v10 = vcombine.low %v184_v31, %v187_v3  ;;  %v5288_v11 = vcombine.high %v184_v31, %v187_v3  ;;  %v4664_v21 = vld [vmem:[%s6757_s1 + $0x300] ss:$8 sps:$4 sm:$0xff]  }
  0x27   : > { %1328 = vmatpush1.bf16.msra.mxu1 %v4640_v55  ;;  %3982 = vmatmul.mubr.msk.bf16.gmra.mrb[4].mxu0 %vm1290_vm1, %v672_v63  ;;  %v571_v55 = vrot.slane %v569_v45, 1  ;;  %v574_v56 = vrot.slane %v572_v46, 2  ;;  %v190_v9 = vld [vmem:[%s5120_s18 + $0x78] sm:$0xff]  ;;  %v4732_v17 = vld [vmem:[%s6757_s1 + $0x3c0] ss:$8 sps:$4 sm:$0xff]   ;;  %v5665_v15 = vld [vmem:[%s5120_s18 + $0xd0] sm:$0xff] }
  0x28   : > { %1329 = vmatprep.subr.bf16.mxu1 %v4641_v58  ;;  %1593 = vmatprep.mubr.bf16.mxu0 %v6764_v2  ;;  %v563_v53 = vrot.slane %v561_v43, 1  ;;  %v566_v54 = vrot.slane %v564_v44, 2  ;;  %v802_v58 = vrot.slane %v800_v40, 1  ;;  %v3880_v22 = vcombine.high %v187_v3, %v190_v9  ;;  %v4668_v23 = vld [vmem:[%s6757_s1 + $0x314] ss:$8 sps:$4 sm:$0xff]   ;;  %v5675_v61 = vld [vmem:[%s5120_s18 + $0xe4] sm:$0xff] }
  0x29   : > { %2365 = vmatpush1.bf16.msra.mxu0 %v4665_v12  ;;  %v5276_v0 = vor.u32 %v574_v56, %v571_v55  ;;  %v848_v12 = vshll.u32 %v3903_v51, 16  ;;  %v4671_v40 = vld [vmem:[%s6757_s1 + $0x324] ss:$8 sps:$4 sm:$0xff]   ;;  %v4747_v19 = vld [vmem:[%s6757_s1 + $0x3e0] ss:$8 sps:$4 sm:$0xff]  }
  0x2a   : > { %v567_v63 = vor.u32 %v566_v54, %v563_v53  ;;  %2366 = vmatprep.subr.bf16.mxu0 %v4688_v1  ;;  %v638_v41 = vshrl.u32 %v3880_v22, 16  ;;  %v641_v43 = vshll.u32 %v3880_v22, 16  ;;  %v4708_v54 = vld [vmem:[%s6757_s1 + $0x484] ss:$8 sps:$4 sm:$0xff]   ;;  %v4675_v1 = vld [vmem:[%s6757_s1 + $0x334] ss:$8 sps:$4 sm:$0xff]  }
  0x2b   : > { %1330 = vmatpush1.bf16.msra.mxu1 %v4643_v4  ;;  %v4661_v4 = vld [vmem:[%s6757_s1 + $0x304] ss:$8 sps:$4 sm:$0xff]  }
  0x2c   : > { %1331 = vmatprep.subr.bf16.mxu1 %v4644_v6  ;;  %v845_v6 = vshrl.u32 %v3903_v51, 16  ;;  %v576_v14 = vsel %vm542_vm0, %v567_v63, %v5276_v0  ;;  %v4753_v36 = vld [vmem:[%s6757_s1 + $0x4e4] ss:$8 sps:$4 sm:$0xff]  }
  0x2d   : > { %1347 = vmatprep.mubr.bf16.mxu1 %v576_v14  ;;  %2367 = vmatpush1.bf16.msra.mxu0 %v4686_v60  ;;  %v3879_v60 = vcombine.low %v187_v3, %v190_v9  ;;  %v4768_v48 = vld [vmem:[%s6757_s1 + $0x504] ss:$8 sps:$4 sm:$0xff]  }
  0x2e   : > { %3254 = vmatprep.subr.bf16.mxu0 %v4708_v54 }
  0x2f   : > { %1332 = vmatpush1.bf16.msra.mxu1 %v4647_v7  ;;  %3983 = vmatmul.mubr.msk.bf16.gmra.mrb[8].mxu0 %vm1290_vm1, %v717_v20  ;;  %v3869_v7 = vcombine.low %v292_v32, %v178_v28  ;;  %v3874_v20 = vcombine.low %v181_v30, %v184_v31  ;;  %v4670_v30 = vld [vmem:[%s6757_s1 + $0x310] ss:$8 sps:$4 sm:$0xff]   ;;  %v850_v31 = vrot.slane %v848_v12, 2 }
  0x30   : > { %1333 = vmatprep.subr.bf16.mxu1 %v4651_v16  ;;  %1603 = vmatprep.mubr.bf16.mxu0 %v6764_v2  ;;  %v806_v16 = vor.u32 %v805_v59, %v802_v58  ;;  %v4685_v32 = vld [vmem:[%s5120_s18 + $0x13c] ss:$20 sps:$4 sm:$0x3f]   ;;  %v640_v58 = vrot.slane %v638_v41, 1  ;;  %v643_v59 = vrot.slane %v641_v43, 2 }
  0x31   : > { %v547_v28 = vshll.u32 %v3869_v7, 16  ;;  %v552_v34 = vshrl.u32 %v3874_v20, 16  ;;  %v555_v35 = vshll.u32 %v3874_v20, 16  ;;  %v893_v53 = vshll.u32 %v4685_v32, 16 }
  0x32   : > { %v807_v33 = vsel %vm542_vm0, %v761_v38, %v806_v16 }
  0x33   : > { %1334 = vmatpush1.bf16.msra.mxu1 %v4653_v26  ;;  %v847_v26 = vrot.slane %v845_v6, 1  ;;  %v549_v46 = vrot.slane %v547_v28, 2  ;;  %v554_v55 = vrot.slane %v552_v34, 1  ;;  %v557_v56 = vrot.slane %v555_v35, 2  ;;  %v202_v34 = vld [vmem:[%s5120_s18 + $0xc8] sm:$0xff] }
  0x34   : > { %1335 = vmatprep.subr.bf16.mxu1 %v4654_v27  ;;  %v544_v27 = vshrl.u32 %v3869_v7, 16  ;;  %v895_v20 = vrot.slane %v893_v53, 2  ;;  %v632_v28 = vshll.u32 %v3879_v60, 16 }
  0x35   : > { %v851_v38 = vor.u32 %v850_v31, %v847_v26  ;;  %v558_v3 = vor.u32 %v557_v56, %v554_v55  ;;  %v644_v26 = vor.u32 %v643_v59, %v640_v58  ;;  %v4684_v31 = vld [vmem:[%s6757_s1 + $0x344] ss:$8 sps:$4 sm:$0xff]   ;;  %v5360_v55 = vld [vmem:[%s5120_s18 + $0xdc] sm:$0xff]  ;;  %v4689_v59 = vld [vmem:[%s6757_s1 + $0x350] ss:$8 sps:$4 sm:$0xff]  }
  0x36   : > { %v546_v45 = vrot.slane %v544_v27, 1  ;;  %v629_v27 = vshrl.u32 %v3879_v60, 16  ;;  %v634_v53 = vrot.slane %v632_v28, 2  ;;  %v5369_v58 = vcombine.low %v202_v34, %v5360_v55 }
  0x37   : > { %1336 = vmatpush1.bf16.msra.mxu1 %v4657_v39  ;;  %3984 = vmatmul.mubr.msk.bf16.gmra.mrb[12].mxu0 %vm1290_vm1, %v762_v57  ;;  %v193_v39 = vld [vmem:[%s5120_s18 + $0x8c] sm:$0xff]  ;;  %v4674_v57 = vld [vmem:[%s6757_s1 + $0x320] ss:$8 sps:$4 sm:$0xff]   ;;  %v852_v7 = vsel %vm542_vm0, %v806_v16, %v851_v38 }
  0x38   : > { %1337 = vmatprep.subr.bf16.mxu1 %v4658_v47  ;;  %1613 = vmatprep.mubr.bf16.mxu0 %v6764_v2  ;;  %v5309_v44 = vcombine.high %v190_v9, %v193_v39  ;;  %v196_v47 = vld [vmem:[%s5120_s18 + $0xa0] sm:$0xff]  ;;  %v5312_v51 = vcombine.low %v190_v9, %v193_v39  ;;  %v550_v12 = vor.u32 %v549_v46, %v546_v45  ;;  %v4677_v16 = vld [vmem:[%s6757_s1 + $0x330] ss:$8 sps:$4 sm:$0xff]  }
  0x39   : > { %v3885_v63 = vcombine.high %v193_v39, %v196_v47  ;;  %v3884_v41 = vcombine.low %v193_v39, %v196_v47  ;;  %v4682_v45 = vld [vmem:[%s6757_s1 + $0x340] ss:$8 sps:$4 sm:$0xff]   ;;  %v645_v46 = vsel %vm542_vm0, %v5276_v0, %v644_v26  ;;  %v4691_v39 = vld [vmem:[%s6757_s1 + $0x354] ss:$8 sps:$4 sm:$0xff]  }
  0x3a   : > { %v2778_v6 = vrot.slane %v5312_v51, 3  ;;  %v559_v35 = vsel %vm542_vm0, %v550_v12, %v558_v3  ;;  %v2798_v12 = vrot.slane %v5369_v58, 3 }
  0x3b   : > { %1338 = vmatpush1.bf16.msra.mxu1 %v4660_v52  ;;  %v890_v52 = vshrl.u32 %v4685_v32, 16  ;;  %v686_v32 = vshll.u32 %v3885_v63, 16  ;;  %v674_v60 = vshrl.u32 %v3884_v41, 16 }
  0x3c   : > { %1339 = vmatprep.subr.bf16.mxu1 %v4661_v4  ;;  %v6761_v4 = vrot.slane %v5286_v10, 3 }
  0x3d   : > { %v892_v14 = vrot.slane %v890_v52, 1  ;;  %v631_v52 = vrot.slane %v629_v27, 1  ;;  %v208_v27 = vld [vmem:[%s5120_s18 + $0xf0] sm:$0xff] }
  0x3e   : > { %v5332_v9 = vsel %vm2762_vm2, %v6761_v4, %v2778_v6  ;;  %v4705_v4 = vld [vmem:[%s5120_s18 + $0x10] ss:$20 sps:$4 sm:$0xff]  }
  0x3f   : > { %1340 = vmatpush1.bf16.msra.mxu1 %v4664_v21  ;;  %3985 = vmatmul.mubr.msk.bf16.gmra.mrb[16].mxu0 %vm1290_vm1, %v807_v33  ;;  %v199_v21 = vld [vmem:[%s5120_s18 + $0xb4] sm:$0xff] }
  0x40   : > { %1341 = vmatprep.subr.bf16.mxu1 %v4668_v23  ;;  %1623 = vmatprep.mubr.bf16.mxu0 %v6764_v2  ;;  %v5334_v22 = vcombine.high %v196_v47, %v199_v21  ;;  %v5336_v23 = vcombine.low %v196_v47, %v199_v21  ;;  %v688_v47 = vrot.slane %v686_v32, 2  ;;  %v3890_v56 = vcombine.high %v199_v21, %v202_v34 }
  0x42   : > { %v2788_v33 = vrot.slane %v5336_v23, 3 }
  0x43   : > { %1342 = vmatpush1.bf16.msra.mxu1 %v4670_v30  ;;  %v683_v30 = vshrl.u32 %v3885_v63, 16  ;;  %v677_v63 = vshll.u32 %v3884_v41, 16  ;;  %v5394_v41 = vld [vmem:[%s5120_s18 + $0x104] sm:$0xff] }
  0x44   : > { %1343 = vmatprep.subr.bf16.mxu1 %v4671_v40  ;;  %v5349_v40 = vor.u32 %v895_v20, %v892_v14  ;;  %v5352_v43 = vsel %vm2762_vm2, %v2778_v6, %v2788_v33  ;;  %v6760_v6 = vrot.slane %v5334_v22, 3  ;;  %v728_v20 = vshrl.u32 %v3890_v56, 16 }
  0x45   : > { %v685_v54 = vrot.slane %v683_v30, 1  ;;  %v5390_v30 = vsel %vm2762_vm2, %v2788_v33, %v2798_v12  ;;  %v679_v32 = vrot.slane %v677_v63, 2  ;;  %v5404_v33 = vcombine.low %v208_v27, %v5394_v41 }
  0x46   : > { %v897_v0 = vsel %vm542_vm0, %v851_v38, %v5349_v40  ;;  %v4696_v38 = vld [vmem:[%s6757_s1 + $0x364] ss:$8 sps:$4 sm:$0xff]  }
  0x47   : > { %1344 = vmatpush1.bf16.msra.mxu1 %v4674_v57  ;;  %3986 = vmatmul.mubr.msk.bf16.gmra.mrb[20].mxu0 %vm1290_vm1, %v852_v7  ;;  %v5366_v57 = vcombine.high %v202_v34, %v5360_v55  ;;  %v689_v14 = vor.u32 %v688_v47, %v685_v54  ;;  %6781 = vst [vmem:[#allocation3_spill] sm:$0xff] %v5404_v33  ;;  %v4697_v47 = vld [vmem:[%s6757_s1 + $0x370] ss:$8 sps:$4 sm:$0xff]   ;;  %v2808_v63 = vrot.slane %v5404_v33, 3 }
  0x48   : > { %1345 = vmatprep.subr.bf16.mxu1 %v4675_v1  ;;  %1633 = vmatprep.mubr.bf16.mxu0 %v6764_v2  ;;  %v635_v1 = vor.u32 %v634_v53, %v631_v52  ;;  %v5401_v52 = vcombine.high %v208_v27, %v5394_v41  ;;  %v730_v53 = vrot.slane %v728_v20, 1 }
  0x49   : > { %v2800_v7 = vrot.slane %v5366_v57, 3 }
  0x4a   : > { %6780 = vst [vmem:[#allocation2_spill] sm:$0xff] %v5401_v52 }
  0x4b   : > { %1346 = vmatpush1.bf16.msra.mxu1 %v4677_v16  ;;  %v731_v16 = vshll.u32 %v3890_v56, 16  ;;  %v5387_v28 = vsel %vm2762_vm2, %v6760_v6, %v2800_v7 }
  0x4c   : > { %1428 = vmatprep.subr.bf16.mxu1 %v4684_v31  ;;  %v676_v31 = vrot.slane %v674_v60, 1 }
  0x4d   : > { %v733_v54 = vrot.slane %v731_v16, 2  ;;  %v214_v16 = vld [vmem:[%s5120_s18 + $0x118] sm:$0xff] }
  0x4e   : > { %1348 = vmatmul.mubr.bf16.vlgmr.msra.gmra.mrb[0].mxu1 %v559_v35  ;;  %v3889_v35 = vcombine.low %v199_v21, %v202_v34  ;;  %v4699_v21 = vld [vmem:[%s6757_s1 + $0x374] ss:$8 sps:$4 sm:$0xff]   ;;  %v690_v34 = vsel %vm542_vm0, %v644_v26, %v689_v14  ;;  %v680_v56 = vor.u32 %v679_v32, %v676_v31  ;;  %v4704_v26 = vld [vmem:[%s6757_s1 + $0x384] ss:$8 sps:$4 sm:$0xff]   ;;  %v5429_v32 = vsel %vm2762_vm2, %v2798_v12, %v2808_v63 }
  0x4f   : > { %1429 = vmatpush1.bf16.msra.mxu1 %v4682_v45  ;;  %1357 = vmatprep.mubr.bf16.mxu1 %v645_v46  ;;  %v636_v45 = vsel %vm542_vm0, %v558_v3, %v635_v1  ;;  %v4694_v46 = vld [vmem:[%s6757_s1 + $0x360] ss:$8 sps:$4 sm:$0xff]   ;;  %v3895_v3 = vcombine.high %v5360_v55, %v208_v27 }
  0x50   : > { %1430 = vmatprep.subr.bf16.mxu1 %v4691_v39  ;;  %3987 = vmatmul.mubr.msk.bf16.gmra.mrb[24].mxu0 %vm1290_vm1, %v897_v0  ;;  %v2810_v39 = vrot.slane %v5401_v52, 3  ;;  %v719_v0 = vshrl.u32 %v3889_v35, 16 }
  0x51   : > { %1643 = vmatprep.mubr.bf16.mxu0 %v6764_v2  ;;  %v773_v20 = vshrl.u32 %v3895_v3, 16  ;;  %v776_v31 = vshll.u32 %v3895_v3, 16  ;;  %v4711_v3 = vld [vmem:[%s6757_s1 + $0x394] ss:$8 sps:$4 sm:$0xff]  }
  0x52   : > { %v5419_v60 = vsel %vm2762_vm2, %v2800_v7, %v2810_v39 }
  0x53   : > { %1431 = vmatpush1.bf16.msra.mxu1 %v4689_v59  ;;  %v722_v59 = vshll.u32 %v3889_v35, 16  ;;  %v775_v6 = vrot.slane %v773_v20, 1  ;;  %v778_v29 = vrot.slane %v776_v31, 2  ;;  %v4719_v20 = vld [vmem:[%s6757_s1 + $0x3a4] ss:$8 sps:$4 sm:$0xff]  }
  0x54   : > { %1432 = vmatprep.subr.bf16.mxu1 %v4696_v38  ;;  %v734_v38 = vor.u32 %v733_v54, %v730_v53  ;;  %v3894_v53 = vcombine.low %v5360_v55, %v208_v27  ;;  %v4706_v27 = vld [vmem:[%s6757_s1 + $0x480] ss:$8 sps:$4 sm:$0xff]   ;;  %v4712_v31 = vld [vmem:[%s6757_s1 + $0x490] ss:$8 sps:$4 sm:$0xff]  }
  0x56   : > { %1358 = vmatmul.mubr.bf16.gmra.mrb[4].mxu1 %v636_v45  ;;  %v5424_v45 = vld [vmem:[%s5120_s18 + $0x12c] sm:$0xff] }
  0x57   : > { %1433 = vmatpush1.bf16.msra.mxu1 %v4694_v46  ;;  %1367 = vmatprep.mubr.bf16.mxu1 %v690_v34  ;;  %v4212_v35 = vcombine.high %v214_v16, %v5424_v45  ;;  %v4211_v7 = vcombine.low %v214_v16, %v5424_v45  ;;  %v681_v46 = vsel %vm542_vm0, %v635_v1, %v680_v56  ;;  %v721_v34 = vrot.slane %v719_v0, 1 }
  0x58   : > { %1434 = vmatprep.subr.bf16.mxu1 %v4699_v21  ;;  %3988 = vmatmul.mubr.msk.bf16.gmra.mrb[28].mxu0 %vm1290_vm1, %v5349_v40  ;;  %v4702_v21 = vld [vmem:[%s6757_s1 + $0x380] ss:$8 sps:$4 sm:$0xff]   ;;  %v724_v40 = vrot.slane %v722_v59, 2  ;;  %v735_v1 = vsel %vm542_vm0, %v689_v14, %v734_v38  ;;  %v3900_v0 = vcombine.high %v5394_v41, %v214_v16  ;;  %v4709_v14 = vld [vmem:[%s6757_s1 + $0x390] ss:$8 sps:$4 sm:$0xff]   ;;  %v764_v59 = vshrl.u32 %v3894_v53, 16 }
  0x59   : > { %2392 = vmatprep.mubr.bf16.mxu0 %v6764_v2  ;;  %v5439_v12 = vrot.slane %v4212_v35, 3  ;;  %v5441_v54 = vrot.slane %v4211_v7, 3  ;;  %v779_v35 = vor.u32 %v778_v29, %v775_v6  ;;  %v3899_v6 = vcombine.low %v5394_v41, %v214_v16  ;;  %v4724_v41 = vld [vmem:[%s6757_s1 + $0x3b0] ss:$8 sps:$4 sm:$0xff]  }
  0x5a   : > { %v818_v7 = vshrl.u32 %v3900_v0, 16 }
  0x5b   : > { %1435 = vmatpush1.bf16.msra.mxu1 %v4697_v47  ;;  %v5451_v47 = vsel %vm2762_vm2, %v2810_v39, %v5439_v12  ;;  %v5455_v55 = vsel %vm2762_vm2, %v2808_v63, %v5441_v54  ;;  %v4714_v39 = vld [vmem:[%s6757_s1 + $0x494] ss:$8 sps:$4 sm:$0xff]   ;;  %v767_v63 = vshll.u32 %v3894_v53, 16  ;;  %v766_v53 = vrot.slane %v764_v59, 1 }
  0x5c   : > { %1436 = vmatprep.subr.bf16.mxu1 %v4704_v26  ;;  %v725_v26 = vor.u32 %v724_v40, %v721_v34  ;;  %v298_v34 = vld [vmem:[%s5120_s18 + $0x140] sm:$0x33]  ;;  %v812_v59 = vshll.u32 %v3899_v6, 16 }
  0x5d   : > { %v769_v29 = vrot.slane %v767_v63, 2  ;;  %v4734_v63 = vld [vmem:[%s6757_s1 + $0x3c4] ss:$8 sps:$4 sm:$0xff]  }
  0x5e   : > { %1368 = vmatmul.mubr.bf16.gmra.mrb[8].mxu1 %v681_v46  ;;  %v821_v46 = vshll.u32 %v3900_v0, 16  ;;  %v726_v40 = vsel %vm542_vm0, %v680_v56, %v725_v26  ;;  %v820_v0 = vrot.slane %v818_v7, 1  ;;  %v4721_v56 = vld [vmem:[%s6757_s1 + $0x4a0] ss:$8 sps:$4 sm:$0xff]  }
  0x5f   : > { %1437 = vmatpush1.bf16.msra.mxu1 %v4702_v21  ;;  %1377 = vmatprep.mubr.bf16.mxu1 %v735_v1  ;;  %v4717_v21 = vld [vmem:[%s6757_s1 + $0x3a0] ss:$8 sps:$4 sm:$0xff]   ;;  %v780_v1 = vsel %vm542_vm0, %v734_v38, %v779_v35  ;;  %v4729_v38 = vld [vmem:[%s6757_s1 + $0x4b4] ss:$8 sps:$4 sm:$0xff]   ;;  %v770_v16 = vor.u32 %v769_v29, %v766_v53  ;;  %v4739_v29 = vld [vmem:[%s6757_s1 + $0x3d0] ss:$8 sps:$4 sm:$0xff]  }
  0x60   : > { %1438 = vmatprep.subr.bf16.mxu1 %v4711_v3  ;;  %4101 = vmatmul.mubr.msk.bf16.vlgmr.msra.gmra.mrb[32].mxu0 %vm1290_vm1, %v4705_v4  ;;  %v4723_v4 = vld [vmem:[%s6757_s1 + $0x4a4] ss:$8 sps:$4 sm:$0xff]   ;;  %v4726_v3 = vld [vmem:[%s6757_s1 + $0x3b4] ss:$8 sps:$4 sm:$0xff]   ;;  %v4736_v53 = vld [vmem:[%s6757_s1 + $0x4c0] ss:$8 sps:$4 sm:$0xff]  }
  0x61   : > { %3255 = vmatpush1.bf16.msra.mxu0 %v4706_v27  ;;  %2402 = vmatprep.mubr.bf16.mxu0 %v6764_v2  ;;  %v823_v27 = vrot.slane %v821_v46, 2  ;;  %v4727_v46 = vld [vmem:[%s6757_s1 + $0x4b0] ss:$8 sps:$4 sm:$0xff]  }
  0x62   : > { %3256 = vmatprep.subr.bf16.mxu0 %v4714_v39  ;;  %v809_v39 = vshrl.u32 %v3899_v6, 16 }
  0x63   : > { %1439 = vmatpush1.bf16.msra.mxu1 %v4709_v14  ;;  %v3905_v14 = vcombine.high %v5424_v45, %v298_v34 }
  0x64   : > { %1440 = vmatprep.subr.bf16.mxu1 %v4719_v20  ;;  %v824_v20 = vor.u32 %v823_v27, %v820_v0  ;;  %v185_v0 = vld [vmem:[%s5120_s18 + $0x58] sm:$0xff] }
  0x65   : > { %3257 = vmatpush1.bf16.msra.mxu0 %v4712_v31  ;;  %v863_v31 = vshrl.u32 %v3905_v14, 16  ;;  %v866_v7 = vshll.u32 %v3905_v14, 16 }
  0x66   : > { %1378 = vmatmul.mubr.bf16.gmra.mrb[12].mxu1 %v726_v40  ;;  %3258 = vmatprep.subr.bf16.mxu0 %v4723_v4  ;;  %v814_v40 = vrot.slane %v812_v59, 2  ;;  %v3904_v4 = vcombine.low %v5424_v45, %v298_v34  ;;  %v825_v6 = vsel %vm542_vm0, %v779_v35, %v824_v20  ;;  %v4744_v34 = vld [vmem:[%s6757_s1 + $0x4d4] ss:$8 sps:$4 sm:$0xff]  }
  0x67   : > { %1441 = vmatpush1.bf16.msra.mxu1 %v4717_v21  ;;  %1387 = vmatprep.mubr.bf16.mxu1 %v780_v1  ;;  %v771_v21 = vsel %vm542_vm0, %v725_v26, %v770_v16  ;;  %v4741_v26 = vld [vmem:[%s6757_s1 + $0x3d4] ss:$8 sps:$4 sm:$0xff]   ;;  %v868_v45 = vrot.slane %v866_v7, 2  ;;  %v4749_v1 = vld [vmem:[%s6757_s1 + $0x3e4] ss:$8 sps:$4 sm:$0xff]  }
  0x68   : > { %1442 = vmatprep.subr.bf16.mxu1 %v4726_v3  ;;  %4102 = vmatmul.mubr.msk.bf16.gmra.mrb[36].mxu0 %vm1290_vm1, %v3998_v24  ;;  %v811_v24 = vrot.slane %v809_v39, 1  ;;  %v865_v3 = vrot.slane %v863_v31, 1  ;;  %v854_v35 = vshrl.u32 %v3904_v4, 16  ;;  %v857_v14 = vshll.u32 %v3904_v4, 16  ;;  %v182_v31 = vld [vmem:[%s5120_s18 + $0x44] sm:$0xff]  ;;  %v5571_v4 = vld [vmem:[%s5120_s18 + $0x94] sm:$0xff] }
  0x69   : > { %3259 = vmatpush1.bf16.msra.mxu0 %v4721_v56  ;;  %2412 = vmatprep.mubr.bf16.mxu0 %v6764_v2  ;;  %v5534_v56 = vld [vmem:[%s5120_s18 + $0x6c] sm:$0xff] }
  0x6a   : > { %3260 = vmatprep.subr.bf16.mxu0 %v4729_v38  ;;  %v815_v27 = vor.u32 %v814_v40, %v811_v24  ;;  %v293_v38 = vld [vmem:[%s5120_s18 + $0x1c] sm:$0xee]  ;;  %v5539_v39 = vcombine.low %v185_v0, %v5534_v56  ;;  %v5542_v59 = vcombine.high %v185_v0, %v5534_v56  ;;  %v4742_v7 = vld [vmem:[%s6757_s1 + $0x4d0] ss:$8 sps:$4 sm:$0xff]   ;;  %v3877_v24 = vcombine.high %v182_v31, %v185_v0 }
  0x6b   : > { %1443 = vmatpush1.bf16.msra.mxu1 %v4724_v41  ;;  %v179_v41 = vld [vmem:[%s5120_s18 + $0x30] sm:$0xff]  ;;  %v5568_v40 = vld [vmem:[%s5120_s18 + $0x80] sm:$0xff] }
  0x6c   : > { %1444 = vmatprep.subr.bf16.mxu1 %v4734_v63  ;;  %v5548_v63 = vor.u32 %v868_v45, %v865_v3  ;;  %v4764_v45 = vld [vmem:[%s6757_s1 + $0x404] ss:$8 sps:$4 sm:$0xff]   ;;  %v3881_v49 = vcombine.low %v5534_v56, %v5568_v40 }
  0x6d   : > { %3261 = vmatpush1.bf16.msra.mxu0 %v4727_v46  ;;  %v816_v46 = vsel %vm542_vm0, %v770_v16, %v815_v27 }
  0x6e   : > { %1388 = vmatmul.mubr.bf16.gmra.mrb[16].mxu1 %v771_v21  ;;  %3262 = vmatprep.subr.bf16.mxu0 %v4738_v18  ;;  %v859_v21 = vrot.slane %v857_v14, 2  ;;  %v4756_v18 = vld [vmem:[%s6757_s1 + $0x3f4] ss:$8 sps:$4 sm:$0xff]   ;;  %v870_v16 = vsel %vm542_vm0, %v824_v20, %v5548_v63  ;;  %v5585_v20 = vcombine.low %v5568_v40, %v5571_v4  ;;  %v606_v14 = vshll.u32 %v3877_v24, 16 }
  0x6f   : > { %1445 = vmatpush1.bf16.msra.mxu1 %v4732_v17  ;;  %1397 = vmatprep.mubr.bf16.mxu1 %v825_v6  ;;  %v3872_v17 = vcombine.high %v293_v38, %v179_v41  ;;  %v4759_v6 = vld [vmem:[%s6757_s1 + $0x4f4] ss:$8 sps:$4 sm:$0xff]   ;;  %v647_v33 = vshrl.u32 %v3881_v49, 16 }
  0x70   : > { %1446 = vmatprep.subr.bf16.mxu1 %v4741_v26  ;;  %4103 = vmatmul.mubr.msk.bf16.gmra.mrb[40].mxu0 %vm1290_vm1, %v4003_v42  ;;  %v856_v42 = vrot.slane %v854_v35, 1  ;;  %v4754_v26 = vld [vmem:[%s6757_s1 + $0x3f0] ss:$8 sps:$4 sm:$0xff]   ;;  %6783 = vst [vmem:[#allocation5_spill] sm:$0xff] %v5585_v20  ;;  %v603_v35 = vshrl.u32 %v3877_v24, 16 }
  0x71   : > { %3263 = vmatpush1.bf16.msra.mxu0 %v4736_v53  ;;  %2422 = vmatprep.mubr.bf16.mxu0 %v6764_v2  ;;  %v4751_v53 = vld [vmem:[%s6757_s1 + $0x4e0] ss:$8 sps:$4 sm:$0xff]  }
  0x72   : > { %3264 = vmatprep.subr.bf16.mxu0 %v4744_v34  ;;  %v5590_v3 = vor.u32 %v859_v21, %v856_v42  ;;  %v595_v34 = vshrl.u32 %v3872_v17, 16  ;;  %v4762_v42 = vld [vmem:[%s6757_s1 + $0x400] ss:$8 sps:$4 sm:$0xff]   ;;  %v3876_v21 = vcombine.low %v182_v31, %v185_v0  ;;  %v605_v31 = vrot.slane %v603_v35, 1 }
  0x73   : > { %1447 = vmatpush1.bf16.msra.mxu1 %v4739_v29  ;;  %v5581_v29 = vcombine.high %v5568_v40, %v5571_v4  ;;  %v4766_v0 = vld [vmem:[%s6757_s1 + $0x500] ss:$8 sps:$4 sm:$0xff]  }
  0x74   : > { %1448 = vmatprep.subr.bf16.mxu1 %v4749_v1  ;;  %v598_v1 = vshll.u32 %v3872_v17, 16  ;;  %v861_v37 = vsel %vm542_vm0, %v815_v27, %v5590_v3  ;;  %v4771_v27 = vld [vmem:[%s6757_s1 + $0x414] ss:$8 sps:$4 sm:$0xff]   ;;  %v608_v17 = vrot.slane %v606_v14, 2 }
  0x75   : > { %3265 = vmatpush1.bf16.msra.mxu0 %v4742_v7  ;;  %6782 = vst [vmem:[#allocation4_spill] sm:$0xff] %v5581_v29  ;;  %v6766_v7 = vrot.slane %v5581_v29, 3  ;;  %v5637_v35 = vld [vmem:[%s5120_s18 + $0xbc] sm:$0xff] }
  0x76   : > { %1398 = vmatmul.mubr.bf16.gmra.mrb[20].mxu1 %v816_v46  ;;  %3266 = vmatprep.subr.bf16.mxu0 %v4753_v36  ;;  %v3871_v46 = vcombine.low %v293_v38, %v179_v41  ;;  %v4757_v36 = vld [vmem:[%s6757_s1 + $0x4f0] ss:$8 sps:$4 sm:$0xff]   ;;  %v597_v41 = vrot.slane %v595_v34, 1  ;;  %v600_v38 = vrot.slane %v598_v1, 2  ;;  %v589_v34 = vshll.u32 %v3876_v21, 16  ;;  %v5634_v1 = vld [vmem:[%s5120_s18 + $0xa8] sm:$0xff] }
  0x77   : > { %1449 = vmatpush1.bf16.msra.mxu1 %v4747_v19  ;;  %1407 = vmatprep.mubr.bf16.mxu1 %v870_v16  ;;  %v6762_v19 = vrot.slane %v5542_v59, 3  ;;  %v3882_v16 = vcombine.high %v5534_v56, %v5568_v40  ;;  %v4774_v14 = vld [vmem:[%s6757_s1 + $0x514] ss:$8 sps:$4 sm:$0xff]   ;;  %v5691_v56 = vcombine.low %v5665_v15, %v5675_v61  ;;  %v4779_v40 = vld [vmem:[%s6757_s1 + $0x520] ss:$8 sps:$4 sm:$0xff]  }
  0x78   : > { %1450 = vmatprep.subr.bf16.mxu1 %v4756_v18  ;;  %4104 = vmatmul.mubr.msk.bf16.gmra.mrb[44].mxu0 %vm1290_vm1, %v4008_v50  ;;  %v4769_v18 = vld [vmem:[%s6757_s1 + $0x410] ss:$8 sps:$4 sm:$0xff]   ;;  %v578_v24 = vshrl.u32 %v3871_v46, 16 }
  0x79   : > { %3267 = vmatpush1.bf16.msra.mxu0 %v4751_v53  ;;  %2432 = vmatprep.mubr.bf16.mxu0 %v6764_v2  ;;  %v5618_v50 = vsel %vm2762_vm2, %v6762_v19, %v6766_v7  ;;  %v6763_v53 = vrot.slane %v5539_v39, 3  ;;  %6786 = vst [vmem:[#allocation8_spill] sm:$0xff] %v5691_v56 }
  0x7a   : > { %3268 = vmatprep.subr.bf16.mxu0 %v4759_v6  ;;  %v581_v6 = vshll.u32 %v3871_v46, 16  ;;  %v5649_v46 = vcombine.high %v5634_v1, %v5637_v35 }
  0x7b   : > { %1451 = vmatpush1.bf16.msra.mxu1 %v4754_v26  ;;  %v2782_v26 = vrot.slane %v5585_v20, 3 }
  0x7c   : > { %1452 = vmatprep.subr.bf16.mxu1 %v4764_v45  ;;  %v586_v45 = vshrl.u32 %v3876_v21, 16  ;;  %6784 = vst [vmem:[#allocation6_spill] sm:$0xff] %v5649_v46  ;;  %v601_v21 = vor.u32 %v600_v38, %v597_v41  ;;  %v583_v41 = vrot.slane %v581_v6, 2  ;;  %v2794_v6 = vrot.slane %v5649_v46, 3  ;;  %v5797_v46 = vld [vmem:[%s5120_s18 + $0x120] sm:$0xff] }
  0x7d   : > { %3269 = vmatpush1.bf16.msra.mxu0 %v4757_v36  ;;  %v5645_v19 = vsel %vm2762_vm2, %v6763_v53, %v2782_v26  ;;  %v4772_v36 = vld [vmem:[%s6757_s1 + $0x510] ss:$8 sps:$4 sm:$0xff]   ;;  %v659_v53 = vshll.u32 %v3882_v16, 16 }
  0x7e   : > { %1408 = vmatmul.mubr.bf16.gmra.mrb[24].mxu1 %v861_v37  ;;  %3270 = vmatprep.subr.bf16.mxu0 %v4768_v48  ;;  %v5658_v37 = vor.u32 %v608_v17, %v605_v31  ;;  %v580_v48 = vrot.slane %v578_v24, 1  ;;  %v588_v38 = vrot.slane %v586_v45, 1  ;;  %v591_v31 = vrot.slane %v589_v34, 2 }
  0x7f   : > { %1453 = vmatpush1.bf16.msra.mxu1 %v4762_v42  ;;  %1417 = vmatprep.mubr.bf16.mxu1 %v5548_v63  ;;  %v4777_v42 = vld [vmem:[%s6757_s1 + $0x424] ss:$8 sps:$4 sm:$0xff]   ;;  %v5669_v63 = vcombine.low %v5634_v1, %v5637_v35  ;;  %v3887_v17 = vcombine.high %v5571_v4, %v5634_v1  ;;  %v5687_v24 = vcombine.high %v5665_v15, %v5675_v61  ;;  %v661_v34 = vrot.slane %v659_v53, 2  ;;  %v4787_v53 = vld [vmem:[%s6757_s1 + $0x534] ss:$8 sps:$4 sm:$0xff]  }
  0x80   : > { %1454 = vmatprep.subr.bf16.mxu1 %v4771_v27  ;;  %4105 = vmatmul.mubr.msk.bf16.gmra.mrb[48].mxu0 %vm1290_vm1, %v4013_v5  ;;  %v656_v27 = vshrl.u32 %v3882_v16, 16  ;;  %v4775_v5 = vld [vmem:[%s6757_s1 + $0x420] ss:$8 sps:$4 sm:$0xff]   ;;  %v610_v16 = vsel %vm542_vm0, %v601_v21, %v5658_v37  ;;  %v584_v7 = vor.u32 %v583_v41, %v580_v48  ;;  %v5708_v20 = vor.u32 %v591_v31, %v588_v38  ;;  %v4785_v41 = vld [vmem:[%s6757_s1 + $0x530] ss:$8 sps:$4 sm:$0xff]  }
  0x81   : > { %6785 = vst [vmem:[#allocation7_spill] sm:$0xff] %v5669_v63  ;;  %3271 = vmatpush1.bf16.msra.mxu0 %v4766_v0  ;;  %2442 = vmatprep.mubr.bf16.mxu0 %v6764_v2  ;;  %v4781_v0 = vld [vmem:[%s6757_s1 + $0x524] ss:$8 sps:$4 sm:$0xff]   ;;  %v650_v21 = vshll.u32 %v3881_v49, 16  ;;  %v704_v2 = vshll.u32 %v3887_v17, 16  ;;  %v6788_v31 = vrot.slane %v5687_v24, 3 }
  0x82   : > { %3272 = vmatprep.subr.bf16.mxu0 %v4774_v14  ;;  %v658_v45 = vrot.slane %v656_v27, 1  ;;  %v2792_v14 = vrot.slane %v5669_v63, 3  ;;  %v701_v27 = vshrl.u32 %v3887_v17, 16  ;;  %v4794_v38 = vld [vmem:[%s6757_s1 + $0x4] ss:$8 sps:$4 sm:$0xff]  }
  0x83   : > { %1455 = vmatpush1.bf16.msra.mxu1 %v4769_v18  ;;  %v4784_v18 = vld [vmem:[%s6757_s1 + $0x434] ss:$8 sps:$4 sm:$0xff]   ;;  %v5730_v49 = vsel %vm2762_vm2, %v2794_v6, %v6788_v31  ;;  %v593_v31 = vsel %vm542_vm0, %v584_v7, %v5708_v20 }
  0x84   : > { %1456 = vmatprep.subr.bf16.mxu1 %v4777_v42  ;;  %v4782_v42 = vld [vmem:[%s6757_s1 + $0x430] ss:$8 sps:$4 sm:$0xff]   ;;  %v5719_v48 = vsel %vm2762_vm2, %v2782_v26, %v2792_v14  ;;  %v4792_v26 = vld [vmem:[%s6757_s1] ss:$8 sps:$4 sm:$0xff]   ;;  %v5742_v17 = vor.u32 %v661_v34, %v658_v45  ;;  %v706_v45 = vrot.slane %v704_v2, 2 }
  0x85   : > { %3273 = vmatpush1.bf16.msra.mxu0 %v4772_v36  ;;  %v6787_v36 = vrot.slane %v5581_v29, 3  ;;  %v5757_v34 = vld [vmem:[%s5120_s18 + $0x10c] sm:$0xff] }
  0x86   : > { %1418 = vmatmul.mubr.bf16.gmra.mrb[28].mxu1 %v5590_v3  ;;  %3274 = vmatprep.subr.bf16.mxu0 %v4781_v0  ;;  %v4798_v0 = vld [vmem:[%s6757_s1 + $0x544] ss:$8 sps:$4 sm:$0xff]  }
  0x87   : > { %1457 = vmatpush1.bf16.msra.mxu1 %v4775_v5  ;;  %v5716_v3 = vsel %vm2762_vm2, %v6787_v36, %v2794_v6  ;;  %1460 = vmatprep.mubr.bf16.mxu1 %v610_v16  ;;  %v6789_v5 = vcombine.low %v5206_v62, %v5224_v8  ;;  %v649_v16 = vrot.slane %v647_v33, 1  ;;  %v652_v6 = vrot.slane %v650_v21, 2  ;;  %v5746_v62 = vld [vmem:[%s5120_s18 + $0x28] sm:$0x88]  ;;  %v4801_v33 = vld [vmem:[%s6757_s1 + $0x14] ss:$8 sps:$4 sm:$0xff]  }
  0x88   : > { %1458 = vmatprep.subr.bf16.mxu1 %v4784_v18  ;;  %v6790_v18 = vmov 0   ;;  %v3886_v8 = vcombine.low %v5571_v4, %v5634_v1  ;;  %v6769_v36 = vrot.slane %v5691_v56, 3  ;;  %v3892_v4 = vcombine.high %v5637_v35, %v5665_v15  ;;  %v4799_v21 = vld [vmem:[%s6757_s1 + $0x10] ss:$8 sps:$4 sm:$0xff]  }
  0x89   : > { %4106 = vmatmul.mubr.msk.bf16.gmra.mrb[52].mxu0 %vm1290_vm1, %v6789_v5  ;;  %v703_v5 = vrot.slane %v701_v27, 1  ;;  %v5789_v27 = vor.u32 %v652_v6, %v649_v16  ;;  %v4802_v16 = vld [vmem:[%s6757_s1 + $0x550] ss:$8 sps:$4 sm:$0xff]   ;;  %v4809_v6 = vld [vmem:[%s6757_s1 + $0x24] ss:$8 sps:$4 sm:$0xff]  }
  0x8a   : > { %3275 = vmatpush1.bf16.msra.mxu0 %v4779_v40  ;;  %2452 = vmatprep.mubr.bf16.mxu0 %v6790_v18  ;;  %v5754_v40 = vld [vmem:[%s5120_s18 + $0xf8] sm:$0xff]  ;;  %v5767_v7 = vsel %vm2762_vm2, %v2792_v14, %v6769_v36  ;;  %v663_v14 = vsel %vm542_vm0, %v5658_v37, %v5742_v17  ;;  %v692_v63 = vshrl.u32 %v3886_v8, 16 }
  0x8b   : > { %3276 = vmatprep.subr.bf16.mxu0 %v4787_v53  ;;  %1459 = vmatpush1.bf16.msra.mxu1 %v4782_v42  ;;  %6791 = vst [vmem:[#allocation9_spill] sm:$0xff] %v5767_v7  ;;  %v5771_v2 = vcombine.high %v5754_v40, %v5757_v34  ;;  %v5775_v1 = vcombine.low %v5754_v40, %v5757_v34  ;;  %v4796_v42 = vld [vmem:[%s6757_s1 + $0x540] ss:$8 sps:$4 sm:$0xff]   ;;  %v4804_v53 = vld [vmem:[%s6757_s1 + $0x554] ss:$8 sps:$4 sm:$0xff]   ;;  %v746_v7 = vshrl.u32 %v3892_v4, 16 }
  0x8c   : > { %2134 = vmatprep.subr.bf16.mxu1 %v4794_v38  ;;  %v5792_v38 = vld [vmem:[%s5120_s18 + $0x3c] sm:$0xff]  ;;  %v5809_v29 = vor.u32 %v706_v45, %v703_v5  ;;  %v694_v45 = vrot.slane %v692_v63, 1  ;;  %v5031_v63 = vld [vmem:[%s5120_s18 + $0x128] sm:$0xf] }
  0x8d   : > { %6792 = vst [vmem:[#allocation10_spill] sm:$0xff] %v5771_v2  ;;  %6793 = vst [vmem:[#allocation11_spill] sm:$0xff] %v5775_v1  ;;  %v4182_v36 = vcombine.high %v5746_v62, %v5792_v38  ;;  %v2814_v37 = vrot.slane %v5771_v2, 3 }
  0x8e   : > { %3277 = vmatpush1.bf16.msra.mxu0 %v4785_v41  ;;  %1461 = vmatmul.mubr.bf16.vlgmr.msra.gmra.mrb[0].mxu1 %v593_v31  ;;  %v695_v41 = vshll.u32 %v3886_v8, 16  ;;  %v5801_v31 = vld [vmem:[%s5120_s18 + $0x134] sm:$0xff]  ;;  %v6794_v8 = vcombine.low %v5231_v13, %v5245_v25  ;;  %v654_v13 = vsel %vm542_vm0, %v5708_v20, %v5789_v27 }
  0x8f   : > { %3278 = vmatprep.subr.bf16.mxu0 %v4798_v0  ;;  %2135 = vmatpush1.bf16.msra.mxu1 %v4792_v26  ;;  %v749_v0 = vshll.u32 %v3892_v4, 16  ;;  %v4214_v26 = vcombine.high %v5797_v46, %v5801_v31  ;;  %v4213_v5 = vcombine.low %v5797_v46, %v5801_v31  ;;  %v2766_v25 = vrot.slane %v4182_v36, 3 }
  0x90   : > { %2136 = vmatprep.subr.bf16.mxu1 %v4801_v33  ;;  %1470 = vmatprep.mubr.bf16.mxu1 %v663_v14  ;;  %v4807_v33 = vld [vmem:[%s6757_s1 + $0x20] ss:$8 sps:$4 sm:$0xff]   ;;  %v219_v14 = vld [vmem:[%s5120_s18 + $0x13c] sm:$0x1]  ;;  %v2812_v4 = vrot.slane %v5775_v1, 3  ;;  %v697_v2 = vrot.slane %v695_v41, 2 }
  0x91   : > { %4107 = vmatmul.mubr.msk.bf16.gmra.mrb[56].mxu0 %vm1290_vm1, %v6794_v8  ;;  %v4813_v8 = vld [vmem:[%s6757_s1 + $0x564] ss:$8 sps:$4 sm:$0xff]   ;;  %v5839_v20 = vrot.slane %v4214_v26, 3  ;;  %v4028_v36 = vcombine.low %v5031_v63, %v219_v14  ;;  %v748_v41 = vrot.slane %v746_v7, 1  ;;  %v5859_v14 = vrot.slane %v4213_v5, 3 }
  0x92   : > { %3279 = vmatpush1.bf16.msra.mxu0 %v4796_v42  ;;  %2462 = vmatprep.mubr.bf16.mxu0 %v6790_v18  ;;  %v3891_v42 = vcombine.low %v5637_v35, %v5665_v15  ;;  %v6795_v18 = vrot.slane %v5687_v24, 3  ;;  %v751_v15 = vrot.slane %v749_v0, 2  ;;  %v3897_v35 = vcombine.high %v5675_v61, %v5754_v40  ;;  %v4814_v7 = vld [vmem:[%s6757_s1 + $0x30] ss:$8 sps:$4 sm:$0xff]  }
  0x93   : > { %3280 = vmatprep.subr.bf16.mxu0 %v4804_v53  ;;  %2137 = vmatpush1.bf16.msra.mxu1 %v4799_v21  ;;  %v4816_v21 = vld [vmem:[%s6757_s1 + $0x34] ss:$8 sps:$4 sm:$0xff]   ;;  %v708_v53 = vsel %vm542_vm0, %v5742_v17, %v5809_v29  ;;  %v4811_v17 = vld [vmem:[%s6757_s1 + $0x560] ss:$8 sps:$4 sm:$0xff]   ;;  %v4181_v0 = vcombine.low %v5746_v62, %v5792_v38  ;;  %v6797_v63 = vrot.slane %v5288_v11, 3  ;;  %v698_v5 = vor.u32 %v697_v2, %v694_v45 }
  0x94   : > { %v5837_v52 = vsel %vm2762_vm2, %v6795_v18, %v2814_v37  ;;  %2138 = vmatprep.subr.bf16.mxu1 %v4809_v6  ;;  %v6796_v18 = vrot.slane %v5691_v56, 3  ;;  %v5857_v6 = vsel %vm2762_vm2, %v2814_v37, %v5839_v20  ;;  %v5877_v1 = vsel %vm2762_vm2, %v2812_v4, %v5859_v14  ;;  %v4828_v62 = vld [vmem:[%s6757_s1 + $0x44] ss:$8 sps:$4 sm:$0xff]   ;;  %v4817_v2 = vld [vmem:[%s6757_s1 + $0x570] ss:$8 sps:$4 sm:$0xff]  }
  0x95   : > { %v2768_v37 = vsel %vm2762_vm2, %v2766_v25, %v6797_v63  ;;  %v2780_v25 = vrot.slane %v5309_v44, 3  ;;  %v794_v63 = vshll.u32 %v3897_v35, 16  ;;  %v2763_v45 = vrot.slane %v4181_v0, 3 }
  0x96   : > { %v5853_v26 = vsel %vm2762_vm2, %v6796_v18, %v2812_v4  ;;  %3281 = vmatpush1.bf16.msra.mxu0 %v4802_v16  ;;  %1471 = vmatmul.mubr.bf16.gmra.mrb[4].mxu1 %v654_v13  ;;  %v4819_v16 = vld [vmem:[%s6757_s1 + $0x574] ss:$8 sps:$4 sm:$0xff]   ;;  %v737_v13 = vshrl.u32 %v3891_v42, 16  ;;  %v740_v18 = vshll.u32 %v3891_v42, 16  ;;  %v4826_v4 = vld [vmem:[%s6757_s1 + $0x40] ss:$8 sps:$4 sm:$0xff]   ;;  %v699_v42 = vsel %vm542_vm0, %v5789_v27, %v698_v5 }
  0x97   : > { %3282 = vmatprep.subr.bf16.mxu0 %v4813_v8  ;;  %2139 = vmatpush1.bf16.msra.mxu1 %v4807_v33  ;;  %v752_v33 = vor.u32 %v751_v15, %v748_v41  ;;  %v791_v8 = vshrl.u32 %v3897_v35, 16  ;;  %v3896_v41 = vcombine.low %v5675_v61, %v5754_v40  ;;  %v4834_v15 = vld [vmem:[%s6757_s1 + $0x54] ss:$8 sps:$4 sm:$0xff]   ;;  %v5905_v35 = vld [vmem:[%s6757_s1 + $0x580] ss:$8 sps:$4 sm:$0xff]   ;;  %v3902_v0 = vcombine.high %v5757_v34, %v5797_v46 }
  0x98   : > { %2140 = vmatprep.subr.bf16.mxu1 %v4816_v21  ;;  %1480 = vmatprep.mubr.bf16.mxu1 %v708_v53  ;;  %v739_v21 = vrot.slane %v737_v13, 1  ;;  %v742_v53 = vrot.slane %v740_v18, 2  ;;  %v6798_v61 = vrot.slane %v5286_v10, 3 }
  0x99   : > { %4108 = vmatmul.mubr.msk.bf16.gmra.mrb[60].mxu0 %vm1290_vm1, %v4028_v36  ;;  %v5895_v36 = vld [vmem:[%s6757_s1 + $0x584] ss:$8 sps:$4 sm:$0xff]   ;;  %v753_v27 = vsel %vm542_vm0, %v5809_v29, %v752_v33  ;;  %v5921_v29 = vld [vmem:[%s6757_s1 + $0x594] ss:$8 sps:$4 sm:$0xff]  }
  0x9a   : > { %3283 = vmatpush1.bf16.msra.mxu0 %v4811_v17  ;;  %3286 = vmatprep.mubr.bf16.mxu0 %v2768_v37  ;;  %v793_v17 = vrot.slane %v791_v8, 1  ;;  %v2765_v40 = vsel %vm2762_vm2, %v2763_v45, %v6798_v61  ;;  %v4832_v37 = vld [vmem:[%s6757_s1 + $0x50] ss:$8 sps:$4 sm:$0xff]   ;;  %v743_v18 = vor.u32 %v742_v53, %v739_v21  ;;  %v785_v8 = vshll.u32 %v3896_v41, 16  ;;  %v4841_v21 = vld [vmem:[%s6757_s1 + $0x60] ss:$8 sps:$4 sm:$0xff]  }
  0x9b   : > { %3284 = vmatprep.subr.bf16.mxu0 %v4819_v16  ;;  %2141 = vmatpush1.bf16.msra.mxu1 %v4814_v7  ;;  %v796_v7 = vrot.slane %v794_v63, 2  ;;  %v6799_v16 = vrot.slane %v5288_v11, 3  ;;  %v4843_v63 = vld [vmem:[%s6757_s1 + $0x64] ss:$8 sps:$4 sm:$0xff]  }
  0x9c   : > { %2142 = vmatprep.subr.bf16.mxu1 %v4828_v62  ;;  %v782_v62 = vshrl.u32 %v3896_v41, 16  ;;  %v299_v53 = vld [vmem:[%s5120_s18 + $0x148] sm:$0x33]  ;;  %v744_v41 = vsel %vm542_vm0, %v698_v5, %v743_v18 }
  0x9d   : > { %v2781_v13 = vsel %vm2762_vm2, %v6799_v16, %v2780_v25  ;;  %v797_v45 = vor.u32 %v796_v7, %v793_v17  ;;  %v787_v17 = vrot.slane %v785_v8, 2  ;;  %v3901_v7 = vcombine.low %v5757_v34, %v5797_v46  ;;  %v5959_v16 = vld [vmem:[%s6757_s1 + $0x5a0] ss:$8 sps:$4 sm:$0xff]   ;;  %v4848_v46 = vld [vmem:[%s6757_s1 + $0x70] ss:$8 sps:$4 sm:$0xff]  }
  0x9e   : > { %3285 = vmatpush1.bf16.msra.mxu0 %v4817_v2  ;;  %1481 = vmatmul.mubr.bf16.gmra.mrb[8].mxu1 %v699_v42  ;;  %v5934_v2 = vld [vmem:[%s6757_s1 + $0x590] ss:$8 sps:$4 sm:$0xff]   ;;  %v839_v42 = vshll.u32 %v3902_v0, 16  ;;  %v3907_v5 = vcombine.high %v5801_v31, %v299_v53  ;;  %v5968_v34 = vld [vmem:[%s6757_s1 + $0x5b4] ss:$8 sps:$4 sm:$0xff]  }
  0x9f   : > { %3367 = vmatprep.subr.bf16.mxu0 %v5895_v36  ;;  %2143 = vmatpush1.bf16.msra.mxu1 %v4826_v4  ;;  %v836_v4 = vshrl.u32 %v3902_v0, 16  ;;  %v4850_v0 = vld [vmem:[%s6757_s1 + $0x74] ss:$8 sps:$4 sm:$0xff]   ;;  %v798_v61 = vsel %vm542_vm0, %v752_v33, %v797_v45  ;;  %v6800_v33 = vrot.slane %v5334_v22, 3  ;;  %v827_v8 = vshrl.u32 %v3901_v7, 16 }
  0xa0   : > { %2144 = vmatprep.subr.bf16.mxu1 %v4834_v15  ;;  %1490 = vmatprep.mubr.bf16.mxu1 %v753_v27  ;;  %v5946_v15 = vld [vmem:[%s6757_s1 + $0x5a4] ss:$8 sps:$4 sm:$0xff]   ;;  %v784_v27 = vrot.slane %v782_v62, 1  ;;  %v884_v56 = vshll.u32 %v3907_v5, 16 }
  0xa1   : > { %3287 = vmatmul.mubr.bf16.vlgmr.msra.gmra.mrb[32].mxu0 %v2765_v40  ;;  %v838_v40 = vrot.slane %v836_v4, 1  ;;  %v4859_v4 = vld [vmem:[%s6757_s1 + $0x84] ss:$8 sps:$4 sm:$0xff]  }
  0xa2   : > { %3368 = vmatpush1.bf16.msra.mxu0 %v5905_v35  ;;  %3296 = vmatprep.mubr.bf16.mxu0 %v2781_v13  ;;  %v2791_v13 = vsel %vm2762_vm2, %v2780_v25, %v6800_v33  ;;  %v788_v62 = vor.u32 %v787_v17, %v784_v27  ;;  %v4857_v25 = vld [vmem:[%s6757_s1 + $0x80] ss:$8 sps:$4 sm:$0xff]   ;;  %v5993_v27 = vld [vmem:[%s6757_s1 + $0x5c4] ss:$8 sps:$4 sm:$0xff]   ;;  %v829_v17 = vrot.slane %v827_v8, 1 }
  0xa3   : > { %3369 = vmatprep.subr.bf16.mxu0 %v5921_v29  ;;  %2145 = vmatpush1.bf16.msra.mxu1 %v4832_v37  ;;  %v841_v37 = vrot.slane %v839_v42, 2  ;;  %v5982_v42 = vld [vmem:[%s6757_s1 + $0x5b0] ss:$8 sps:$4 sm:$0xff]  }
  0xa4   : > { %2146 = vmatprep.subr.bf16.mxu1 %v4843_v63  ;;  %v830_v63 = vshll.u32 %v3901_v7, 16 }
  0xa6   : > { %3370 = vmatpush1.bf16.msra.mxu0 %v5934_v2  ;;  %1491 = vmatmul.mubr.bf16.gmra.mrb[12].mxu1 %v744_v41  ;;  %v881_v41 = vshrl.u32 %v3907_v5, 16  ;;  %v832_v7 = vrot.slane %v830_v63, 2  ;;  %v886_v5 = vrot.slane %v884_v56, 2  ;;  %v4875_v56 = vld [vmem:[%s6757_s1 + $0xa4] ss:$8 sps:$4 sm:$0xff]  }
  0xa7   : > { %3371 = vmatprep.subr.bf16.mxu0 %v5946_v15  ;;  %2147 = vmatpush1.bf16.msra.mxu1 %v4841_v21  ;;  %v842_v21 = vor.u32 %v841_v37, %v838_v40  ;;  %v6002_v40 = vld [vmem:[%s6757_s1 + $0x5c0] ss:$8 sps:$4 sm:$0xff]  }
  0xa8   : > { %2148 = vmatprep.subr.bf16.mxu1 %v4850_v0  ;;  %1500 = vmatprep.mubr.bf16.mxu1 %v798_v61  ;;  %v3906_v0 = vcombine.low %v5801_v31, %v299_v53  ;;  %v4866_v61 = vld [vmem:[%s6757_s1 + $0x94] ss:$8 sps:$4 sm:$0xff]   ;;  %v883_v37 = vrot.slane %v881_v41, 1  ;;  %v4864_v31 = vld [vmem:[%s6757_s1 + $0x90] ss:$8 sps:$4 sm:$0xff]  }
  0xa9   : > { %3297 = vmatmul.mubr.bf16.gmra.mrb[36].mxu0 %v5332_v9  ;;  %v789_v9 = vsel %vm542_vm0, %v743_v18, %v788_v62  ;;  %v843_v18 = vsel %vm542_vm0, %v797_v45, %v842_v21  ;;  %v6013_v53 = vld [vmem:[%s6757_s1 + $0x5d4] ss:$8 sps:$4 sm:$0xff]   ;;  %v4873_v63 = vld [vmem:[%s6757_s1 + $0xa0] ss:$8 sps:$4 sm:$0xff]  }
  0xaa   : > { %3372 = vmatpush1.bf16.msra.mxu0 %v5959_v16  ;;  %3306 = vmatprep.mubr.bf16.mxu0 %v2791_v13  ;;  %v872_v33 = vshrl.u32 %v3906_v0, 16  ;;  %v875_v45 = vshll.u32 %v3906_v0, 16  ;;  %v6022_v13 = vld [vmem:[%s6757_s1 + $0x5d0] ss:$8 sps:$4 sm:$0xff]   ;;  %v887_v8 = vor.u32 %v886_v5, %v883_v37  ;;  %v4891_v0 = vld [vmem:[%s6757_s1 + $0xc4] ss:$8 sps:$4 sm:$0xff]  }
  0xab   : > { %3373 = vmatprep.subr.bf16.mxu0 %v5968_v34  ;;  %2149 = vmatpush1.bf16.msra.mxu1 %v4848_v46  ;;  %v833_v46 = vor.u32 %v832_v7, %v829_v17  ;;  %v4880_v17 = vld [vmem:[%s6757_s1 + $0xb0] ss:$8 sps:$4 sm:$0xff]   ;;  %v6053_v7 = vld [vmem:[%s6757_s1 + $0x5f4] ss:$8 sps:$4 sm:$0xff]   ;;  %v4889_v37 = vld [vmem:[%s6757_s1 + $0xc0] ss:$8 sps:$4 sm:$0xff]  }
  0xac   : > { %2150 = vmatprep.subr.bf16.mxu1 %v4859_v4  ;;  %v874_v41 = vrot.slane %v872_v33, 1  ;;  %v4898_v5 = vld [vmem:[%s6757_s1 + $0xd4] ss:$8 sps:$4 sm:$0xff]  }
  0xad   : > { %v834_v4 = vsel %vm542_vm0, %v788_v62, %v833_v46  ;;  %v6044_v62 = vld [vmem:[%s6757_s1 + $0x5e0] ss:$8 sps:$4 sm:$0xff]   ;;  %v6095_v33 = vld [vmem:[%s6757_s1 + $0x614] ss:$8 sps:$4 sm:$0xff]  }
  0xae   : > { %3374 = vmatpush1.bf16.msra.mxu0 %v5982_v42  ;;  %1501 = vmatmul.mubr.bf16.gmra.mrb[16].mxu1 %v789_v9  ;;  %v888_v9 = vsel %vm542_vm0, %v842_v21, %v887_v8 }
  0xaf   : > { %3375 = vmatprep.subr.bf16.mxu0 %v5993_v27  ;;  %2151 = vmatpush1.bf16.msra.mxu1 %v4857_v25  ;;  %v877_v25 = vrot.slane %v875_v45, 2  ;;  %v6100_v45 = vld [vmem:[%s6757_s1 + $0x610] ss:$8 sps:$4 sm:$0xff]  }
  0xb0   : > { %2152 = vmatprep.subr.bf16.mxu1 %v4866_v61  ;;  %1510 = vmatprep.mubr.bf16.mxu1 %v843_v18  ;;  %v6063_v61 = vld [vmem:[%s6757_s1 + $0x5f0] ss:$8 sps:$4 sm:$0xff]  }
  0xb1   : > { %3307 = vmatmul.mubr.bf16.gmra.mrb[40].mxu0 %v5352_v43  ;;  %v6034_v43 = vld [vmem:[%s6757_s1 + $0x5e4] ss:$8 sps:$4 sm:$0xff]   ;;  %v878_v21 = vor.u32 %v877_v25, %v874_v41  ;;  %v4924_v25 = vld [vmem:[%s5120_s18 + $0x140] ss:$20 sps:$4 sm:$0xff]  }
  0xb2   : > { %3376 = vmatpush1.bf16.msra.mxu0 %v6002_v40  ;;  %3316 = vmatprep.mubr.bf16.mxu0 %v5387_v28  ;;  %v4882_v28 = vld [vmem:[%s6757_s1 + $0xb4] ss:$8 sps:$4 sm:$0xff]   ;;  %v4918_v41 = vld [vmem:[%s5120_s18 + $0x4] ss:$20 sps:$4 sm:$0xff]  }
  0xb3   : > { %3377 = vmatprep.subr.bf16.mxu0 %v6013_v53  ;;  %2153 = vmatpush1.bf16.msra.mxu1 %v4864_v31  ;;  %v879_v18 = vsel %vm542_vm0, %v833_v46, %v878_v21  ;;  %v6086_v31 = vld [vmem:[%s5120_s18 + $0x144] ss:$20 sps:$4 sm:$0xff]  }
  0xb4   : > { %2154 = vmatprep.subr.bf16.mxu1 %v4875_v56  ;;  %v4896_v46 = vld [vmem:[%s6757_s1 + $0xd0] ss:$8 sps:$4 sm:$0xff]   ;;  %v4905_v56 = vld [vmem:[%s6757_s1 + $0xe4] ss:$8 sps:$4 sm:$0xff]  }
  0xb6   : > { %3378 = vmatpush1.bf16.msra.mxu0 %v6022_v13  ;;  %1511 = vmatmul.mubr.bf16.gmra.mrb[20].mxu1 %v834_v4  ;;  %v6114_v4 = vld [vmem:[%s6757_s1 + $0x624] ss:$8 sps:$4 sm:$0xff]  }
  0xb7   : > { %3379 = vmatprep.subr.bf16.mxu0 %v6034_v43  ;;  %2155 = vmatpush1.bf16.msra.mxu1 %v4873_v63  ;;  %v4903_v63 = vld [vmem:[%s6757_s1 + $0xe0] ss:$8 sps:$4 sm:$0xff]  }
  0xb8   : > { %2156 = vmatprep.subr.bf16.mxu1 %v4882_v28  ;;  %1520 = vmatprep.mubr.bf16.mxu1 %v888_v9  ;;  %v4910_v28 = vld [vmem:[%s6757_s1 + $0xf0] ss:$8 sps:$4 sm:$0xff]   ;;  %v6136_v9 = vld [vmem:[%s6757_s1 + $0x634] ss:$8 sps:$4 sm:$0xff]  }
  0xb9   : > { %3317 = vmatmul.mubr.bf16.gmra.mrb[44].mxu0 %v5390_v30  ;;  %v6074_v30 = vld [vmem:[%s6757_s1 + $0x604] ss:$8 sps:$4 sm:$0xff]  }
  0xba   : > { %3380 = vmatpush1.bf16.msra.mxu0 %v6044_v62  ;;  %3326 = vmatprep.mubr.bf16.mxu0 %v5419_v60  ;;  %v6083_v60 = vld [vmem:[%s6757_s1 + $0x600] ss:$8 sps:$4 sm:$0xff]  }
  0xbb   : > { %3381 = vmatprep.subr.bf16.mxu0 %v6053_v7  ;;  %2157 = vmatpush1.bf16.msra.mxu1 %v4880_v17 }
  0xbc   : > { %2158 = vmatprep.subr.bf16.mxu1 %v4891_v0  ;;  %v6147_v0 = vld [vmem:[%s6757_s1 + $0x630] ss:$8 sps:$4 sm:$0xff]  }
  0xbe   : > { %3382 = vmatpush1.bf16.msra.mxu0 %v6063_v61  ;;  %1521 = vmatmul.mubr.bf16.gmra.mrb[24].mxu1 %v879_v18  ;;  %v4916_v18 = vld [vmem:[%s5120_s18] ss:$20 sps:$4 sm:$0xff]  }
  0xbf   : > { %3383 = vmatprep.subr.bf16.mxu0 %v6074_v30  ;;  %2159 = vmatpush1.bf16.msra.mxu1 %v4889_v37  ;;  %v4921_v37 = vld [vmem:[%s6757_s1 + $0x100] ss:$8 sps:$4 sm:$0xff]  }
  0xc0   : > { %2160 = vmatprep.subr.bf16.mxu1 %v4898_v5  ;;  %1530 = vmatprep.mubr.bf16.mxu1 %v887_v8  ;;  %v2830_v8 = vrot.slane %v6086_v31, 3  ;;  %v4930_v5 = vld [vmem:[%s6757_s1 + $0x114] ss:$8 sps:$4 sm:$0xff]   ;;  %v5032_v31 = vld [vmem:[%s5120_s18 + $0x28] sm:$0xff] }
  0xc1   : > { %3327 = vmatmul.mubr.bf16.gmra.mrb[48].mxu0 %v5429_v32  ;;  %v4912_v32 = vld [vmem:[%s6757_s1 + $0xf4] ss:$8 sps:$4 sm:$0xff]  }
  0xc2   : > { %3384 = vmatpush1.bf16.msra.mxu0 %v6083_v60  ;;  %3336 = vmatprep.mubr.bf16.mxu0 %v5451_v47  ;;  %v6126_v47 = vld [vmem:[%s6757_s1 + $0x620] ss:$8 sps:$4 sm:$0xff]   ;;  %v2831_v17 = vsel %vm2762_vm2, %v5439_v12, %v2830_v8  ;;  %v2828_v12 = vrot.slane %v4924_v25, 3  ;;  %v6181_v25 = vld [vmem:[%s6757_s1 + $0x654] ss:$8 sps:$4 sm:$0xff]  }
  0xc3   : > { %3385 = vmatprep.subr.bf16.mxu0 %v6095_v33  ;;  %2161 = vmatpush1.bf16.msra.mxu1 %v4896_v46  ;;  %v3995_v46 = vcombine.high %v5032_v31, %v5792_v38 }
  0xc4   : > { %2162 = vmatprep.subr.bf16.mxu1 %v4905_v56  ;;  %v2474_v56 = vld [vmem:[%s5120_s18 + $0x30] sm:$0x88] }
  0xc6   : > { %3386 = vmatpush1.bf16.msra.mxu0 %v6100_v45  ;;  %1531 = vmatmul.mubr.bf16.gmra.mrb[28].mxu1 %v878_v21  ;;  %v4923_v21 = vld [vmem:[%s6757_s1 + $0x104] ss:$8 sps:$4 sm:$0xff]  }
  0xc7   : > { %3387 = vmatprep.subr.bf16.mxu0 %v6114_v4  ;;  %2163 = vmatpush1.bf16.msra.mxu1 %v4903_v63  ;;  %v2829_v63 = vsel %vm2762_vm2, %v5441_v54, %v2828_v12 }
  0xc8   : > { %2164 = vmatprep.subr.bf16.mxu1 %v4912_v32  ;;  %2166 = vmatprep.mubr.bf16.mxu1 %v4918_v41  ;;  %v6172_v32 = vld [vmem:[%s6757_s1 + $0x640] ss:$8 sps:$4 sm:$0xff]   ;;  %v4928_v41 = vld [vmem:[%s6757_s1 + $0x110] ss:$8 sps:$4 sm:$0xff]  }
  0xc9   : > { %3337 = vmatmul.mubr.bf16.gmra.mrb[52].mxu0 %v5455_v55  ;;  %v6158_v55 = vld [vmem:[%s6757_s1 + $0x644] ss:$8 sps:$4 sm:$0xff]  }
  0xca   : > { %3388 = vmatpush1.bf16.msra.mxu0 %v6126_v47  ;;  %3346 = vmatprep.mubr.bf16.mxu0 %v2831_v17  ;;  %v4938_v17 = vld [vmem:[%s6757_s1 + $0x124] ss:$8 sps:$4 sm:$0xff]  }
  0xcb   : > { %3389 = vmatprep.subr.bf16.mxu0 %v6136_v9  ;;  %2165 = vmatpush1.bf16.msra.mxu1 %v4910_v28  ;;  %v6184_v28 = vld [vmem:[%s5120_s18 + $0x44] sm:$0xff] }
  0xcc   : > { %2247 = vmatprep.subr.bf16.mxu1 %v4923_v21  ;;  %v4184_v54 = vcombine.high %v2474_v56, %v6184_v28  ;;  %v6194_v21 = vld [vmem:[%s6757_s1 + $0x650] ss:$8 sps:$4 sm:$0xff]  }
  0xce   : > { %3390 = vmatpush1.bf16.msra.mxu0 %v6147_v0  ;;  %2167 = vmatmul.mubr.bf16.vlgmr.msra.gmra.mrb[32].mxu1 %v4916_v18  ;;  %v3994_v18 = vcombine.low %v5032_v31, %v5792_v38  ;;  %v6213_v38 = vld [vmem:[%s6757_s1 + $0x660] ss:$8 sps:$4 sm:$0xff]   ;;  %v4183_v31 = vcombine.low %v2474_v56, %v6184_v28  ;;  %v4954_v56 = vld [vmem:[%s6757_s1 + $0x144] ss:$8 sps:$4 sm:$0xff]  }
  0xcf   : > { %3391 = vmatprep.subr.bf16.mxu0 %v6158_v55  ;;  %2248 = vmatpush1.bf16.msra.mxu1 %v4921_v37  ;;  %v4936_v37 = vld [vmem:[%s6757_s1 + $0x120] ss:$8 sps:$4 sm:$0xff]  }
  0xd0   : > { %2249 = vmatprep.subr.bf16.mxu1 %v4930_v5  ;;  %2176 = vmatprep.mubr.bf16.mxu1 %v3995_v46  ;;  %v6204_v5 = vld [vmem:[%s6757_s1 + $0x664] ss:$8 sps:$4 sm:$0xff]   ;;  %v2772_v46 = vrot.slane %v4184_v54, 3  ;;  %v6801_v54 = vrot.slane %v5542_v59, 3 }
  0xd1   : > { %3347 = vmatmul.mubr.bf16.gmra.mrb[56].mxu0 %v2829_v63  ;;  %v4942_v63 = vld [vmem:[%s6757_s1 + $0x130] ss:$8 sps:$4 sm:$0xff]  }
  0xd2   : > { %3392 = vmatpush1.bf16.msra.mxu0 %v6172_v32  ;;  %3356 = vmatprep.mubr.bf16.mxu0 %v2830_v8  ;;  %v4944_v8 = vld [vmem:[%s6757_s1 + $0x134] ss:$8 sps:$4 sm:$0xff]  }
  0xd3   : > { %3393 = vmatprep.subr.bf16.mxu0 %v6181_v25  ;;  %2250 = vmatpush1.bf16.msra.mxu1 %v4928_v41  ;;  %v6223_v41 = vld [vmem:[%s6757_s1 + $0x674] ss:$8 sps:$4 sm:$0xff]  }
  0xd4   : > { %2251 = vmatprep.subr.bf16.mxu1 %v4938_v17  ;;  %v2774_v17 = vsel %vm2762_vm2, %v2772_v46, %v6801_v54  ;;  %v4960_v46 = vld [vmem:[%s6757_s1 + $0x154] ss:$8 sps:$4 sm:$0xff]   ;;  %v4958_v54 = vld [vmem:[%s6757_s1 + $0x150] ss:$8 sps:$4 sm:$0xff]  }
  0xd6   : > { %3394 = vmatpush1.bf16.msra.mxu0 %v6194_v21  ;;  %2177 = vmatmul.mubr.bf16.gmra.mrb[36].mxu1 %v3994_v18  ;;  %v6236_v18 = vld [vmem:[%s6757_s1 + $0x670] ss:$8 sps:$4 sm:$0xff]  }
  0xd7   : > { %3395 = vmatprep.subr.bf16.mxu0 %v6204_v5  ;;  %2252 = vmatpush1.bf16.msra.mxu1 %v4936_v37  ;;  %v2769_v37 = vrot.slane %v4183_v31, 3 }
  0xd8   : > { %2253 = vmatprep.subr.bf16.mxu1 %v4944_v8  ;;  %2186 = vmatprep.mubr.bf16.mxu1 %v5288_v11  ;;  %v4952_v11 = vld [vmem:[%s6757_s1 + $0x140] ss:$8 sps:$4 sm:$0xff]   ;;  %v6802_v8 = vrot.slane %v5539_v39, 3 }
  0xd9   : > { %3357 = vmatmul.mubr.bf16.gmra.mrb[60].mxu0 %v2828_v12  ;;  %v4957_v12 = vld [vmem:[%s6757_s1 + $0x684] ss:$8 sps:$4 sm:$0xff]  }
  0xda   : > { %3396 = vmatpush1.bf16.msra.mxu0 %v6213_v38  ;;  %3399 = vmatprep.mubr.bf16.mxu0 %v2774_v17  ;;  %v2771_v31 = vsel %vm2762_vm2, %v2769_v37, %v6802_v8  ;;  %v4976_v17 = vld [vmem:[%s6757_s1 + $0x694] ss:$8 sps:$4 sm:$0xff]   ;;  %v4962_v37 = vld [vmem:[%s6757_s1 + $0x160] ss:$8 sps:$4 sm:$0xff]   ;;  %v5009_v8 = vld [vmem:[%s6757_s1 + $0x6b0] ss:$8 sps:$4 sm:$0xff]  }
  0xdb   : > { %3397 = vmatprep.subr.bf16.mxu0 %v6223_v41  ;;  %2254 = vmatpush1.bf16.msra.mxu1 %v4942_v63  ;;  %v4955_v63 = vld [vmem:[%s6757_s1 + $0x680] ss:$8 sps:$4 sm:$0xff]  }
  0xdc   : > { %2255 = vmatprep.subr.bf16.mxu1 %v4954_v56  ;;  %v4974_v56 = vld [vmem:[%s6757_s1 + $0x690] ss:$8 sps:$4 sm:$0xff]  }
  0xde   : > { %3398 = vmatpush1.bf16.msra.mxu0 %v6236_v18  ;;  %2187 = vmatmul.mubr.bf16.gmra.mrb[40].mxu1 %v5286_v10  ;;  %v4964_v10 = vld [vmem:[%s6757_s1 + $0x164] ss:$8 sps:$4 sm:$0xff]  }
  0xdf   : > { %2256 = vmatpush1.bf16.msra.mxu1 %v4952_v11  ;;  %3480 = vmatprep.subr.bf16.mxu0 %v4957_v12  ;;  %v4990_v11 = vld [vmem:[%s6757_s1 + $0x6a4] ss:$8 sps:$4 sm:$0xff]   ;;  %v4966_v12 = vld [vmem:[%s6757_s1 + $0x170] ss:$8 sps:$4 sm:$0xff]  }
  0xe0   : > { %2257 = vmatprep.subr.bf16.mxu1 %v4960_v46  ;;  %2196 = vmatprep.mubr.bf16.mxu1 %v5309_v44  ;;  %v4968_v44 = vld [vmem:[%s6757_s1 + $0x174] ss:$8 sps:$4 sm:$0xff]  }
  0xe1   : > { %3400 = vmatmul.mubr.bf16.vlgmr.msra.gmra.mrb[32].mxu0 %v2771_v31  ;;  %v5011_v46 = vld [vmem:[%s6757_s1 + $0x6b4] ss:$8 sps:$4 sm:$0xff]  }
  0xe2   : > { %3481 = vmatpush1.bf16.msra.mxu0 %v4955_v63  ;;  %3409 = vmatprep.mubr.bf16.mxu0 %v5618_v50  ;;  %v4988_v50 = vld [vmem:[%s6757_s1 + $0x6a0] ss:$8 sps:$4 sm:$0xff]   ;;  %v4979_v31 = vld [vmem:[%s6757_s1 + $0x194] ss:$8 sps:$4 sm:$0xff]  }
  0xe3   : > { %2258 = vmatpush1.bf16.msra.mxu1 %v4958_v54  ;;  %3482 = vmatprep.subr.bf16.mxu0 %v4976_v17 }
  0xe4   : > { %2259 = vmatprep.subr.bf16.mxu1 %v4964_v10  ;;  %v6803_v10 = vld [vmem:[#allocation2_spill] sm:$0xff] }
  0xe6   : > { %2197 = vmatmul.mubr.bf16.gmra.mrb[44].mxu1 %v5312_v51  ;;  %3483 = vmatpush1.bf16.msra.mxu0 %v4974_v56  ;;  %v4972_v51 = vld [vmem:[%s6757_s1 + $0x184] ss:$8 sps:$4 sm:$0xff]  }
  0xe7   : > { %2260 = vmatpush1.bf16.msra.mxu1 %v4962_v37  ;;  %2206 = vmatprep.mubr.bf16.mxu1 %v5334_v22  ;;  %v4970_v22 = vld [vmem:[%s6757_s1 + $0x180] ss:$8 sps:$4 sm:$0xff]   ;;  %v4994_v56 = vld [vmem:[%s6757_s1 + $0x1c4] ss:$8 sps:$4 sm:$0xff]  }
  0xe8   : > { %2261 = vmatprep.subr.bf16.mxu1 %v4968_v44  ;;  %3484 = vmatprep.subr.bf16.mxu0 %v4990_v11  ;;  %v217_v37 = vld [vmem:[%s5120_s18 + $0x12c] sm:$0x11]  ;;  %v6804_v44 = vld [vmem:[#allocation9_spill] sm:$0xff] }
  0xe9   : > { %3410 = vmatmul.mubr.bf16.gmra.mrb[36].mxu0 %v5645_v19  ;;  %v4977_v19 = vld [vmem:[%s6757_s1 + $0x190] ss:$8 sps:$4 sm:$0xff]  }
  0xea   : > { %3419 = vmatprep.mubr.bf16.mxu0 %v5716_v3  ;;  %3485 = vmatpush1.bf16.msra.mxu0 %v4988_v50  ;;  %v4983_v3 = vld [vmem:[%s6757_s1 + $0x1a4] ss:$8 sps:$4 sm:$0xff]   ;;  %v5034_v11 = vld [vmem:[%s5120_s18 + $0x118] sm:$0xff] }
  0xeb   : > { %2262 = vmatpush1.bf16.msra.mxu1 %v4966_v12  ;;  %3486 = vmatprep.subr.bf16.mxu0 %v5011_v46  ;;  %v4025_v50 = vcombine.high %v5034_v11, %v217_v37  ;;  %v4998_v46 = vld [vmem:[%s6757_s1 + $0x1d4] ss:$8 sps:$4 sm:$0xff]  }
  0xec   : > { %2263 = vmatprep.subr.bf16.mxu1 %v4972_v51 }
  0xee   : > { %2207 = vmatmul.mubr.bf16.gmra.mrb[48].mxu1 %v5336_v23  ;;  %3487 = vmatpush1.bf16.msra.mxu0 %v5009_v8  ;;  %v4981_v23 = vld [vmem:[%s6757_s1 + $0x1a0] ss:$8 sps:$4 sm:$0xff]  }
  0xef   : > { %2264 = vmatpush1.bf16.msra.mxu1 %v4970_v22  ;;  %2216 = vmatprep.mubr.bf16.mxu1 %v5366_v57  ;;  %v4987_v57 = vld [vmem:[%s6757_s1 + $0x1b4] ss:$8 sps:$4 sm:$0xff]  }
  0xf0   : > { %2265 = vmatprep.subr.bf16.mxu1 %v4979_v31  ;;  %v4996_v31 = vld [vmem:[%s6757_s1 + $0x1d0] ss:$8 sps:$4 sm:$0xff]  }
  0xf1   : > { %3420 = vmatmul.mubr.bf16.gmra.mrb[40].mxu0 %v5719_v48 }
  0xf2   : > { %3429 = vmatprep.mubr.bf16.mxu0 %v5730_v49  ;;  %v6317_v63 = vpop.f32.mrb[0].mxu0  ;;  %v4985_v49 = vld [vmem:[%s6757_s1 + $0x1b0] ss:$8 sps:$4 sm:$0xff]  }
  0xf3   : > { %2266 = vmatpush1.bf16.msra.mxu1 %v4977_v19  ;;  %v6322_v54 = vpop.f32.mrb[1].mxu0  ;;  %v6359_v19 = vld [vmem:[%s5120_s18 + $0x14c] ss:$20 sps:$4 sm:$0xff]  }
  0xf4   : > { %2267 = vmatprep.subr.bf16.mxu1 %v4983_v3  ;;  %v6324_v17 = vpop.f32.mrb[2].mxu0  ;;  %v5004_v3 = vld [vmem:[%s6757_s1 + $0x1e4] ss:$8 sps:$4 sm:$0xff]  }
  0xf5   : > { %v6327_v48 = vpop.f32.mrb[3].mxu0 }
  0xf6   : > { %2217 = vmatmul.mubr.bf16.gmra.mrb[52].mxu1 %v5369_v58  ;;  %v4992_v58 = vld [vmem:[%s6757_s1 + $0x1c0] ss:$8 sps:$4 sm:$0xff]  }
  0xf7   : > { %2268 = vmatpush1.bf16.msra.mxu1 %v4981_v23  ;;  %2226 = vmatprep.mubr.bf16.mxu1 %v6803_v10  ;;  %v4024_v23 = vcombine.low %v5034_v11, %v217_v37  ;;  %v6778_v10 = vrot.slane %v6359_v19, 3  ;;  %v6381_v37 = vld [vmem:[%s5120_s18 + $0x148] ss:$20 sps:$4 sm:$0xff]   ;;  %v5006_v11 = vld [vmem:[%s6757_s1 + $0x1f0] ss:$8 sps:$4 sm:$0xff]  }
  0xf8   : > { %2269 = vmatprep.subr.bf16.mxu1 %v4987_v57  ;;  %v5002_v57 = vld [vmem:[%s6757_s1 + $0x1e0] ss:$8 sps:$4 sm:$0xff]  }
  0xf9   : > { %3430 = vmatmul.mubr.bf16.gmra.mrb[44].mxu0 %v6804_v44  ;;  %v5008_v44 = vld [vmem:[%s6757_s1 + $0x1f4] ss:$8 sps:$4 sm:$0xff]  }
  0xfa   : > { %3439 = vmatprep.mubr.bf16.mxu0 %v5837_v52  ;;  %v6343_v12 = vpop.f32.mrb[4].mxu0  ;;  %v6805_v52 = vld [vmem:[#allocation3_spill] sm:$0xff] }
  0xfb   : > { %2270 = vmatpush1.bf16.msra.mxu1 %v4985_v49  ;;  %v6348_v51 = vpop.f32.mrb[5].mxu0  ;;  %v5014_v49 = vld [vmem:[%s5120_s18 + $0xc] ss:$20 sps:$4 sm:$0xff]  }
  0xfc   : > { %2271 = vmatprep.subr.bf16.mxu1 %v4994_v56  ;;  %v6350_v8 = vpop.f32.mrb[6].mxu0 }
  0xfd   : > { %v6353_v22 = vpop.f32.mrb[7].mxu0 }
  0xfe   : > { %2227 = vmatmul.mubr.bf16.gmra.mrb[56].mxu1 %v6805_v52  ;;  %v6779_v52 = vrot.slane %v6381_v37, 3 }
  0xff   : > { %2272 = vmatpush1.bf16.msra.mxu1 %v4992_v58  ;;  %2236 = vmatprep.mubr.bf16.mxu1 %v4025_v50  ;;  %v2835_v50 = vsel %vm2762_vm2, %v5839_v20, %v6778_v10  ;;  %v5020_v20 = vld [vmem:[%s5120_s18 + $0x38] ss:$20 sps:$4 sm:$0xf8]  }
 0x100   : > { %2273 = vmatprep.subr.bf16.mxu1 %v4998_v46  ;;  %v5012_v46 = vld [vmem:[%s5120_s18 + $0x8] ss:$20 sps:$4 sm:$0xff]  }
 0x101   : > { %3440 = vmatmul.mubr.bf16.gmra.mrb[48].mxu0 %v5853_v26 }
 0x102   : > { %3449 = vmatprep.mubr.bf16.mxu0 %v5857_v6  ;;  %v6371_v56 = vpop.f32.mrb[8].mxu0 }
 0x103   : > { %2274 = vmatpush1.bf16.msra.mxu1 %v4996_v31  ;;  %v6376_v26 = vpop.f32.mrb[9].mxu0  ;;  %v5035_v31 = vld [vmem:[%s5120_s18 + $0x30] sm:$0xff] }
 0x104   : > { %2275 = vmatprep.subr.bf16.mxu1 %v5004_v3  ;;  %v6378_v6 = vpop.f32.mrb[10].mxu0  ;;  %v3997_v3 = vcombine.high %v5035_v31, %v6184_v28 }
 0x105   : > { %v6383_v58 = vpop.f32.mrb[11].mxu0 }
 0x106   : > { %2237 = vmatmul.mubr.bf16.gmra.mrb[60].mxu1 %v4024_v23 }
 0x107   : > { %2276 = vmatpush1.bf16.msra.mxu1 %v5002_v57  ;;  %2279 = vmatprep.mubr.bf16.mxu1 %v5014_v49 }
 0x108   : > { %2277 = vmatprep.subr.bf16.mxu1 %v5008_v44  ;;  %v5021_v44 = vld [vmem:[%s5120_s18 + $0x60] ss:$20 sps:$4 sm:$0xff]  }
 0x109   : > { %3450 = vmatmul.mubr.bf16.gmra.mrb[52].mxu0 %v5877_v1  ;;  %v2833_v1 = vsel %vm2762_vm2, %v5859_v14, %v6779_v52  ;;  %v2776_v10 = vrot.slane %v5021_v44, 3 }
 0x10a   : > { %3459 = vmatprep.mubr.bf16.mxu0 %v2835_v50  ;;  %v6397_v23 = vpop.f32.mrb[12].mxu0  ;;  %v3996_v50 = vcombine.low %v5035_v31, %v6184_v28 }
 0x10b   : > { %2278 = vmatpush1.bf16.msra.mxu1 %v5006_v11  ;;  %v6400_v57 = vpop.f32.mrb[13].mxu0 }
 0x10c   : > { %4304 = vmatprep.subr.bf16.mxu1 %v5895_v36  ;;  %v6402_v49 = vpop.f32.mrb[14].mxu0  ;;  %v6807_v36 = vmov 0  }
 0x10d   : > { %v6410_v11 = vpop.f32.mrb[15].mxu0 }
 0x10e   : > { %2280 = vmatmul.mubr.bf16.vlgmr.msra.gmra.mrb[32].mxu1 %v5012_v46  ;;  %6806 = vst [vmem:[#allocation2_spill] sm:$0xff] %v6410_v11  ;;  %v2775_v46 = vrot.slane %v5020_v20, 3 }
 0x10f   : > { %4320 = vmatpush1.bf16.msra.mxu1 %v5905_v35  ;;  %2289 = vmatprep.mubr.bf16.mxu1 %v3997_v3 }
 0x110   : > { %4305 = vmatprep.subr.bf16.mxu1 %v5921_v29  ;;  %v2777_v35 = vsel %vm2762_vm2, %v2775_v46, %v2776_v10  ;;  %v5022_v29 = vld [vmem:[%s5120_s18 + $0x88] ss:$20 sps:$4 sm:$0xff]  }
 0x111   : > { %3460 = vmatmul.mubr.bf16.gmra.mrb[56].mxu0 %v2833_v1  ;;  %v6808_v1 = vld [vmem:[#allocation4_spill] sm:$0xff] }
 0x112   : > { %3512 = vmatprep.mubr.bf16.mxu0 %v6807_v36  ;;  %v6417_v14 = vpop.f32.mrb[16].mxu0 }
 0x113   : > { %4321 = vmatpush1.bf16.msra.mxu1 %v5934_v2  ;;  %v6420_v52 = vpop.f32.mrb[17].mxu0  ;;  %v2786_v2 = vrot.slane %v5022_v29, 3  ;;  %v5025_v29 = vld [vmem:[%s5120_s18 + $0x100] ss:$20 sps:$4 sm:$0xff]  }
 0x114   : > { %4306 = vmatprep.subr.bf16.mxu1 %v5946_v15  ;;  %v6422_v11 = vpop.f32.mrb[18].mxu0 }
 0x115   : > { %v6426_v3 = vpop.f32.mrb[19].mxu0 }
 0x116   : > { %2290 = vmatmul.mubr.bf16.gmra.mrb[36].mxu1 %v3996_v50  ;;  %v6810_v50 = vld [vmem:[#allocation6_spill] sm:$0xff] }
 0x117   : > { %4322 = vmatpush1.bf16.msra.mxu1 %v5959_v16  ;;  %2299 = vmatprep.mubr.bf16.mxu1 %v5542_v59  ;;  %v2787_v59 = vsel %vm2762_vm2, %v2776_v10, %v2786_v2  ;;  %v5023_v16 = vld [vmem:[%s5120_s18 + $0xb0] ss:$20 sps:$4 sm:$0xff]  }
 0x118   : > { %4307 = vmatprep.subr.bf16.mxu1 %v5968_v34 }
 0x119   : > { %4293 = vmatmul.mubr.msk.bf16.vlgmr.msra.gmra.mrb[32].mxu0 %vm1290_vm1, %v2777_v35 }
 0x11a   : > { %3522 = vmatprep.mubr.bf16.mxu0 %v6807_v36  ;;  %v6434_v15 = vpop.f32.mrb[20].mxu0 }
 0x11b   : > { %4323 = vmatpush1.bf16.msra.mxu1 %v5982_v42  ;;  %v6437_v28 = vpop.f32.mrb[21].mxu0  ;;  %v2796_v42 = vrot.slane %v5023_v16, 3 }
 0x11c   : > { %4308 = vmatprep.subr.bf16.mxu1 %v5993_v27  ;;  %v6439_v31 = vpop.f32.mrb[22].mxu0 }
 0x11d   : > { %v6444_v34 = vpop.f32.mrb[23].mxu0  ;;  %v2797_v20 = vsel %vm2762_vm2, %v2786_v2, %v2796_v42 }
 0x11e   : > { %2300 = vmatmul.mubr.bf16.gmra.mrb[40].mxu1 %v5539_v39 }
 0x11f   : > { %4324 = vmatpush1.bf16.msra.mxu1 %v6002_v40  ;;  %2309 = vmatprep.mubr.bf16.mxu1 %v6808_v1  ;;  %v6809_v40 = vld [vmem:[#allocation5_spill] sm:$0xff]  ;;  %v6814_v1 = vld [vmem:[#allocation11_spill] sm:$0xff] }
 0x120   : > { %4309 = vmatprep.subr.bf16.mxu1 %v6013_v53  ;;  %v5024_v53 = vld [vmem:[%s5120_s18 + $0xd8] ss:$20 sps:$4 sm:$0xff]  }
 0x121   : > { %4294 = vmatmul.mubr.msk.bf16.gmra.mrb[36].mxu0 %vm1290_vm1, %v2787_v59 }
 0x122   : > { %3532 = vmatprep.mubr.bf16.mxu0 %v6807_v36 }
 0x123   : > { %4325 = vmatpush1.bf16.msra.mxu1 %v6022_v13  ;;  %v6452_v39 = vpop.f32.mrb[24].mxu0  ;;  %v2806_v13 = vrot.slane %v5024_v53, 3 }
 0x124   : > { %4310 = vmatprep.subr.bf16.mxu1 %v6034_v43  ;;  %v6455_v27 = vpop.f32.mrb[25].mxu0 }
 0x125   : > { %v6457_v10 = vpop.f32.mrb[26].mxu0 }
 0x126   : > { %2310 = vmatmul.mubr.bf16.gmra.mrb[44].mxu1 %v6809_v40  ;;  %v6462_v44 = vpop.f32.mrb[27].mxu0 }
 0x127   : > { %4326 = vmatpush1.bf16.msra.mxu1 %v6044_v62  ;;  %2319 = vmatprep.mubr.bf16.mxu1 %v6810_v50  ;;  %v6811_v62 = vld [vmem:[#allocation7_spill] sm:$0xff] }
 0x128   : > { %4311 = vmatprep.subr.bf16.mxu1 %v6053_v7  ;;  %v2807_v7 = vsel %vm2762_vm2, %v2796_v42, %v2806_v13  ;;  %v5029_v42 = vld [vmem:[%s5120_s18 + $0x150] ss:$20 sps:$4 sm:$0xff]  }
 0x129   : > { %4295 = vmatmul.mubr.msk.bf16.gmra.mrb[40].mxu0 %vm1290_vm1, %v2797_v20 }
 0x12a   : > { %3542 = vmatprep.mubr.bf16.mxu0 %v6807_v36 }
 0x12b   : > { %4327 = vmatpush1.bf16.msra.mxu1 %v6063_v61  ;;  %v6470_v43 = vpop.f32.mrb[28].mxu0  ;;  %v2816_v61 = vrot.slane %v5025_v29, 3 }
 0x12c   : > { %4312 = vmatprep.subr.bf16.mxu1 %v6074_v30  ;;  %v6473_v46 = vpop.f32.mrb[29].mxu0  ;;  %v6812_v30 = vld [vmem:[#allocation8_spill] sm:$0xff] }
 0x12d   : > { %v6475_v35 = vpop.f32.mrb[30].mxu0  ;;  %v2817_v59 = vsel %vm2762_vm2, %v2806_v13, %v2816_v61 }
 0x12e   : > { %2320 = vmatmul.mubr.bf16.gmra.mrb[48].mxu1 %v6811_v62  ;;  %v6480_v2 = vpop.f32.mrb[31].mxu0 }
 0x12f   : > { %4328 = vmatpush1.bf16.msra.mxu1 %v6083_v60  ;;  %2329 = vmatprep.mubr.bf16.mxu1 %v5687_v24  ;;  %v5026_v60 = vld [vmem:[%s5120_s18 + $0x128] ss:$20 sps:$4 sm:$0xff]   ;;  %v6813_v24 = vld [vmem:[#allocation10_spill] sm:$0xff] }
 0x130   : > { %4313 = vmatprep.subr.bf16.mxu1 %v6095_v33  ;;  %v218_v33 = vld [vmem:[%s5120_s18 + $0x134] sm:$0x11] }
 0x131   : > { %4296 = vmatmul.mubr.msk.bf16.gmra.mrb[44].mxu0 %vm1290_vm1, %v2807_v7 }
 0x132   : > { %3552 = vmatprep.mubr.bf16.mxu0 %v6807_v36 }
 0x133   : > { %4329 = vmatpush1.bf16.msra.mxu1 %v6100_v45  ;;  %v2826_v45 = vrot.slane %v5026_v60, 3 }
 0x134   : > { %4314 = vmatprep.subr.bf16.mxu1 %v6114_v4  ;;  %v5036_v4 = vld [vmem:[%s5120_s18 + $0x120] sm:$0xff] }
 0x135   : > { %v4027_v16 = vcombine.high %v5036_v4, %v218_v33 }
 0x136   : > { %2330 = vmatmul.mubr.bf16.gmra.mrb[52].mxu1 %v6812_v30 }
 0x137   : > { %4330 = vmatpush1.bf16.msra.mxu1 %v6126_v47  ;;  %2339 = vmatprep.mubr.bf16.mxu1 %v6813_v24  ;;  %v2827_v47 = vsel %vm2762_vm2, %v2816_v61, %v2826_v45 }
 0x138   : > { %4315 = vmatprep.subr.bf16.mxu1 %v6136_v9  ;;  %v4026_v9 = vcombine.low %v5036_v4, %v218_v33  ;;  %v6817_v33 = vld [vmem:[#allocation2_spill] sm:$0xff] }
 0x139   : > { %4297 = vmatmul.mubr.msk.bf16.gmra.mrb[48].mxu0 %vm1290_vm1, %v2817_v59 }
 0x13a   : > { %3562 = vmatprep.mubr.bf16.mxu0 %v6807_v36 }
 0x13b   : > { %4331 = vmatpush1.bf16.msra.mxu1 %v6147_v0  ;;  %v2836_v0 = vrot.slane %v5029_v42, 3 }
 0x13c   : > { %4316 = vmatprep.subr.bf16.mxu1 %v6158_v55 }
 0x13d   : > { %v2837_v55 = vsel %vm2762_vm2, %v2826_v45, %v2836_v0 }
 0x13e   : > { %2340 = vmatmul.mubr.bf16.gmra.mrb[56].mxu1 %v6814_v1 }
 0x13f   : > { %4332 = vmatpush1.bf16.msra.mxu1 %v6172_v32  ;;  %2349 = vmatprep.mubr.bf16.mxu1 %v4027_v16  ;;  %v6815_v32 = vrot.slane %v6359_v19, 3 }
 0x140   : > { %4317 = vmatprep.subr.bf16.mxu1 %v6181_v25  ;;  %v6816_v25 = vrot.slane %v6381_v37, 3 }
 0x141   : > { %4298 = vmatmul.mubr.msk.bf16.gmra.mrb[52].mxu0 %vm1290_vm1, %v2827_v47 }
 0x142   : > { %3572 = vmatprep.mubr.bf16.mxu0 %v6807_v36 }
 0x143   : > { %4333 = vmatpush1.bf16.msra.mxu1 %v6194_v21 }
 0x144   : > { %4318 = vmatprep.subr.bf16.mxu1 %v6204_v5 }
 0x146   : > { %2350 = vmatmul.mubr.bf16.gmra.mrb[60].mxu1 %v4026_v9 }
 0x147   : > { %4334 = vmatpush1.bf16.msra.mxu1 %v6213_v38  ;;  %3469 = vmatprep.mubr.bf16.mxu1 %v6815_v32 }
 0x148   : > { %4319 = vmatprep.subr.bf16.mxu1 %v6223_v41 }
 0x149   : > { %4299 = vmatmul.mubr.msk.bf16.gmra.mrb[56].mxu0 %vm1290_vm1, %v2837_v55 }
 0x14a   : > { %3582 = vmatprep.mubr.bf16.mxu0 %v6807_v36 }
 0x14b   : > { %4335 = vmatpush1.bf16.msra.mxu1 %v6236_v18 }
 0x14e   : > { %3470 = vmatmul.mubr.bf16.vlgmr.msra.gmra.mrb[64].mxu1 %v6816_v25 }
 0x151   : > { %4300 = vmatmul.mubr.msk.bf16.gmra.mrb[64].mxu0 %vm1290_vm1, %v2836_v0 }
 0x161   : > { %v1462_v21 = vpop.f32.mrb[0].mxu1 }
 0x162   : > { %v6522_v5 = vadd.f32 %v6317_v63, %v1462_v21  ;;  %v1464_v38 = vpop.f32.mrb[1].mxu1 }
 0x163   : > { %v6525_v19 = vadd.f32 %v6322_v54, %v1464_v38  ;;  %v1466_v41 = vpop.f32.mrb[2].mxu1 }
 0x164   : > { %v6528_v40 = vadd.f32 %v6324_v17, %v1466_v41  ;;  %v1468_v36 = vpop.f32.mrb[3].mxu1 }
 0x165   : > { %v6531_v18 = vadd.f32 %v6327_v48, %v1468_v36 }
 0x169   : > { %v1472_v37 = vpop.f32.mrb[4].mxu1 }
 0x16a   : > { %v6534_v20 = vadd.f32 %v6343_v12, %v1472_v37  ;;  %v1474_v53 = vpop.f32.mrb[5].mxu1 }
 0x16b   : > { %v6537_v63 = vadd.f32 %v6348_v51, %v1474_v53  ;;  %v1476_v50 = vpop.f32.mrb[6].mxu1 }
 0x16c   : > { %v6540_v54 = vadd.f32 %v6350_v8, %v1476_v50  ;;  %v1478_v13 = vpop.f32.mrb[7].mxu1 }
 0x16d   : > { %v6543_v17 = vadd.f32 %v6353_v22, %v1478_v13 }
 0x171   : > { %v1482_v62 = vpop.f32.mrb[8].mxu1 }
 0x172   : > { %v6546_v48 = vadd.f32 %v6371_v56, %v1482_v62  ;;  %v1484_v7 = vpop.f32.mrb[9].mxu1  ;;  %v3627_v62 = vlaneseq }
 0x173   : > { %v6549_v12 = vadd.f32 %v6376_v26, %v1484_v7  ;;  %v1486_v29 = vpop.f32.mrb[10].mxu1 }
 0x174   : > { %v6552_v51 = vadd.f32 %v6378_v6, %v1486_v29  ;;  %v1488_v61 = vpop.f32.mrb[11].mxu1 }
 0x175   : > { %v6555_v8 = vadd.f32 %v6383_v58, %v1488_v61 }
 0x179   : > { %v1492_v30 = vpop.f32.mrb[12].mxu1 }
 0x17a   : > { %v6558_v22 = vadd.f32 %v6397_v23, %v1492_v30  ;;  %v1494_v59 = vpop.f32.mrb[13].mxu1  ;;  %v3628_v30 = vshrl.u32 %v3627_v62, 7 }
 0x17b   : > { %v6561_v56 = vadd.f32 %v6400_v57, %v1494_v59  ;;  %v1496_v60 = vpop.f32.mrb[14].mxu1 }
 0x17c   : > { %v6564_v26 = vadd.f32 %v6402_v49, %v1496_v60  ;;  %v1498_v24 = vpop.f32.mrb[15].mxu1 }
 0x17d   : > { %v6567_v6 = vadd.f32 %v6817_v33, %v1498_v24  ;;  %v3629_v24 = vsub.s32 0, %v3628_v30  ;;  %v3625_v33 = vld [vmem:[%s6758_s2] sm:$0x3] }
 0x181   : > { %v1502_v45 = vpop.f32.mrb[16].mxu1 }
 0x182   : > { %v6570_v58 = vadd.f32 %v6417_v14, %v1502_v45  ;;  %v1504_v4 = vpop.f32.mrb[17].mxu1  ;;  %v3633_v45 = vsub.s32 1, %v3628_v30 }
 0x183   : > { %v6573_v23 = vadd.f32 %v6420_v52, %v1504_v4  ;;  %v1506_v16 = vpop.f32.mrb[18].mxu1 }
 0x184   : > { %v6576_v57 = vadd.f32 %v6422_v11, %v1506_v16  ;;  %v1508_v1 = vpop.f32.mrb[19].mxu1 }
 0x185   : > { %v6579_v49 = vadd.f32 %v6426_v3, %v1508_v1  ;;  %v6633_v1 = vrot.slane %v3625_v33, %v3629_v24 }
 0x189   : > { %v1512_v47 = vpop.f32.mrb[20].mxu1 }
 0x18a   : > { %v6582_v42 = vadd.f32 %v6434_v15, %v1512_v47  ;;  %v1514_v9 = vpop.f32.mrb[21].mxu1 }
 0x18b   : > { %v6585_v14 = vadd.f32 %v6437_v28, %v1514_v9  ;;  %v1516_v0 = vpop.f32.mrb[22].mxu1  ;;  %v6636_v9 = vrot.slane %v3625_v33, %v3633_v45 }
 0x18c   : > { %v6588_v52 = vadd.f32 %v6439_v31, %v1516_v0  ;;  %v1518_v55 = vpop.f32.mrb[23].mxu1 }
 0x18d   : > { %v6591_v11 = vadd.f32 %v6444_v34, %v1518_v55 }
 0x191   : > { %v1522_v32 = vpop.f32.mrb[24].mxu1 }
 0x192   : > { %v6594_v3 = vadd.f32 %v6452_v39, %v1522_v32  ;;  %v1524_v25 = vpop.f32.mrb[25].mxu1 }
 0x193   : > { %v6597_v15 = vadd.f32 %v6455_v27, %v1524_v25  ;;  %v1526_v21 = vpop.f32.mrb[26].mxu1 }
 0x194   : > { %v6600_v28 = vadd.f32 %v6457_v10, %v1526_v21  ;;  %v1528_v38 = vpop.f32.mrb[27].mxu1 }
 0x195   : > { %v6603_v31 = vadd.f32 %v6462_v44, %v1528_v38 }
 0x199   : > { %v1532_v41 = vpop.f32.mrb[28].mxu1 }
 0x19a   : > { %v6606_v34 = vadd.f32 %v6470_v43, %v1532_v41  ;;  %v1534_v36 = vpop.f32.mrb[29].mxu1 }
 0x19b   : > { %v6609_v39 = vadd.f32 %v6473_v46, %v1534_v36  ;;  %v1536_v37 = vpop.f32.mrb[30].mxu1 }
 0x19c   : > { %v6612_v27 = vadd.f32 %v6475_v35, %v1536_v37  ;;  %v1538_v53 = vpop.f32.mrb[31].mxu1 }
 0x19d   : > { %v6615_v10 = vadd.f32 %v6480_v2, %v1538_v53 }
 0x1ac   : > { %v6617_v50 = vpop.f32.mrb[60].mxu0 }
 0x1ad   : > { %v6619_v44 = vpop.f32.mrb[61].mxu0 }
 0x1ae   : > { %v6621_v13 = vpop.f32.mrb[62].mxu0 }
 0x1af   : > { %v6623_v43 = vpop.f32.mrb[63].mxu0 }
 0x1e1   : > { %v2281_v7 = vpop.f32.mrb[32].mxu1 }
 0x1e2   : > { %v4337_v46 = vadd.f32 %v6522_v5, %v2281_v7  ;;  %v2283_v29 = vpop.f32.mrb[33].mxu1 }
 0x1e3   : > { %v4340_v35 = vadd.f32 %v6525_v19, %v2283_v29  ;;  %v2285_v61 = vpop.f32.mrb[34].mxu1 }
 0x1e4   : > { %v4343_v2 = vadd.f32 %v6528_v40, %v2285_v61  ;;  %v2287_v59 = vpop.f32.mrb[35].mxu1 }
 0x1e5   : > { %v4346_v60 = vadd.f32 %v6531_v18, %v2287_v59 }
 0x1e9   : > { %v2291_v4 = vpop.f32.mrb[36].mxu1 }
 0x1ea   : > { %v4349_v5 = vadd.f32 %v6534_v20, %v2291_v4  ;;  %v2293_v16 = vpop.f32.mrb[37].mxu1 }
 0x1eb   : > { %v4352_v19 = vadd.f32 %v6537_v63, %v2293_v16  ;;  %v2295_v47 = vpop.f32.mrb[38].mxu1 }
 0x1ec   : > { %v3514_v40 = vpop.f32.mrb[32].mxu0  ;;  %v4355_v18 = vadd.f32 %v6540_v54, %v2295_v47  ;;  %v2297_v0 = vpop.f32.mrb[39].mxu1 }
 0x1ed   : > { %v4338_v55 = vadd.f32 %v4337_v46, %v3514_v40  ;;  %v3516_v32 = vpop.f32.mrb[33].mxu0  ;;  %v4358_v25 = vadd.f32 %v6543_v17, %v2297_v0 }
 0x1ee   : > { %v4341_v21 = vadd.f32 %v4340_v35, %v3516_v32  ;;  %v3518_v38 = vpop.f32.mrb[34].mxu0 }
 0x1ef   : > { %v3637_v20 = vadd.f32 %v4338_v55, %v6633_v1  ;;  %v4344_v41 = vadd.f32 %v4343_v2, %v3518_v38  ;;  %v3520_v36 = vpop.f32.mrb[35].mxu0 }
 0x1f0   : > { %v3638_v63 = vadd.f32 %v4341_v21, %v6636_v9  ;;  %v4347_v54 = vadd.f32 %v4346_v60, %v3520_v36 }
 0x1f1   : > { %v3669_v37 = vmax.f32 %v3637_v20, 0.0  ;;  %v3639_v17 = vadd.f32 %v4344_v41, %v6633_v1  ;;  %v2301_v53 = vpop.f32.mrb[40].mxu1 }
 0x1f2   : > { %v3670_v62 = vmax.f32 %v3638_v63, 0.0  ;;  %v3640_v7 = vadd.f32 %v4347_v54, %v6636_v9  ;;  %v4361_v46 = vadd.f32 %v6546_v48, %v2301_v53  ;;  %v2303_v29 = vpop.f32.mrb[41].mxu1 }
 0x1f3   : > { %3701 = vst [vmem:[%s6645_s21] sm:$0xff] %v3669_v37  ;;  %v3671_v35 = vmax.f32 %v3639_v17, 0.0  ;;  %v4364_v61 = vadd.f32 %v6549_v12, %v2303_v29  ;;  %v2305_v30 = vpop.f32.mrb[42].mxu1 }
 0x1f4   : > { %3702 = vst.msk [vmem:[%s6645_s21 + $0x8] sm:$0xff] %vm1290_vm1, %v3670_v62  ;;  %v3672_v2 = vmax.f32 %v3640_v7, 0.0  ;;  %v3524_v59 = vpop.f32.mrb[36].mxu0  ;;  %v4367_v60 = vadd.f32 %v6552_v51, %v2305_v30  ;;  %v2307_v24 = vpop.f32.mrb[43].mxu1 }
 0x1f5   : > { %3703 = vst [vmem:[%s6645_s21 + $0x10] sm:$0xff] %v3671_v35  ;;  %v4350_v33 = vadd.f32 %v4349_v5, %v3524_v59  ;;  %v3526_v45 = vpop.f32.mrb[37].mxu0  ;;  %v4370_v4 = vadd.f32 %v6555_v8, %v2307_v24 }
 0x1f6   : > { %3704 = vst.msk [vmem:[%s6645_s21 + $0x18] sm:$0xff] %vm1290_vm1, %v3672_v2  ;;  %v4353_v48 = vadd.f32 %v4352_v19, %v3526_v45  ;;  %v3528_v16 = vpop.f32.mrb[38].mxu0 }
 0x1f7   : > { %v3641_v12 = vadd.f32 %v4350_v33, %v6633_v1  ;;  %v4356_v47 = vadd.f32 %v4355_v18, %v3528_v16  ;;  %v3530_v40 = vpop.f32.mrb[39].mxu0 }
 0x1f8   : > { %v3642_v0 = vadd.f32 %v4353_v48, %v6636_v9  ;;  %v4359_v55 = vadd.f32 %v4358_v25, %v3530_v40 }
 0x1f9   : > { %v3673_v51 = vmax.f32 %v3641_v12, 0.0  ;;  %v3643_v5 = vadd.f32 %v4356_v47, %v6633_v1  ;;  %v2311_v32 = vpop.f32.mrb[44].mxu1 }
 0x1fa   : > { %v3674_v21 = vmax.f32 %v3642_v0, 0.0  ;;  %v3644_v8 = vadd.f32 %v4359_v55, %v6636_v9  ;;  %v4373_v19 = vadd.f32 %v6558_v22, %v2311_v32  ;;  %v2313_v38 = vpop.f32.mrb[45].mxu1 }
 0x1fb   : > { %3705 = vst [vmem:[%s6645_s21 + $0x20] sm:$0xff] %v3673_v51  ;;  %v3675_v20 = vmax.f32 %v3643_v5, 0.0  ;;  %v4376_v18 = vadd.f32 %v6561_v56, %v2313_v38  ;;  %v2315_v41 = vpop.f32.mrb[46].mxu1 }
 0x1fc   : > { %3706 = vst.msk [vmem:[%s6645_s21 + $0x28] sm:$0xff] %vm1290_vm1, %v3674_v21  ;;  %v3676_v25 = vmax.f32 %v3644_v8, 0.0  ;;  %v3534_v36 = vpop.f32.mrb[40].mxu0  ;;  %v4379_v63 = vadd.f32 %v6564_v26, %v2315_v41  ;;  %v2317_v54 = vpop.f32.mrb[47].mxu1 }
 0x1fd   : > { %3707 = vst [vmem:[%s6645_s21 + $0x30] sm:$0xff] %v3675_v20  ;;  %v4362_v37 = vadd.f32 %v4361_v46, %v3534_v36  ;;  %v3536_v17 = vpop.f32.mrb[41].mxu0  ;;  %v4382_v53 = vadd.f32 %v6567_v6, %v2317_v54 }
 0x1fe   : > { %3708 = vst.msk [vmem:[%s6645_s21 + $0x38] sm:$0xff] %vm1290_vm1, %v3676_v25  ;;  %v4365_v22 = vadd.f32 %v4364_v61, %v3536_v17  ;;  %v3538_v62 = vpop.f32.mrb[42].mxu0 }
 0x1ff   : > { %v3645_v56 = vadd.f32 %v4362_v37, %v6633_v1  ;;  %v4368_v7 = vadd.f32 %v4367_v60, %v3538_v62  ;;  %v3540_v29 = vpop.f32.mrb[43].mxu0 }
 0x200   : > { %v3646_v35 = vadd.f32 %v4365_v22, %v6636_v9  ;;  %v4371_v30 = vadd.f32 %v4370_v4, %v3540_v29 }
 0x201   : > { %v3677_v26 = vmax.f32 %v3645_v56, 0.0  ;;  %v3647_v46 = vadd.f32 %v4368_v7, %v6633_v1  ;;  %v2321_v2 = vpop.f32.mrb[48].mxu1 }
 0x202   : > { %v3678_v59 = vmax.f32 %v3646_v35, 0.0  ;;  %v3648_v6 = vadd.f32 %v4371_v30, %v6636_v9  ;;  %v4385_v61 = vadd.f32 %v6570_v58, %v2321_v2  ;;  %v2323_v24 = vpop.f32.mrb[49].mxu1 }
 0x203   : > { %3709 = vst [vmem:[%s6645_s21 + $0x40] sm:$0xff] %v3677_v26  ;;  %v3679_v33 = vmax.f32 %v3647_v46, 0.0  ;;  %v4388_v60 = vadd.f32 %v6573_v23, %v2323_v24  ;;  %v2325_v45 = vpop.f32.mrb[50].mxu1 }
 0x204   : > { %3710 = vst.msk [vmem:[%s6645_s21 + $0x48] sm:$0xff] %vm1290_vm1, %v3678_v59  ;;  %v3680_v4 = vmax.f32 %v3648_v6, 0.0  ;;  %v3544_v48 = vpop.f32.mrb[44].mxu0  ;;  %v4391_v16 = vadd.f32 %v6576_v57, %v2325_v45  ;;  %v2327_v12 = vpop.f32.mrb[51].mxu1 }
 0x205   : > { %3711 = vst [vmem:[%s6645_s21 + $0x50] sm:$0xff] %v3679_v33  ;;  %v4374_v47 = vadd.f32 %v4373_v19, %v3544_v48  ;;  %v3546_v40 = vpop.f32.mrb[45].mxu0  ;;  %v4394_v0 = vadd.f32 %v6579_v49, %v2327_v12 }
 0x206   : > { %3712 = vst.msk [vmem:[%s6645_s21 + $0x58] sm:$0xff] %vm1290_vm1, %v3680_v4  ;;  %v4377_v58 = vadd.f32 %v4376_v18, %v3546_v40  ;;  %v3548_v55 = vpop.f32.mrb[46].mxu0 }
 0x207   : > { %v3649_v23 = vadd.f32 %v4374_v47, %v6633_v1  ;;  %v4380_v51 = vadd.f32 %v4379_v63, %v3548_v55  ;;  %v3550_v5 = vpop.f32.mrb[47].mxu0 }
 0x208   : > { %v3650_v32 = vadd.f32 %v4377_v58, %v6636_v9  ;;  %v4383_v21 = vadd.f32 %v4382_v53, %v3550_v5 }
 0x209   : > { %v3681_v57 = vmax.f32 %v3649_v23, 0.0  ;;  %v3651_v8 = vadd.f32 %v4380_v51, %v6633_v1  ;;  %v2331_v19 = vpop.f32.mrb[52].mxu1 }
 0x20a   : > { %v3682_v38 = vmax.f32 %v3650_v32, 0.0  ;;  %v3652_v49 = vadd.f32 %v4383_v21, %v6636_v9  ;;  %v4397_v20 = vadd.f32 %v6582_v42, %v2331_v19  ;;  %v2333_v18 = vpop.f32.mrb[53].mxu1 }
 0x20b   : > { %3713 = vst [vmem:[%s6645_s21 + $0x60] sm:$0xff] %v3681_v57  ;;  %v3683_v41 = vmax.f32 %v3651_v8, 0.0  ;;  %v4400_v25 = vadd.f32 %v6585_v14, %v2333_v18  ;;  %v2335_v36 = vpop.f32.mrb[54].mxu1 }
 0x20c   : > { %3714 = vst.msk [vmem:[%s6645_s21 + $0x68] sm:$0xff] %vm1290_vm1, %v3682_v38  ;;  %v3684_v63 = vmax.f32 %v3652_v49, 0.0  ;;  %v3554_v54 = vpop.f32.mrb[48].mxu0  ;;  %v4403_v37 = vadd.f32 %v6588_v52, %v2335_v36  ;;  %v2337_v17 = vpop.f32.mrb[55].mxu1 }
 0x20d   : > { %3715 = vst [vmem:[%s6645_s21 + $0x70] sm:$0xff] %v3683_v41  ;;  %v4386_v53 = vadd.f32 %v4385_v61, %v3554_v54  ;;  %v3556_v22 = vpop.f32.mrb[49].mxu0  ;;  %v4406_v62 = vadd.f32 %v6591_v11, %v2337_v17 }
 0x20e   : > { %3716 = vst.msk [vmem:[%s6645_s21 + $0x78] sm:$0xff] %vm1290_vm1, %v3684_v63  ;;  %v4389_v42 = vadd.f32 %v4388_v60, %v3556_v22  ;;  %v3558_v56 = vpop.f32.mrb[50].mxu0 }
 0x20f   : > { %v3653_v14 = vadd.f32 %v4386_v53, %v6633_v1  ;;  %v4392_v7 = vadd.f32 %v4391_v16, %v3558_v56  ;;  %v3560_v29 = vpop.f32.mrb[51].mxu0 }
 0x210   : > { %v3654_v35 = vadd.f32 %v4389_v42, %v6636_v9  ;;  %v4395_v30 = vadd.f32 %v4394_v0, %v3560_v29 }
 0x211   : > { %v3685_v52 = vmax.f32 %v3653_v14, 0.0  ;;  %v3655_v26 = vadd.f32 %v4392_v7, %v6633_v1  ;;  %v2341_v46 = vpop.f32.mrb[56].mxu1 }
 0x212   : > { %v3686_v2 = vmax.f32 %v3654_v35, 0.0  ;;  %v3656_v11 = vadd.f32 %v4395_v30, %v6636_v9  ;;  %v4409_v59 = vadd.f32 %v6594_v3, %v2341_v46  ;;  %v2343_v6 = vpop.f32.mrb[57].mxu1 }
 0x213   : > { %3717 = vst [vmem:[%s6645_s21 + $0x80] sm:$0xff] %v3685_v52  ;;  %v3687_v61 = vmax.f32 %v3655_v26, 0.0  ;;  %v4412_v24 = vadd.f32 %v6597_v15, %v2343_v6  ;;  %v2345_v33 = vpop.f32.mrb[58].mxu1 }
 0x214   : > { %3718 = vst.msk [vmem:[%s6645_s21 + $0x88] sm:$0xff] %vm1290_vm1, %v3686_v2  ;;  %v3688_v60 = vmax.f32 %v3656_v11, 0.0  ;;  %v3564_v45 = vpop.f32.mrb[52].mxu0  ;;  %v4415_v4 = vadd.f32 %v6600_v28, %v2345_v33  ;;  %v2347_v48 = vpop.f32.mrb[59].mxu1 }
 0x215   : > { %3719 = vst [vmem:[%s6645_s21 + $0x90] sm:$0xff] %v3687_v61  ;;  %v4398_v16 = vadd.f32 %v4397_v20, %v3564_v45  ;;  %v3566_v12 = vpop.f32.mrb[53].mxu0  ;;  %v4418_v47 = vadd.f32 %v6603_v31, %v2347_v48 }
 0x216   : > { %3720 = vst.msk [vmem:[%s6645_s21 + $0x98] sm:$0xff] %vm1290_vm1, %v3688_v60  ;;  %v4401_v3 = vadd.f32 %v4400_v25, %v3566_v12  ;;  %v3568_v40 = vpop.f32.mrb[54].mxu0 }
 0x217   : > { %v3657_v15 = vadd.f32 %v4398_v16, %v6633_v1  ;;  %v4404_v0 = vadd.f32 %v4403_v37, %v3568_v40  ;;  %v3570_v58 = vpop.f32.mrb[55].mxu0 }
 0x218   : > { %v3658_v55 = vadd.f32 %v4401_v3, %v6636_v9  ;;  %v4407_v23 = vadd.f32 %v4406_v62, %v3570_v58 }
 0x219   : > { %v3689_v28 = vmax.f32 %v3657_v15, 0.0  ;;  %v3659_v51 = vadd.f32 %v4404_v0, %v6633_v1  ;;  %v2351_v5 = vpop.f32.mrb[60].mxu1 }
 0x21a   : > { %v3690_v32 = vmax.f32 %v3658_v55, 0.0  ;;  %v3660_v31 = vadd.f32 %v4407_v23, %v6636_v9  ;;  %v4421_v21 = vadd.f32 %v6606_v34, %v2351_v5  ;;  %v2353_v57 = vpop.f32.mrb[61].mxu1 }
 0x21b   : > { %3721 = vst [vmem:[%s6645_s21 + $0xa0] sm:$0xff] %v3689_v28  ;;  %v3691_v8 = vmax.f32 %v3659_v51, 0.0  ;;  %v4426_v19 = vadd.f32 %v6609_v39, %v2353_v57  ;;  %v2355_v38 = vpop.f32.mrb[62].mxu1 }
 0x21c   : > { %3722 = vst.msk [vmem:[%s6645_s21 + $0xa8] sm:$0xff] %vm1290_vm1, %v3690_v32  ;;  %v3692_v49 = vmax.f32 %v3660_v31, 0.0  ;;  %v3574_v20 = vpop.f32.mrb[56].mxu0  ;;  %v4431_v18 = vadd.f32 %v6612_v27, %v2355_v38  ;;  %v2357_v41 = vpop.f32.mrb[63].mxu1  ;;  %v4422_v25 = vadd.f32 %v4421_v21, %v6617_v50 }
 0x21d   : > { %3723 = vst [vmem:[%s6645_s21 + $0xb0] sm:$0xff] %v3691_v8  ;;  %v4410_v36 = vadd.f32 %v4409_v59, %v3574_v20  ;;  %v3576_v63 = vpop.f32.mrb[57].mxu0  ;;  %v4436_v34 = vadd.f32 %v6615_v10, %v2357_v41  ;;  %v4427_v54 = vadd.f32 %v4426_v19, %v6619_v44 }
 0x21e   : > { %3724 = vst.msk [vmem:[%s6645_s21 + $0xb8] sm:$0xff] %vm1290_vm1, %v3692_v49  ;;  %v4413_v39 = vadd.f32 %v4412_v24, %v3576_v63  ;;  %v3578_v37 = vpop.f32.mrb[58].mxu0  ;;  %v4432_v17 = vadd.f32 %v4431_v18, %v6621_v13 }
 0x21f   : > { %v3661_v53 = vadd.f32 %v4410_v36, %v6633_v1  ;;  %v4416_v27 = vadd.f32 %v4415_v4, %v3578_v37  ;;  %v3580_v22 = vpop.f32.mrb[59].mxu0  ;;  %v4437_v50 = vadd.f32 %v4436_v34, %v6623_v43 }
 0x220   : > { %v3662_v62 = vadd.f32 %v4413_v39, %v6636_v9  ;;  %v4419_v42 = vadd.f32 %v4418_v47, %v3580_v22 }
 0x221   : > { %v3693_v10 = vmax.f32 %v3661_v53, 0.0  ;;  %v3663_v44 = vadd.f32 %v4416_v27, %v6633_v1  ;;  %v3471_v56 = vpop.f32.mrb[64].mxu1 }
 0x222   : > { %v3694_v14 = vmax.f32 %v3662_v62, 0.0  ;;  %v3664_v7 = vadd.f32 %v4419_v42, %v6636_v9  ;;  %v4423_v13 = vadd.f32 %v4422_v25, %v3471_v56  ;;  %v3473_v29 = vpop.f32.mrb[65].mxu1 }
 0x223   : > { %3725 = vst [vmem:[%s6645_s21 + $0xc0] sm:$0xff] %v3693_v10  ;;  %v3695_v35 = vmax.f32 %v3663_v44, 0.0  ;;  %v4428_v30 = vadd.f32 %v4427_v54, %v3473_v29  ;;  %v3475_v52 = vpop.f32.mrb[66].mxu1 }
 0x224   : > { %3726 = vst.msk [vmem:[%s6645_s21 + $0xc8] sm:$0xff] %vm1290_vm1, %v3694_v14  ;;  %v3696_v43 = vmax.f32 %v3664_v7, 0.0  ;;  %v3584_v26 = vpop.f32.mrb[64].mxu0  ;;  %v4433_v46 = vadd.f32 %v4432_v17, %v3475_v52  ;;  %v3477_v2 = vpop.f32.mrb[67].mxu1 }
 0x225   : > { %3727 = vst [vmem:[%s6645_s21 + $0xd0] sm:$0xff] %v3695_v35  ;;  %v4424_v11 = vadd.f32 %v4423_v13, %v3584_v26  ;;  %v3586_v59 = vpop.f32.mrb[65].mxu0  ;;  %v4438_v6 = vadd.f32 %v4437_v50, %v3477_v2 }
 0x226   : > { %3728 = vst.msk [vmem:[%s6645_s21 + $0xd8] sm:$0xff] %vm1290_vm1, %v3696_v43  ;;  %v4429_v61 = vadd.f32 %v4428_v30, %v3586_v59  ;;  %v3588_v24 = vpop.f32.mrb[66].mxu0 }
 0x227   : > { %v3665_v33 = vadd.f32 %v4424_v11, %v6633_v1  ;;  %v4434_v60 = vadd.f32 %v4433_v46, %v3588_v24  ;;  %v3590_v45 = vpop.f32.mrb[67].mxu0 }
 0x228   : > { %v3666_v4 = vadd.f32 %v4429_v61, %v6636_v9  ;;  %v4439_v48 = vadd.f32 %v4438_v6, %v3590_v45 }
 0x229   : > { %v3697_v16 = vmax.f32 %v3665_v33, 0.0  ;;  %v3667_v12 = vadd.f32 %v4434_v60, %v6633_v1 }
 0x22a   : > { %v3698_v47 = vmax.f32 %v3666_v4, 0.0  ;;  %v3668_v3 = vadd.f32 %v4439_v48, %v6636_v9 }
 0x22b   : > { %3729 = vst [vmem:[%s6645_s21 + $0xe0] sm:$0xff] %v3697_v16  ;;  %v3699_v40 = vmax.f32 %v3667_v12, 0.0 }
 0x22c   : > { %3730 = vst.msk [vmem:[%s6645_s21 + $0xe8] sm:$0xff] %vm1290_vm1, %v3698_v47  ;;  %v3700_v15 = vmax.f32 %v3668_v3, 0.0 }
 0x22d   : > { %3731 = vst [vmem:[%s6645_s21 + $0xf0] sm:$0x1] %v3699_v40 }
 0x22e   : > { %3733 = vst.msk [vmem:[%s6645_s21 + $0xf8] sm:$0x1] %vm3732_vm3, %v3700_v15 }
 0x22f PF: > { %s13_s12 = sadd.s32 1, %s5043_s12  }
 0x230   : > { %p10_p4 = scmp.ge.s32.totalorder %s13_s12, 4  }
 0x232   :  { %12 = sbr.rel (!%p10_p4) target bundleno = 1 (0x1), region = 64 }

// kernel: mixed_6a.8
= control target key start
LH: loop header
LB: loop body
LE: loop exit
PB: predicated region body
PF: predicated region fallthrough
CT: control target
= control target key end

     0   :  { %s3207_s12 = smov 0   ;;  %s4014_s0 = inlined_call_operand.vmem [shape: bf16[2,55,576], index: 0, kind: input, shape index: {}]   ;;  %s4015_s1 = inlined_call_operand.vmem [shape: bf16[3,576,256], index: 1, kind: input, shape index: {}]   ;;  %s4016_s2 = inlined_call_operand.vmem [shape: f32[1,256], index: 2, kind: input, shape index: {}]   ;;  %s4017_s3 = inlined_call_operand.vmem [shape: f32[2,25,256], index: 3, kind: output, shape index: {}]  }
   0x1 LB: > { %s2331_s13 = sadd.s32 4294967295, %s3184_s12   ;;  %p2335_p0 = scmp.ge.s32.totalorder %s3184_s12, 1  ;;  %s3184_s12 = sphi %s3207_s12, %s13_s12  }
   0x2   : > { %p137_p1 = scmp.lt.s32.totalorder %s3184_s12, 3 }
   0x4   : > { %p138_p2 = pnand %p2335_p0, %p137_p1 }
   0x5   : > { %v2820_v0 = vld [vmem:[%s4015_s1 + $0x244] ss:$8 sps:$4 sm:$0xff] (!%p138_p2)   ;;  %v2824_v2 = vld [vmem:[%s4015_s1 + $0x240] ss:$8 sps:$4 sm:$0xff] (!%p138_p2)   ;;  %v2826_v4 = vld [vmem:[%s4015_s1 + $0x254] ss:$8 sps:$4 sm:$0xff] (!%p138_p2)  }
   0x6   : > { %141 = sbr.rel (%p138_p2) target bundleno = 453 (0x1c5), region = 32  ;;  %v2822_v1 = vld [vmem:[%s4015_s1 + $0x104] ss:$8 sps:$4 sm:$0xff] (!%p138_p2)   ;;  %774 = vmatprep.subr.bf16.mxu1 (!%p138_p2), %v2820_v0  ;;  %v2825_v3 = vld [vmem:[%s4015_s1 + $0x100] ss:$8 sps:$4 sm:$0xff] (!%p138_p2)   ;;  %p161_p3 = scmp.lt.s32.totalorder (!%p138_p2), %s2331_s13, 1 }
   0x7   : > { %1402 = vmatprep.subr.bf16.mxu0 (!%p138_p2), %v2822_v1  ;;  %775 = vmatpush1.bf16.msra.mxu1 (!%p138_p2), %v2824_v2  ;;  %v2828_v5 = vld [vmem:[%s4015_s1 + $0x114] ss:$8 sps:$4 sm:$0xff] (!%p138_p2)   ;;  %v2830_v6 = vld [vmem:[%s4015_s1 + $0x250] ss:$8 sps:$4 sm:$0xff] (!%p138_p2)   ;;  %v2832_v8 = vld [vmem:[%s4015_s1 + $0x264] ss:$8 sps:$4 sm:$0xff] (!%p138_p2)  }
   0x8   : > { %1403 = vmatpush1.bf16.msra.mxu0 (!%p138_p2), %v2825_v3  ;;  %776 = vmatprep.subr.bf16.mxu1 (!%p138_p2), %v2826_v4  ;;  %v2831_v7 = vld [vmem:[%s4015_s1 + $0x110] ss:$8 sps:$4 sm:$0xff] (!%p138_p2)   ;;  %v2834_v9 = vld [vmem:[%s4015_s1 + $0x124] ss:$8 sps:$4 sm:$0xff] (!%p138_p2)   ;;  %v2836_v10 = vld [vmem:[%s4015_s1 + $0x260] ss:$8 sps:$4 sm:$0xff] (!%p138_p2)  }
   0x9   : > { %1404 = vmatprep.subr.bf16.mxu0 (!%p138_p2), %v2828_v5  ;;  %v2837_v11 = vld [vmem:[%s4015_s1 + $0x120] ss:$8 sps:$4 sm:$0xff] (!%p138_p2)   ;;  %v2838_v12 = vld [vmem:[%s4015_s1 + $0x274] ss:$8 sps:$4 sm:$0xff] (!%p138_p2)   ;;  %v2842_v14 = vld [vmem:[%s4015_s1 + $0x270] ss:$8 sps:$4 sm:$0xff] (!%p138_p2)  }
   0xa   : > { %v2840_v13 = vld [vmem:[%s4015_s1 + $0x134] ss:$8 sps:$4 sm:$0xff] (!%p138_p2)   ;;  %v2843_v15 = vld [vmem:[%s4015_s1 + $0x130] ss:$8 sps:$4 sm:$0xff] (!%p138_p2)   ;;  %v2844_v16 = vld [vmem:[%s4015_s1 + $0x284] ss:$8 sps:$4 sm:$0xff] (!%p138_p2)  }
   0xb   : > { %777 = vmatpush1.bf16.msra.mxu1 (!%p138_p2), %v2830_v6  ;;  %v2846_v17 = vld [vmem:[%s4015_s1 + $0x144] ss:$8 sps:$4 sm:$0xff] (!%p138_p2)   ;;  %v2848_v18 = vld [vmem:[%s4015_s1 + $0x280] ss:$8 sps:$4 sm:$0xff] (!%p138_p2)   ;;  %v2850_v20 = vld [vmem:[%s4015_s1 + $0x294] ss:$8 sps:$4 sm:$0xff] (!%p138_p2)  }
   0xc   : > { %1405 = vmatpush1.bf16.msra.mxu0 (!%p138_p2), %v2831_v7  ;;  %778 = vmatprep.subr.bf16.mxu1 (!%p138_p2), %v2832_v8  ;;  %v2849_v19 = vld [vmem:[%s4015_s1 + $0x140] ss:$8 sps:$4 sm:$0xff] (!%p138_p2)   ;;  %v2852_v21 = vld [vmem:[%s4015_s1 + $0x154] ss:$8 sps:$4 sm:$0xff] (!%p138_p2)   ;;  %v2854_v22 = vld [vmem:[%s4015_s1 + $0x290] ss:$8 sps:$4 sm:$0xff] (!%p138_p2)  }
   0xd   : > { %1406 = vmatprep.subr.bf16.mxu0 %v2834_v9  ;;  %v2855_v23 = vld [vmem:[%s4015_s1 + $0x150] ss:$8 sps:$4 sm:$0xff]   ;;  %v2856_v24 = vld [vmem:[%s4015_s1 + $0x2a4] ss:$8 sps:$4 sm:$0xff]   ;;  %v2860_v26 = vld [vmem:[%s4015_s1 + $0x2a0] ss:$8 sps:$4 sm:$0xff]  }
   0xe   : > { %v2858_v25 = vld [vmem:[%s4015_s1 + $0x164] ss:$8 sps:$4 sm:$0xff]   ;;  %v2861_v27 = vld [vmem:[%s4015_s1 + $0x160] ss:$8 sps:$4 sm:$0xff]   ;;  %v2862_v28 = vld [vmem:[%s4015_s1 + $0x2b4] ss:$8 sps:$4 sm:$0xff]  }
   0xf   : > { %779 = vmatpush1.bf16.msra.mxu1 %v2836_v10  ;;  %v2864_v29 = vld [vmem:[%s4015_s1 + $0x174] ss:$8 sps:$4 sm:$0xff]   ;;  %v2866_v30 = vld [vmem:[%s4015_s1 + $0x2b0] ss:$8 sps:$4 sm:$0xff]   ;;  %v2868_v32 = vld [vmem:[%s4015_s1 + $0x2c4] ss:$8 sps:$4 sm:$0xff]  }
  0x10   : > { %1407 = vmatpush1.bf16.msra.mxu0 %v2837_v11  ;;  %780 = vmatprep.subr.bf16.mxu1 %v2838_v12  ;;  %v2867_v31 = vld [vmem:[%s4015_s1 + $0x170] ss:$8 sps:$4 sm:$0xff]   ;;  %v2870_v33 = vld [vmem:[%s4015_s1 + $0x184] ss:$8 sps:$4 sm:$0xff]   ;;  %v2872_v34 = vld [vmem:[%s4015_s1 + $0x2c0] ss:$8 sps:$4 sm:$0xff]  }
  0x11   : > { %1408 = vmatprep.subr.bf16.mxu0 %v2840_v13  ;;  %v2873_v35 = vld [vmem:[%s4015_s1 + $0x180] ss:$8 sps:$4 sm:$0xff]   ;;  %v2874_v36 = vld [vmem:[%s4015_s1 + $0x2d4] ss:$8 sps:$4 sm:$0xff]   ;;  %s4019_s13 = smov (!%p161_p3, %s2331_s13), 1  ;;  %vm383_vm0 = vcmask 1044480  }
  0x12   : > { %v2876_v37 = vld [vmem:[%s4015_s1 + $0x194] ss:$8 sps:$4 sm:$0xff]   ;;  %v2878_v38 = vld [vmem:[%s4015_s1 + $0x2d0] ss:$8 sps:$4 sm:$0xff]   ;;  %v2880_v40 = vld [vmem:[%s4015_s1 + $0x2e4] ss:$8 sps:$4 sm:$0xff]  }
  0x13   : > { %781 = vmatpush1.bf16.msra.mxu1 %v2842_v14  ;;  %v2879_v39 = vld [vmem:[%s4015_s1 + $0x190] ss:$8 sps:$4 sm:$0xff]   ;;  %v2882_v41 = vld [vmem:[%s4015_s1 + $0x1a4] ss:$8 sps:$4 sm:$0xff]   ;;  %s2810_s23 = smul.u32 140, %s4019_s13  ;;  %vm767_vm1 = vcmask 523264  }
  0x14   : > { %1409 = vmatpush1.bf16.msra.mxu0 %v2843_v15  ;;  %782 = vmatprep.subr.bf16.mxu1 %v2844_v16  ;;  %v2884_v42 = vld [vmem:[%s4015_s1 + $0x2e0] ss:$8 sps:$4 sm:$0xff]   ;;  %v2886_v44 = vld [vmem:[%s4015_s1 + $0x2f4] ss:$8 sps:$4 sm:$0xff]   ;;  %v2890_v46 = vld [vmem:[%s4015_s1 + $0x2f0] ss:$8 sps:$4 sm:$0xff]  }
  0x15   : > { %1410 = vmatprep.subr.bf16.mxu0 %v2846_v17  ;;  %v2885_v43 = vld [vmem:[%s4015_s1 + $0x1a0] ss:$8 sps:$4 sm:$0xff]   ;;  %v2888_v45 = vld [vmem:[%s4015_s1 + $0x1b4] ss:$8 sps:$4 sm:$0xff]   ;;  %s3363_s7 = scalar_lea.vmem %s4014_s0, %s2810_s23  ;;  %v2891_v47 = vld [vmem:[%s4015_s1 + $0x1b0] ss:$8 sps:$4 sm:$0xff]  }
  0x16   : > { %v2916_v48 = vld [vmem:[%s3363_s7 + $0x40] ss:$20 sps:$4 sm:$0xf8]   ;;  %v3373_v49 = vld [vmem:[%s3363_s7 + $0x68] ss:$20 sps:$4 sm:$0xff]   ;;  %s2737_s15 = sshll.u32 %s4019_s13, 6 }
  0x17   : > { %783 = vmatpush1.bf16.msra.mxu1 %v2848_v18  ;;  %v2892_v50 = vld [vmem:[%s4015_s1 + $0x304] ss:$8 sps:$4 sm:$0xff]   ;;  %v387_v52 = vrot.slane %v2916_v48, 3  ;;  %v388_v53 = vrot.slane %v3373_v49, 3  ;;  %v3384_v55 = vld [vmem:[%s3363_s7 + $0x1c] sm:$0xff]  ;;  %v3448_v17 = vld [vmem:[%s3363_s7 + $0x30] sm:$0xff]  ;;  %s170_s18 = scalar_lea.vmem %s4017_s3, %s2737_s15 }
  0x18   : > { %1411 = vmatpush1.bf16.msra.mxu0 %v2849_v19  ;;  %784 = vmatprep.subr.bf16.mxu1 %v2850_v20  ;;  %v2894_v51 = vld [vmem:[%s4015_s1 + $0x1c4] ss:$8 sps:$4 sm:$0xff]   ;;  %v2896_v56 = vld [vmem:[%s4015_s1 + $0x300] ss:$8 sps:$4 sm:$0xff]   ;;  %v2898_v59 = vld [vmem:[%s4015_s1 + $0x314] ss:$8 sps:$4 sm:$0xff]  }
  0x19   : > { %1412 = vmatprep.subr.bf16.mxu0 %v2852_v21  ;;  %v173_v54 = vld [vmem:[%s3363_s7 + $0x8] sm:$0xff]  ;;  %v389_v60 = vsel %vm383_vm0, %v387_v52, %v388_v53  ;;  %v2900_v61 = vld [vmem:[%s4015_s1 + $0x1d4] ss:$8 sps:$4 sm:$0xff]   ;;  %v2902_v62 = vld [vmem:[%s4015_s1 + $0x310] ss:$8 sps:$4 sm:$0xff]  }
  0x1a   : > { %v2498_v57 = vcombine.high %v173_v54, %v3384_v55  ;;  %v2897_v58 = vld [vmem:[%s4015_s1 + $0x1c0] ss:$8 sps:$4 sm:$0xff]   ;;  %806 = vmatprep.mubr.bf16.mxu1 %v389_v60  ;;  %v2903_v63 = vld [vmem:[%s4015_s1 + $0x1d0] ss:$8 sps:$4 sm:$0xff]   ;;  %v2904_v0 = vld [vmem:[%s4015_s1 + $0x324] ss:$8 sps:$4 sm:$0xff]   ;;  %v2497_v16 = vcombine.low %v173_v54, %v3384_v55 }
  0x1b   : > { %785 = vmatpush1.bf16.msra.mxu1 %v2854_v22  ;;  %v2906_v1 = vld [vmem:[%s4015_s1 + $0x1e4] ss:$8 sps:$4 sm:$0xff]   ;;  %v2908_v2 = vld [vmem:[%s4015_s1 + $0x320] ss:$8 sps:$4 sm:$0xff]   ;;  %v2910_v6 = vld [vmem:[%s4015_s1 + $0x334] ss:$8 sps:$4 sm:$0xff]  }
  0x1c   : > { %1413 = vmatpush1.bf16.msra.mxu0 %v2855_v23  ;;  %786 = vmatprep.subr.bf16.mxu1 %v2856_v24  ;;  %v2909_v3 = vld [vmem:[%s4015_s1 + $0x1e0] ss:$8 sps:$4 sm:$0xff]   ;;  %v2930_v4 = vld [vmem:[%s3363_s7 + $0x3c] ss:$20 sps:$4 sm:$0xf8]  }
  0x1d   : > { %1414 = vmatprep.subr.bf16.mxu0 %v2858_v25  ;;  %1434 = vmatprep.mubr.bf16.mxu0 %v2498_v57  ;;  %v2931_v5 = vld [vmem:[%s3363_s7 + $0x64] ss:$20 sps:$4 sm:$0xff]   ;;  %v2912_v7 = vld [vmem:[%s4015_s1 + $0x1f4] ss:$8 sps:$4 sm:$0xff]   ;;  %v384_v11 = vrot.slane %v2930_v4, 3 }
  0x1e   : > { %v2914_v8 = vld [vmem:[%s4015_s1 + $0x330] ss:$8 sps:$4 sm:$0xff]   ;;  %v2922_v10 = vld [vmem:[%s4015_s1 + $0x344] ss:$8 sps:$4 sm:$0xff]   ;;  %v385_v12 = vrot.slane %v2931_v5, 3 }
  0x1f   : > { %787 = vmatpush1.bf16.msra.mxu1 %v2860_v26  ;;  %v2915_v9 = vld [vmem:[%s4015_s1 + $0x1f0] ss:$8 sps:$4 sm:$0xff]   ;;  %v2929_v13 = vld [vmem:[%s4015_s1 + $0x204] ss:$8 sps:$4 sm:$0xff]   ;;  %v2920_v14 = vld [vmem:[%s4015_s1 + $0x340] ss:$8 sps:$4 sm:$0xff]  }
  0x20   : > { %1415 = vmatpush1.bf16.msra.mxu0 %v2861_v27  ;;  %788 = vmatprep.subr.bf16.mxu1 %v2862_v28  ;;  %v2927_v15 = vld [vmem:[%s4015_s1 + $0x200] ss:$8 sps:$4 sm:$0xff]   ;;  %v386_v19 = vsel %vm383_vm0, %v384_v11, %v385_v12  ;;  %v2934_v20 = vld [vmem:[%s4015_s1 + $0x354] ss:$8 sps:$4 sm:$0xff]   ;;  %v2932_v23 = vld [vmem:[%s4015_s1 + $0x350] ss:$8 sps:$4 sm:$0xff]  }
  0x21   : > { %1416 = vmatprep.subr.bf16.mxu0 %v2864_v29  ;;  %v182_v18 = vld [vmem:[%s3363_s7 + $0x44] sm:$0x11]  ;;  %v2937_v21 = vld [vmem:[%s4015_s1 + $0x214] ss:$8 sps:$4 sm:$0xff]   ;;  %v2935_v24 = vld [vmem:[%s4015_s1 + $0x210] ss:$8 sps:$4 sm:$0xff]  }
  0x22   : > { %v2503_v22 = vcombine.high %v3448_v17, %v182_v18  ;;  %v2940_v25 = vld [vmem:[%s4015_s1 + $0x364] ss:$8 sps:$4 sm:$0xff]   ;;  %v2938_v27 = vld [vmem:[%s4015_s1 + $0x360] ss:$8 sps:$4 sm:$0xff]   ;;  %v2502_v29 = vcombine.low %v3448_v17, %v182_v18  ;;  %v2971_v52 = vld [vmem:[%s4015_s1 + $0x3b0] ss:$8 sps:$4 sm:$0xff]  }
  0x23   : > { %789 = vmatpush1.bf16.msra.mxu1 %v2866_v30  ;;  %v2944_v26 = vld [vmem:[%s4015_s1 + $0x224] ss:$8 sps:$4 sm:$0xff]   ;;  %v2942_v28 = vld [vmem:[%s4015_s1 + $0x220] ss:$8 sps:$4 sm:$0xff]   ;;  %v2948_v30 = vld [vmem:[%s4015_s1 + $0x374] ss:$8 sps:$4 sm:$0xff]  }
  0x24   : > { %1417 = vmatpush1.bf16.msra.mxu0 %v2867_v31  ;;  %790 = vmatprep.subr.bf16.mxu1 %v2868_v32  ;;  %v2951_v31 = vld [vmem:[%s4015_s1 + $0x234] ss:$8 sps:$4 sm:$0xff]   ;;  %v2946_v32 = vld [vmem:[%s4015_s1 + $0x370] ss:$8 sps:$4 sm:$0xff]   ;;  %v2965_v48 = vld [vmem:[%s4015_s1 + $0x3a0] ss:$8 sps:$4 sm:$0xff]  }
  0x25   : > { %1418 = vmatprep.subr.bf16.mxu0 %v2870_v33  ;;  %v2949_v33 = vld [vmem:[%s4015_s1 + $0x230] ss:$8 sps:$4 sm:$0xff]   ;;  %v2968_v49 = vld [vmem:[%s4015_s1 + $0x4a0] ss:$8 sps:$4 sm:$0xff]   ;;  %v2979_v54 = vld [vmem:[%s4015_s1 + $0x3c4] ss:$8 sps:$4 sm:$0xff]  }
  0x26   : > { %v2982_v57 = vld [vmem:[%s4015_s1 + $0x4c4] ss:$8 sps:$4 sm:$0xff]   ;;  %v2997_v11 = vld [vmem:[%s4015_s1 + $0x3f4] ss:$8 sps:$4 sm:$0xff]   ;;  %vm1613_vm2 = vsmask.f32 5376 }
  0x27   : > { %791 = vmatpush1.bf16.msra.mxu1 %v2872_v34  ;;  %v2954_v34 = vld [vmem:[%s4015_s1 + $0x384] ss:$8 sps:$4 sm:$0xff]  }
  0x28   : > { %1419 = vmatpush1.bf16.msra.mxu0 %v2873_v35  ;;  %792 = vmatprep.subr.bf16.mxu1 %v2874_v36  ;;  %v174_v35 = vld [vmem:[%s3363_s7 + $0x10] sm:$0xf]  ;;  %v3497_v36 = vld [vmem:[%s3363_s7 + $0x24] sm:$0xf] }
  0x29   : > { %1420 = vmatprep.subr.bf16.mxu0 %v2876_v37  ;;  %v2957_v37 = vld [vmem:[%s4015_s1 + $0x484] ss:$8 sps:$4 sm:$0xff]  }
  0x2a   : > { %v2991_v4 = vld [vmem:[%s4015_s1 + $0x3e4] ss:$8 sps:$4 sm:$0xff]  }
  0x2b   : > { %793 = vmatpush1.bf16.msra.mxu1 %v2878_v38  ;;  %v3186_v38 = vmov 0   ;;  %v2994_v5 = vld [vmem:[%s4015_s1 + $0x4e4] ss:$8 sps:$4 sm:$0xff]  }
  0x2c   : > { %1421 = vmatpush1.bf16.msra.mxu0 %v2879_v39  ;;  %794 = vmatprep.subr.bf16.mxu1 %v2880_v40  ;;  %v2952_v39 = vld [vmem:[%s4015_s1 + $0x380] ss:$8 sps:$4 sm:$0xff]  }
  0x2d   : > { %1422 = vmatprep.subr.bf16.mxu0 %v2882_v41  ;;  %v2955_v40 = vld [vmem:[%s4015_s1 + $0x480] ss:$8 sps:$4 sm:$0xff]   ;;  %v2499_v41 = vcombine.low %v174_v35, %v3497_v36 }
  0x2e   : > { %v3617_v18 = vld [vmem:[%s3363_s7] sm:$0xcc] }
  0x2f   : > { %795 = vmatpush1.bf16.msra.mxu1 %v2884_v42  ;;  %v2961_v42 = vld [vmem:[%s4015_s1 + $0x394] ss:$8 sps:$4 sm:$0xff]  }
  0x30   : > { %1423 = vmatpush1.bf16.msra.mxu0 %v2885_v43  ;;  %796 = vmatprep.subr.bf16.mxu1 %v2886_v44  ;;  %v2964_v43 = vld [vmem:[%s4015_s1 + $0x494] ss:$8 sps:$4 sm:$0xff]   ;;  %v2959_v44 = vld [vmem:[%s4015_s1 + $0x390] ss:$8 sps:$4 sm:$0xff]  }
  0x31   : > { %1424 = vmatprep.subr.bf16.mxu0 %v2888_v45  ;;  %v2962_v45 = vld [vmem:[%s4015_s1 + $0x490] ss:$8 sps:$4 sm:$0xff]  }
  0x33   : > { %797 = vmatpush1.bf16.msra.mxu1 %v2890_v46  ;;  %v2967_v46 = vld [vmem:[%s4015_s1 + $0x3a4] ss:$8 sps:$4 sm:$0xff]  }
  0x34   : > { %1425 = vmatpush1.bf16.msra.mxu0 %v2891_v47  ;;  %798 = vmatprep.subr.bf16.mxu1 %v2892_v50  ;;  %v2970_v47 = vld [vmem:[%s4015_s1 + $0x4a4] ss:$8 sps:$4 sm:$0xff]   ;;  %v2973_v50 = vld [vmem:[%s4015_s1 + $0x3b4] ss:$8 sps:$4 sm:$0xff]  }
  0x35   : > { %1426 = vmatprep.subr.bf16.mxu0 %v2894_v51  ;;  %v2976_v51 = vld [vmem:[%s4015_s1 + $0x4b4] ss:$8 sps:$4 sm:$0xff]  }
  0x37   : > { %799 = vmatpush1.bf16.msra.mxu1 %v2896_v56  ;;  %v3027_v56 = vld [vmem:[%s3363_s7 + $0x48] ss:$20 sps:$4 sm:$0xf8]  }
  0x38   : > { %1427 = vmatpush1.bf16.msra.mxu0 %v2897_v58  ;;  %800 = vmatprep.subr.bf16.mxu1 %v2898_v59  ;;  %v3556_v58 = vld [vmem:[%s3363_s7 + $0x70] ss:$20 sps:$4 sm:$0xff]   ;;  %v393_v59 = vrot.slane %v3027_v56, 3 }
  0x39   : > { %1428 = vmatprep.subr.bf16.mxu0 %v2900_v61  ;;  %v394_v60 = vrot.slane %v3556_v58, 3  ;;  %v2977_v61 = vld [vmem:[%s4015_s1 + $0x3c0] ss:$8 sps:$4 sm:$0xff]   ;;  %v3033_v56 = vld [vmem:[%s4015_s1 + $0x444] ss:$8 sps:$4 sm:$0xff]  }
  0x3a   : > { %v3053_v58 = vld [vmem:[%s4015_s1 + $0x474] ss:$8 sps:$4 sm:$0xff]  }
  0x3b   : > { %801 = vmatpush1.bf16.msra.mxu1 %v2902_v62  ;;  %v2980_v62 = vld [vmem:[%s4015_s1 + $0x4c0] ss:$8 sps:$4 sm:$0xff]  }
  0x3c   : > { %1429 = vmatpush1.bf16.msra.mxu0 %v2903_v63  ;;  %802 = vmatprep.subr.bf16.mxu1 %v2904_v0  ;;  %v2985_v63 = vld [vmem:[%s4015_s1 + $0x3d4] ss:$8 sps:$4 sm:$0xff]  }
  0x3d   : > { %1430 = vmatprep.subr.bf16.mxu0 %v2906_v1  ;;  %v2988_v0 = vld [vmem:[%s4015_s1 + $0x4d4] ss:$8 sps:$4 sm:$0xff]   ;;  %v395_v1 = vsel %vm383_vm0, %v393_v59, %v394_v60  ;;  %v3031_v59 = vld [vmem:[%s4015_s1 + $0x440] ss:$8 sps:$4 sm:$0xff]  }
  0x3f   : > { %803 = vmatpush1.bf16.msra.mxu1 %v2908_v2  ;;  %v2983_v2 = vld [vmem:[%s4015_s1 + $0x3d0] ss:$8 sps:$4 sm:$0xff]  }
  0x40   : > { %1431 = vmatpush1.bf16.msra.mxu0 %v2909_v3  ;;  %804 = vmatprep.subr.bf16.mxu1 %v2910_v6  ;;  %v2986_v3 = vld [vmem:[%s4015_s1 + $0x4d0] ss:$8 sps:$4 sm:$0xff]  }
  0x41   : > { %1432 = vmatprep.subr.bf16.mxu0 %v2912_v7  ;;  %v3587_v6 = vld [vmem:[%s3363_s7 + $0x38] sm:$0xf]  ;;  %v183_v7 = vld [vmem:[%s3363_s7 + $0x4c] sm:$0x1] }
  0x43   : > { %805 = vmatpush1.bf16.msra.mxu1 %v2914_v8  ;;  %v2989_v8 = vld [vmem:[%s4015_s1 + $0x3e0] ss:$8 sps:$4 sm:$0xff]  }
  0x44   : > { %1433 = vmatpush1.bf16.msra.mxu0 %v2915_v9  ;;  %827 = vmatprep.subr.bf16.mxu1 %v2922_v10  ;;  %v2992_v9 = vld [vmem:[%s4015_s1 + $0x4e0] ss:$8 sps:$4 sm:$0xff]   ;;  %v2504_v10 = vcombine.low %v3587_v6, %v183_v7 }
  0x45   : > { %1455 = vmatprep.subr.bf16.mxu0 %v2929_v13  ;;  %v2995_v13 = vld [vmem:[%s4015_s1 + $0x3f0] ss:$8 sps:$4 sm:$0xff]  }
  0x46   : > { %807 = vmatmul.mubr.bf16.vlgmr.msra.gmra.mrb[0].mxu1 %v386_v19  ;;  %v3003_v19 = vld [vmem:[%s4015_s1 + $0x404] ss:$8 sps:$4 sm:$0xff]  }
  0x47   : > { %1435 = vmatmul.mubr.bf16.vlgmr.msra.gmra.mrb[0].mxu0 %v2497_v16  ;;  %828 = vmatpush1.bf16.msra.mxu1 %v2920_v14  ;;  %v2998_v14 = vld [vmem:[%s4015_s1 + $0x4f0] ss:$8 sps:$4 sm:$0xff]   ;;  %v3614_v16 = vld [vmem:[%s3363_s7 + $0x28] sm:$0xff] }
  0x48   : > { %1456 = vmatpush1.bf16.msra.mxu0 %v2927_v15  ;;  %829 = vmatprep.subr.bf16.mxu1 %v2934_v20  ;;  %v3611_v15 = vld [vmem:[%s3363_s7 + $0x14] sm:$0xff]  ;;  %v1511_v20 = vld [vmem:[%s3363_s7 + $0x3c] sm:$0x77] }
  0x49   : > { %1457 = vmatprep.subr.bf16.mxu0 %v2937_v21  ;;  %1444 = vmatprep.mubr.bf16.mxu0 %v2503_v22  ;;  %v2652_v21 = vcombine.high %v3617_v18, %v3611_v15  ;;  %v3006_v22 = vld [vmem:[%s4015_s1 + $0x504] ss:$8 sps:$4 sm:$0xff]  }
  0x4a   : > { %816 = vmatprep.mubr.bf16.mxu1 %v388_v53  ;;  %v2974_v53 = vld [vmem:[%s4015_s1 + $0x4b0] ss:$8 sps:$4 sm:$0xff]  }
  0x4b   : > { %830 = vmatpush1.bf16.msra.mxu1 %v2932_v23  ;;  %v2657_v23 = vcombine.high %v3614_v16, %v1511_v20 }
  0x4c   : > { %1458 = vmatpush1.bf16.msra.mxu0 %v2935_v24  ;;  %831 = vmatprep.subr.bf16.mxu1 %v2940_v25  ;;  %v1632_v24 = vshrl.u32 %v2652_v21, 16  ;;  %v1635_v25 = vshll.u32 %v2652_v21, 16 }
  0x4d   : > { %1459 = vmatprep.subr.bf16.mxu0 %v2944_v26  ;;  %v3001_v26 = vld [vmem:[%s4015_s1 + $0x400] ss:$8 sps:$4 sm:$0xff]  }
  0x4e   : > { %817 = vmatmul.mubr.bf16.gmra.mrb[4].mxu1 %v385_v12  ;;  %v3000_v12 = vld [vmem:[%s4015_s1 + $0x4f4] ss:$8 sps:$4 sm:$0xff]  }
  0x4f   : > { %1445 = vmatmul.mubr.bf16.gmra.mrb[4].mxu0 %v2502_v29  ;;  %832 = vmatpush1.bf16.msra.mxu1 %v2938_v27  ;;  %v1640_v27 = vshrl.u32 %v2657_v23, 16  ;;  %v3004_v29 = vld [vmem:[%s4015_s1 + $0x500] ss:$8 sps:$4 sm:$0xff]  }
  0x50   : > { %1460 = vmatpush1.bf16.msra.mxu0 %v2942_v28  ;;  %833 = vmatprep.subr.bf16.mxu1 %v2948_v30  ;;  %v1643_v28 = vshll.u32 %v2657_v23, 16  ;;  %v3009_v30 = vld [vmem:[%s4015_s1 + $0x414] ss:$8 sps:$4 sm:$0xff]   ;;  %v1509_v23 = vld [vmem:[%s3363_s7 + $0x8] sm:$0xcc] }
  0x51   : > { %1461 = vmatprep.subr.bf16.mxu0 %v2951_v31  ;;  %1487 = vmatprep.mubr.bf16.mxu0 %v3186_v38  ;;  %v1634_v31 = vrot.slane %v1632_v24, 2  ;;  %v3051_v24 = vld [vmem:[%s4015_s1 + $0x470] ss:$8 sps:$4 sm:$0xff]  }
  0x52   : > { %859 = vmatprep.mubr.bf16.mxu1 %v395_v1  ;;  %v1645_v35 = vrot.slane %v1643_v28, 3  ;;  %v3039_v1 = vld [vmem:[%s4015_s1 + $0x454] ss:$8 sps:$4 sm:$0xff]  }
  0x53   : > { %834 = vmatpush1.bf16.msra.mxu1 %v2946_v32  ;;  %v1637_v32 = vrot.slane %v1635_v25, 3  ;;  %v3054_v25 = vld [vmem:[%s4015_s1 + $0x570] ss:$8 sps:$4 sm:$0xff]  }
  0x54   : > { %1462 = vmatpush1.bf16.msra.mxu0 %v2949_v33  ;;  %835 = vmatprep.subr.bf16.mxu1 %v2954_v34  ;;  %v3012_v33 = vld [vmem:[%s4015_s1 + $0x514] ss:$8 sps:$4 sm:$0xff]   ;;  %v1642_v34 = vrot.slane %v1640_v27, 2 }
  0x55   : > { %2073 = vmatprep.subr.bf16.mxu0 %v2957_v37  ;;  %v1638_v37 = vor.u32 %v1637_v32, %v1634_v31  ;;  %v3066_v31 = vld [vmem:[%s4015_s1 + $0x584] ss:$8 sps:$4 sm:$0xff]   ;;  %v3057_v32 = vld [vmem:[%s4015_s1] ss:$8 sps:$4 sm:$0xff]  }
  0x57   : > { %2577 = vmatmul.mubr.msk.bf16.vlgmr.msra.gmra.mrb[0].mxu0 %vm767_vm1, %v2499_v41  ;;  %836 = vmatpush1.bf16.msra.mxu1 %v2952_v39  ;;  %v3007_v39 = vld [vmem:[%s4015_s1 + $0x410] ss:$8 sps:$4 sm:$0xff]  }
  0x58   : > { %2074 = vmatpush1.bf16.msra.mxu0 %v2955_v40  ;;  %837 = vmatprep.subr.bf16.mxu1 %v2961_v42  ;;  %v3644_v40 = vor.u32 %v1645_v35, %v1642_v34  ;;  %v3010_v41 = vld [vmem:[%s4015_s1 + $0x510] ss:$8 sps:$4 sm:$0xff]   ;;  %v3015_v42 = vld [vmem:[%s4015_s1 + $0x424] ss:$8 sps:$4 sm:$0xff]   ;;  %v3064_v34 = vld [vmem:[%s4015_s1 + $0x580] ss:$8 sps:$4 sm:$0xff]  }
  0x59   : > { %2075 = vmatprep.subr.bf16.mxu0 %v2964_v43  ;;  %1497 = vmatprep.mubr.bf16.mxu0 %v3186_v38  ;;  %v3018_v43 = vld [vmem:[%s4015_s1 + $0x524] ss:$8 sps:$4 sm:$0xff]  }
  0x5b   : > { %838 = vmatpush1.bf16.msra.mxu1 %v2959_v44  ;;  %v1647_v44 = vsel %vm1613_vm2, %v1638_v37, %v3644_v40 }
  0x5c   : > { %2076 = vmatpush1.bf16.msra.mxu0 %v2962_v45  ;;  %839 = vmatprep.subr.bf16.mxu1 %v2967_v46  ;;  %v3013_v45 = vld [vmem:[%s4015_s1 + $0x420] ss:$8 sps:$4 sm:$0xff]  }
  0x5d   : > { %2077 = vmatprep.subr.bf16.mxu0 %v2970_v47  ;;  %v3016_v46 = vld [vmem:[%s4015_s1 + $0x520] ss:$8 sps:$4 sm:$0xff]   ;;  %v3025_v47 = vld [vmem:[%s3363_s7 + $0x44] ss:$20 sps:$4 sm:$0xf8]  }
  0x5f   : > { %840 = vmatpush1.bf16.msra.mxu1 %v2965_v48  ;;  %2578 = vmatmul.mubr.msk.bf16.gmra.mrb[4].mxu0 %vm767_vm1, %v2504_v10  ;;  %v3028_v48 = vld [vmem:[%s3363_s7 + $0x6c] ss:$20 sps:$4 sm:$0xff]  }
  0x60   : > { %2078 = vmatpush1.bf16.msra.mxu0 %v2968_v49  ;;  %841 = vmatprep.subr.bf16.mxu1 %v2973_v50  ;;  %v3021_v49 = vld [vmem:[%s4015_s1 + $0x434] ss:$8 sps:$4 sm:$0xff]   ;;  %v3045_v10 = vld [vmem:[%s4015_s1 + $0x464] ss:$8 sps:$4 sm:$0xff]  }
  0x61   : > { %2079 = vmatprep.subr.bf16.mxu0 %v2976_v51  ;;  %2105 = vmatprep.mubr.bf16.mxu0 %v1647_v44  ;;  %v3024_v50 = vld [vmem:[%s4015_s1 + $0x534] ss:$8 sps:$4 sm:$0xff]   ;;  %v3019_v51 = vld [vmem:[%s4015_s1 + $0x430] ss:$8 sps:$4 sm:$0xff]  }
  0x63   : > { %842 = vmatpush1.bf16.msra.mxu1 %v2971_v52  ;;  %v3022_v52 = vld [vmem:[%s4015_s1 + $0x530] ss:$8 sps:$4 sm:$0xff]  }
  0x64   : > { %2080 = vmatpush1.bf16.msra.mxu0 %v2974_v53  ;;  %843 = vmatprep.subr.bf16.mxu1 %v2979_v54  ;;  %v390_v53 = vrot.slane %v3025_v47, 3  ;;  %v391_v54 = vrot.slane %v3028_v48, 3  ;;  %v3080_v47 = vld [vmem:[%s4015_s1 + $0x5a4] ss:$8 sps:$4 sm:$0xff]  }
  0x65   : > { %2081 = vmatprep.subr.bf16.mxu0 %v2982_v57  ;;  %v3036_v57 = vld [vmem:[%s4015_s1 + $0x544] ss:$8 sps:$4 sm:$0xff]  }
  0x66   : > { %v1513_v48 = vld [vmem:[%s3363_s7 + $0x4c] sm:$0x7] }
  0x67   : > { %844 = vmatpush1.bf16.msra.mxu1 %v2977_v61  ;;  %v3034_v61 = vld [vmem:[%s4015_s1 + $0x540] ss:$8 sps:$4 sm:$0xff]  }
  0x68   : > { %2082 = vmatpush1.bf16.msra.mxu0 %v2980_v62  ;;  %845 = vmatprep.subr.bf16.mxu1 %v2985_v63  ;;  %v392_v62 = vsel %vm383_vm0, %v390_v53, %v391_v54  ;;  %v2651_v63 = vcombine.low %v3617_v18, %v3611_v15  ;;  %v3721_v18 = vld [vmem:[%s3363_s7 + $0x74] ss:$20 sps:$4 sm:$0xff]  }
  0x69   : > { %2083 = vmatprep.subr.bf16.mxu0 %v2988_v0  ;;  %v2656_v0 = vcombine.low %v3614_v16, %v1511_v20  ;;  %v397_v27 = vrot.slane %v3721_v18, 3  ;;  %v3078_v53 = vld [vmem:[%s4015_s1 + $0x5a0] ss:$8 sps:$4 sm:$0xff]  }
  0x6a   : > { %v1618_v7 = vshll.u32 %v2651_v63, 16 }
  0x6b   : > { %846 = vmatpush1.bf16.msra.mxu1 %v2983_v2  ;;  %v3042_v2 = vld [vmem:[%s4015_s1 + $0x554] ss:$8 sps:$4 sm:$0xff]  }
  0x6c   : > { %2084 = vmatpush1.bf16.msra.mxu0 %v2986_v3  ;;  %847 = vmatprep.subr.bf16.mxu1 %v2991_v4  ;;  %v3037_v3 = vld [vmem:[%s4015_s1 + $0x450] ss:$8 sps:$4 sm:$0xff]   ;;  %v1620_v20 = vrot.slane %v1618_v7, 3 }
  0x6d   : > { %2085 = vmatprep.subr.bf16.mxu0 %v2994_v5  ;;  %v3040_v4 = vld [vmem:[%s4015_s1 + $0x550] ss:$8 sps:$4 sm:$0xff]   ;;  %v1615_v5 = vshrl.u32 %v2651_v63, 16 }
  0x6f   : > { %848 = vmatpush1.bf16.msra.mxu1 %v2989_v8  ;;  %v1623_v8 = vshrl.u32 %v2656_v0, 16 }
  0x70   : > { %2086 = vmatpush1.bf16.msra.mxu0 %v2992_v9  ;;  %849 = vmatprep.subr.bf16.mxu1 %v2997_v11  ;;  %v1626_v9 = vshll.u32 %v2656_v0, 16  ;;  %v3048_v11 = vld [vmem:[%s4015_s1 + $0x564] ss:$8 sps:$4 sm:$0xff]  }
  0x71   : > { %2087 = vmatprep.subr.bf16.mxu0 %v3000_v12  ;;  %v3043_v12 = vld [vmem:[%s4015_s1 + $0x460] ss:$8 sps:$4 sm:$0xff]   ;;  %v1625_v21 = vrot.slane %v1623_v8, 2 }
  0x73   : > { %850 = vmatpush1.bf16.msra.mxu1 %v2995_v13  ;;  %v3046_v13 = vld [vmem:[%s4015_s1 + $0x560] ss:$8 sps:$4 sm:$0xff]  }
  0x74   : > { %2088 = vmatpush1.bf16.msra.mxu0 %v2998_v14  ;;  %851 = vmatprep.subr.bf16.mxu1 %v3003_v19  ;;  %v3067_v14 = vld [vmem:[%s3363_s7 + $0x4c] ss:$20 sps:$4 sm:$0xf8]   ;;  %v1617_v19 = vrot.slane %v1615_v5, 2 }
  0x75   : > { %2089 = vmatprep.subr.bf16.mxu0 %v3006_v22  ;;  %v1628_v22 = vrot.slane %v1626_v9, 3  ;;  %v3092_v5 = vld [vmem:[%s4015_s1 + $0x5c4] ss:$8 sps:$4 sm:$0xff]  }
  0x76   : > { %v1621_v28 = vor.u32 %v1620_v20, %v1617_v19 }
  0x77   : > { %852 = vmatpush1.bf16.msra.mxu1 %v3001_v26  ;;  %v396_v26 = vrot.slane %v3067_v14, 3  ;;  %v3087_v14 = vld [vmem:[%s4015_s1 + $0x40] ss:$8 sps:$4 sm:$0xff]  }
  0x78   : > { %2090 = vmatpush1.bf16.msra.mxu0 %v3004_v29  ;;  %853 = vmatprep.subr.bf16.mxu1 %v3009_v30  ;;  %v1629_v29 = vor.u32 %v1628_v22, %v1625_v21  ;;  %v3059_v30 = vld [vmem:[%s4015_s1 + $0x4] ss:$8 sps:$4 sm:$0xff]   ;;  %v3090_v22 = vld [vmem:[%s4015_s1 + $0x5c0] ss:$8 sps:$4 sm:$0xff]  }
  0x79   : > { %2091 = vmatprep.subr.bf16.mxu0 %v3012_v33  ;;  %v2653_v33 = vcombine.low %v1509_v23, %v3384_v55  ;;  %v398_v35 = vsel %vm383_vm0, %v396_v26, %v397_v27 }
  0x7a   : > { %v1630_v37 = vsel %vm1613_vm2, %v1621_v28, %v1629_v29 }
  0x7b   : > { %854 = vmatpush1.bf16.msra.mxu1 %v3007_v39  ;;  %v3071_v39 = vld [vmem:[%s4015_s1 + $0x14] ss:$8 sps:$4 sm:$0xff]   ;;  %v1649_v44 = vshrl.u32 %v2653_v33, 16 }
  0x7c   : > { %2092 = vmatpush1.bf16.msra.mxu0 %v3010_v41  ;;  %855 = vmatprep.subr.bf16.mxu1 %v3015_v42  ;;  %v3074_v41 = vld [vmem:[%s4015_s1 + $0x594] ss:$8 sps:$4 sm:$0xff]   ;;  %v2654_v42 = vcombine.high %v1509_v23, %v3384_v55  ;;  %v3077_v55 = vld [vmem:[%s4015_s1 + $0x24] ss:$8 sps:$4 sm:$0xff]  }
  0x7d   : > { %2093 = vmatprep.subr.bf16.mxu0 %v3018_v43  ;;  %v3069_v43 = vld [vmem:[%s4015_s1 + $0x10] ss:$8 sps:$4 sm:$0xff]  }
  0x7f   : > { %856 = vmatpush1.bf16.msra.mxu1 %v3013_v45  ;;  %v3072_v45 = vld [vmem:[%s4015_s1 + $0x590] ss:$8 sps:$4 sm:$0xff]  }
  0x80   : > { %2094 = vmatpush1.bf16.msra.mxu0 %v3016_v46  ;;  %857 = vmatprep.subr.bf16.mxu1 %v3021_v49  ;;  %v1652_v46 = vshll.u32 %v2653_v33, 16  ;;  %v1666_v49 = vshrl.u32 %v2654_v42, 16 }
  0x81   : > { %2095 = vmatprep.subr.bf16.mxu0 %v3024_v50  ;;  %v1669_v50 = vshll.u32 %v2654_v42, 16  ;;  %v3099_v42 = vld [vmem:[%s4015_s1 + $0x60] ss:$8 sps:$4 sm:$0xff]  }
  0x82   : > { %v1668_v63 = vrot.slane %v1666_v49, 2  ;;  %v3113_v49 = vld [vmem:[%s4015_s1 + $0x84] ss:$8 sps:$4 sm:$0xff]  }
  0x83   : > { %858 = vmatpush1.bf16.msra.mxu1 %v3019_v51  ;;  %v3075_v51 = vld [vmem:[%s4015_s1 + $0x20] ss:$8 sps:$4 sm:$0xff]   ;;  %v1671_v0 = vrot.slane %v1669_v50, 3  ;;  %v3116_v50 = vld [vmem:[%s4015_s1 + $0x604] ss:$8 sps:$4 sm:$0xff]  }
  0x84   : > { %2096 = vmatpush1.bf16.msra.mxu0 %v3022_v52  ;;  %880 = vmatprep.subr.bf16.mxu1 %v3033_v56  ;;  %v1651_v52 = vrot.slane %v1649_v44, 2  ;;  %v3086_v56 = vld [vmem:[%s4015_s1 + $0x5b4] ss:$8 sps:$4 sm:$0xff]  }
  0x85   : > { %2097 = vmatprep.subr.bf16.mxu0 %v3036_v57  ;;  %v3789_v57 = vld [vmem:[%s3363_s7] sm:$0xff] }
  0x86   : > { %860 = vmatmul.mubr.bf16.vlgmr.msra.gmra.mrb[0].mxu1 %v392_v62  ;;  %v1512_v62 = vld [vmem:[%s3363_s7 + $0x44] sm:$0x77] }
  0x87   : > { %881 = vmatpush1.bf16.msra.mxu1 %v3031_v59  ;;  %869 = vmatprep.mubr.bf16.mxu1 %v394_v60  ;;  %v3056_v60 = vld [vmem:[%s4015_s1 + $0x574] ss:$8 sps:$4 sm:$0xff]   ;;  %v2660_v59 = vcombine.low %v3587_v6, %v1513_v48  ;;  %v3084_v6 = vld [vmem:[%s4015_s1 + $0x5b0] ss:$8 sps:$4 sm:$0xff]  }
  0x88   : > { %2098 = vmatpush1.bf16.msra.mxu0 %v3034_v61  ;;  %882 = vmatprep.subr.bf16.mxu1 %v3039_v1  ;;  %v2496_v61 = vcombine.high %v3789_v57, %v3611_v15  ;;  %v3081_v1 = vld [vmem:[%s4015_s1 + $0x30] ss:$8 sps:$4 sm:$0xff]  }
  0x89   : > { %2099 = vmatprep.subr.bf16.mxu0 %v3042_v2  ;;  %v2658_v2 = vcombine.low %v3448_v17, %v1512_v62  ;;  %v3108_v48 = vld [vmem:[%s4015_s1 + $0x5f0] ss:$8 sps:$4 sm:$0xff]  }
  0x8b   : > { %883 = vmatpush1.bf16.msra.mxu1 %v3037_v3  ;;  %v2659_v3 = vcombine.high %v3448_v17, %v1512_v62  ;;  %v1657_v9 = vshrl.u32 %v2658_v2, 16  ;;  %v1660_v17 = vshll.u32 %v2658_v2, 16  ;;  %v3123_v62 = vld [vmem:[%s4015_s1 + $0xa0] ss:$8 sps:$4 sm:$0xff]   ;;  %v3129_v2 = vld [vmem:[%s4015_s1 + $0xb0] ss:$8 sps:$4 sm:$0xff]  }
  0x8c   : > { %2100 = vmatpush1.bf16.msra.mxu0 %v3040_v4  ;;  %884 = vmatprep.subr.bf16.mxu1 %v3045_v10  ;;  %v3089_v4 = vld [vmem:[%s4015_s1 + $0x44] ss:$8 sps:$4 sm:$0xff]   ;;  %v1691_v10 = vshrl.u32 %v2660_v59, 16 }
  0x8d   : > { %2101 = vmatprep.subr.bf16.mxu0 %v3048_v11  ;;  %v1674_v7 = vshrl.u32 %v2659_v3, 16  ;;  %v1677_v8 = vshll.u32 %v2659_v3, 16  ;;  %v1694_v11 = vshll.u32 %v2660_v59, 16  ;;  %v1659_v20 = vrot.slane %v1657_v9, 2  ;;  %v3125_v59 = vld [vmem:[%s4015_s1 + $0xa4] ss:$8 sps:$4 sm:$0xff]  }
  0x8e   : > { %870 = vmatmul.mubr.bf16.gmra.mrb[4].mxu1 %v391_v54  ;;  %v1654_v54 = vrot.slane %v1652_v46, 3  ;;  %v1662_v21 = vrot.slane %v1660_v17, 3  ;;  %v1693_v26 = vrot.slane %v1691_v10, 2  ;;  %v3110_v46 = vld [vmem:[%s4015_s1 + $0x5f4] ss:$8 sps:$4 sm:$0xff]  }
  0x8f   : > { %885 = vmatpush1.bf16.msra.mxu1 %v3043_v12  ;;  %912 = vmatprep.mubr.bf16.mxu1 %v3186_v38  ;;  %v1672_v12 = vor.u32 %v1671_v0, %v1668_v63  ;;  %v1676_v18 = vrot.slane %v1674_v7, 2  ;;  %v1679_v19 = vrot.slane %v1677_v8, 3  ;;  %v3126_v63 = vld [vmem:[%s4015_s1 + $0x620] ss:$8 sps:$4 sm:$0xff]   ;;  %v3131_v0 = vld [vmem:[%s4015_s1 + $0xb4] ss:$8 sps:$4 sm:$0xff]  }
  0x90   : > { %2102 = vmatpush1.bf16.msra.mxu0 %v3046_v13  ;;  %886 = vmatprep.subr.bf16.mxu1 %v3053_v58  ;;  %v1655_v13 = vor.u32 %v1654_v54, %v1651_v52  ;;  %v3095_v58 = vld [vmem:[%s4015_s1 + $0x54] ss:$8 sps:$4 sm:$0xff]   ;;  %v3114_v52 = vld [vmem:[%s4015_s1 + $0x600] ss:$8 sps:$4 sm:$0xff]   ;;  %v3132_v3 = vld [vmem:[%s4015_s1 + $0x630] ss:$8 sps:$4 sm:$0xff]  }
  0x91   : > { %2103 = vmatprep.subr.bf16.mxu0 %v3056_v60  ;;  %v3098_v60 = vld [vmem:[%s4015_s1 + $0x5d4] ss:$8 sps:$4 sm:$0xff]   ;;  %v3822_v23 = vor.u32 %v1679_v19, %v1676_v18  ;;  %v3138_v7 = vld [vmem:[%s4015_s1 + $0x640] ss:$8 sps:$4 sm:$0xff]   ;;  %v3141_v17 = vld [vmem:[%s4015_s1 + $0xd0] ss:$8 sps:$4 sm:$0xff]  }
  0x92   : > { %v3122_v54 = vld [vmem:[%s4015_s1 + $0x614] ss:$8 sps:$4 sm:$0xff]   ;;  %v3144_v10 = vld [vmem:[%s4015_s1 + $0x650] ss:$8 sps:$4 sm:$0xff]  }
  0x93   : > { %887 = vmatpush1.bf16.msra.mxu1 %v3051_v24  ;;  %v3824_v24 = vor.u32 %v1662_v21, %v1659_v20  ;;  %v3143_v8 = vld [vmem:[%s4015_s1 + $0xd4] ss:$8 sps:$4 sm:$0xff]   ;;  %v3153_v20 = vld [vmem:[%s4015_s1 + $0xf0] ss:$8 sps:$4 sm:$0xff]  }
  0x94   : > { %2104 = vmatpush1.bf16.msra.mxu0 %v3054_v25  ;;  %1349 = vmatprep.subr.bf16.mxu1 %v3059_v30  ;;  %v1510_v25 = vld [vmem:[%s3363_s7 + $0x10] sm:$0xc]  ;;  %v3146_v9 = vld [vmem:[%s4015_s1 + $0x654] ss:$8 sps:$4 sm:$0xff]  }
  0x95   : > { %2126 = vmatprep.subr.bf16.mxu0 %v3066_v31  ;;  %v2655_v28 = vcombine.low %v1510_v25, %v3497_v36  ;;  %v3832_v30 = vsel %vm1613_vm2, %v1655_v13, %v3824_v24  ;;  %v3093_v31 = vld [vmem:[%s4015_s1 + $0x50] ss:$8 sps:$4 sm:$0xff]   ;;  %v3101_v36 = vld [vmem:[%s4015_s1 + $0x64] ss:$8 sps:$4 sm:$0xff]   ;;  %v3147_v13 = vld [vmem:[%s4015_s1 + $0xe0] ss:$8 sps:$4 sm:$0xff]  }
  0x96   : > { %2493 = vmatmul.mubr.msk.bf16.vlgmr.msra.gmra.mrb[0].mxu1 %vm767_vm1, %v398_v35  ;;  %v3104_v35 = vld [vmem:[%s4015_s1 + $0x5e4] ss:$8 sps:$4 sm:$0xff]   ;;  %v3155_v18 = vld [vmem:[%s4015_s1 + $0xf4] ss:$8 sps:$4 sm:$0xff]   ;;  %v3156_v21 = vld [vmem:[%s4015_s1 + $0x670] ss:$8 sps:$4 sm:$0xff]  }
  0x97   : > { %2106 = vmatmul.mubr.bf16.vlgmr.msra.gmra.mrb[0].mxu0 %v1630_v37  ;;  %1350 = vmatpush1.bf16.msra.mxu1 %v3057_v32  ;;  %v3096_v32 = vld [vmem:[%s4015_s1 + $0x5d0] ss:$8 sps:$4 sm:$0xff]   ;;  %v1683_v33 = vshrl.u32 %v2655_v28, 16  ;;  %v3158_v19 = vld [vmem:[%s4015_s1 + $0x674] ss:$8 sps:$4 sm:$0xff]  }
  0x98   : > { %2127 = vmatpush1.bf16.msra.mxu0 %v3064_v34  ;;  %1351 = vmatprep.subr.bf16.mxu1 %v3071_v39  ;;  %v1686_v34 = vshll.u32 %v2655_v28, 16  ;;  %v3163_v25 = vld [vmem:[%s4015_s1 + $0x680] ss:$8 sps:$4 sm:$0xff]  }
  0x99   : > { %2128 = vmatprep.subr.bf16.mxu0 %v3074_v41  ;;  %922 = vmatprep.mubr.bf16.mxu1 %v3186_v38  ;;  %v1685_v37 = vrot.slane %v1683_v33, 2  ;;  %v2242_v33 = vlaneseq }
  0x9a   : > { %2115 = vmatprep.mubr.bf16.mxu0 %v3644_v40  ;;  %v3083_v40 = vld [vmem:[%s4015_s1 + $0x34] ss:$8 sps:$4 sm:$0xff]   ;;  %v1688_v39 = vrot.slane %v1686_v34, 3 }
  0x9b   : > { %1352 = vmatpush1.bf16.msra.mxu1 %v3069_v43  ;;  %v3102_v43 = vld [vmem:[%s4015_s1 + $0x5e0] ss:$8 sps:$4 sm:$0xff]   ;;  %v2243_v34 = vshrl.u32 %v2242_v33, 7 }
  0x9c   : > { %2129 = vmatpush1.bf16.msra.mxu0 %v3072_v45  ;;  %1353 = vmatprep.subr.bf16.mxu1 %v3077_v55  ;;  %v1689_v44 = vor.u32 %v1688_v39, %v1685_v37  ;;  %v3107_v45 = vld [vmem:[%s4015_s1 + $0x74] ss:$8 sps:$4 sm:$0xff]  }
  0x9d   : > { %2130 = vmatprep.subr.bf16.mxu0 %v3080_v47  ;;  %v3105_v47 = vld [vmem:[%s4015_s1 + $0x70] ss:$8 sps:$4 sm:$0xff]  }
  0x9e   : > { %2494 = vmatmul.mubr.msk.bf16.gmra.mrb[4].mxu1 %vm767_vm1, %v397_v27  ;;  %v1696_v27 = vrot.slane %v1694_v11, 3  ;;  %v3149_v11 = vld [vmem:[%s4015_s1 + $0xe4] ss:$8 sps:$4 sm:$0xff]  }
  0x9f   : > { %2116 = vmatmul.mubr.bf16.gmra.mrb[4].mxu0 %v1629_v29  ;;  %1354 = vmatpush1.bf16.msra.mxu1 %v3075_v51  ;;  %v1681_v29 = vsel %vm1613_vm2, %v1672_v12, %v3822_v23  ;;  %v3111_v51 = vld [vmem:[%s4015_s1 + $0x80] ss:$8 sps:$4 sm:$0xff]   ;;  %v3152_v12 = vld [vmem:[%s4015_s1 + $0x664] ss:$8 sps:$4 sm:$0xff]  }
  0xa0   : > { %2131 = vmatpush1.bf16.msra.mxu0 %v3078_v53  ;;  %1355 = vmatprep.subr.bf16.mxu1 %v3083_v40  ;;  %v3846_v41 = vor.u32 %v1696_v27, %v1693_v26  ;;  %v3119_v53 = vld [vmem:[%s4015_s1 + $0x94] ss:$8 sps:$4 sm:$0xff]   ;;  %v3117_v40 = vld [vmem:[%s4015_s1 + $0x90] ss:$8 sps:$4 sm:$0xff]  }
  0xa1   : > { %2132 = vmatprep.subr.bf16.mxu0 %v3086_v56  ;;  %1381 = vmatprep.mubr.bf16.mxu1 %v2496_v61  ;;  %v3120_v56 = vld [vmem:[%s4015_s1 + $0x610] ss:$8 sps:$4 sm:$0xff]   ;;  %v3128_v61 = vld [vmem:[%s4015_s1 + $0x624] ss:$8 sps:$4 sm:$0xff]   ;;  %v3168_v26 = vld [vmem:[%s4015_s1 + $0x694] ss:$8 sps:$4 sm:$0xff]  }
  0xa2   : > { %2158 = vmatprep.mubr.bf16.mxu0 %v1681_v29  ;;  %v3862_v55 = vsel %vm1613_vm2, %v1689_v44, %v3846_v41  ;;  %v3171_v29 = vld [vmem:[%s4015_s1 + $0x6a0] ss:$8 sps:$4 sm:$0xff]  }
  0xa3   : > { %1356 = vmatpush1.bf16.msra.mxu1 %v3081_v1  ;;  %v3134_v1 = vld [vmem:[%s4015_s1 + $0x634] ss:$8 sps:$4 sm:$0xff]  }
  0xa4   : > { %2133 = vmatpush1.bf16.msra.mxu0 %v3084_v6  ;;  %1357 = vmatprep.subr.bf16.mxu1 %v3089_v4  ;;  %v3137_v6 = vld [vmem:[%s4015_s1 + $0xc4] ss:$8 sps:$4 sm:$0xff]  }
  0xa5   : > { %2134 = vmatprep.subr.bf16.mxu0 %v3092_v5  ;;  %v3140_v4 = vld [vmem:[%s4015_s1 + $0x644] ss:$8 sps:$4 sm:$0xff]   ;;  %v3135_v5 = vld [vmem:[%s4015_s1 + $0xc0] ss:$8 sps:$4 sm:$0xff]  }
  0xa7   : > { %1358 = vmatpush1.bf16.msra.mxu1 %v3087_v14  ;;  %v3150_v14 = vld [vmem:[%s4015_s1 + $0x660] ss:$8 sps:$4 sm:$0xff]  }
  0xa8   : > { %2135 = vmatpush1.bf16.msra.mxu0 %v3090_v22  ;;  %1359 = vmatprep.subr.bf16.mxu1 %v3095_v58  ;;  %v3165_v22 = vld [vmem:[%s4015_s1 + $0x684] ss:$8 sps:$4 sm:$0xff]   ;;  %v2495_v58 = vcombine.low %v3789_v57, %v3611_v15  ;;  %v3166_v15 = vld [vmem:[%s4015_s1 + $0x690] ss:$8 sps:$4 sm:$0xff]  }
  0xa9   : > { %2136 = vmatprep.subr.bf16.mxu0 %v3098_v60  ;;  %v181_v60 = vld [vmem:[%s3363_s7 + $0x3c] sm:$0x11]  ;;  %v3173_v57 = vld [vmem:[%s4015_s1 + $0x6a4] ss:$8 sps:$4 sm:$0xff]  }
  0xaa   : > { %v2501_v27 = vcombine.high %v3614_v16, %v181_v60  ;;  %v2500_v28 = vcombine.low %v3614_v16, %v181_v60  ;;  %v3174_v16 = vld [vmem:[%s4015_s1 + $0x6b0] ss:$8 sps:$4 sm:$0xff]  }
  0xab   : > { %1360 = vmatpush1.bf16.msra.mxu1 %v3093_v31 }
  0xac   : > { %2137 = vmatpush1.bf16.msra.mxu0 %v3096_v32  ;;  %1361 = vmatprep.subr.bf16.mxu1 %v3101_v36 }
  0xad   : > { %2138 = vmatprep.subr.bf16.mxu0 %v3104_v35 }
  0xaf   : > { %1362 = vmatpush1.bf16.msra.mxu1 %v3099_v42 }
  0xb0   : > { %2139 = vmatpush1.bf16.msra.mxu0 %v3102_v43  ;;  %1363 = vmatprep.subr.bf16.mxu1 %v3107_v45 }
  0xb1   : > { %2140 = vmatprep.subr.bf16.mxu0 %v3110_v46 }
  0xb3   : > { %1364 = vmatpush1.bf16.msra.mxu1 %v3105_v47  ;;  %v2244_v47 = vsub.s32 0, %v2243_v34 }
  0xb4   : > { %2141 = vmatpush1.bf16.msra.mxu0 %v3108_v48  ;;  %1365 = vmatprep.subr.bf16.mxu1 %v3113_v49  ;;  %v2240_v48 = vld [vmem:[%s4016_s2] sm:$0x3]  ;;  %v2248_v49 = vsub.s32 1, %v2243_v34 }
  0xb5   : > { %2142 = vmatprep.subr.bf16.mxu0 %v3116_v50  ;;  %v2245_v50 = vrot.slane %v2240_v48, %v2244_v47 }
  0xb7   : > { %1366 = vmatpush1.bf16.msra.mxu1 %v3111_v51 }
  0xb8   : > { %2143 = vmatpush1.bf16.msra.mxu0 %v3114_v52  ;;  %1367 = vmatprep.subr.bf16.mxu1 %v3119_v53  ;;  %v2249_v53 = vrot.slane %v2240_v48, %v2248_v49 }
  0xb9   : > { %2144 = vmatprep.subr.bf16.mxu0 %v3122_v54 }
  0xbb   : > { %1368 = vmatpush1.bf16.msra.mxu1 %v3117_v40 }
  0xbc   : > { %2145 = vmatpush1.bf16.msra.mxu0 %v3120_v56  ;;  %1369 = vmatprep.subr.bf16.mxu1 %v3125_v59 }
  0xbd   : > { %2146 = vmatprep.subr.bf16.mxu0 %v3128_v61 }
  0xbf   : > { %1370 = vmatpush1.bf16.msra.mxu1 %v3123_v62 }
  0xc0   : > { %2147 = vmatpush1.bf16.msra.mxu0 %v3126_v63  ;;  %1371 = vmatprep.subr.bf16.mxu1 %v3131_v0 }
  0xc1   : > { %2148 = vmatprep.subr.bf16.mxu0 %v3134_v1 }
  0xc3   : > { %1372 = vmatpush1.bf16.msra.mxu1 %v3129_v2 }
  0xc4   : > { %2149 = vmatpush1.bf16.msra.mxu0 %v3132_v3  ;;  %1373 = vmatprep.subr.bf16.mxu1 %v3137_v6 }
  0xc5   : > { %2150 = vmatprep.subr.bf16.mxu0 %v3140_v4 }
  0xc7   : > { %1374 = vmatpush1.bf16.msra.mxu1 %v3135_v5 }
  0xc8   : > { %2151 = vmatpush1.bf16.msra.mxu0 %v3138_v7  ;;  %1375 = vmatprep.subr.bf16.mxu1 %v3143_v8 }
  0xc9   : > { %2152 = vmatprep.subr.bf16.mxu0 %v3146_v9 }
  0xcb   : > { %1376 = vmatpush1.bf16.msra.mxu1 %v3141_v17 }
  0xcc   : > { %2153 = vmatpush1.bf16.msra.mxu0 %v3144_v10  ;;  %1377 = vmatprep.subr.bf16.mxu1 %v3149_v11 }
  0xcd   : > { %2154 = vmatprep.subr.bf16.mxu0 %v3152_v12 }
  0xcf   : > { %1378 = vmatpush1.bf16.msra.mxu1 %v3147_v13 }
  0xd0   : > { %2155 = vmatpush1.bf16.msra.mxu0 %v3150_v14  ;;  %1379 = vmatprep.subr.bf16.mxu1 %v3155_v18 }
  0xd1   : > { %2156 = vmatprep.subr.bf16.mxu0 %v3158_v19 }
  0xd3   : > { %1380 = vmatpush1.bf16.msra.mxu1 %v3153_v20 }
  0xd4   : > { %2157 = vmatpush1.bf16.msra.mxu0 %v3156_v21  ;;  %2738 = vmatprep.subr.bf16.mxu1 %v3165_v22 }
  0xd5   : > { %2179 = vmatprep.subr.bf16.mxu0 %v3165_v22 }
  0xd6   : > { %1382 = vmatmul.mubr.bf16.vlgmr.msra.gmra.mrb[0].mxu1 %v2495_v58 }
  0xd7   : > { %2159 = vmatmul.mubr.bf16.vlgmr.msra.gmra.mrb[0].mxu0 %v3832_v30  ;;  %2742 = vmatpush1.bf16.msra.mxu1 %v3163_v25  ;;  %v3176_v30 = vld [vmem:[%s4015_s1 + $0x6b4] ss:$8 sps:$4 sm:$0xff]  }
  0xd8   : > { %2180 = vmatpush1.bf16.msra.mxu0 %v3163_v25  ;;  %2739 = vmatprep.subr.bf16.mxu1 %v3168_v26 }
  0xd9   : > { %2181 = vmatprep.subr.bf16.mxu0 %v3168_v26  ;;  %1391 = vmatprep.mubr.bf16.mxu1 %v2501_v27 }
  0xda   : > { %2168 = vmatprep.mubr.bf16.mxu0 %v3822_v23 }
  0xdb   : > { %2743 = vmatpush1.bf16.msra.mxu1 %v3166_v15 }
  0xdc   : > { %2182 = vmatpush1.bf16.msra.mxu0 %v3166_v15  ;;  %2740 = vmatprep.subr.bf16.mxu1 %v3173_v57 }
  0xdd   : > { %2183 = vmatprep.subr.bf16.mxu0 %v3173_v57 }
  0xde   : > { %1392 = vmatmul.mubr.bf16.gmra.mrb[4].mxu1 %v2500_v28 }
  0xdf   : > { %2169 = vmatmul.mubr.bf16.gmra.mrb[4].mxu0 %v3824_v24  ;;  %2744 = vmatpush1.bf16.msra.mxu1 %v3171_v29 }
  0xe0   : > { %2184 = vmatpush1.bf16.msra.mxu0 %v3171_v29  ;;  %2741 = vmatprep.subr.bf16.mxu1 %v3176_v30 }
  0xe1   : > { %2185 = vmatprep.subr.bf16.mxu0 %v3176_v30  ;;  %2211 = vmatprep.mubr.bf16.mxu0 %v3186_v38 }
  0xe2   : > { %2221 = vmatprep.mubr.bf16.mxu1 %v3186_v38 }
  0xe3   : > { %2745 = vmatpush1.bf16.msra.mxu1 %v3174_v16 }
  0xe4   : > { %2186 = vmatpush1.bf16.msra.mxu0 %v3174_v16 }
  0xe6   : > { %2734 = vmatmul.mubr.msk.bf16.vlgmr.msra.gmra.mrb[8].mxu1 %vm767_vm1, %v3846_v41 }
  0xe7   : > { %2733 = vmatmul.mubr.msk.bf16.vlgmr.msra.gmra.mrb[0].mxu0 %vm767_vm1, %v3862_v55 }
 0x1a9   : > { %v1383_v23 = vpop.f32.mrb[0].mxu1 }
 0x1aa   : > { %v1385_v24 = vpop.f32.mrb[1].mxu1 }
 0x1ab   : > { %v1387_v31 = vpop.f32.mrb[2].mxu1 }
 0x1ac   : > { %v1389_v32 = vpop.f32.mrb[3].mxu1 }
 0x1b1   : > { %v1393_v36 = vpop.f32.mrb[4].mxu1 }
 0x1b2   : > { %v2170_v35 = vpop.f32.mrb[4].mxu0  ;;  %v1395_v39 = vpop.f32.mrb[5].mxu1 }
 0x1b3   : > { %v2750_v37 = vadd.f32 %v2170_v35, %v1393_v36  ;;  %v2172_v38 = vpop.f32.mrb[5].mxu0  ;;  %v1397_v43 = vpop.f32.mrb[6].mxu1 }
 0x1b4   : > { %v2752_v42 = vadd.f32 %v2172_v38, %v1395_v39  ;;  %v2174_v44 = vpop.f32.mrb[6].mxu0  ;;  %v1399_v46 = vpop.f32.mrb[7].mxu1 }
 0x1b5   : > { %v2754_v45 = vadd.f32 %v2174_v44, %v1397_v43  ;;  %v2176_v55 = vpop.f32.mrb[7].mxu0 }
 0x1b6   : > { %v2756_v41 = vadd.f32 %v2176_v55, %v1399_v46 }
 0x1b9   : > { %v2223_v52 = vpop.f32.mrb[8].mxu1 }
 0x1ba   : > { %v2213_v51 = vpop.f32.mrb[0].mxu0  ;;  %v2751_v40 = vadd.f32 %v2750_v37, %v2223_v52  ;;  %v2225_v59 = vpop.f32.mrb[9].mxu1 }
 0x1bb   : > { %v2746_v54 = vadd.f32 %v2213_v51, %v1383_v23  ;;  %v2215_v56 = vpop.f32.mrb[1].mxu0  ;;  %v2753_v62 = vadd.f32 %v2752_v42, %v2225_v59  ;;  %v2227_v0 = vpop.f32.mrb[10].mxu1 }
 0x1bc   : > { %v2747_v61 = vadd.f32 %v2215_v56, %v1385_v24  ;;  %v2217_v63 = vpop.f32.mrb[2].mxu0  ;;  %v2256_v2 = vadd.f32 %v2751_v40, %v2245_v50  ;;  %v2755_v6 = vadd.f32 %v2754_v45, %v2227_v0  ;;  %v2229_v5 = vpop.f32.mrb[11].mxu1 }
 0x1bd   : > { %v2252_v1 = vadd.f32 %v2746_v54, %v2245_v50  ;;  %v2748_v3 = vadd.f32 %v2217_v63, %v1387_v31  ;;  %v2219_v4 = vpop.f32.mrb[3].mxu0  ;;  %v2257_v8 = vadd.f32 %v2753_v62, %v2249_v53  ;;  %v2757_v17 = vadd.f32 %v2756_v41, %v2229_v5 }
 0x1be   : > { %v2253_v7 = vadd.f32 %v2747_v61, %v2249_v53  ;;  %v2749_v9 = vadd.f32 %v2219_v4, %v1389_v32  ;;  %v2264_v11 = vmax.f32 %v2256_v2, 0.0  ;;  %v2258_v13 = vadd.f32 %v2755_v6, %v2245_v50 }
 0x1bf   : > { %v2260_v10 = vmax.f32 %v2252_v1, 0.0  ;;  %v2254_v12 = vadd.f32 %v2748_v3, %v2245_v50  ;;  %v2265_v18 = vmax.f32 %v2257_v8, 0.0  ;;  %v2259_v20 = vadd.f32 %v2757_v17, %v2249_v53 }
 0x1c0   : > { %v2261_v14 = vmax.f32 %v2253_v7, 0.0  ;;  %v2255_v19 = vadd.f32 %v2749_v9, %v2249_v53  ;;  %2272 = vst [vmem:[%s170_s18 + $0x20] sm:$0xff] %v2264_v11  ;;  %v2266_v22 = vmax.f32 %v2258_v13, 0.0 }
 0x1c1   : > { %2268 = vst [vmem:[%s170_s18] sm:$0xff] %v2260_v10  ;;  %v2262_v21 = vmax.f32 %v2254_v12, 0.0  ;;  %2273 = vst [vmem:[%s170_s18 + $0x28] sm:$0xff] %v2265_v18  ;;  %v2267_v60 = vmax.f32 %v2259_v20, 0.0 }
 0x1c2   : > { %2269 = vst [vmem:[%s170_s18 + $0x8] sm:$0xff] %v2261_v14  ;;  %v2263_v58 = vmax.f32 %v2255_v19, 0.0  ;;  %2274 = vst [vmem:[%s170_s18 + $0x30] sm:$0x1] %v2266_v22 }
 0x1c3   : > { %2270 = vst [vmem:[%s170_s18 + $0x10] sm:$0xff] %v2262_v21  ;;  %2275 = vst [vmem:[%s170_s18 + $0x38] sm:$0x1] %v2267_v60 }
 0x1c4   : > { %2271 = vst [vmem:[%s170_s18 + $0x18] sm:$0xff] %v2263_v58 }
 0x1c5 PF: > { %s13_s12 = sadd.s32 1, %s3184_s12  }
 0x1c6   : > { %p10_p4 = scmp.ge.s32.totalorder %s13_s12, 4  }
 0x1c8   :  { %12 = sbr.rel (!%p10_p4) target bundleno = 1 (0x1), region = 64 }

// kernel: mixed_6a.5
= control target key start
LH: loop header
LB: loop body
LE: loop exit
PB: predicated region body
PF: predicated region fallthrough
CT: control target
= control target key end

     0   :  { %s6245_s12 = smov 0   ;;  %s7882_s0 = inlined_call_operand.vmem [shape: bf16[2,55,768], index: 0, kind: input, shape index: {}]   ;;  %s7883_s1 = inlined_call_operand.vmem [shape: bf16[3,768,384], index: 1, kind: input, shape index: {}]   ;;  %s7884_s2 = inlined_call_operand.vmem [shape: f32[1,384], index: 2, kind: input, shape index: {}]   ;;  %s7885_s3 = inlined_call_operand.vmem [shape: f32[2,25,384], index: 3, kind: output, shape index: {}]  }
   0x1 LB: > { %s4406_s13 = sadd.s32 4294967295, %s6223_s12   ;;  %p4410_p0 = scmp.ge.s32.totalorder %s6223_s12, 1  ;;  %s6223_s12 = sphi %s6245_s12, %s13_s12  }
   0x2   : > { %p137_p1 = scmp.lt.s32.totalorder %s6223_s12, 3 }
   0x4   : > { %p138_p2 = pnand %p4410_p0, %p137_p1 }
   0x5   : > { %v5593_v0 = vld [vmem:[%s7883_s1 + $0x484] ss:$12 sps:$4 sm:$0xff] (!%p138_p2)   ;;  %v5597_v2 = vld [vmem:[%s7883_s1 + $0x480] ss:$12 sps:$4 sm:$0xff] (!%p138_p2)   ;;  %v5599_v4 = vld [vmem:[%s7883_s1 + $0x49c] ss:$12 sps:$4 sm:$0xff] (!%p138_p2)  }
   0x6   : > { %141 = sbr.rel (%p138_p2) target bundleno = 685 (0x2ad), region = 32  ;;  %v5595_v1 = vld [vmem:[%s7883_s1 + $0x784] ss:$12 sps:$4 sm:$0xff] (!%p138_p2)   ;;  %1428 = vmatprep.subr.bf16.mxu1 (!%p138_p2), %v5593_v0  ;;  %v5598_v3 = vld [vmem:[%s7883_s1 + $0x780] ss:$12 sps:$4 sm:$0xff] (!%p138_p2)   ;;  %p161_p3 = scmp.lt.s32.totalorder (!%p138_p2), %s4406_s13, 1 }
   0x7   : > { %1534 = vmatprep.subr.bf16.mxu0 (!%p138_p2), %v5595_v1  ;;  %1429 = vmatpush1.bf16.msra.mxu1 (!%p138_p2), %v5597_v2  ;;  %v5601_v5 = vld [vmem:[%s7883_s1 + $0x79c] ss:$12 sps:$4 sm:$0xff] (!%p138_p2)   ;;  %v5603_v6 = vld [vmem:[%s7883_s1 + $0x498] ss:$12 sps:$4 sm:$0xff] (!%p138_p2)   ;;  %v5605_v8 = vld [vmem:[%s7883_s1 + $0x4b4] ss:$12 sps:$4 sm:$0xff] (!%p138_p2)  }
   0x8   : > { %1535 = vmatpush1.bf16.msra.mxu0 (!%p138_p2), %v5598_v3  ;;  %1430 = vmatprep.subr.bf16.mxu1 (!%p138_p2), %v5599_v4  ;;  %v5604_v7 = vld [vmem:[%s7883_s1 + $0x798] ss:$12 sps:$4 sm:$0xff] (!%p138_p2)   ;;  %v5607_v9 = vld [vmem:[%s7883_s1 + $0x7b4] ss:$12 sps:$4 sm:$0xff] (!%p138_p2)   ;;  %v5609_v10 = vld [vmem:[%s7883_s1 + $0x4b0] ss:$12 sps:$4 sm:$0xff] (!%p138_p2)  }
   0x9   : > { %1536 = vmatprep.subr.bf16.mxu0 (!%p138_p2), %v5601_v5  ;;  %v5610_v11 = vld [vmem:[%s7883_s1 + $0x7b0] ss:$12 sps:$4 sm:$0xff] (!%p138_p2)   ;;  %v5611_v12 = vld [vmem:[%s7883_s1 + $0x4cc] ss:$12 sps:$4 sm:$0xff] (!%p138_p2)   ;;  %v5615_v14 = vld [vmem:[%s7883_s1 + $0x4c8] ss:$12 sps:$4 sm:$0xff] (!%p138_p2)  }
   0xa   : > { %v5613_v13 = vld [vmem:[%s7883_s1 + $0x7cc] ss:$12 sps:$4 sm:$0xff] (!%p138_p2)   ;;  %v5616_v15 = vld [vmem:[%s7883_s1 + $0x7c8] ss:$12 sps:$4 sm:$0xff] (!%p138_p2)   ;;  %v5617_v16 = vld [vmem:[%s7883_s1 + $0x4e4] ss:$12 sps:$4 sm:$0xff] (!%p138_p2)  }
   0xb   : > { %1431 = vmatpush1.bf16.msra.mxu1 (!%p138_p2), %v5603_v6  ;;  %v5619_v17 = vld [vmem:[%s7883_s1 + $0x7e4] ss:$12 sps:$4 sm:$0xff] (!%p138_p2)   ;;  %v5621_v18 = vld [vmem:[%s7883_s1 + $0x4e0] ss:$12 sps:$4 sm:$0xff] (!%p138_p2)   ;;  %v5623_v20 = vld [vmem:[%s7883_s1 + $0x4fc] ss:$12 sps:$4 sm:$0xff] (!%p138_p2)  }
   0xc   : > { %1537 = vmatpush1.bf16.msra.mxu0 (!%p138_p2), %v5604_v7  ;;  %1432 = vmatprep.subr.bf16.mxu1 (!%p138_p2), %v5605_v8  ;;  %v5622_v19 = vld [vmem:[%s7883_s1 + $0x7e0] ss:$12 sps:$4 sm:$0xff] (!%p138_p2)   ;;  %v5625_v21 = vld [vmem:[%s7883_s1 + $0x7fc] ss:$12 sps:$4 sm:$0xff] (!%p138_p2)   ;;  %v5627_v22 = vld [vmem:[%s7883_s1 + $0x4f8] ss:$12 sps:$4 sm:$0xff] (!%p138_p2)  }
   0xd   : > { %1538 = vmatprep.subr.bf16.mxu0 %v5607_v9  ;;  %v5628_v23 = vld [vmem:[%s7883_s1 + $0x7f8] ss:$12 sps:$4 sm:$0xff]   ;;  %v5629_v24 = vld [vmem:[%s7883_s1 + $0x514] ss:$12 sps:$4 sm:$0xff]   ;;  %v5633_v26 = vld [vmem:[%s7883_s1 + $0x510] ss:$12 sps:$4 sm:$0xff]  }
   0xe   : > { %v5631_v25 = vld [vmem:[%s7883_s1 + $0x814] ss:$12 sps:$4 sm:$0xff]   ;;  %v5634_v27 = vld [vmem:[%s7883_s1 + $0x810] ss:$12 sps:$4 sm:$0xff]   ;;  %v5635_v28 = vld [vmem:[%s7883_s1 + $0x52c] ss:$12 sps:$4 sm:$0xff]  }
   0xf   : > { %1433 = vmatpush1.bf16.msra.mxu1 %v5609_v10  ;;  %v5637_v29 = vld [vmem:[%s7883_s1 + $0x82c] ss:$12 sps:$4 sm:$0xff]   ;;  %v5639_v30 = vld [vmem:[%s7883_s1 + $0x528] ss:$12 sps:$4 sm:$0xff]   ;;  %v5641_v32 = vld [vmem:[%s7883_s1 + $0x544] ss:$12 sps:$4 sm:$0xff]  }
  0x10   : > { %1539 = vmatpush1.bf16.msra.mxu0 %v5610_v11  ;;  %1434 = vmatprep.subr.bf16.mxu1 %v5611_v12  ;;  %v5640_v31 = vld [vmem:[%s7883_s1 + $0x828] ss:$12 sps:$4 sm:$0xff]   ;;  %v5643_v33 = vld [vmem:[%s7883_s1 + $0x844] ss:$12 sps:$4 sm:$0xff]   ;;  %v5645_v34 = vld [vmem:[%s7883_s1 + $0x540] ss:$12 sps:$4 sm:$0xff]  }
  0x11   : > { %1540 = vmatprep.subr.bf16.mxu0 %v5613_v13  ;;  %v5646_v35 = vld [vmem:[%s7883_s1 + $0x840] ss:$12 sps:$4 sm:$0xff]   ;;  %v5647_v36 = vld [vmem:[%s7883_s1 + $0x55c] ss:$12 sps:$4 sm:$0xff]   ;;  %s7887_s13 = smov (!%p161_p3, %s4406_s13), 1  ;;  %vm629_vm0 = vcmask 1044480  }
  0x12   : > { %v5649_v37 = vld [vmem:[%s7883_s1 + $0x85c] ss:$12 sps:$4 sm:$0xff]   ;;  %v5651_v38 = vld [vmem:[%s7883_s1 + $0x558] ss:$12 sps:$4 sm:$0xff]   ;;  %v5653_v40 = vld [vmem:[%s7883_s1 + $0x574] ss:$12 sps:$4 sm:$0xff]  }
  0x13   : > { %1435 = vmatpush1.bf16.msra.mxu1 %v5615_v14  ;;  %v5652_v39 = vld [vmem:[%s7883_s1 + $0x858] ss:$12 sps:$4 sm:$0xff]   ;;  %v5655_v41 = vld [vmem:[%s7883_s1 + $0x874] ss:$12 sps:$4 sm:$0xff]   ;;  %s5583_s23 = smul.u32 168, %s7887_s13 }
  0x14   : > { %1541 = vmatpush1.bf16.msra.mxu0 %v5616_v15  ;;  %1436 = vmatprep.subr.bf16.mxu1 %v5617_v16  ;;  %v5657_v42 = vld [vmem:[%s7883_s1 + $0x570] ss:$12 sps:$4 sm:$0xff]   ;;  %v5659_v44 = vld [vmem:[%s7883_s1 + $0x58c] ss:$12 sps:$4 sm:$0xff]   ;;  %v5663_v46 = vld [vmem:[%s7883_s1 + $0x588] ss:$12 sps:$4 sm:$0xff]  }
  0x15   : > { %1542 = vmatprep.subr.bf16.mxu0 %v5619_v17  ;;  %v5658_v43 = vld [vmem:[%s7883_s1 + $0x870] ss:$12 sps:$4 sm:$0xff]   ;;  %v5661_v45 = vld [vmem:[%s7883_s1 + $0x88c] ss:$12 sps:$4 sm:$0xff]   ;;  %s6401_s7 = scalar_lea.vmem %s7882_s0, %s5583_s23  ;;  %v5664_v47 = vld [vmem:[%s7883_s1 + $0x888] ss:$12 sps:$4 sm:$0xff]  }
  0x16   : > { %v5689_v48 = vld [vmem:[%s6401_s7 + $0x4c] ss:$24 sps:$4 sm:$0xf8]   ;;  %v5691_v49 = vld [vmem:[%s6401_s7 + $0x7c] ss:$24 sps:$4 sm:$0xff]   ;;  %s5584_s10 = smul.u32 96, %s7887_s13 }
  0x17   : > { %1437 = vmatpush1.bf16.msra.mxu1 %v5621_v18  ;;  %v5665_v50 = vld [vmem:[%s7883_s1 + $0x5a4] ss:$12 sps:$4 sm:$0xff]   ;;  %v5669_v52 = vld [vmem:[%s7883_s1 + $0x5a0] ss:$12 sps:$4 sm:$0xff]   ;;  %v633_v53 = vrot.slane %v5689_v48, 3  ;;  %v6420_v54 = vrot.slane %v5691_v49, 3 }
  0x18   : > { %1543 = vmatpush1.bf16.msra.mxu0 %v5622_v19  ;;  %1438 = vmatprep.subr.bf16.mxu1 %v5623_v20  ;;  %v5667_v51 = vld [vmem:[%s7883_s1 + $0x8a4] ss:$12 sps:$4 sm:$0xff]   ;;  %v5696_v55 = vld [vmem:[%s6401_s7 + $0x5c] ss:$24 sps:$4 sm:$0xf8]  }
  0x19   : > { %1544 = vmatprep.subr.bf16.mxu0 %v5625_v21  ;;  %v5698_v56 = vld [vmem:[%s6401_s7 + $0x8c] ss:$24 sps:$4 sm:$0xff]   ;;  %v6429_v58 = vsel %vm629_vm0, %v633_v53, %v6420_v54  ;;  %v5671_v59 = vld [vmem:[%s7883_s1 + $0x5bc] ss:$12 sps:$4 sm:$0xff]   ;;  %v645_v61 = vrot.slane %v5696_v55, 3 }
  0x1a   : > { %v5670_v57 = vld [vmem:[%s7883_s1 + $0x8a0] ss:$12 sps:$4 sm:$0xff]   ;;  %v5673_v60 = vld [vmem:[%s7883_s1 + $0x8bc] ss:$12 sps:$4 sm:$0xff]   ;;  %v6437_v62 = vrot.slane %v5698_v56, 3  ;;  %1460 = vmatprep.mubr.bf16.mxu1 %v6429_v58 }
  0x1b   : > { %1439 = vmatpush1.bf16.msra.mxu1 %v5627_v22  ;;  %v5675_v0 = vld [vmem:[%s7883_s1 + $0x5b8] ss:$12 sps:$4 sm:$0xff]   ;;  %v5677_v2 = vld [vmem:[%s7883_s1 + $0x5d4] ss:$12 sps:$4 sm:$0xff]   ;;  %v5681_v4 = vld [vmem:[%s7883_s1 + $0x5d0] ss:$12 sps:$4 sm:$0xff]  }
  0x1c   : > { %1545 = vmatpush1.bf16.msra.mxu0 %v5628_v23  ;;  %1440 = vmatprep.subr.bf16.mxu1 %v5629_v24  ;;  %v6442_v63 = vsel %vm629_vm0, %v645_v61, %v6437_v62  ;;  %v5676_v1 = vld [vmem:[%s7883_s1 + $0x8b8] ss:$12 sps:$4 sm:$0xff]   ;;  %v5679_v3 = vld [vmem:[%s7883_s1 + $0x8d4] ss:$12 sps:$4 sm:$0xff]   ;;  %v5682_v5 = vld [vmem:[%s7883_s1 + $0x8d0] ss:$12 sps:$4 sm:$0xff]  }
  0x1d   : > { %1546 = vmatprep.subr.bf16.mxu0 %v5631_v25  ;;  %1566 = vmatprep.mubr.bf16.mxu0 %v6442_v63  ;;  %v5683_v6 = vld [vmem:[%s7883_s1 + $0x5ec] ss:$12 sps:$4 sm:$0xff]   ;;  %v5703_v7 = vld [vmem:[%s6401_s7 + $0x48] ss:$24 sps:$4 sm:$0xf8]  }
  0x1e   : > { %v5704_v8 = vld [vmem:[%s6401_s7 + $0x78] ss:$24 sps:$4 sm:$0xff]   ;;  %v5706_v10 = vld [vmem:[%s6401_s7 + $0x88] ss:$24 sps:$4 sm:$0xff]   ;;  %v630_v15 = vrot.slane %v5703_v7, 3 }
  0x1f   : > { %1441 = vmatpush1.bf16.msra.mxu1 %v5633_v26  ;;  %v5705_v9 = vld [vmem:[%s6401_s7 + $0x58] ss:$24 sps:$4 sm:$0xf8]   ;;  %v5687_v12 = vld [vmem:[%s7883_s1 + $0x5e8] ss:$12 sps:$4 sm:$0xff]   ;;  %v6482_v16 = vrot.slane %v5704_v8, 3 }
  0x20   : > { %1547 = vmatpush1.bf16.msra.mxu0 %v5634_v27  ;;  %1442 = vmatprep.subr.bf16.mxu1 %v5635_v28  ;;  %v5685_v11 = vld [vmem:[%s7883_s1 + $0x8ec] ss:$12 sps:$4 sm:$0xff]   ;;  %v5688_v13 = vld [vmem:[%s7883_s1 + $0x8e8] ss:$12 sps:$4 sm:$0xff]   ;;  %v5695_v14 = vld [vmem:[%s7883_s1 + $0x604] ss:$12 sps:$4 sm:$0xff]  }
  0x21   : > { %1548 = vmatprep.subr.bf16.mxu0 %v5637_v29  ;;  %v642_v17 = vrot.slane %v5705_v9, 3  ;;  %v6484_v18 = vrot.slane %v5706_v10, 3  ;;  %v5702_v19 = vld [vmem:[%s7883_s1 + $0x4] ss:$12 sps:$4 sm:$0xff]   ;;  %v5693_v20 = vld [vmem:[%s7883_s1 + $0x600] ss:$12 sps:$4 sm:$0xff]   ;;  %v6497_v22 = vsel %vm629_vm0, %v630_v15, %v6482_v16 }
  0x22   : > { %v5700_v21 = vld [vmem:[%s7883_s1] ss:$12 sps:$4 sm:$0xff]   ;;  %v5709_v24 = vld [vmem:[%s7883_s1 + $0x61c] ss:$12 sps:$4 sm:$0xff]   ;;  %v5707_v26 = vld [vmem:[%s7883_s1 + $0x618] ss:$12 sps:$4 sm:$0xff]  }
  0x23   : > { %1443 = vmatpush1.bf16.msra.mxu1 %v5639_v30  ;;  %v6501_v23 = vsel %vm629_vm0, %v642_v17, %v6484_v18  ;;  %v5712_v25 = vld [vmem:[%s7883_s1 + $0x1c] ss:$12 sps:$4 sm:$0xff]   ;;  %v5710_v27 = vld [vmem:[%s7883_s1 + $0x18] ss:$12 sps:$4 sm:$0xff]   ;;  %v5715_v28 = vld [vmem:[%s7883_s1 + $0x634] ss:$12 sps:$4 sm:$0xff]  }
  0x24   : > { %1549 = vmatpush1.bf16.msra.mxu0 %v5640_v31  ;;  %1444 = vmatprep.subr.bf16.mxu1 %v5641_v32  ;;  %v5718_v29 = vld [vmem:[%s7883_s1 + $0x34] ss:$12 sps:$4 sm:$0xff]   ;;  %v5713_v30 = vld [vmem:[%s7883_s1 + $0x630] ss:$12 sps:$4 sm:$0xff]   ;;  %v5721_v32 = vld [vmem:[%s7883_s1 + $0x64c] ss:$12 sps:$4 sm:$0xff]  }
  0x25   : > { %1550 = vmatprep.subr.bf16.mxu0 %v5643_v33  ;;  %v5716_v31 = vld [vmem:[%s7883_s1 + $0x30] ss:$12 sps:$4 sm:$0xff]   ;;  %v5724_v33 = vld [vmem:[%s7883_s1 + $0x4c] ss:$12 sps:$4 sm:$0xff]   ;;  %v5763_v8 = vld [vmem:[%s7883_s1 + $0x6f4] ss:$12 sps:$4 sm:$0xff]  }
  0x26   : > { %v5745_v48 = vld [vmem:[%s7883_s1 + $0x6ac] ss:$12 sps:$4 sm:$0xff]   ;;  %v5754_v53 = vld [vmem:[%s7883_s1 + $0xc4] ss:$12 sps:$4 sm:$0xff]   ;;  %v5766_v9 = vld [vmem:[%s7883_s1 + $0xf4] ss:$12 sps:$4 sm:$0xff]  }
  0x27   : > { %1445 = vmatpush1.bf16.msra.mxu1 %v5645_v34  ;;  %v5719_v34 = vld [vmem:[%s7883_s1 + $0x648] ss:$12 sps:$4 sm:$0xff]   ;;  %v5748_v49 = vld [vmem:[%s7883_s1 + $0xac] ss:$12 sps:$4 sm:$0xff]   ;;  %v5761_v10 = vld [vmem:[%s7883_s1 + $0x6f0] ss:$12 sps:$4 sm:$0xff]  }
  0x28   : > { %1551 = vmatpush1.bf16.msra.mxu0 %v5646_v35  ;;  %1446 = vmatprep.subr.bf16.mxu1 %v5647_v36  ;;  %v5722_v35 = vld [vmem:[%s7883_s1 + $0x48] ss:$12 sps:$4 sm:$0xff]   ;;  %v5727_v36 = vld [vmem:[%s7883_s1 + $0x664] ss:$12 sps:$4 sm:$0xff]   ;;  %v5749_v56 = vld [vmem:[%s7883_s1 + $0x6c0] ss:$12 sps:$4 sm:$0xff]  }
  0x29   : > { %1552 = vmatprep.subr.bf16.mxu0 %v5649_v37  ;;  %v5730_v37 = vld [vmem:[%s7883_s1 + $0x64] ss:$12 sps:$4 sm:$0xff]   ;;  %v5799_v55 = vld [vmem:[%s6401_s7 + $0x54] ss:$24 sps:$4 sm:$0xf8]  }
  0x2a   : > { %v5758_v7 = vld [vmem:[%s7883_s1 + $0xd8] ss:$12 sps:$4 sm:$0xff]   ;;  %v5770_v15 = vld [vmem:[%s7883_s1 + $0x108] ss:$12 sps:$4 sm:$0xff]   ;;  %vm3097_vm1 = vsmask.f32 5376 }
  0x2b   : > { %1447 = vmatpush1.bf16.msra.mxu1 %v5651_v38  ;;  %v5725_v38 = vld [vmem:[%s7883_s1 + $0x660] ss:$12 sps:$4 sm:$0xff]   ;;  %v5775_v17 = vld [vmem:[%s7883_s1 + $0x724] ss:$12 sps:$4 sm:$0xff]  }
  0x2c   : > { %1553 = vmatpush1.bf16.msra.mxu0 %v5652_v39  ;;  %1448 = vmatprep.subr.bf16.mxu1 %v5653_v40  ;;  %v5728_v39 = vld [vmem:[%s7883_s1 + $0x60] ss:$12 sps:$4 sm:$0xff]   ;;  %v5733_v40 = vld [vmem:[%s7883_s1 + $0x67c] ss:$12 sps:$4 sm:$0xff]  }
  0x2d   : > { %1554 = vmatprep.subr.bf16.mxu0 %v5655_v41  ;;  %v5736_v41 = vld [vmem:[%s7883_s1 + $0x7c] ss:$12 sps:$4 sm:$0xff]  }
  0x2f   : > { %1449 = vmatpush1.bf16.msra.mxu1 %v5657_v42  ;;  %v5731_v42 = vld [vmem:[%s7883_s1 + $0x678] ss:$12 sps:$4 sm:$0xff]  }
  0x30   : > { %1555 = vmatpush1.bf16.msra.mxu0 %v5658_v43  ;;  %1450 = vmatprep.subr.bf16.mxu1 %v5659_v44  ;;  %v5734_v43 = vld [vmem:[%s7883_s1 + $0x78] ss:$12 sps:$4 sm:$0xff]   ;;  %v5739_v44 = vld [vmem:[%s7883_s1 + $0x694] ss:$12 sps:$4 sm:$0xff]  }
  0x31   : > { %1556 = vmatprep.subr.bf16.mxu0 %v5661_v45  ;;  %v5742_v45 = vld [vmem:[%s7883_s1 + $0x94] ss:$12 sps:$4 sm:$0xff]  }
  0x33   : > { %1451 = vmatpush1.bf16.msra.mxu1 %v5663_v46  ;;  %v5737_v46 = vld [vmem:[%s7883_s1 + $0x690] ss:$12 sps:$4 sm:$0xff]  }
  0x34   : > { %1557 = vmatpush1.bf16.msra.mxu0 %v5664_v47  ;;  %1452 = vmatprep.subr.bf16.mxu1 %v5665_v50  ;;  %v5740_v47 = vld [vmem:[%s7883_s1 + $0x90] ss:$12 sps:$4 sm:$0xff]   ;;  %v5743_v50 = vld [vmem:[%s7883_s1 + $0x6a8] ss:$12 sps:$4 sm:$0xff]  }
  0x35   : > { %1558 = vmatprep.subr.bf16.mxu0 %v5667_v51  ;;  %v5746_v51 = vld [vmem:[%s7883_s1 + $0xa8] ss:$12 sps:$4 sm:$0xff]  }
  0x37   : > { %1453 = vmatpush1.bf16.msra.mxu1 %v5669_v52  ;;  %v5751_v52 = vld [vmem:[%s7883_s1 + $0x6c4] ss:$12 sps:$4 sm:$0xff]  }
  0x38   : > { %1559 = vmatpush1.bf16.msra.mxu0 %v5670_v57  ;;  %1454 = vmatprep.subr.bf16.mxu1 %v5671_v59  ;;  %v5802_v57 = vld [vmem:[%s6401_s7 + $0x84] ss:$24 sps:$4 sm:$0xff]   ;;  %v5752_v59 = vld [vmem:[%s7883_s1 + $0xc0] ss:$12 sps:$4 sm:$0xff]  }
  0x39   : > { %1560 = vmatprep.subr.bf16.mxu0 %v5673_v60  ;;  %v639_v60 = vrot.slane %v5799_v55, 3  ;;  %v6607_v61 = vrot.slane %v5802_v57, 3  ;;  %v5820_v55 = vld [vmem:[%s7883_s1 + $0x590] ss:$12 sps:$4 sm:$0xff]   ;;  %v5821_v57 = vld [vmem:[%s7883_s1 + $0x1c8] ss:$12 sps:$4 sm:$0xff]  }
  0x3b   : > { %1455 = vmatpush1.bf16.msra.mxu1 %v5675_v0  ;;  %v6610_v0 = vld [vmem:[%s6401_s7] sm:$0xff] }
  0x3c   : > { %1561 = vmatpush1.bf16.msra.mxu0 %v5676_v1  ;;  %1456 = vmatprep.subr.bf16.mxu1 %v5677_v2  ;;  %v6613_v1 = vld [vmem:[%s6401_s7 + $0x18] sm:$0xff] }
  0x3d   : > { %1562 = vmatprep.subr.bf16.mxu0 %v5679_v3  ;;  %v5757_v2 = vld [vmem:[%s7883_s1 + $0x6dc] ss:$12 sps:$4 sm:$0xff]  }
  0x3e   : > { %v5760_v3 = vld [vmem:[%s7883_s1 + $0xdc] ss:$12 sps:$4 sm:$0xff]  }
  0x3f   : > { %1457 = vmatpush1.bf16.msra.mxu1 %v5681_v4  ;;  %v6623_v4 = vcombine.high %v6610_v0, %v6613_v1 }
  0x40   : > { %1563 = vmatpush1.bf16.msra.mxu0 %v5682_v5  ;;  %1458 = vmatprep.subr.bf16.mxu1 %v5683_v6  ;;  %v5755_v5 = vld [vmem:[%s7883_s1 + $0x6d8] ss:$12 sps:$4 sm:$0xff]   ;;  %v6630_v6 = vsel %vm629_vm0, %v639_v60, %v6607_v61  ;;  %v5825_v60 = vld [vmem:[%s7883_s1 + $0x5a8] ss:$12 sps:$4 sm:$0xff]  }
  0x41   : > { %1564 = vmatprep.subr.bf16.mxu0 %v5685_v11  ;;  %v5764_v11 = vld [vmem:[%s7883_s1 + $0xf0] ss:$12 sps:$4 sm:$0xff]  }
  0x43   : > { %1459 = vmatpush1.bf16.msra.mxu1 %v5687_v12  ;;  %v5769_v12 = vld [vmem:[%s7883_s1 + $0x70c] ss:$12 sps:$4 sm:$0xff]  }
  0x44   : > { %1565 = vmatpush1.bf16.msra.mxu0 %v5688_v13  ;;  %1481 = vmatprep.subr.bf16.mxu1 %v5695_v14  ;;  %v5772_v13 = vld [vmem:[%s7883_s1 + $0x10c] ss:$12 sps:$4 sm:$0xff]   ;;  %v5767_v14 = vld [vmem:[%s7883_s1 + $0x708] ss:$12 sps:$4 sm:$0xff]  }
  0x45   : > { %2562 = vmatprep.subr.bf16.mxu0 %v5702_v19  ;;  %v5778_v19 = vld [vmem:[%s7883_s1 + $0x124] ss:$12 sps:$4 sm:$0xff]  }
  0x46   : > { %1461 = vmatmul.mubr.bf16.vlgmr.msra.gmra.mrb[0].mxu1 %v6497_v22 }
  0x47   : > { %1567 = vmatmul.mubr.bf16.vlgmr.msra.gmra.mrb[0].mxu0 %v6501_v23  ;;  %1482 = vmatpush1.bf16.msra.mxu1 %v5693_v20  ;;  %v5773_v20 = vld [vmem:[%s7883_s1 + $0x720] ss:$12 sps:$4 sm:$0xff]  }
  0x48   : > { %2563 = vmatpush1.bf16.msra.mxu0 %v5700_v21  ;;  %1483 = vmatprep.subr.bf16.mxu1 %v5709_v24  ;;  %v5776_v21 = vld [vmem:[%s7883_s1 + $0x120] ss:$12 sps:$4 sm:$0xff]   ;;  %v5781_v24 = vld [vmem:[%s7883_s1 + $0x73c] ss:$12 sps:$4 sm:$0xff]  }
  0x49   : > { %2564 = vmatprep.subr.bf16.mxu0 %v5712_v25  ;;  %1470 = vmatprep.mubr.bf16.mxu1 %v6420_v54  ;;  %v5784_v25 = vld [vmem:[%s7883_s1 + $0x13c] ss:$12 sps:$4 sm:$0xff]  }
  0x4a   : > { %1576 = vmatprep.mubr.bf16.mxu0 %v6437_v62 }
  0x4b   : > { %1484 = vmatpush1.bf16.msra.mxu1 %v5707_v26  ;;  %v5779_v26 = vld [vmem:[%s7883_s1 + $0x738] ss:$12 sps:$4 sm:$0xff]  }
  0x4c   : > { %2565 = vmatpush1.bf16.msra.mxu0 %v5710_v27  ;;  %1485 = vmatprep.subr.bf16.mxu1 %v5715_v28  ;;  %v5782_v27 = vld [vmem:[%s7883_s1 + $0x138] ss:$12 sps:$4 sm:$0xff]   ;;  %v5787_v28 = vld [vmem:[%s7883_s1 + $0x754] ss:$12 sps:$4 sm:$0xff]  }
  0x4d   : > { %2566 = vmatprep.subr.bf16.mxu0 %v5718_v29  ;;  %v5790_v29 = vld [vmem:[%s7883_s1 + $0x154] ss:$12 sps:$4 sm:$0xff]  }
  0x4e   : > { %1471 = vmatmul.mubr.bf16.gmra.mrb[4].mxu1 %v6482_v16 }
  0x4f   : > { %1577 = vmatmul.mubr.bf16.gmra.mrb[4].mxu0 %v6484_v18  ;;  %1486 = vmatpush1.bf16.msra.mxu1 %v5713_v30  ;;  %v5785_v30 = vld [vmem:[%s7883_s1 + $0x750] ss:$12 sps:$4 sm:$0xff]  }
  0x50   : > { %2567 = vmatpush1.bf16.msra.mxu0 %v5716_v31  ;;  %1487 = vmatprep.subr.bf16.mxu1 %v5721_v32  ;;  %v5788_v31 = vld [vmem:[%s7883_s1 + $0x150] ss:$12 sps:$4 sm:$0xff]  }
  0x51   : > { %2568 = vmatprep.subr.bf16.mxu0 %v5724_v33  ;;  %1513 = vmatprep.mubr.bf16.mxu1 %v6630_v6  ;;  %v5797_v32 = vld [vmem:[%s6401_s7 + $0x50] ss:$24 sps:$4 sm:$0xf8]   ;;  %v5793_v33 = vld [vmem:[%s7883_s1 + $0x76c] ss:$12 sps:$4 sm:$0xff]  }
  0x52   : > { %2594 = vmatprep.mubr.bf16.mxu0 %v6623_v4 }
  0x53   : > { %1488 = vmatpush1.bf16.msra.mxu1 %v5719_v34  ;;  %v5800_v34 = vld [vmem:[%s6401_s7 + $0x80] ss:$24 sps:$4 sm:$0xff]  }
  0x54   : > { %2569 = vmatpush1.bf16.msra.mxu0 %v5722_v35  ;;  %1489 = vmatprep.subr.bf16.mxu1 %v5727_v36  ;;  %v5796_v35 = vld [vmem:[%s7883_s1 + $0x16c] ss:$12 sps:$4 sm:$0xff]   ;;  %v5791_v36 = vld [vmem:[%s7883_s1 + $0x768] ss:$12 sps:$4 sm:$0xff]  }
  0x55   : > { %2570 = vmatprep.subr.bf16.mxu0 %v5730_v37  ;;  %v5794_v37 = vld [vmem:[%s7883_s1 + $0x168] ss:$12 sps:$4 sm:$0xff]  }
  0x57   : > { %1490 = vmatpush1.bf16.msra.mxu1 %v5725_v38  ;;  %v636_v38 = vrot.slane %v5797_v32, 3  ;;  %v5853_v32 = vld [vmem:[%s7883_s1 + $0x25c] ss:$12 sps:$4 sm:$0xff]  }
  0x58   : > { %2571 = vmatpush1.bf16.msra.mxu0 %v5728_v39  ;;  %1491 = vmatprep.subr.bf16.mxu1 %v5733_v40  ;;  %v6711_v39 = vrot.slane %v5800_v34, 3  ;;  %v5803_v40 = vld [vmem:[%s7883_s1 + $0x548] ss:$12 sps:$4 sm:$0xff]   ;;  %v5854_v34 = vld [vmem:[%s7883_s1 + $0x620] ss:$12 sps:$4 sm:$0xff]  }
  0x59   : > { %2572 = vmatprep.subr.bf16.mxu0 %v5736_v41  ;;  %v5808_v41 = vld [vmem:[%s7883_s1 + $0x184] ss:$12 sps:$4 sm:$0xff]  }
  0x5b   : > { %1492 = vmatpush1.bf16.msra.mxu1 %v5731_v42  ;;  %v6721_v42 = vcombine.low %v6610_v0, %v6613_v1  ;;  %v5828_v0 = vld [vmem:[%s7883_s1 + $0x1e4] ss:$12 sps:$4 sm:$0xff]   ;;  %v5826_v1 = vld [vmem:[%s7883_s1 + $0x1e0] ss:$12 sps:$4 sm:$0xff]  }
  0x5c   : > { %2573 = vmatpush1.bf16.msra.mxu0 %v5734_v43  ;;  %1493 = vmatprep.subr.bf16.mxu1 %v5739_v44  ;;  %v5806_v43 = vld [vmem:[%s7883_s1 + $0x180] ss:$12 sps:$4 sm:$0xff]   ;;  %v5809_v44 = vld [vmem:[%s7883_s1 + $0x488] ss:$12 sps:$4 sm:$0xff]  }
  0x5d   : > { %2574 = vmatprep.subr.bf16.mxu0 %v5742_v45  ;;  %v6731_v45 = vsel %vm629_vm0, %v636_v38, %v6711_v39  ;;  %v5860_v38 = vld [vmem:[%s7883_s1 + $0x710] ss:$12 sps:$4 sm:$0xff]  }
  0x5f   : > { %1494 = vmatpush1.bf16.msra.mxu1 %v5737_v46  ;;  %v5810_v46 = vld [vmem:[%s7883_s1 + $0x560] ss:$12 sps:$4 sm:$0xff]  }
  0x60   : > { %2575 = vmatpush1.bf16.msra.mxu0 %v5740_v47  ;;  %1495 = vmatprep.subr.bf16.mxu1 %v5745_v48  ;;  %v5813_v47 = vld [vmem:[%s7883_s1 + $0x19c] ss:$12 sps:$4 sm:$0xff]   ;;  %v5811_v48 = vld [vmem:[%s7883_s1 + $0x198] ss:$12 sps:$4 sm:$0xff]  }
  0x61   : > { %2576 = vmatprep.subr.bf16.mxu0 %v5748_v49  ;;  %v5814_v49 = vld [vmem:[%s7883_s1 + $0x4a0] ss:$12 sps:$4 sm:$0xff]  }
  0x63   : > { %1496 = vmatpush1.bf16.msra.mxu1 %v5743_v50  ;;  %v5815_v50 = vld [vmem:[%s7883_s1 + $0x578] ss:$12 sps:$4 sm:$0xff]  }
  0x64   : > { %2577 = vmatpush1.bf16.msra.mxu0 %v5746_v51  ;;  %1497 = vmatprep.subr.bf16.mxu1 %v5751_v52  ;;  %v5818_v51 = vld [vmem:[%s7883_s1 + $0x1b4] ss:$12 sps:$4 sm:$0xff]   ;;  %v5816_v52 = vld [vmem:[%s7883_s1 + $0x1b0] ss:$12 sps:$4 sm:$0xff]  }
  0x65   : > { %2578 = vmatprep.subr.bf16.mxu0 %v5754_v53  ;;  %v5819_v53 = vld [vmem:[%s7883_s1 + $0x4b8] ss:$12 sps:$4 sm:$0xff]  }
  0x67   : > { %1498 = vmatpush1.bf16.msra.mxu1 %v5749_v56  ;;  %v5823_v56 = vld [vmem:[%s7883_s1 + $0x1cc] ss:$12 sps:$4 sm:$0xff]  }
  0x68   : > { %2579 = vmatpush1.bf16.msra.mxu0 %v5752_v59  ;;  %1499 = vmatprep.subr.bf16.mxu1 %v5757_v2  ;;  %v5824_v59 = vld [vmem:[%s7883_s1 + $0x4d0] ss:$12 sps:$4 sm:$0xff]   ;;  %v5829_v2 = vld [vmem:[%s7883_s1 + $0x4e8] ss:$12 sps:$4 sm:$0xff]  }
  0x69   : > { %2580 = vmatprep.subr.bf16.mxu0 %v5760_v3  ;;  %v6787_v3 = vld [vmem:[%s6401_s7 + $0x30] sm:$0xff] }
  0x6b   : > { %1500 = vmatpush1.bf16.msra.mxu1 %v5755_v5  ;;  %v181_v5 = vld [vmem:[%s6401_s7 + $0x48] sm:$0x11] }
  0x6c   : > { %2581 = vmatpush1.bf16.msra.mxu0 %v5758_v7  ;;  %1501 = vmatprep.subr.bf16.mxu1 %v5763_v8  ;;  %v5830_v7 = vld [vmem:[%s7883_s1 + $0x5c0] ss:$12 sps:$4 sm:$0xff]   ;;  %v6794_v8 = vcombine.high %v6787_v3, %v181_v5 }
  0x6d   : > { %2582 = vmatprep.subr.bf16.mxu0 %v5766_v9  ;;  %v6797_v9 = vcombine.low %v6787_v3, %v181_v5  ;;  %v5893_v5 = vld [vmem:[%s7883_s1 + $0x788] ss:$12 sps:$4 sm:$0xff]  }
  0x6f   : > { %1502 = vmatpush1.bf16.msra.mxu1 %v5761_v10  ;;  %v5831_v10 = vld [vmem:[%s7883_s1 + $0x1f8] ss:$12 sps:$4 sm:$0xff]  }
  0x70   : > { %2583 = vmatpush1.bf16.msra.mxu0 %v5764_v11  ;;  %1503 = vmatprep.subr.bf16.mxu1 %v5769_v12  ;;  %v5834_v11 = vld [vmem:[%s7883_s1 + $0x500] ss:$12 sps:$4 sm:$0xff]   ;;  %v5835_v12 = vld [vmem:[%s7883_s1 + $0x5d8] ss:$12 sps:$4 sm:$0xff]  }
  0x71   : > { %2584 = vmatprep.subr.bf16.mxu0 %v5772_v13  ;;  %v5838_v13 = vld [vmem:[%s7883_s1 + $0x214] ss:$12 sps:$4 sm:$0xff]  }
  0x73   : > { %1504 = vmatpush1.bf16.msra.mxu1 %v5767_v14  ;;  %v5836_v14 = vld [vmem:[%s7883_s1 + $0x210] ss:$12 sps:$4 sm:$0xff]  }
  0x74   : > { %2585 = vmatpush1.bf16.msra.mxu0 %v5770_v15  ;;  %1505 = vmatprep.subr.bf16.mxu1 %v5775_v17  ;;  %v6820_v15 = vld [vmem:[%s6401_s7 + $0x8] sm:$0xff]  ;;  %v6823_v17 = vld [vmem:[%s6401_s7 + $0x20] sm:$0xff] }
  0x75   : > { %2586 = vmatprep.subr.bf16.mxu0 %v5778_v19  ;;  %v5839_v19 = vld [vmem:[%s7883_s1 + $0x518] ss:$12 sps:$4 sm:$0xff]  }
  0x77   : > { %1506 = vmatpush1.bf16.msra.mxu1 %v5773_v20  ;;  %v5840_v20 = vld [vmem:[%s7883_s1 + $0x5f0] ss:$12 sps:$4 sm:$0xff]  }
  0x78   : > { %2587 = vmatpush1.bf16.msra.mxu0 %v5776_v21  ;;  %1507 = vmatprep.subr.bf16.mxu1 %v5781_v24  ;;  %v6833_v21 = vcombine.high %v6820_v15, %v6823_v17  ;;  %v5843_v24 = vld [vmem:[%s7883_s1 + $0x22c] ss:$12 sps:$4 sm:$0xff]  }
  0x79   : > { %2588 = vmatprep.subr.bf16.mxu0 %v5784_v25  ;;  %v5841_v25 = vld [vmem:[%s7883_s1 + $0x228] ss:$12 sps:$4 sm:$0xff]  }
  0x7b   : > { %1508 = vmatpush1.bf16.msra.mxu1 %v5779_v26  ;;  %v5844_v26 = vld [vmem:[%s7883_s1 + $0x530] ss:$12 sps:$4 sm:$0xff]  }
  0x7c   : > { %2589 = vmatpush1.bf16.msra.mxu0 %v5782_v27  ;;  %1509 = vmatprep.subr.bf16.mxu1 %v5787_v28  ;;  %v5845_v27 = vld [vmem:[%s7883_s1 + $0x6c8] ss:$12 sps:$4 sm:$0xff]   ;;  %v5848_v28 = vld [vmem:[%s7883_s1 + $0x244] ss:$12 sps:$4 sm:$0xff]  }
  0x7d   : > { %2590 = vmatprep.subr.bf16.mxu0 %v5790_v29  ;;  %v5846_v29 = vld [vmem:[%s7883_s1 + $0x240] ss:$12 sps:$4 sm:$0xff]  }
  0x7f   : > { %1510 = vmatpush1.bf16.msra.mxu1 %v5785_v30  ;;  %v5849_v30 = vld [vmem:[%s7883_s1 + $0x608] ss:$12 sps:$4 sm:$0xff]  }
  0x80   : > { %2591 = vmatpush1.bf16.msra.mxu0 %v5788_v31  ;;  %1511 = vmatprep.subr.bf16.mxu1 %v5793_v33  ;;  %v5850_v31 = vld [vmem:[%s7883_s1 + $0x6e0] ss:$12 sps:$4 sm:$0xff]   ;;  %v5851_v33 = vld [vmem:[%s7883_s1 + $0x258] ss:$12 sps:$4 sm:$0xff]  }
  0x81   : > { %2592 = vmatprep.subr.bf16.mxu0 %v5796_v35  ;;  %v5855_v35 = vld [vmem:[%s7883_s1 + $0x6f8] ss:$12 sps:$4 sm:$0xff]  }
  0x83   : > { %1512 = vmatpush1.bf16.msra.mxu1 %v5791_v36  ;;  %v5856_v36 = vld [vmem:[%s7883_s1 + $0x270] ss:$12 sps:$4 sm:$0xff]  }
  0x84   : > { %2593 = vmatpush1.bf16.msra.mxu0 %v5794_v37  ;;  %5267 = vmatprep.subr.bf16.mxu1 %v5803_v40  ;;  %v5859_v37 = vld [vmem:[%s7883_s1 + $0x638] ss:$12 sps:$4 sm:$0xff]  }
  0x85   : > { %2615 = vmatprep.subr.bf16.mxu0 %v5808_v41  ;;  %v5863_v40 = vld [vmem:[%s7883_s1 + $0x28c] ss:$12 sps:$4 sm:$0xff]   ;;  %v5864_v41 = vld [vmem:[%s7883_s1 + $0x650] ss:$12 sps:$4 sm:$0xff]  }
  0x86   : > { %1514 = vmatmul.mubr.bf16.vlgmr.msra.gmra.mrb[0].mxu1 %v6731_v45 }
  0x87   : > { %2595 = vmatmul.mubr.bf16.vlgmr.msra.gmra.mrb[0].mxu0 %v6721_v42  ;;  %5268 = vmatpush3.bf16.msra.mxu1 %v5809_v44  ;;  %v5868_v44 = vld [vmem:[%s7883_s1 + $0x2a4] ss:$12 sps:$4 sm:$0xff]  }
  0x88   : > { %2616 = vmatpush1.bf16.msra.mxu0 %v5806_v43  ;;  %5269 = vmatprep.subr.bf16.mxu1 %v5810_v46  ;;  %v5865_v43 = vld [vmem:[%s7883_s1 + $0x728] ss:$12 sps:$4 sm:$0xff]  }
  0x89   : > { %2617 = vmatprep.subr.bf16.mxu0 %v5813_v47  ;;  %1523 = vmatprep.mubr.bf16.mxu1 %v6607_v61  ;;  %v5869_v46 = vld [vmem:[%s7883_s1 + $0x668] ss:$12 sps:$4 sm:$0xff]   ;;  %v5870_v47 = vld [vmem:[%s7883_s1 + $0x740] ss:$12 sps:$4 sm:$0xff]  }
  0x8a   : > { %2604 = vmatprep.mubr.bf16.mxu0 %v6794_v8 }
  0x8b   : > { %5270 = vmatpush3.bf16.msra.mxu1 %v5814_v49  ;;  %v5874_v49 = vld [vmem:[%s7883_s1 + $0x680] ss:$12 sps:$4 sm:$0xff]  }
  0x8c   : > { %2618 = vmatpush1.bf16.msra.mxu0 %v5811_v48  ;;  %5271 = vmatprep.subr.bf16.mxu1 %v5815_v50  ;;  %v5871_v48 = vld [vmem:[%s7883_s1 + $0x2b8] ss:$12 sps:$4 sm:$0xff]  }
  0x8d   : > { %2619 = vmatprep.subr.bf16.mxu0 %v5818_v51  ;;  %v5875_v50 = vld [vmem:[%s7883_s1 + $0x758] ss:$12 sps:$4 sm:$0xff]   ;;  %v5879_v51 = vld [vmem:[%s7883_s1 + $0x2d4] ss:$12 sps:$4 sm:$0xff]  }
  0x8e   : > { %1524 = vmatmul.mubr.bf16.gmra.mrb[4].mxu1 %v6711_v39 }
  0x8f   : > { %5272 = vmatpush3.bf16.msra.mxu1 %v5819_v53  ;;  %1619 = vmatprep.mubr.bf16.mxu1 %v6429_v58  ;;  %v5833_v58 = vld [vmem:[%s7883_s1 + $0x1fc] ss:$12 sps:$4 sm:$0xff]   ;;  %v5880_v53 = vld [vmem:[%s7883_s1 + $0x698] ss:$12 sps:$4 sm:$0xff]  }
  0x90   : > { %2620 = vmatpush1.bf16.msra.mxu0 %v5816_v52  ;;  %5273 = vmatprep.subr.bf16.mxu1 %v5820_v55  ;;  %v5877_v52 = vld [vmem:[%s7883_s1 + $0x2d0] ss:$12 sps:$4 sm:$0xff]  }
  0x91   : > { %2621 = vmatprep.subr.bf16.mxu0 %v5823_v56  ;;  %2605 = vmatmul.mubr.bf16.gmra.mrb[4].mxu0 %v6797_v9  ;;  %v5882_v55 = vld [vmem:[%s7883_s1 + $0x770] ss:$12 sps:$4 sm:$0xff]   ;;  %v5885_v56 = vld [vmem:[%s7883_s1 + $0x2ec] ss:$12 sps:$4 sm:$0xff]  }
  0x92   : > { %2647 = vmatprep.mubr.bf16.mxu0 %v6833_v21 }
  0x93   : > { %5274 = vmatpush3.bf16.msra.mxu1 %v5824_v59  ;;  %v5886_v59 = vld [vmem:[%s7883_s1 + $0x6b0] ss:$12 sps:$4 sm:$0xff]  }
  0x94   : > { %2622 = vmatpush1.bf16.msra.mxu0 %v5821_v57  ;;  %5275 = vmatprep.subr.bf16.mxu1 %v5825_v60  ;;  %v5883_v57 = vld [vmem:[%s7883_s1 + $0x2e8] ss:$12 sps:$4 sm:$0xff]  }
  0x95   : > { %2623 = vmatprep.subr.bf16.mxu0 %v5828_v0  ;;  %v5887_v60 = vld [vmem:[%s7883_s1 + $0x848] ss:$12 sps:$4 sm:$0xff]   ;;  %v5892_v0 = vld [vmem:[%s7883_s1 + $0x304] ss:$12 sps:$4 sm:$0xff]  }
  0x97   : > { %5276 = vmatpush3.bf16.msra.mxu1 %v5829_v2  ;;  %v5890_v2 = vld [vmem:[%s7883_s1 + $0x300] ss:$12 sps:$4 sm:$0xff]  }
  0x98   : > { %2624 = vmatpush1.bf16.msra.mxu0 %v5826_v1  ;;  %5277 = vmatprep.subr.bf16.mxu1 %v5830_v7  ;;  %v6953_v1 = vcombine.low %v6820_v15, %v6823_v17  ;;  %v5894_v7 = vld [vmem:[%s7883_s1 + $0x860] ss:$12 sps:$4 sm:$0xff]   ;;  %v182_v15 = vld [vmem:[%s6401_s7 + $0x50] sm:$0x11] }
  0x99   : > { %2625 = vmatprep.subr.bf16.mxu0 %v5833_v58  ;;  %v5897_v58 = vld [vmem:[%s7883_s1 + $0x31c] ss:$12 sps:$4 sm:$0xff]  }
  0x9b   : > { %5278 = vmatpush3.bf16.msra.mxu1 %v5834_v11  ;;  %v5898_v11 = vld [vmem:[%s7883_s1 + $0x7a0] ss:$12 sps:$4 sm:$0xff]  }
  0x9c   : > { %2626 = vmatpush1.bf16.msra.mxu0 %v5831_v10  ;;  %5279 = vmatprep.subr.bf16.mxu1 %v5835_v12  ;;  %v5895_v10 = vld [vmem:[%s7883_s1 + $0x318] ss:$12 sps:$4 sm:$0xff]  }
  0x9d   : > { %2627 = vmatprep.subr.bf16.mxu0 %v5838_v13  ;;  %v5899_v12 = vld [vmem:[%s7883_s1 + $0x878] ss:$12 sps:$4 sm:$0xff]   ;;  %v5902_v13 = vld [vmem:[%s7883_s1 + $0x334] ss:$12 sps:$4 sm:$0xff]  }
  0x9f   : > { %5280 = vmatpush3.bf16.msra.mxu1 %v5839_v19  ;;  %v5903_v19 = vld [vmem:[%s7883_s1 + $0x7b8] ss:$12 sps:$4 sm:$0xff]  }
  0xa0   : > { %2628 = vmatpush1.bf16.msra.mxu0 %v5836_v14  ;;  %5281 = vmatprep.subr.bf16.mxu1 %v5840_v20  ;;  %v6982_v14 = vld [vmem:[%s6401_s7 + $0x38] sm:$0xff] }
  0xa1   : > { %2629 = vmatprep.subr.bf16.mxu0 %v5843_v24  ;;  %v6990_v17 = vcombine.high %v6982_v14, %v182_v15  ;;  %v6996_v20 = vcombine.low %v6982_v14, %v182_v15  ;;  %v5904_v24 = vld [vmem:[%s7883_s1 + $0x890] ss:$12 sps:$4 sm:$0xff]  }
  0xa2   : > { %v5969_v15 = vld [vmem:[%s7883_s1 + $0x170] ss:$12 sps:$4 sm:$0xff]  }
  0xa3   : > { %5282 = vmatpush3.bf16.msra.mxu1 %v5844_v26  ;;  %v5908_v26 = vld [vmem:[%s7883_s1 + $0x7d0] ss:$12 sps:$4 sm:$0xff]  }
  0xa4   : > { %2630 = vmatpush1.bf16.msra.mxu0 %v5841_v25  ;;  %5295 = vmatprep.subr.bf16.mxu1 %v5845_v27  ;;  %v5905_v25 = vld [vmem:[%s7883_s1 + $0x348] ss:$12 sps:$4 sm:$0xff]  }
  0xa5   : > { %2631 = vmatprep.subr.bf16.mxu0 %v5848_v28  ;;  %v5909_v27 = vld [vmem:[%s7883_s1 + $0x8a8] ss:$12 sps:$4 sm:$0xff]  }
  0xa6   : > { %1620 = vmatmul.mubr.bf16.vlgmr.msra.gmra.mrb[8].mxu1 %v6497_v22  ;;  %v5858_v22 = vld [vmem:[%s7883_s1 + $0x274] ss:$12 sps:$4 sm:$0xff]  }
  0xa7   : > { %5296 = vmatpush3.bf16.msra.mxu1 %v5849_v30  ;;  %1627 = vmatprep.mubr.bf16.mxu1 %v6420_v54  ;;  %v5861_v54 = vld [vmem:[%s7883_s1 + $0x288] ss:$12 sps:$4 sm:$0xff]   ;;  %v5912_v30 = vld [vmem:[%s7883_s1 + $0x364] ss:$12 sps:$4 sm:$0xff]  }
  0xa8   : > { %2632 = vmatpush1.bf16.msra.mxu0 %v5846_v29  ;;  %5297 = vmatprep.subr.bf16.mxu1 %v5850_v31  ;;  %v7017_v28 = vld [vmem:[%s6401_s7 + $0x10] sm:$0xff]  ;;  %v7020_v29 = vld [vmem:[%s6401_s7 + $0x28] sm:$0xff] }
  0xa9   : > { %2633 = vmatprep.subr.bf16.mxu0 %v5853_v32  ;;  %v5910_v31 = vld [vmem:[%s7883_s1 + $0x360] ss:$12 sps:$4 sm:$0xff]   ;;  %v5913_v32 = vld [vmem:[%s7883_s1 + $0x7e8] ss:$12 sps:$4 sm:$0xff]  }
  0xab   : > { %5298 = vmatpush3.bf16.msra.mxu1 %v5854_v34  ;;  %v5917_v34 = vld [vmem:[%s7883_s1 + $0x37c] ss:$12 sps:$4 sm:$0xff]  }
  0xac   : > { %2634 = vmatpush1.bf16.msra.mxu0 %v5851_v33  ;;  %5299 = vmatprep.subr.bf16.mxu1 %v5855_v35  ;;  %v5914_v33 = vld [vmem:[%s7883_s1 + $0x8c0] ss:$12 sps:$4 sm:$0xff]  }
  0xad   : > { %2635 = vmatprep.subr.bf16.mxu0 %v5858_v22  ;;  %v5918_v35 = vld [vmem:[%s7883_s1 + $0x800] ss:$12 sps:$4 sm:$0xff]   ;;  %v5919_v22 = vld [vmem:[%s7883_s1 + $0x8d8] ss:$12 sps:$4 sm:$0xff]  }
  0xae   : > { %1628 = vmatmul.mubr.bf16.gmra.mrb[12].mxu1 %v6482_v16  ;;  %v5866_v16 = vld [vmem:[%s7883_s1 + $0x2a0] ss:$12 sps:$4 sm:$0xff]  }
  0xaf   : > { %5300 = vmatpush3.bf16.msra.mxu1 %v5859_v37  ;;  %1668 = vmatprep.mubr.bf16.mxu1 %v6630_v6  ;;  %v5873_v6 = vld [vmem:[%s7883_s1 + $0x2bc] ss:$12 sps:$4 sm:$0xff]  }
  0xb0   : > { %2636 = vmatpush1.bf16.msra.mxu0 %v5856_v36  ;;  %5301 = vmatprep.subr.bf16.mxu1 %v5860_v38  ;;  %v5922_v36 = vld [vmem:[%s7883_s1 + $0x394] ss:$12 sps:$4 sm:$0xff]   ;;  %v5920_v37 = vld [vmem:[%s7883_s1 + $0x390] ss:$12 sps:$4 sm:$0xff]   ;;  %v5923_v38 = vld [vmem:[%s7883_s1 + $0x818] ss:$12 sps:$4 sm:$0xff]  }
  0xb1   : > { %2637 = vmatprep.subr.bf16.mxu0 %v5863_v40  ;;  %v5924_v40 = vld [vmem:[%s7883_s1 + $0x8f0] ss:$12 sps:$4 sm:$0xff]  }
  0xb3   : > { %5302 = vmatpush3.bf16.msra.mxu1 %v5864_v41  ;;  %v5925_v41 = vld [vmem:[%s7883_s1 + $0x3a8] ss:$12 sps:$4 sm:$0xff]  }
  0xb4   : > { %2638 = vmatpush1.bf16.msra.mxu0 %v5861_v54  ;;  %5303 = vmatprep.subr.bf16.mxu1 %v5865_v43  ;;  %v5927_v54 = vld [vmem:[%s7883_s1 + $0x3ac] ss:$12 sps:$4 sm:$0xff]   ;;  %v5928_v43 = vld [vmem:[%s7883_s1 + $0x830] ss:$12 sps:$4 sm:$0xff]  }
  0xb5   : > { %2639 = vmatprep.subr.bf16.mxu0 %v5868_v44  ;;  %v5931_v44 = vld [vmem:[%s7883_s1 + $0x3c4] ss:$12 sps:$4 sm:$0xff]  }
  0xb7   : > { %5304 = vmatpush3.bf16.msra.mxu1 %v5869_v46  ;;  %v5929_v46 = vld [vmem:[%s7883_s1 + $0x3c0] ss:$12 sps:$4 sm:$0xff]  }
  0xb8   : > { %2640 = vmatpush1.bf16.msra.mxu0 %v5866_v16  ;;  %5305 = vmatprep.subr.bf16.mxu1 %v5870_v47  ;;  %v5932_v16 = vld [vmem:[%s7883_s1 + $0xc8] ss:$12 sps:$4 sm:$0xff]  }
  0xb9   : > { %2641 = vmatprep.subr.bf16.mxu0 %v5873_v6  ;;  %v5933_v47 = vld [vmem:[%s7883_s1 + $0x8] ss:$12 sps:$4 sm:$0xff]  }
  0xba   : > { %v5936_v6 = vld [vmem:[%s7883_s1 + $0x3dc] ss:$12 sps:$4 sm:$0xff]  }
  0xbb   : > { %5306 = vmatpush3.bf16.msra.mxu1 %v5874_v49  ;;  %v5934_v49 = vld [vmem:[%s7883_s1 + $0x3d8] ss:$12 sps:$4 sm:$0xff]  }
  0xbc   : > { %2642 = vmatpush1.bf16.msra.mxu0 %v5871_v48  ;;  %5307 = vmatprep.subr.bf16.mxu1 %v5875_v50  ;;  %v5937_v48 = vld [vmem:[%s7883_s1 + $0xe0] ss:$12 sps:$4 sm:$0xff]  }
  0xbd   : > { %2643 = vmatprep.subr.bf16.mxu0 %v5879_v51  ;;  %v5938_v50 = vld [vmem:[%s7883_s1 + $0x20] ss:$12 sps:$4 sm:$0xff]  }
  0xbe   : > { %v5941_v51 = vld [vmem:[%s7883_s1 + $0x3f4] ss:$12 sps:$4 sm:$0xff]  }
  0xbf   : > { %5308 = vmatpush3.bf16.msra.mxu1 %v5880_v53  ;;  %v5943_v53 = vld [vmem:[%s7883_s1 + $0x38] ss:$12 sps:$4 sm:$0xff]  }
  0xc0   : > { %2644 = vmatpush1.bf16.msra.mxu0 %v5877_v52  ;;  %5309 = vmatprep.subr.bf16.mxu1 %v5882_v55  ;;  %v5942_v52 = vld [vmem:[%s7883_s1 + $0xf8] ss:$12 sps:$4 sm:$0xff]  }
  0xc1   : > { %2645 = vmatprep.subr.bf16.mxu0 %v5885_v56  ;;  %v5946_v55 = vld [vmem:[%s7883_s1 + $0x40c] ss:$12 sps:$4 sm:$0xff]   ;;  %v5944_v56 = vld [vmem:[%s7883_s1 + $0x408] ss:$12 sps:$4 sm:$0xff]  }
  0xc3   : > { %5310 = vmatpush3.bf16.msra.mxu1 %v5886_v59  ;;  %v5951_v59 = vld [vmem:[%s7883_s1 + $0x424] ss:$12 sps:$4 sm:$0xff]  }
  0xc4   : > { %2646 = vmatpush1.bf16.msra.mxu0 %v5883_v57  ;;  %5323 = vmatprep.subr.bf16.mxu1 %v5887_v60  ;;  %v5948_v57 = vld [vmem:[%s7883_s1 + $0x50] ss:$12 sps:$4 sm:$0xff]   ;;  %v5952_v60 = vld [vmem:[%s7883_s1 + $0x128] ss:$12 sps:$4 sm:$0xff]  }
  0xc5   : > { %2668 = vmatprep.subr.bf16.mxu0 %v5892_v0  ;;  %v5953_v0 = vld [vmem:[%s7883_s1 + $0x68] ss:$12 sps:$4 sm:$0xff]  }
  0xc6   : > { %1669 = vmatmul.mubr.bf16.vlgmr.msra.gmra.mrb[16].mxu1 %v6731_v45  ;;  %v5900_v45 = vld [vmem:[%s7883_s1 + $0x330] ss:$12 sps:$4 sm:$0xff]  }
  0xc7   : > { %2648 = vmatmul.mubr.bf16.vlgmr.msra.gmra.mrb[0].mxu0 %v6953_v1  ;;  %5324 = vmatpush3.bf16.msra.mxu1 %v5893_v5  ;;  %v5954_v5 = vld [vmem:[%s7883_s1 + $0x438] ss:$12 sps:$4 sm:$0xff]  }
  0xc8   : > { %2669 = vmatpush1.bf16.msra.mxu0 %v5890_v2  ;;  %5325 = vmatprep.subr.bf16.mxu1 %v5894_v7  ;;  %v5956_v2 = vld [vmem:[%s7883_s1 + $0x43c] ss:$12 sps:$4 sm:$0xff]   ;;  %v5958_v7 = vld [vmem:[%s7883_s1 + $0x80] ss:$12 sps:$4 sm:$0xff]  }
  0xc9   : > { %2670 = vmatprep.subr.bf16.mxu0 %v5897_v58  ;;  %1676 = vmatprep.mubr.bf16.mxu1 %v6607_v61  ;;  %v5907_v61 = vld [vmem:[%s7883_s1 + $0x34c] ss:$12 sps:$4 sm:$0xff]   ;;  %v5962_v58 = vld [vmem:[%s7883_s1 + $0x454] ss:$12 sps:$4 sm:$0xff]  }
  0xca   : > { %2657 = vmatprep.mubr.bf16.mxu0 %v6990_v17 }
  0xcb   : > { %5326 = vmatpush3.bf16.msra.mxu1 %v5898_v11  ;;  %v5960_v11 = vld [vmem:[%s7883_s1 + $0x450] ss:$12 sps:$4 sm:$0xff]  }
  0xcc   : > { %2671 = vmatpush1.bf16.msra.mxu0 %v5895_v10  ;;  %5327 = vmatprep.subr.bf16.mxu1 %v5899_v12  ;;  %v5963_v10 = vld [vmem:[%s7883_s1 + $0x158] ss:$12 sps:$4 sm:$0xff]  }
  0xcd   : > { %2672 = vmatprep.subr.bf16.mxu0 %v5902_v13  ;;  %v5965_v12 = vld [vmem:[%s7883_s1 + $0x98] ss:$12 sps:$4 sm:$0xff]  }
  0xce   : > { %1677 = vmatmul.mubr.bf16.gmra.mrb[20].mxu1 %v6711_v39  ;;  %v7027_v39 = vcombine.high %v7017_v28, %v7020_v29  ;;  %v5968_v13 = vld [vmem:[%s7883_s1 + $0x46c] ss:$12 sps:$4 sm:$0xff]  }
  0xcf   : > { %2658 = vmatmul.mubr.bf16.gmra.mrb[4].mxu0 %v6996_v20  ;;  %5328 = vmatpush3.bf16.msra.mxu1 %v5903_v19  ;;  %v5970_v19 = vld [vmem:[%s7883_s1 + $0xb0] ss:$12 sps:$4 sm:$0xff]  }
  0xd0   : > { %2673 = vmatpush1.bf16.msra.mxu0 %v5900_v45  ;;  %5329 = vmatprep.subr.bf16.mxu1 %v5904_v24  ;;  %v5966_v45 = vld [vmem:[%s7883_s1 + $0x468] ss:$12 sps:$4 sm:$0xff]  }
  0xd1   : > { %2674 = vmatprep.subr.bf16.mxu0 %v5907_v61  ;;  %1717 = vmatprep.mubr.bf16.mxu1 %v6442_v63  ;;  %v5915_v63 = vld [vmem:[%s7883_s1 + $0x378] ss:$12 sps:$4 sm:$0xff]   ;;  %v5973_v24 = vld [vmem:[%s7883_s1 + $0x248] ss:$12 sps:$4 sm:$0xff]  }
  0xd2   : > { %2700 = vmatprep.mubr.bf16.mxu0 %v7027_v39  ;;  %v5976_v61 = vld [vmem:[%s7883_s1 + $0x904] ss:$12 sps:$4 sm:$0xff]  }
  0xd3   : > { %5330 = vmatpush3.bf16.msra.mxu1 %v5908_v26  ;;  %v180_v26 = vld [vmem:[%s6401_s7 + $0x40] sm:$0xff] }
  0xd4   : > { %2675 = vmatpush1.bf16.msra.mxu0 %v5905_v25  ;;  %5331 = vmatprep.subr.bf16.mxu1 %v5909_v27  ;;  %v5974_v25 = vld [vmem:[%s7883_s1 + $0x900] ss:$12 sps:$4 sm:$0xff]   ;;  %v7185_v27 = vcombine.low %v7017_v28, %v7020_v29  ;;  %v5979_v28 = vld [vmem:[%s7883_s1 + $0x918] ss:$12 sps:$4 sm:$0xff]  }
  0xd5   : > { %2676 = vmatprep.subr.bf16.mxu0 %v5912_v30  ;;  %v183_v30 = vld [vmem:[%s6401_s7 + $0x58] sm:$0x11] }
  0xd6   : > { %v7200_v29 = vcombine.high %v180_v26, %v183_v30 }
  0xd7   : > { %5332 = vmatpush3.bf16.msra.mxu1 %v5913_v32  ;;  %v5978_v32 = vld [vmem:[%s7883_s1 + $0x260] ss:$12 sps:$4 sm:$0xff]  }
  0xd8   : > { %2677 = vmatpush1.bf16.msra.mxu0 %v5910_v31  ;;  %5333 = vmatprep.subr.bf16.mxu1 %v5914_v33  ;;  %v5977_v31 = vld [vmem:[%s7883_s1 + $0x188] ss:$12 sps:$4 sm:$0xff]  }
  0xd9   : > { %2678 = vmatprep.subr.bf16.mxu0 %v5917_v34  ;;  %v5981_v33 = vld [vmem:[%s7883_s1 + $0x91c] ss:$12 sps:$4 sm:$0xff]   ;;  %v7205_v34 = vld [vmem:[%s6401_s7] sm:$0xcc] }
  0xdb   : > { %5334 = vmatpush3.bf16.msra.mxu1 %v5918_v35  ;;  %v5982_v35 = vld [vmem:[%s7883_s1 + $0x1a0] ss:$12 sps:$4 sm:$0xff]  }
  0xdc   : > { %2679 = vmatpush1.bf16.msra.mxu0 %v5915_v63  ;;  %5335 = vmatprep.subr.bf16.mxu1 %v5919_v22  ;;  %v7208_v63 = vld [vmem:[%s6401_s7 + $0x48] sm:$0x77]  ;;  %v5983_v22 = vld [vmem:[%s7883_s1 + $0x278] ss:$12 sps:$4 sm:$0xff]  }
  0xdd   : > { %2680 = vmatprep.subr.bf16.mxu0 %v5922_v36  ;;  %v7217_v36 = vld [vmem:[%s6401_s7 + $0x18] sm:$0xff] }
  0xdf   : > { %5336 = vmatpush3.bf16.msra.mxu1 %v5923_v38  ;;  %v5116_v38 = vcombine.high %v6787_v3, %v7208_v63  ;;  %v5987_v3 = vld [vmem:[%s7883_s1 + $0x1b8] ss:$12 sps:$4 sm:$0xff]  }
  0xe0   : > { %2681 = vmatpush1.bf16.msra.mxu0 %v5920_v37  ;;  %5337 = vmatprep.subr.bf16.mxu1 %v5924_v40  ;;  %v5986_v37 = vld [vmem:[%s7883_s1 + $0x934] ss:$12 sps:$4 sm:$0xff]  }
  0xe1   : > { %2682 = vmatprep.subr.bf16.mxu0 %v5927_v54 }
  0xe3   : > { %5338 = vmatpush3.bf16.msra.mxu1 %v5928_v43  ;;  %v7231_v43 = vcombine.low %v180_v26, %v183_v30  ;;  %v6026_v26 = vld [vmem:[%s7883_s1 + $0x9f4] ss:$12 sps:$4 sm:$0xff]   ;;  %v6027_v30 = vld [vmem:[%s7883_s1 + $0x338] ss:$12 sps:$4 sm:$0xff]  }
  0xe4   : > { %2683 = vmatpush1.bf16.msra.mxu0 %v5925_v41  ;;  %5351 = vmatprep.subr.bf16.mxu1 %v5932_v16  ;;  %v5984_v41 = vld [vmem:[%s7883_s1 + $0x930] ss:$12 sps:$4 sm:$0xff]   ;;  %v3127_v16 = vshll.u32 %v5116_v38, 16 }
  0xe5   : > { %2684 = vmatprep.subr.bf16.mxu0 %v5931_v44  ;;  %v3124_v44 = vshrl.u32 %v5116_v38, 16  ;;  %v6212_v38 = vld [vmem:[%s6401_s7 + $0x30] sm:$0xff] }
  0xe6   : > { %1718 = vmatmul.mubr.bf16.vlgmr.msra.gmra.mrb[24].mxu1 %v6501_v23  ;;  %v5939_v23 = vld [vmem:[%s7883_s1 + $0x3f0] ss:$12 sps:$4 sm:$0xff]  }
  0xe7   : > { %5352 = vmatpush3.bf16.msra.mxu1 %v5933_v47  ;;  %1725 = vmatprep.mubr.bf16.mxu1 %v6437_v62  ;;  %v5947_v62 = vld [vmem:[%s7883_s1 + $0x110] ss:$12 sps:$4 sm:$0xff]  }
  0xe8   : > { %2685 = vmatpush1.bf16.msra.mxu0 %v5929_v46  ;;  %5353 = vmatprep.subr.bf16.mxu1 %v5937_v48  ;;  %v3126_v48 = vrot.slane %v3124_v44, 2 }
  0xe9   : > { %2686 = vmatprep.subr.bf16.mxu0 %v5936_v6  ;;  %v5991_v6 = vld [vmem:[%s7883_s1 + $0x94c] ss:$12 sps:$4 sm:$0xff]  }
  0xeb   : > { %5354 = vmatpush3.bf16.msra.mxu1 %v5938_v50 }
  0xec   : > { %2687 = vmatpush1.bf16.msra.mxu0 %v5934_v49  ;;  %5355 = vmatprep.subr.bf16.mxu1 %v5942_v52  ;;  %v3129_v49 = vrot.slane %v3127_v16, 3  ;;  %v6044_v16 = vld [vmem:[%s7883_s1 + $0x458] ss:$12 sps:$4 sm:$0xff]  }
  0xed   : > { %2688 = vmatprep.subr.bf16.mxu0 %v5941_v51  ;;  %v5989_v51 = vld [vmem:[%s7883_s1 + $0x948] ss:$12 sps:$4 sm:$0xff]  }
  0xee   : > { %1726 = vmatmul.mubr.bf16.gmra.mrb[28].mxu1 %v6484_v18  ;;  %v5949_v18 = vld [vmem:[%s7883_s1 + $0x420] ss:$12 sps:$4 sm:$0xff]   ;;  %v7247_v52 = vor.u32 %v3129_v49, %v3126_v48 }
  0xef   : > { %5356 = vmatpush3.bf16.msra.mxu1 %v5943_v53  ;;  %2753 = vmatprep.mubr.bf16.mxu1 %v6623_v4  ;;  %v5957_v4 = vld [vmem:[%s7883_s1 + $0x140] ss:$12 sps:$4 sm:$0xff]   ;;  %v5996_v53 = vld [vmem:[%s7883_s1 + $0x964] ss:$12 sps:$4 sm:$0xff]  }
  0xf0   : > { %2689 = vmatpush1.bf16.msra.mxu0 %v5939_v23  ;;  %5357 = vmatprep.subr.bf16.mxu1 %v5947_v62  ;;  %v5992_v23 = vld [vmem:[%s7883_s1 + $0x1d0] ss:$12 sps:$4 sm:$0xff]   ;;  %v5994_v62 = vld [vmem:[%s7883_s1 + $0x960] ss:$12 sps:$4 sm:$0xff]  }
  0xf1   : > { %2690 = vmatprep.subr.bf16.mxu0 %v5946_v55 }
  0xf3   : > { %5358 = vmatpush3.bf16.msra.mxu1 %v5948_v57  ;;  %v5998_v57 = vld [vmem:[%s7883_s1 + $0x2c0] ss:$12 sps:$4 sm:$0xff]  }
  0xf4   : > { %2691 = vmatpush1.bf16.msra.mxu0 %v5944_v56  ;;  %5359 = vmatprep.subr.bf16.mxu1 %v5952_v60  ;;  %v5997_v56 = vld [vmem:[%s7883_s1 + $0x1e8] ss:$12 sps:$4 sm:$0xff]   ;;  %v6002_v60 = vld [vmem:[%s7883_s1 + $0x200] ss:$12 sps:$4 sm:$0xff]  }
  0xf5   : > { %2692 = vmatprep.subr.bf16.mxu0 %v5951_v59  ;;  %v6001_v59 = vld [vmem:[%s7883_s1 + $0x97c] ss:$12 sps:$4 sm:$0xff]  }
  0xf7   : > { %5360 = vmatpush3.bf16.msra.mxu1 %v5953_v0  ;;  %v6006_v0 = vld [vmem:[%s7883_s1 + $0x994] ss:$12 sps:$4 sm:$0xff]  }
  0xf8   : > { %2693 = vmatpush1.bf16.msra.mxu0 %v5949_v18  ;;  %5361 = vmatprep.subr.bf16.mxu1 %v5957_v4  ;;  %v6003_v18 = vld [vmem:[%s7883_s1 + $0x2d8] ss:$12 sps:$4 sm:$0xff]  }
  0xf9   : > { %2694 = vmatprep.subr.bf16.mxu0 %v5956_v2  ;;  %v6004_v2 = vld [vmem:[%s7883_s1 + $0x990] ss:$12 sps:$4 sm:$0xff]   ;;  %v6007_v4 = vld [vmem:[%s7883_s1 + $0x218] ss:$12 sps:$4 sm:$0xff]  }
  0xfb   : > { %5362 = vmatpush3.bf16.msra.mxu1 %v5958_v7  ;;  %v6011_v7 = vld [vmem:[%s7883_s1 + $0x9ac] ss:$12 sps:$4 sm:$0xff]  }
  0xfc   : > { %2695 = vmatpush1.bf16.msra.mxu0 %v5954_v5  ;;  %5363 = vmatprep.subr.bf16.mxu1 %v5963_v10  ;;  %v6008_v5 = vld [vmem:[%s7883_s1 + $0x2f0] ss:$12 sps:$4 sm:$0xff]  }
  0xfd   : > { %2696 = vmatprep.subr.bf16.mxu0 %v5962_v58  ;;  %v6009_v58 = vld [vmem:[%s7883_s1 + $0x9a8] ss:$12 sps:$4 sm:$0xff]   ;;  %v6012_v10 = vld [vmem:[%s7883_s1 + $0x230] ss:$12 sps:$4 sm:$0xff]  }
  0xff   : > { %5364 = vmatpush3.bf16.msra.mxu1 %v5965_v12  ;;  %v6016_v12 = vld [vmem:[%s7883_s1 + $0x9c4] ss:$12 sps:$4 sm:$0xff]  }
 0x100   : > { %2697 = vmatpush1.bf16.msra.mxu0 %v5960_v11  ;;  %5365 = vmatprep.subr.bf16.mxu1 %v5969_v15  ;;  %v6013_v11 = vld [vmem:[%s7883_s1 + $0x3c8] ss:$12 sps:$4 sm:$0xff]  }
 0x101   : > { %2698 = vmatprep.subr.bf16.mxu0 %v5968_v13  ;;  %v6014_v13 = vld [vmem:[%s7883_s1 + $0x9c0] ss:$12 sps:$4 sm:$0xff]   ;;  %v6017_v15 = vld [vmem:[%s7883_s1 + $0x308] ss:$12 sps:$4 sm:$0xff]  }
 0x103   : > { %5366 = vmatpush3.bf16.msra.mxu1 %v5970_v19  ;;  %v6021_v19 = vld [vmem:[%s7883_s1 + $0x9dc] ss:$12 sps:$4 sm:$0xff]  }
 0x104   : > { %2699 = vmatpush1.bf16.msra.mxu0 %v5966_v45  ;;  %5379 = vmatprep.subr.bf16.mxu1 %v5973_v24  ;;  %v6018_v45 = vld [vmem:[%s7883_s1 + $0x3e0] ss:$12 sps:$4 sm:$0xff]   ;;  %v6019_v24 = vld [vmem:[%s7883_s1 + $0x9d8] ss:$12 sps:$4 sm:$0xff]  }
 0x105   : > { %3980 = vmatprep.subr.bf16.mxu0 %v5976_v61  ;;  %v6022_v61 = vld [vmem:[%s7883_s1 + $0x320] ss:$12 sps:$4 sm:$0xff]  }
 0x106   : > { %2754 = vmatmul.mubr.bf16.vlgmr.msra.gmra.mrb[32].mxu1 %v6721_v42  ;;  %v5110_v42 = vcombine.high %v7205_v34, %v7217_v36 }
 0x107   : > { %2701 = vmatmul.mubr.bf16.vlgmr.msra.gmra.mrb[0].mxu0 %v7185_v27  ;;  %5380 = vmatpush3.bf16.msra.mxu1 %v5977_v31  ;;  %v6028_v31 = vld [vmem:[%s7883_s1 + $0x410] ss:$12 sps:$4 sm:$0xff]  }
 0x108   : > { %3981 = vmatpush1.bf16.msra.mxu0 %v5974_v25  ;;  %5381 = vmatprep.subr.bf16.mxu1 %v5978_v32  ;;  %v3116_v40 = vshrl.u32 %v5110_v42, 16  ;;  %v3119_v54 = vshll.u32 %v5110_v42, 16  ;;  %v6023_v25 = vld [vmem:[%s7883_s1 + $0x3f8] ss:$12 sps:$4 sm:$0xff]   ;;  %v6029_v32 = vld [vmem:[%s7883_s1 + $0xa08] ss:$12 sps:$4 sm:$0xff]   ;;  %v5109_v42 = vcombine.low %v7205_v34, %v7217_v36 }
 0x109   : > { %3982 = vmatprep.subr.bf16.mxu0 %v5981_v33  ;;  %2761 = vmatprep.mubr.bf16.mxu1 %v6794_v8  ;;  %v5988_v8 = vld [vmem:[%s7883_s1 + $0x290] ss:$12 sps:$4 sm:$0xff]   ;;  %v6042_v34 = vld [vmem:[%s7883_s1 + $0x380] ss:$12 sps:$4 sm:$0xff]  }
 0x10a   : > { %2710 = vmatprep.mubr.bf16.mxu0 %v7200_v29  ;;  %v3118_v46 = vrot.slane %v3116_v40, 2  ;;  %v3121_v47 = vrot.slane %v3119_v54, 3  ;;  %v6032_v33 = vld [vmem:[%s7883_s1 + $0x350] ss:$12 sps:$4 sm:$0xff]   ;;  %v5115_v40 = vcombine.low %v6212_v38, %v7208_v63  ;;  %v6039_v54 = vld [vmem:[%s7883_s1 + $0xa38] ss:$12 sps:$4 sm:$0xff]  }
 0x10b   : > { %5382 = vmatpush3.bf16.msra.mxu1 %v5982_v35  ;;  %v6034_v35 = vld [vmem:[%s7883_s1 + $0xa20] ss:$12 sps:$4 sm:$0xff]   ;;  %v3099_v36 = vshrl.u32 %v5109_v42, 16 }
 0x10c   : > { %3983 = vmatpush1.bf16.msra.mxu0 %v5979_v28  ;;  %5383 = vmatprep.subr.bf16.mxu1 %v5983_v22  ;;  %v3122_v50 = vor.u32 %v3121_v47, %v3118_v46  ;;  %v6033_v28 = vld [vmem:[%s7883_s1 + $0x428] ss:$12 sps:$4 sm:$0xff]   ;;  %v3107_v44 = vshrl.u32 %v5115_v40, 16  ;;  %v3110_v63 = vshll.u32 %v5115_v40, 16  ;;  %v6049_v46 = vld [vmem:[%s7883_s1 + $0x398] ss:$12 sps:$4 sm:$0xff]  }
 0x10d   : > { %3984 = vmatprep.subr.bf16.mxu0 %v5986_v37  ;;  %v6037_v22 = vld [vmem:[%s7883_s1 + $0x368] ss:$12 sps:$4 sm:$0xff]   ;;  %v6038_v37 = vld [vmem:[%s7883_s1 + $0x440] ss:$12 sps:$4 sm:$0xff]   ;;  %v6050_v47 = vld [vmem:[%s7883_s1 + $0x470] ss:$12 sps:$4 sm:$0xff]  }
 0x10e   : > { %2762 = vmatmul.mubr.bf16.gmra.mrb[36].mxu1 %v6797_v9  ;;  %v5993_v9 = vld [vmem:[%s7883_s1 + $0x2a8] ss:$12 sps:$4 sm:$0xff]   ;;  %v7260_v55 = vsel %vm3097_vm1, %v3122_v50, %v7247_v52  ;;  %v3109_v49 = vrot.slane %v3107_v44, 2  ;;  %v3112_v50 = vrot.slane %v3110_v63, 3  ;;  %v6088_v38 = vld [vmem:[%s7883_s1 + $0x980] ss:$12 sps:$4 sm:$0xff]  }
 0x10f   : > { %2711 = vmatmul.mubr.bf16.gmra.mrb[4].mxu0 %v7231_v43  ;;  %5384 = vmatpush3.bf16.msra.mxu1 %v5987_v3  ;;  %v6047_v3 = vld [vmem:[%s7883_s1 + $0xa54] ss:$12 sps:$4 sm:$0xff]   ;;  %v6096_v44 = vld [vmem:[%s7883_s1 + $0xb2c] ss:$12 sps:$4 sm:$0xff]  }
 0x110   : > { %3985 = vmatpush1.bf16.msra.mxu0 %v5984_v41  ;;  %5385 = vmatprep.subr.bf16.mxu1 %v5988_v8  ;;  %v3102_v41 = vshll.u32 %v5109_v42, 16  ;;  %v6045_v8 = vld [vmem:[%s7883_s1 + $0xa50] ss:$12 sps:$4 sm:$0xff]   ;;  %v6091_v40 = vld [vmem:[%s7883_s1 + $0xb14] ss:$12 sps:$4 sm:$0xff]  }
 0x111   : > { %3986 = vmatprep.subr.bf16.mxu0 %v5991_v6  ;;  %2802 = vmatprep.mubr.bf16.mxu1 %v6833_v21  ;;  %v5999_v21 = vld [vmem:[%s7883_s1 + $0x978] ss:$12 sps:$4 sm:$0xff]   ;;  %v3101_v6 = vrot.slane %v3099_v36, 2  ;;  %v6086_v42 = vld [vmem:[%s7883_s1 + $0xafc] ss:$12 sps:$4 sm:$0xff]  }
 0x112   : > { %4012 = vmatprep.mubr.bf16.mxu0 %v7260_v55  ;;  %v3104_v48 = vrot.slane %v3102_v41, 3  ;;  %v6093_v36 = vld [vmem:[%s7883_s1 + $0x998] ss:$12 sps:$4 sm:$0xff]  }
 0x113   : > { %5386 = vmatpush3.bf16.msra.mxu1 %v5992_v23  ;;  %v6051_v23 = vld [vmem:[%s7883_s1 + $0xa68] ss:$12 sps:$4 sm:$0xff]  }
 0x114   : > { %3987 = vmatpush1.bf16.msra.mxu0 %v5989_v51  ;;  %5387 = vmatprep.subr.bf16.mxu1 %v5993_v9  ;;  %v6053_v51 = vld [vmem:[%s7883_s1 + $0xa6c] ss:$12 sps:$4 sm:$0xff]   ;;  %v6054_v9 = vld [vmem:[%s7883_s1 + $0x3b0] ss:$12 sps:$4 sm:$0xff]  }
 0x115   : > { %3988 = vmatprep.subr.bf16.mxu0 %v5996_v53  ;;  %v7411_v53 = vld [vmem:[%s6401_s7 + $0x8] sm:$0xcc] }
 0x117   : > { %5388 = vmatpush3.bf16.msra.mxu1 %v5997_v56  ;;  %v6061_v56 = vld [vmem:[%s7883_s1 + $0xa84] ss:$12 sps:$4 sm:$0xff]  }
 0x118   : > { %3989 = vmatpush1.bf16.msra.mxu0 %v5994_v62  ;;  %5389 = vmatprep.subr.bf16.mxu1 %v5998_v57  ;;  %v7414_v62 = vld [vmem:[%s6401_s7 + $0x50] sm:$0x77]  ;;  %v3105_v57 = vor.u32 %v3104_v48, %v3101_v6 }
 0x119   : > { %3990 = vmatprep.subr.bf16.mxu0 %v6001_v59  ;;  %v7419_v59 = vor.u32 %v3112_v50, %v3109_v49  ;;  %v6102_v6 = vld [vmem:[%s7883_s1 + $0xb48] ss:$12 sps:$4 sm:$0xff]   ;;  %v6099_v50 = vld [vmem:[%s7883_s1 + $0xb40] ss:$12 sps:$4 sm:$0xff]  }
 0x11b   : > { %5390 = vmatpush3.bf16.msra.mxu1 %v6002_v60 }
 0x11c   : > { %3991 = vmatpush1.bf16.msra.mxu0 %v5999_v21  ;;  %5391 = vmatprep.subr.bf16.mxu1 %v6003_v18  ;;  %v7422_v21 = vld [vmem:[%s6401_s7 + $0x20] sm:$0xff]  ;;  %v6062_v18 = vld [vmem:[%s7883_s1 + $0x9c8] ss:$12 sps:$4 sm:$0xff]  }
 0x11d   : > { %3992 = vmatprep.subr.bf16.mxu0 %v6006_v0  ;;  %v5112_v60 = vcombine.high %v7411_v53, %v7422_v21  ;;  %v5118_v0 = vcombine.high %v6982_v14, %v7414_v62  ;;  %v6066_v14 = vld [vmem:[%s7883_s1 + $0xa9c] ss:$12 sps:$4 sm:$0xff]  }
 0x11f   : > { %5392 = vmatpush3.bf16.msra.mxu1 %v6007_v4  ;;  %v3153_v4 = vshll.u32 %v5112_v60, 16 }
 0x120   : > { %3993 = vmatpush1.bf16.msra.mxu0 %v6004_v2  ;;  %5393 = vmatprep.subr.bf16.mxu1 %v6008_v5  ;;  %v3150_v2 = vshrl.u32 %v5112_v60, 16  ;;  %v3158_v5 = vshrl.u32 %v5118_v0, 16  ;;  %v6104_v60 = vld [vmem:[%s7883_s1 + $0xb58] ss:$12 sps:$4 sm:$0xff]  }
 0x121   : > { %3994 = vmatprep.subr.bf16.mxu0 %v6011_v7  ;;  %v3161_v7 = vshll.u32 %v5118_v0, 16  ;;  %v6111_v0 = vld [vmem:[%s7883_s1 + $0xb74] ss:$12 sps:$4 sm:$0xff]  }
 0x123   : > { %5394 = vmatpush3.bf16.msra.mxu1 %v6012_v10  ;;  %v7436_v10 = vsel %vm3097_vm1, %v3105_v57, %v7419_v59 }
 0x124   : > { %3995 = vmatpush1.bf16.msra.mxu0 %v6009_v58  ;;  %5407 = vmatprep.subr.bf16.mxu1 %v6013_v11  ;;  %v6059_v58 = vld [vmem:[%s7883_s1 + $0xa80] ss:$12 sps:$4 sm:$0xff]   ;;  %v6063_v11 = vld [vmem:[%s7883_s1 + $0x908] ss:$12 sps:$4 sm:$0xff]  }
 0x125   : > { %3996 = vmatprep.subr.bf16.mxu0 %v6016_v12  ;;  %v6067_v12 = vld [vmem:[%s7883_s1 + $0x9e0] ss:$12 sps:$4 sm:$0xff]  }
 0x126   : > { %2803 = vmatmul.mubr.bf16.vlgmr.msra.gmra.mrb[40].mxu1 %v6953_v1  ;;  %v6024_v1 = vld [vmem:[%s7883_s1 + $0x9f0] ss:$12 sps:$4 sm:$0xff]  }
 0x127   : > { %5408 = vmatpush3.bf16.msra.mxu1 %v6017_v15  ;;  %2810 = vmatprep.mubr.bf16.mxu1 %v6990_v17  ;;  %v6031_v17 = vld [vmem:[%s7883_s1 + $0xa0c] ss:$12 sps:$4 sm:$0xff]  }
 0x128   : > { %3997 = vmatpush1.bf16.msra.mxu0 %v6014_v13  ;;  %5409 = vmatprep.subr.bf16.mxu1 %v6018_v45  ;;  %v6064_v13 = vld [vmem:[%s7883_s1 + $0xa98] ss:$12 sps:$4 sm:$0xff]   ;;  %v6068_v15 = vld [vmem:[%s7883_s1 + $0x920] ss:$12 sps:$4 sm:$0xff]   ;;  %v3152_v45 = vrot.slane %v3150_v2, 2 }
 0x129   : > { %3998 = vmatprep.subr.bf16.mxu0 %v6021_v19  ;;  %v3155_v19 = vrot.slane %v3153_v4, 3  ;;  %v6112_v2 = vld [vmem:[%s7883_s1 + $0xb78] ss:$12 sps:$4 sm:$0xff]   ;;  %v6109_v4 = vld [vmem:[%s7883_s1 + $0xb70] ss:$12 sps:$4 sm:$0xff]  }
 0x12b   : > { %5410 = vmatpush3.bf16.msra.mxu1 %v6022_v61  ;;  %v3163_v61 = vrot.slane %v3161_v7, 3  ;;  %v6116_v7 = vld [vmem:[%s7883_s1 + $0xb8c] ss:$12 sps:$4 sm:$0xff]  }
 0x12c   : > { %3999 = vmatpush1.bf16.msra.mxu0 %v6019_v24  ;;  %5411 = vmatprep.subr.bf16.mxu1 %v6023_v25  ;;  %v3160_v24 = vrot.slane %v3158_v5, 2  ;;  %v6071_v25 = vld [vmem:[%s7883_s1 + $0xab4] ss:$12 sps:$4 sm:$0xff]   ;;  %v6113_v5 = vld [vmem:[%s7883_s1 + $0xab8] ss:$12 sps:$4 sm:$0xff]  }
 0x12d   : > { %4000 = vmatprep.subr.bf16.mxu0 %v6026_v26  ;;  %v6072_v26 = vld [vmem:[%s7883_s1 + $0x9f8] ss:$12 sps:$4 sm:$0xff]  }
 0x12e   : > { %2811 = vmatmul.mubr.bf16.gmra.mrb[44].mxu1 %v6996_v20  ;;  %v6036_v20 = vld [vmem:[%s7883_s1 + $0xa24] ss:$12 sps:$4 sm:$0xff]  }
 0x12f   : > { %5412 = vmatpush3.bf16.msra.mxu1 %v6027_v30  ;;  %2851 = vmatprep.mubr.bf16.mxu1 %v7027_v39  ;;  %v6041_v39 = vld [vmem:[%s7883_s1 + $0xa3c] ss:$12 sps:$4 sm:$0xff]   ;;  %v7466_v30 = vor.u32 %v3163_v61, %v3160_v24  ;;  %v6124_v61 = vld [vmem:[%s7883_s1 + $0xbb8] ss:$12 sps:$4 sm:$0xff]  }
 0x130   : > { %4001 = vmatpush1.bf16.msra.mxu0 %v6024_v1  ;;  %5413 = vmatprep.subr.bf16.mxu1 %v6028_v31  ;;  %v3156_v1 = vor.u32 %v3155_v19, %v3152_v45  ;;  %v6073_v31 = vld [vmem:[%s7883_s1 + $0x938] ss:$12 sps:$4 sm:$0xff]   ;;  %v6123_v45 = vld [vmem:[%s7883_s1 + $0xae8] ss:$12 sps:$4 sm:$0xff]  }
 0x131   : > { %4002 = vmatprep.subr.bf16.mxu0 %v6031_v17  ;;  %v6077_v17 = vld [vmem:[%s7883_s1 + $0xa10] ss:$12 sps:$4 sm:$0xff]  }
 0x132   : > { %v6126_v19 = vld [vmem:[%s7883_s1 + $0xbbc] ss:$12 sps:$4 sm:$0xff]  }
 0x133   : > { %5414 = vmatpush3.bf16.msra.mxu1 %v6032_v33  ;;  %v6078_v33 = vld [vmem:[%s7883_s1 + $0x950] ss:$12 sps:$4 sm:$0xff]  }
 0x134   : > { %4003 = vmatpush1.bf16.msra.mxu0 %v6029_v32  ;;  %5415 = vmatprep.subr.bf16.mxu1 %v6033_v28  ;;  %v6074_v32 = vld [vmem:[%s7883_s1 + $0xac8] ss:$12 sps:$4 sm:$0xff]   ;;  %v7487_v28 = vsel %vm3097_vm1, %v3156_v1, %v7466_v30  ;;  %v6132_v1 = vld [vmem:[%s7883_s1 + $0xbd8] ss:$12 sps:$4 sm:$0xff]  }
 0x135   : > { %4004 = vmatprep.subr.bf16.mxu0 %v6036_v20  ;;  %v6081_v20 = vld [vmem:[%s7883_s1 + $0xae4] ss:$12 sps:$4 sm:$0xff]  }
 0x137   : > { %5416 = vmatpush3.bf16.msra.mxu1 %v6037_v22  ;;  %v6083_v22 = vld [vmem:[%s7883_s1 + $0x968] ss:$12 sps:$4 sm:$0xff]  }
 0x138   : > { %4005 = vmatpush1.bf16.msra.mxu0 %v6034_v35  ;;  %5417 = vmatprep.subr.bf16.mxu1 %v6038_v37  ;;  %v6079_v35 = vld [vmem:[%s7883_s1 + $0xae0] ss:$12 sps:$4 sm:$0xff]   ;;  %v6084_v37 = vld [vmem:[%s7883_s1 + $0xaf8] ss:$12 sps:$4 sm:$0xff]  }
 0x139   : > { %4006 = vmatprep.subr.bf16.mxu0 %v6041_v39  ;;  %v6092_v39 = vld [vmem:[%s7883_s1 + $0xa58] ss:$12 sps:$4 sm:$0xff]  }
 0x13b   : > { %5418 = vmatpush3.bf16.msra.mxu1 %v6042_v34  ;;  %v6089_v34 = vld [vmem:[%s7883_s1 + $0xb10] ss:$12 sps:$4 sm:$0xff]  }
 0x13c   : > { %4007 = vmatpush1.bf16.msra.mxu0 %v6039_v54  ;;  %5419 = vmatprep.subr.bf16.mxu1 %v6044_v16  ;;  %v6097_v16 = vld [vmem:[%s7883_s1 + $0xa70] ss:$12 sps:$4 sm:$0xff]  }
 0x13d   : > { %4008 = vmatprep.subr.bf16.mxu0 %v6047_v3 }
 0x13f   : > { %5420 = vmatpush3.bf16.msra.mxu1 %v6049_v46  ;;  %v6098_v46 = vld [vmem:[%s7883_s1 + $0x9b0] ss:$12 sps:$4 sm:$0xff]  }
 0x140   : > { %4009 = vmatpush1.bf16.msra.mxu0 %v6045_v8  ;;  %5421 = vmatprep.subr.bf16.mxu1 %v6050_v47  ;;  %v6094_v8 = vld [vmem:[%s7883_s1 + $0xb28] ss:$12 sps:$4 sm:$0xff]   ;;  %v6101_v47 = vld [vmem:[%s7883_s1 + $0xb44] ss:$12 sps:$4 sm:$0xff]  }
 0x141   : > { %4010 = vmatprep.subr.bf16.mxu0 %v6053_v51  ;;  %v6103_v51 = vld [vmem:[%s7883_s1 + $0xa88] ss:$12 sps:$4 sm:$0xff]  }
 0x143   : > { %5422 = vmatpush3.bf16.msra.mxu1 %v6054_v9  ;;  %v6106_v9 = vld [vmem:[%s7883_s1 + $0xb5c] ss:$12 sps:$4 sm:$0xff]  }
 0x144   : > { %4011 = vmatpush1.bf16.msra.mxu0 %v6051_v23  ;;  %5435 = vmatprep.subr.bf16.mxu1 %v6062_v18  ;;  %v6108_v18 = vld [vmem:[%s7883_s1 + $0xaa0] ss:$12 sps:$4 sm:$0xff]  }
 0x145   : > { %4033 = vmatprep.subr.bf16.mxu0 %v6061_v56  ;;  %v6107_v56 = vld [vmem:[%s7883_s1 + $0xb60] ss:$12 sps:$4 sm:$0xff]  }
 0x146   : > { %2852 = vmatmul.mubr.bf16.vlgmr.msra.gmra.mrb[48].mxu1 %v7185_v27  ;;  %v6069_v27 = vld [vmem:[%s7883_s1 + $0xab0] ss:$12 sps:$4 sm:$0xff]  }
 0x147   : > { %4013 = vmatmul.mubr.bf16.vlgmr.msra.gmra.mrb[0].mxu0 %v7436_v10  ;;  %5436 = vmatpush3.bf16.msra.mxu1 %v6063_v11  ;;  %v6121_v11 = vld [vmem:[%s7883_s1 + $0xba4] ss:$12 sps:$4 sm:$0xff]  }
 0x148   : > { %4034 = vmatpush1.bf16.msra.mxu0 %v6059_v58  ;;  %5437 = vmatprep.subr.bf16.mxu1 %v6067_v12  ;;  %v6114_v58 = vld [vmem:[%s7883_s1 + $0xb88] ss:$12 sps:$4 sm:$0xff]   ;;  %v6214_v12 = vld [vmem:[%s6401_s7 + $0x38] sm:$0xff] }
 0x149   : > { %4035 = vmatprep.subr.bf16.mxu0 %v6066_v14  ;;  %2859 = vmatprep.mubr.bf16.mxu1 %v7200_v29  ;;  %v6076_v29 = vld [vmem:[%s7883_s1 + $0xacc] ss:$12 sps:$4 sm:$0xff]   ;;  %v5111_v14 = vcombine.low %v7411_v53, %v7422_v21 }
 0x14a   : > { %4022 = vmatprep.mubr.bf16.mxu0 %v7247_v52  ;;  %v6127_v53 = vld [vmem:[%s7883_s1 + $0xbc0] ss:$12 sps:$4 sm:$0xff]  }
 0x14b   : > { %5438 = vmatpush3.bf16.msra.mxu1 %v6068_v15  ;;  %v6119_v15 = vld [vmem:[%s7883_s1 + $0xba0] ss:$12 sps:$4 sm:$0xff]   ;;  %v3136_v21 = vshll.u32 %v5111_v14, 16 }
 0x14c   : > { %4036 = vmatpush1.bf16.msra.mxu0 %v6064_v13  ;;  %5439 = vmatprep.subr.bf16.mxu1 %v6072_v26  ;;  %v5117_v13 = vcombine.low %v6214_v12, %v7414_v62  ;;  %v3133_v62 = vshrl.u32 %v5111_v14, 16 }
 0x14d   : > { %4037 = vmatprep.subr.bf16.mxu0 %v6071_v25  ;;  %v6128_v25 = vld [vmem:[%s7883_s1 + $0xb00] ss:$12 sps:$4 sm:$0xff]  }
 0x14e   : > { %2860 = vmatmul.mubr.bf16.gmra.mrb[52].mxu1 %v7231_v43  ;;  %v6082_v43 = vld [vmem:[%s7883_s1 + $0xa28] ss:$12 sps:$4 sm:$0xff]   ;;  %v3141_v24 = vshrl.u32 %v5117_v13, 16  ;;  %v3144_v26 = vshll.u32 %v5117_v13, 16 }
 0x14f   : > { %4023 = vmatmul.mubr.bf16.gmra.mrb[4].mxu0 %v7419_v59  ;;  %5440 = vmatpush3.bf16.msra.mxu1 %v6073_v31  ;;  %v6129_v31 = vld [vmem:[%s7883_s1 + $0xbd0] ss:$12 sps:$4 sm:$0xff]  }
 0x150   : > { %4038 = vmatpush1.bf16.msra.mxu0 %v6069_v27  ;;  %5441 = vmatprep.subr.bf16.mxu1 %v6077_v17  ;;  %v6131_v27 = vld [vmem:[%s7883_s1 + $0xbd4] ss:$12 sps:$4 sm:$0xff]   ;;  %v6133_v17 = vld [vmem:[%s7883_s1 + $0xb18] ss:$12 sps:$4 sm:$0xff]  }
 0x151   : > { %4039 = vmatprep.subr.bf16.mxu0 %v6076_v29  ;;  %4171 = vmatprep.mubr.bf16.mxu1 %v7260_v55  ;;  %v6087_v55 = vld [vmem:[%s7883_s1 + $0xa40] ss:$12 sps:$4 sm:$0xff]  }
 0x152   : > { %4065 = vmatprep.mubr.bf16.mxu0 %v7487_v28 }
 0x153   : > { %5442 = vmatpush3.bf16.msra.mxu1 %v6078_v33  ;;  %v3138_v33 = vrot.slane %v3136_v21, 3  ;;  %v6156_v21 = vld [vmem:[%s7883_s1 + $0xcf8] ss:$12 sps:$4 sm:$0xff]  }
 0x154   : > { %4040 = vmatpush1.bf16.msra.mxu0 %v6074_v32  ;;  %5443 = vmatprep.subr.bf16.mxu1 %v6082_v43  ;;  %v3135_v32 = vrot.slane %v3133_v62, 2  ;;  %v3146_v43 = vrot.slane %v3144_v26, 3  ;;  %v6155_v62 = vld [vmem:[%s7883_s1 + $0xc34] ss:$12 sps:$4 sm:$0xff]   ;;  %v6157_v26 = vld [vmem:[%s7883_s1 + $0xc38] ss:$12 sps:$4 sm:$0xff]  }
 0x155   : > { %4041 = vmatprep.subr.bf16.mxu0 %v6081_v20 }
 0x157   : > { %5444 = vmatpush3.bf16.msra.mxu1 %v6083_v22 }
 0x158   : > { %4042 = vmatpush1.bf16.msra.mxu0 %v6079_v35  ;;  %5445 = vmatprep.subr.bf16.mxu1 %v6087_v55  ;;  %v7653_v55 = vld [vmem:[%s6401_s7 + $0x58] sm:$0x77] }
 0x159   : > { %4043 = vmatprep.subr.bf16.mxu0 %v6086_v42  ;;  %v7521_v54 = vpop.f32.mrb[0].mxu1  ;;  %v7650_v42 = vld [vmem:[%s6401_s7 + $0x10] sm:$0xcc] }
 0x15a   : > { %v7529_v41 = vpop.f32.mrb[1].mxu1 }
 0x15b   : > { %v7534_v63 = vpop.f32.mrb[2].mxu1  ;;  %5446 = vmatpush3.bf16.msra.mxu1 %v6088_v38  ;;  %v6137_v38 = vld [vmem:[%s7883_s1 + $0xbf0] ss:$12 sps:$4 sm:$0xff]  }
 0x15c   : > { %4044 = vmatpush1.bf16.msra.mxu0 %v6084_v37  ;;  %v7539_v3 = vpop.f32.mrb[3].mxu1  ;;  %5447 = vmatprep.subr.bf16.mxu1 %v6092_v39  ;;  %v6136_v37 = vld [vmem:[%s7883_s1 + $0xbec] ss:$12 sps:$4 sm:$0xff]  }
 0x15d   : > { %4045 = vmatprep.subr.bf16.mxu0 %v6091_v40 }
 0x15f   : > { %5448 = vmatpush3.bf16.msra.mxu1 %v6093_v36 }
 0x160   : > { %4046 = vmatpush1.bf16.msra.mxu0 %v6089_v34  ;;  %5449 = vmatprep.subr.bf16.mxu1 %v6097_v16  ;;  %v7664_v34 = vld [vmem:[%s6401_s7 + $0x28] sm:$0xff] }
 0x161   : > { %4047 = vmatprep.subr.bf16.mxu0 %v6096_v44  ;;  %v7553_v48 = vpop.f32.mrb[4].mxu1  ;;  %v5114_v36 = vcombine.high %v7650_v42, %v7664_v34  ;;  %v7669_v44 = vld [vmem:[%s6401_s7 + $0x40] sm:$0xff]  ;;  %s7857_s7 = scalar_lea.vmem %s7885_s3, %s5584_s10 }
 0x162   : > { %v7555_v49 = vpop.f32.mrb[5].mxu1  ;;  %v5120_v16 = vcombine.high %v7669_v44, %v7653_v55 }
 0x163   : > { %5450 = vmatpush3.bf16.msra.mxu1 %v6098_v46  ;;  %v7563_v23 = vpop.f32.mrb[6].mxu1  ;;  %v6138_v46 = vld [vmem:[%s7883_s1 + $0xb30] ss:$12 sps:$4 sm:$0xff]  }
 0x164   : > { %4048 = vmatpush1.bf16.msra.mxu0 %v6094_v8  ;;  %5463 = vmatprep.subr.bf16.mxu1 %v6102_v6  ;;  %v7571_v57 = vpop.f32.mrb[7].mxu1  ;;  %v6134_v8 = vld [vmem:[%s7883_s1 + $0xbe8] ss:$12 sps:$4 sm:$0xff]  }
 0x165   : > { %4049 = vmatprep.subr.bf16.mxu0 %v6101_v47  ;;  %v3139_v47 = vor.u32 %v3138_v33, %v3135_v32  ;;  %v6166_v32 = vld [vmem:[%s7883_s1 + $0xd28] ss:$12 sps:$4 sm:$0xff]   ;;  %v5113_v33 = vcombine.low %v7650_v42, %v7664_v34  ;;  %v6171_v42 = vld [vmem:[%s7883_s1 + $0xd40] ss:$12 sps:$4 sm:$0xff]  }
 0x166   : > { %4172 = vmatmul.mubr.bf16.vlgmr.msra.gmra.mrb[56].mxu1 %v7436_v10  ;;  %v6118_v10 = vld [vmem:[%s7883_s1 + $0xad0] ss:$12 sps:$4 sm:$0xff]  }
 0x167   : > { %5464 = vmatpush3.bf16.msra.mxu1 %v6103_v51  ;;  %4179 = vmatprep.mubr.bf16.mxu1 %v7247_v52  ;;  %v6117_v52 = vld [vmem:[%s7883_s1 + $0xb90] ss:$12 sps:$4 sm:$0xff]   ;;  %v6146_v51 = vld [vmem:[%s7883_s1 + $0xcc8] ss:$12 sps:$4 sm:$0xff]  }
 0x168   : > { %4050 = vmatpush1.bf16.msra.mxu0 %v6099_v50  ;;  %5465 = vmatprep.subr.bf16.mxu1 %v6107_v56  ;;  %v6145_v50 = vld [vmem:[%s7883_s1 + $0xc04] ss:$12 sps:$4 sm:$0xff]  }
 0x169   : > { %4051 = vmatprep.subr.bf16.mxu0 %v6106_v9 }
 0x16b   : > { %5466 = vmatpush3.bf16.msra.mxu1 %v6108_v18  ;;  %v3187_v18 = vshll.u32 %v5114_v36, 16 }
 0x16c   : > { %4052 = vmatpush1.bf16.msra.mxu0 %v6104_v60  ;;  %5467 = vmatprep.subr.bf16.mxu1 %v6112_v2  ;;  %v3184_v60 = vshrl.u32 %v5114_v36, 16  ;;  %v3195_v2 = vshll.u32 %v5120_v16, 16 }
 0x16d   : > { %4053 = vmatprep.subr.bf16.mxu0 %v6111_v0  ;;  %v3192_v0 = vshrl.u32 %v5120_v16, 16  ;;  %v3189_v13 = vrot.slane %v3187_v18, 3  ;;  %v6176_v16 = vld [vmem:[%s7883_s1 + $0xd58] ss:$12 sps:$4 sm:$0xff]  }
 0x16e   : > { %4180 = vmatmul.mubr.bf16.gmra.mrb[60].mxu1 %v7419_v59  ;;  %v6122_v59 = vld [vmem:[%s7883_s1 + $0xba8] ss:$12 sps:$4 sm:$0xff]   ;;  %v3186_v12 = vrot.slane %v3184_v60, 2 }
 0x16f   : > { %5468 = vmatpush3.bf16.msra.mxu1 %v6113_v5  ;;  %4220 = vmatprep.mubr.bf16.mxu1 %v7487_v28  ;;  %v3143_v28 = vrot.slane %v3141_v24, 2 }
 0x170   : > { %4054 = vmatpush1.bf16.msra.mxu0 %v6109_v4  ;;  %5469 = vmatprep.subr.bf16.mxu1 %v6117_v52  ;;  %v6143_v4 = vld [vmem:[%s7883_s1 + $0xc00] ss:$12 sps:$4 sm:$0xff]   ;;  %v3190_v24 = vor.u32 %v3189_v13, %v3186_v12 }
 0x171   : > { %4055 = vmatprep.subr.bf16.mxu0 %v6116_v7  ;;  %v3147_v6 = vor.u32 %v3146_v43, %v3143_v28  ;;  %v6147_v7 = vld [vmem:[%s7883_s1 + $0xc08] ss:$12 sps:$4 sm:$0xff]   ;;  %v6163_v28 = vld [vmem:[%s7883_s1 + $0xc60] ss:$12 sps:$4 sm:$0xff]   ;;  %v5119_v43 = vcombine.low %v7669_v44, %v7653_v55 }
 0x172   : > { %v6172_v55 = vld [vmem:[%s7883_s1 + $0xc80] ss:$12 sps:$4 sm:$0xff]  }
 0x173   : > { %5470 = vmatpush3.bf16.msra.mxu1 %v6118_v10  ;;  %v3148_v5 = vsel %vm3097_vm1, %v3139_v47, %v3147_v6  ;;  %v6150_v10 = vld [vmem:[%s7883_s1 + $0xc1c] ss:$12 sps:$4 sm:$0xff]   ;;  %v3175_v34 = vshrl.u32 %v5119_v43, 16  ;;  %v3178_v36 = vshll.u32 %v5119_v43, 16  ;;  %v6175_v44 = vld [vmem:[%s7883_s1 + $0xc94] ss:$12 sps:$4 sm:$0xff]  }
 0x174   : > { %4056 = vmatpush1.bf16.msra.mxu0 %v6114_v58  ;;  %5471 = vmatprep.subr.bf16.mxu1 %v6122_v59  ;;  %v6173_v47 = vld [vmem:[%s7883_s1 + $0xc90] ss:$12 sps:$4 sm:$0xff]  }
 0x175   : > { %4057 = vmatprep.subr.bf16.mxu0 %v6121_v11  ;;  %v6151_v11 = vld [vmem:[%s7883_s1 + $0xce0] ss:$12 sps:$4 sm:$0xff]   ;;  %v3177_v60 = vrot.slane %v3175_v34, 2  ;;  %v3180_v18 = vrot.slane %v3178_v36, 3  ;;  %v6208_v36 = vld [vmem:[%s7883_s1 + $0xd68] ss:$12 sps:$4 sm:$0xff]  }
 0x177   : > { %5472 = vmatpush3.bf16.msra.mxu1 %v6123_v45  ;;  %v3197_v45 = vrot.slane %v3195_v2, 3  ;;  %v6180_v2 = vld [vmem:[%s7883_s1 + $0xcac] ss:$12 sps:$4 sm:$0xff]   ;;  %v7792_v12 = vor.u32 %v3180_v18, %v3177_v60 }
 0x178   : > { %4058 = vmatpush1.bf16.msra.mxu0 %v6119_v15  ;;  %5473 = vmatprep.subr.bf16.mxu1 %v6127_v53  ;;  %v3194_v15 = vrot.slane %v3192_v0, 2  ;;  %v6152_v53 = vld [vmem:[%s7883_s1 + $0xc20] ss:$12 sps:$4 sm:$0xff]  }
 0x179   : > { %4059 = vmatprep.subr.bf16.mxu0 %v6126_v19  ;;  %v5283_v29 = vpop.f32.mrb[8].mxu1  ;;  %v6148_v19 = vld [vmem:[%s7883_s1 + $0xc18] ss:$12 sps:$4 sm:$0xff]  }
 0x17a   : > { %v5284_v20 = vpop.f32.mrb[9].mxu1 }
 0x17b   : > { %5474 = vmatpush3.bf16.msra.mxu1 %v6128_v25  ;;  %v7647_v35 = vadd.f32 %v5284_v20, %v5283_v29  ;;  %v5286_v22 = vpop.f32.mrb[10].mxu1  ;;  %v6153_v25 = vld [vmem:[%s7883_s1 + $0xc30] ss:$12 sps:$4 sm:$0xff]   ;;  %v6167_v20 = vld [vmem:[%s7883_s1 + $0xc68] ss:$12 sps:$4 sm:$0xff]  }
 0x17c   : > { %4060 = vmatpush1.bf16.msra.mxu0 %v6124_v61  ;;  %5475 = vmatprep.subr.bf16.mxu1 %v6132_v1  ;;  %v5287_v40 = vpop.f32.mrb[11].mxu1  ;;  %v7716_v61 = vor.u32 %v3197_v45, %v3194_v15  ;;  %v6162_v29 = vld [vmem:[%s7883_s1 + $0xc50] ss:$12 sps:$4 sm:$0xff]   ;;  %v6187_v15 = vld [vmem:[%s7883_s1 + $0xcc0] ss:$12 sps:$4 sm:$0xff]  }
 0x17d   : > { %4061 = vmatprep.subr.bf16.mxu0 %v6131_v27  ;;  %v7661_v39 = vadd.f32 %v5287_v40, %v5286_v22  ;;  %v6160_v27 = vld [vmem:[%s7883_s1 + $0xc4c] ss:$12 sps:$4 sm:$0xff]   ;;  %v6170_v22 = vld [vmem:[%s7883_s1 + $0xc7c] ss:$12 sps:$4 sm:$0xff]   ;;  %v3170_v40 = vshll.u32 %v5113_v33, 16 }
 0x17e   : > { %v3199_v1 = vsel %vm3097_vm1, %v3190_v24, %v7716_v61 }
 0x17f   : > { %5476 = vmatpush3.bf16.msra.mxu1 %v6133_v17  ;;  %v6165_v17 = vld [vmem:[%s7883_s1 + $0xc64] ss:$12 sps:$4 sm:$0xff]  }
 0x180   : > { %4062 = vmatpush1.bf16.msra.mxu0 %v6129_v31  ;;  %5477 = vmatprep.subr.bf16.mxu1 %v6137_v38  ;;  %v6158_v31 = vld [vmem:[%s7883_s1 + $0xc48] ss:$12 sps:$4 sm:$0xff]   ;;  %v3167_v38 = vshrl.u32 %v5113_v33, 16 }
 0x181   : > { %4063 = vmatprep.subr.bf16.mxu0 %v6136_v37  ;;  %v5289_v9 = vpop.f32.mrb[12].mxu1  ;;  %v6168_v37 = vld [vmem:[%s7883_s1 + $0xc78] ss:$12 sps:$4 sm:$0xff]   ;;  %v6207_v33 = vld [vmem:[%s7883_s1 + $0xd54] ss:$12 sps:$4 sm:$0xff]  }
 0x182   : > { %v5290_v56 = vpop.f32.mrb[13].mxu1 }
 0x183   : > { %5478 = vmatpush3.bf16.msra.mxu1 %v6138_v46  ;;  %v7692_v52 = vadd.f32 %v5290_v56, %v5289_v9  ;;  %v5292_v58 = vpop.f32.mrb[14].mxu1  ;;  %v6177_v9 = vld [vmem:[%s7883_s1 + $0xc98] ss:$12 sps:$4 sm:$0xff]   ;;  %v3172_v56 = vrot.slane %v3170_v40, 3 }
 0x184   : > { %4064 = vmatpush1.bf16.msra.mxu0 %v6134_v8  ;;  %5491 = vmatprep.subr.bf16.mxu1 %v6146_v51  ;;  %v5293_v59 = vpop.f32.mrb[15].mxu1 }
 0x185   : > { %4086 = vmatprep.subr.bf16.mxu0 %v6145_v50  ;;  %v7700_v14 = vadd.f32 %v5293_v59, %v5292_v58 }
 0x186   : > { %4221 = vmatmul.mubr.bf16.vlgmr.msra.gmra.mrb[64].mxu1 %v3148_v5 }
 0x187   : > { %4066 = vmatmul.mubr.bf16.vlgmr.msra.gmra.mrb[0].mxu0 %v3148_v5  ;;  %5492 = vmatpush3.bf16.msra.mxu1 %v6147_v7 }
 0x188   : > { %4087 = vmatpush1.bf16.msra.mxu0 %v6143_v4  ;;  %5493 = vmatprep.subr.bf16.mxu1 %v6151_v11  ;;  %v6181_v4 = vld [vmem:[%s7883_s1 + $0xd70] ss:$12 sps:$4 sm:$0xff]  }
 0x189   : > { %4088 = vmatprep.subr.bf16.mxu0 %v6150_v10  ;;  %4228 = vmatprep.mubr.bf16.mxu1 %v7466_v30  ;;  %v6178_v10 = vld [vmem:[%s7883_s1 + $0xca8] ss:$12 sps:$4 sm:$0xff]   ;;  %v6182_v11 = vld [vmem:[%s7883_s1 + $0xcb0] ss:$12 sps:$4 sm:$0xff]  }
 0x18a   : > { %4075 = vmatprep.mubr.bf16.mxu0 %v7466_v30  ;;  %v6161_v30 = vld [vmem:[%s7883_s1 + $0xd10] ss:$12 sps:$4 sm:$0xff]  }
 0x18b   : > { %5494 = vmatpush3.bf16.msra.mxu1 %v6152_v53 }
 0x18c   : > { %4089 = vmatpush1.bf16.msra.mxu0 %v6148_v19  ;;  %5495 = vmatprep.subr.bf16.mxu1 %v6156_v21 }
 0x18d   : > { %4090 = vmatprep.subr.bf16.mxu0 %v6155_v62  ;;  %v6192_v62 = vld [vmem:[%s7883_s1 + $0xcdc] ss:$12 sps:$4 sm:$0xff]  }
 0x18e   : > { %4229 = vmatmul.mubr.bf16.gmra.mrb[68].mxu1 %v3147_v6 }
 0x18f   : > { %4076 = vmatmul.mubr.bf16.gmra.mrb[4].mxu0 %v3147_v6  ;;  %5496 = vmatpush3.bf16.msra.mxu1 %v6157_v26  ;;  %v3169_v6 = vrot.slane %v3167_v38, 2  ;;  %v6190_v26 = vld [vmem:[%s7883_s1 + $0xcd8] ss:$12 sps:$4 sm:$0xff]  }
 0x190   : > { %4091 = vmatpush1.bf16.msra.mxu0 %v6153_v25  ;;  %5497 = vmatprep.subr.bf16.mxu1 %v6161_v30  ;;  %v6195_v30 = vld [vmem:[%s7883_s1 + $0xcf4] ss:$12 sps:$4 sm:$0xff]   ;;  %v6210_v38 = vld [vmem:[%s7883_s1 + $0xd6c] ss:$12 sps:$4 sm:$0xff]  }
 0x191   : > { %4092 = vmatprep.subr.bf16.mxu0 %v6160_v27  ;;  %4269 = vmatprep.mubr.bf16.mxu1 %v3199_v1  ;;  %v3173_v59 = vor.u32 %v3172_v56, %v3169_v6 }
 0x192   : > { %4118 = vmatprep.mubr.bf16.mxu0 %v3199_v1  ;;  %v6198_v1 = vld [vmem:[%s7883_s1 + $0xd0c] ss:$12 sps:$4 sm:$0xff]  }
 0x193   : > { %5498 = vmatpush3.bf16.msra.mxu1 %v6162_v29  ;;  %v3182_v45 = vsel %vm3097_vm1, %v3173_v59, %v7792_v12  ;;  %v6199_v29 = vld [vmem:[%s7883_s1 + $0xd20] ss:$12 sps:$4 sm:$0xff]  }
 0x194   : > { %4093 = vmatpush1.bf16.msra.mxu0 %v6158_v31  ;;  %5499 = vmatprep.subr.bf16.mxu1 %v6166_v32  ;;  %v6201_v31 = vld [vmem:[%s7883_s1 + $0xd24] ss:$12 sps:$4 sm:$0xff]  }
 0x195   : > { %4094 = vmatprep.subr.bf16.mxu0 %v6165_v17  ;;  %v6204_v17 = vld [vmem:[%s7883_s1 + $0xd3c] ss:$12 sps:$4 sm:$0xff]   ;;  %v6202_v32 = vld [vmem:[%s7883_s1 + $0xd38] ss:$12 sps:$4 sm:$0xff]  }
 0x197   : > { %5500 = vmatpush3.bf16.msra.mxu1 %v6167_v20 }
 0x198   : > { %4095 = vmatpush1.bf16.msra.mxu0 %v6163_v28  ;;  %5501 = vmatprep.subr.bf16.mxu1 %v6171_v42  ;;  %v6205_v42 = vld [vmem:[%s7883_s1 + $0xd50] ss:$12 sps:$4 sm:$0xff]  }
 0x199   : > { %4096 = vmatprep.subr.bf16.mxu0 %v6170_v22  ;;  %v5311_v8 = vpop.f32.mrb[16].mxu1 }
 0x19a   : > { %v5312_v46 = vpop.f32.mrb[17].mxu1 }
 0x19b   : > { %v5313_v50 = vadd.f32 %v5312_v46, %v5311_v8  ;;  %v5314_v51 = vpop.f32.mrb[18].mxu1  ;;  %5502 = vmatpush3.bf16.msra.mxu1 %v6172_v55 }
 0x19c   : > { %4097 = vmatpush1.bf16.msra.mxu0 %v6168_v37  ;;  %v5315_v0 = vpop.f32.mrb[19].mxu1  ;;  %5503 = vmatprep.subr.bf16.mxu1 %v6176_v16 }
 0x19d   : > { %4098 = vmatprep.subr.bf16.mxu0 %v6175_v44  ;;  %v1671_v5 = vadd.f32 %v5313_v50, %v7647_v35  ;;  %v5316_v7 = vadd.f32 %v5315_v0, %v5314_v51  ;;  %v6189_v35 = vld [vmem:[%s7883_s1 + $0xcc4] ss:$12 sps:$4 sm:$0xff]  }
 0x19f   : > { %v1674_v58 = vadd.f32 %v5316_v7, %v7661_v39  ;;  %5504 = vmatpush3.bf16.msra.mxu1 %v6177_v9 }
 0x1a0   : > { %4099 = vmatpush1.bf16.msra.mxu0 %v6173_v47  ;;  %5505 = vmatprep.subr.bf16.mxu1 %v6181_v4 }
 0x1a1   : > { %4100 = vmatprep.subr.bf16.mxu0 %v6180_v2  ;;  %v5317_v39 = vpop.f32.mrb[20].mxu1 }
 0x1a2   : > { %v5318_v13 = vpop.f32.mrb[21].mxu1 }
 0x1a3   : > { %5506 = vmatpush3.bf16.msra.mxu1 %v6182_v11  ;;  %v5319_v19 = vadd.f32 %v5318_v13, %v5317_v39  ;;  %v5320_v53 = vpop.f32.mrb[22].mxu1 }
 0x1a4   : > { %4101 = vmatpush1.bf16.msra.mxu0 %v6178_v10  ;;  %v5321_v21 = vpop.f32.mrb[23].mxu1 }
 0x1a5   : > { %4102 = vmatprep.subr.bf16.mxu0 %v6189_v35  ;;  %v1679_v24 = vadd.f32 %v5319_v19, %v7692_v52  ;;  %v5322_v25 = vadd.f32 %v5321_v21, %v5320_v53  ;;  %v6193_v52 = vld [vmem:[%s7883_s1 + $0xcf0] ss:$12 sps:$4 sm:$0xff]  }
 0x1a6   : > { %4270 = vmatmul.mubr.bf16.vlgmr.msra.gmra.mrb[72].mxu1 %v3182_v45 }
 0x1a7   : > { %4277 = vmatprep.mubr.bf16.mxu1 %v7716_v61  ;;  %v1682_v27 = vadd.f32 %v5322_v25, %v7700_v14  ;;  %v6196_v14 = vld [vmem:[%s7883_s1 + $0xd08] ss:$12 sps:$4 sm:$0xff]  }
 0x1a8   : > { %4103 = vmatpush1.bf16.msra.mxu0 %v6187_v15 }
 0x1a9   : > { %4104 = vmatprep.subr.bf16.mxu0 %v6192_v62 }
 0x1ac   : > { %4105 = vmatpush1.bf16.msra.mxu0 %v6190_v26 }
 0x1ad   : > { %4106 = vmatprep.subr.bf16.mxu0 %v6195_v30 }
 0x1ae   : > { %4278 = vmatmul.mubr.bf16.gmra.mrb[76].mxu1 %v7792_v12 }
 0x1b0   : > { %4107 = vmatpush1.bf16.msra.mxu0 %v6193_v52 }
 0x1b1   : > { %4108 = vmatprep.subr.bf16.mxu0 %v6198_v1 }
 0x1b4   : > { %4109 = vmatpush1.bf16.msra.mxu0 %v6196_v14 }
 0x1b5   : > { %4110 = vmatprep.subr.bf16.mxu0 %v6201_v31 }
 0x1b8   : > { %4111 = vmatpush1.bf16.msra.mxu0 %v6199_v29 }
 0x1b9   : > { %4112 = vmatprep.subr.bf16.mxu0 %v6204_v17  ;;  %v5339_v28 = vpop.f32.mrb[24].mxu1 }
 0x1ba   : > { %v5340_v20 = vpop.f32.mrb[25].mxu1 }
 0x1bb   : > { %v5341_v43 = vadd.f32 %v5340_v20, %v5339_v28  ;;  %v5342_v22 = vpop.f32.mrb[26].mxu1 }
 0x1bc   : > { %4113 = vmatpush1.bf16.msra.mxu0 %v6202_v32  ;;  %v5343_v37 = vpop.f32.mrb[27].mxu1 }
 0x1bd   : > { %4114 = vmatprep.subr.bf16.mxu0 %v6207_v33  ;;  %v1720_v55 = vadd.f32 %v5341_v43, %v1671_v5  ;;  %v5344_v40 = vadd.f32 %v5343_v37, %v5342_v22 }
 0x1bf   : > { %v1723_v34 = vadd.f32 %v5344_v40, %v1674_v58 }
 0x1c0   : > { %4115 = vmatpush1.bf16.msra.mxu0 %v6205_v42 }
 0x1c1   : > { %4116 = vmatprep.subr.bf16.mxu0 %v6210_v38  ;;  %v5345_v44 = vpop.f32.mrb[28].mxu1 }
 0x1c2   : > { %v5346_v16 = vpop.f32.mrb[29].mxu1 }
 0x1c3   : > { %v5347_v8 = vadd.f32 %v5346_v16, %v5345_v44  ;;  %v5348_v46 = vpop.f32.mrb[30].mxu1 }
 0x1c4   : > { %4117 = vmatpush1.bf16.msra.mxu0 %v6208_v36  ;;  %v5349_v47 = vpop.f32.mrb[31].mxu1 }
 0x1c5   : > { %v1728_v6 = vadd.f32 %v5347_v8, %v1679_v24  ;;  %v5350_v50 = vadd.f32 %v5349_v47, %v5348_v46 }
 0x1c7   : > { %4119 = vmatmul.mubr.bf16.vlgmr.msra.gmra.mrb[0].mxu0 %v3182_v45  ;;  %v1731_v51 = vadd.f32 %v5350_v50, %v1682_v27 }
 0x1c8   : > { %4128 = vmatprep.mubr.bf16.mxu0 %v7716_v61 }
 0x1cf   : > { %4129 = vmatmul.mubr.bf16.gmra.mrb[4].mxu0 %v7792_v12 }
 0x1d9   : > { %v5367_v9 = vpop.f32.mrb[32].mxu1 }
 0x1da   : > { %v5368_v56 = vpop.f32.mrb[33].mxu1 }
 0x1db   : > { %v5369_v60 = vadd.f32 %v5368_v56, %v5367_v9  ;;  %v5370_v18 = vpop.f32.mrb[34].mxu1 }
 0x1dc   : > { %v5371_v0 = vpop.f32.mrb[35].mxu1 }
 0x1dd   : > { %v2756_v2 = vadd.f32 %v5369_v60, %v1720_v55  ;;  %v5372_v4 = vadd.f32 %v5371_v0, %v5370_v18 }
 0x1df   : > { %v2759_v5 = vadd.f32 %v5372_v4, %v1723_v34 }
 0x1e1   : > { %v5373_v7 = vpop.f32.mrb[36].mxu1 }
 0x1e2   : > { %v5374_v58 = vpop.f32.mrb[37].mxu1 }
 0x1e3   : > { %v5375_v10 = vadd.f32 %v5374_v58, %v5373_v7  ;;  %v5376_v11 = vpop.f32.mrb[38].mxu1 }
 0x1e4   : > { %v5377_v59 = vpop.f32.mrb[39].mxu1 }
 0x1e5   : > { %v2764_v35 = vadd.f32 %v5375_v10, %v1728_v6  ;;  %v5378_v39 = vadd.f32 %v5377_v59, %v5376_v11 }
 0x1e7   : > { %v2767_v13 = vadd.f32 %v5378_v39, %v1731_v51 }
 0x1f9   : > { %v5395_v15 = vpop.f32.mrb[40].mxu1 }
 0x1fa   : > { %v5396_v61 = vpop.f32.mrb[41].mxu1 }
 0x1fb   : > { %v5397_v45 = vadd.f32 %v5396_v61, %v5395_v15  ;;  %v5398_v12 = vpop.f32.mrb[42].mxu1 }
 0x1fc   : > { %v5399_v19 = vpop.f32.mrb[43].mxu1 }
 0x1fd   : > { %v2805_v53 = vadd.f32 %v5397_v45, %v2756_v2  ;;  %v5400_v62 = vadd.f32 %v5399_v19, %v5398_v12  ;;  %v4300_v19 = vlaneseq }
 0x1ff   : > { %v2808_v21 = vadd.f32 %v5400_v62, %v2759_v5 }
 0x201   : > { %v5401_v24 = vpop.f32.mrb[44].mxu1 }
 0x202   : > { %v5402_v25 = vpop.f32.mrb[45].mxu1 }
 0x203   : > { %v5403_v26 = vadd.f32 %v5402_v25, %v5401_v24  ;;  %v5404_v27 = vpop.f32.mrb[46].mxu1  ;;  %v4298_v25 = vld [vmem:[%s7884_s2] sm:$0x7] }
 0x204   : > { %v5405_v30 = vpop.f32.mrb[47].mxu1 }
 0x205   : > { %v2813_v52 = vadd.f32 %v5403_v26, %v2764_v35  ;;  %v5406_v1 = vadd.f32 %v5405_v30, %v5404_v27 }
 0x207   : > { %v2816_v14 = vadd.f32 %v5406_v1, %v2767_v13 }
 0x219   : > { %v5423_v31 = vpop.f32.mrb[48].mxu1 }
 0x21a   : > { %v5424_v29 = vpop.f32.mrb[49].mxu1 }
 0x21b   : > { %v5425_v17 = vadd.f32 %v5424_v29, %v5423_v31  ;;  %v5426_v32 = vpop.f32.mrb[50].mxu1 }
 0x21c   : > { %v5427_v33 = vpop.f32.mrb[51].mxu1 }
 0x21d   : > { %v2854_v28 = vadd.f32 %v5425_v17, %v2805_v53  ;;  %v5428_v20 = vadd.f32 %v5427_v33, %v5426_v32  ;;  %v4301_v53 = vshrl.u32 %v4300_v19, 7 }
 0x21f   : > { %v2857_v43 = vadd.f32 %v5428_v20, %v2808_v21  ;;  %v4310_v21 = vsub.s32 2, %v4301_v53 }
 0x221   : > { %v5429_v22 = vpop.f32.mrb[52].mxu1  ;;  %v4311_v1 = vrot.slane %v4298_v25, %v4310_v21 }
 0x222   : > { %v5430_v42 = vpop.f32.mrb[53].mxu1 }
 0x223   : > { %v5431_v37 = vadd.f32 %v5430_v42, %v5429_v22  ;;  %v5432_v38 = vpop.f32.mrb[54].mxu1 }
 0x224   : > { %v5433_v55 = vpop.f32.mrb[55].mxu1 }
 0x225   : > { %v2862_v40 = vadd.f32 %v5431_v37, %v2813_v52  ;;  %v5434_v34 = vadd.f32 %v5433_v55, %v5432_v38 }
 0x227   : > { %v2865_v36 = vadd.f32 %v5434_v34, %v2816_v14 }
 0x239   : > { %v5451_v44 = vpop.f32.mrb[56].mxu1 }
 0x23a   : > { %v5452_v16 = vpop.f32.mrb[57].mxu1 }
 0x23b   : > { %v5453_v8 = vadd.f32 %v5452_v16, %v5451_v44  ;;  %v5454_v46 = vpop.f32.mrb[58].mxu1 }
 0x23c   : > { %v5455_v47 = vpop.f32.mrb[59].mxu1 }
 0x23d   : > { %v5456_v6 = vadd.f32 %v5455_v47, %v5454_v46 }
 0x241   : > { %v5457_v50 = vpop.f32.mrb[60].mxu1 }
 0x242   : > { %v5458_v51 = vpop.f32.mrb[61].mxu1 }
 0x243   : > { %v5459_v9 = vadd.f32 %v5458_v51, %v5457_v50  ;;  %v5460_v56 = vpop.f32.mrb[62].mxu1  ;;  %v4302_v51 = vsub.s32 0, %v4301_v53 }
 0x244   : > { %v5461_v60 = vpop.f32.mrb[63].mxu1 }
 0x245   : > { %v5462_v18 = vadd.f32 %v5461_v60, %v5460_v56  ;;  %v4303_v56 = vrot.slane %v4298_v25, %v4302_v51 }
 0x259   : > { %v5479_v0 = vpop.f32.mrb[64].mxu1 }
 0x25a   : > { %v5480_v2 = vpop.f32.mrb[65].mxu1 }
 0x25b   : > { %v5481_v4 = vadd.f32 %v5480_v2, %v5479_v0  ;;  %v5482_v5 = vpop.f32.mrb[66].mxu1 }
 0x25c   : > { %v5483_v7 = vpop.f32.mrb[67].mxu1 }
 0x25d   : > { %v4223_v58 = vadd.f32 %v5481_v4, %v5453_v8  ;;  %v5484_v10 = vadd.f32 %v5483_v7, %v5482_v5 }
 0x25f   : > { %v4226_v11 = vadd.f32 %v5484_v10, %v5456_v6 }
 0x261   : > { %v5485_v59 = vpop.f32.mrb[68].mxu1 }
 0x262   : > { %v5486_v35 = vpop.f32.mrb[69].mxu1 }
 0x263   : > { %v5487_v39 = vadd.f32 %v5486_v35, %v5485_v59  ;;  %v5488_v13 = vpop.f32.mrb[70].mxu1 }
 0x264   : > { %v5489_v15 = vpop.f32.mrb[71].mxu1 }
 0x265   : > { %v4231_v61 = vadd.f32 %v5487_v39, %v5459_v9  ;;  %v5490_v45 = vadd.f32 %v5489_v15, %v5488_v13  ;;  %v4306_v9 = vsub.s32 1, %v4301_v53 }
 0x267   : > { %v4234_v12 = vadd.f32 %v5490_v45, %v5462_v18  ;;  %v4307_v18 = vrot.slane %v4298_v25, %v4306_v9 }
 0x279   : > { %v5507_v62 = vpop.f32.mrb[72].mxu1 }
 0x27a   : > { %v5508_v24 = vpop.f32.mrb[73].mxu1 }
 0x27b   : > { %v5509_v26 = vadd.f32 %v5508_v24, %v5507_v62  ;;  %v5510_v27 = vpop.f32.mrb[74].mxu1 }
 0x27c   : > { %v5511_v30 = vpop.f32.mrb[75].mxu1 }
 0x27d   : > { %v4272_v52 = vadd.f32 %v5509_v26, %v4223_v58  ;;  %v5512_v14 = vadd.f32 %v5511_v30, %v5510_v27 }
 0x27f   : > { %v4288_v31 = vadd.f32 %v4272_v52, %v2854_v28  ;;  %v4275_v29 = vadd.f32 %v5512_v14, %v4226_v11 }
 0x281   : > { %v4317_v17 = vadd.f32 %v4311_v1, %v4288_v31  ;;  %v4291_v32 = vadd.f32 %v4275_v29, %v2857_v43  ;;  %v5513_v33 = vpop.f32.mrb[76].mxu1 }
 0x282   : > { %v5514_v20 = vpop.f32.mrb[77].mxu1 }
 0x283   : > { %v4329_v22 = vmax.f32 %v4317_v17, 0.0  ;;  %v4320_v42 = vadd.f32 %v4311_v1, %v4291_v32  ;;  %v5515_v37 = vadd.f32 %v5514_v20, %v5513_v33  ;;  %v5516_v38 = vpop.f32.mrb[78].mxu1 }
 0x284   : > { %v5517_v55 = vpop.f32.mrb[79].mxu1 }
 0x285   : > { %4341 = vst [vmem:[%s7857_s7 + $0x10] sm:$0xff] %v4329_v22  ;;  %v4332_v28 = vmax.f32 %v4320_v42, 0.0  ;;  %v4280_v34 = vadd.f32 %v5515_v37, %v4231_v61  ;;  %v5518_v43 = vadd.f32 %v5517_v55, %v5516_v38 }
 0x287   : > { %4344 = vst [vmem:[%s7857_s7 + $0x28] sm:$0xff] %v4332_v28  ;;  %v4294_v44 = vadd.f32 %v4280_v34, %v2862_v40  ;;  %v4283_v16 = vadd.f32 %v5518_v43, %v4234_v12 }
 0x289   : > { %v4323_v8 = vadd.f32 %v4311_v1, %v4294_v44  ;;  %v4297_v46 = vadd.f32 %v4283_v16, %v2865_v36 }
 0x28b   : > { %v4335_v47 = vmax.f32 %v4323_v8, 0.0  ;;  %v4326_v6 = vadd.f32 %v4311_v1, %v4297_v46 }
 0x28d   : > { %4347 = vst [vmem:[%s7857_s7 + $0x40] sm:$0xff] %v4335_v47  ;;  %v4338_v50 = vmax.f32 %v4326_v6, 0.0 }
 0x28f   : > { %4350 = vst [vmem:[%s7857_s7 + $0x58] sm:$0x1] %v4338_v50 }
 0x29a   : > { %v4120_v60 = vpop.f32.mrb[0].mxu0 }
 0x29b   : > { %v5519_v0 = vadd.f32 %v4120_v60, %v7521_v54  ;;  %v4122_v2 = vpop.f32.mrb[1].mxu0 }
 0x29c   : > { %v5520_v40 = vadd.f32 %v4122_v2, %v7529_v41  ;;  %v4124_v4 = vpop.f32.mrb[2].mxu0 }
 0x29d   : > { %v4315_v36 = vadd.f32 %v5519_v0, %v4303_v56  ;;  %v5521_v5 = vadd.f32 %v4124_v4, %v7534_v63  ;;  %v4126_v7 = vpop.f32.mrb[3].mxu0 }
 0x29e   : > { %v4316_v58 = vadd.f32 %v5520_v40, %v4307_v18  ;;  %v5522_v10 = vadd.f32 %v4126_v7, %v7539_v3 }
 0x29f   : > { %v4327_v11 = vmax.f32 %v4315_v36, 0.0  ;;  %v4318_v59 = vadd.f32 %v5521_v5, %v4303_v56 }
 0x2a0   : > { %v4328_v35 = vmax.f32 %v4316_v58, 0.0  ;;  %v4319_v39 = vadd.f32 %v5522_v10, %v4307_v18 }
 0x2a1   : > { %4339 = vst [vmem:[%s7857_s7] sm:$0xff] %v4327_v11  ;;  %v4330_v13 = vmax.f32 %v4318_v59, 0.0 }
 0x2a2   : > { %4340 = vst [vmem:[%s7857_s7 + $0x8] sm:$0xff] %v4328_v35  ;;  %v4331_v54 = vmax.f32 %v4319_v39, 0.0  ;;  %v4130_v15 = vpop.f32.mrb[4].mxu0 }
 0x2a3   : > { %4342 = vst [vmem:[%s7857_s7 + $0x18] sm:$0xff] %v4330_v13  ;;  %v5523_v41 = vadd.f32 %v4130_v15, %v7553_v48  ;;  %v4132_v63 = vpop.f32.mrb[5].mxu0 }
 0x2a4   : > { %4343 = vst [vmem:[%s7857_s7 + $0x20] sm:$0xff] %v4331_v54  ;;  %v5524_v61 = vadd.f32 %v4132_v63, %v7555_v49  ;;  %v4134_v3 = vpop.f32.mrb[6].mxu0 }
 0x2a5   : > { %v4321_v45 = vadd.f32 %v5523_v41, %v4303_v56  ;;  %v5525_v12 = vadd.f32 %v4134_v3, %v7563_v23  ;;  %v4136_v19 = vpop.f32.mrb[7].mxu0 }
 0x2a6   : > { %v4322_v53 = vadd.f32 %v5524_v61, %v4307_v18  ;;  %v5526_v62 = vadd.f32 %v4136_v19, %v7571_v57 }
 0x2a7   : > { %v4333_v21 = vmax.f32 %v4321_v45, 0.0  ;;  %v4324_v24 = vadd.f32 %v5525_v12, %v4303_v56 }
 0x2a8   : > { %v4334_v25 = vmax.f32 %v4322_v53, 0.0  ;;  %v4325_v26 = vadd.f32 %v5526_v62, %v4307_v18 }
 0x2a9   : > { %4345 = vst [vmem:[%s7857_s7 + $0x30] sm:$0xff] %v4333_v21  ;;  %v4336_v48 = vmax.f32 %v4324_v24, 0.0 }
 0x2aa   : > { %4346 = vst [vmem:[%s7857_s7 + $0x38] sm:$0xff] %v4334_v25  ;;  %v4337_v27 = vmax.f32 %v4325_v26, 0.0 }
 0x2ab   : > { %4348 = vst [vmem:[%s7857_s7 + $0x48] sm:$0x1] %v4336_v48 }
 0x2ac   : > { %4349 = vst [vmem:[%s7857_s7 + $0x50] sm:$0x1] %v4337_v27 }
 0x2ad PF: > { %s13_s12 = sadd.s32 1, %s6223_s12  }
 0x2ae   : > { %p10_p4 = scmp.ge.s32.totalorder %s13_s12, 4  }
 0x2b0   :  { %12 = sbr.rel (!%p10_p4) target bundleno = 1 (0x1), region = 64 }

</bundles_post_ra>
